<compile_context>
chip_gen: v7x
topology: tpu7x:2x2x1
jax: 0.10.0
libtpu: 0.0.40
codegen_flags: <defaults>
</compile_context>

<pallas_src>
import jax
import jax.numpy as jnp
import numpy as np
from jax import lax
from jax.experimental import pallas as pl
from jax.experimental.pallas import tpu as pltpu


def _round_up(x, m):
    return ((x + m - 1) // m) * m


_NT_DIMS = (((1,), (1,)), ((), ()))          # A[., T] @ B[., T]^T (contract lanes)
_HIGHEST = jax.lax.Precision.HIGHEST


def _make_tsne_kernel(sigma, num_nodes_p, num_graphs, s_all, edge_tile):
    neg_inv_2s2 = -1.0 / (2.0 * float(sigma) ** 2)
    two_np = 2 * num_nodes_p

    def dot_scatter(a, b):   # a[C, T] @ mask[S, T]^T -> [C, S]   (segment sum)
        return lax.dot_general(a, b, _NT_DIMS, precision=_HIGHEST,
                               preferred_element_type=jnp.float32)

    def dot_gather(a, b):    # table[C, S] @ mask[S, T] -> [C, T] (gather back)
        return jnp.dot(a, b, precision=_HIGHEST,
                       preferred_element_type=jnp.float32)

    def kernel(d_ref, src_ref, dst_ref, g_ref, ne_ref, ptab_ref, out_ref,
               seg_ref, klg_ref):
        phase = pl.program_id(0)             # 0: accumulate sums, 1: KL
        t = pl.program_id(1)                 # edge tile
        nt = pl.num_programs(1)

        @pl.when((phase == 0) & (t == 0))
        def _init():
            seg_ref[...] = jnp.zeros_like(seg_ref)
            klg_ref[...] = jnp.zeros_like(klg_ref)

        # ---- shared per-tile work ---------------------------------------
        # combined one-hot membership mask [S_all, T]:
        #   row src[e]             -> src-node segment
        #   row Np + dst[e]        -> dst-node segment
        #   row 2*Np + graph[e]    -> per-graph segment
        row = lax.broadcasted_iota(jnp.int32, (s_all, edge_tile), 0)
        hit = ((row == src_ref[...])
               | (row == dst_ref[...] + num_nodes_p)
               | (row == g_ref[...] + two_np))
        mask = jnp.where(hit, 1.0, 0.0)                       # [S_all, T] f32

        p_un = jnp.exp(d_ref[...] * neg_inv_2s2)              # [1, T]
        row8_t = lax.broadcasted_iota(jnp.int32, (8, edge_tile), 0)

        # ---- phase 0: accumulate per-node / per-graph sums (MXU) --------
        @pl.when(phase == 0)
        def _accumulate():
            # rows 2..2+D-1 of ptab hold (+pos | -pos | 0), so this matmul
            # yields pos[src] - pos[dst] per coordinate directly.
            diff = dot_gather(ptab_ref[...], mask)            # [8, T]
            eu2 = jnp.sum(diff * diff, axis=0, keepdims=True)
            q_un = 1.0 / (1.0 + eu2)
            vals = jnp.where(row8_t == 0, p_un,
                             jnp.where(row8_t == 1, q_un, 0.0))   # [8, T]
            seg_ref[...] += dot_scatter(vals, mask)           # [8, S_all]

        # ---- phase 1: normalize, KL, per-graph reduction ----------------
        @pl.when(phase == 1)
        def _kl():
            col = lax.broadcasted_iota(jnp.int32, (1, s_all), 1)
            seg = seg_ref[...]
            ns = seg[0:1, :]                  # node p-sums on node columns
            qs = seg[1:2, :]                  # graph q-sums on graph columns
            n_ok = (col < two_np) & (ns > 0.0)
            g_ok = (col >= two_np) & (qs > 0.0)
            inv_n = jnp.where(n_ok, 1.0 / jnp.where(n_ok, ns, 1.0), 0.0)
            inv_q = jnp.where(g_ok, 1.0 / jnp.where(g_ok, qs, 1.0), 0.0)

            # single gather matmul: row0 = 1/sum_src + 1/sum_dst, row1 =
            # 1/q_graph_sum, rows 2.. = coordinate differences.
            row8_s = lax.broadcasted_iota(jnp.int32, (8, s_all), 0)
            gtab = jnp.where(row8_s == 0, inv_n,
                             jnp.where(row8_s == 1, inv_q, ptab_ref[...]))
            gath = dot_gather(gtab, mask)                     # [8, T]
            inv_pair = gath[0:1, :]
            inv_qsum = gath[1:2, :]
            d2 = jnp.where(row8_t >= 2, gath, 0.0)
            eu2 = jnp.sum(d2 * d2, axis=0, keepdims=True)
            q_un = 1.0 / (1.0 + eu2)

            p_n = p_un * inv_pair * (0.5 / ne_ref[...])
            q_n = q_un * inv_qsum
            kl = p_n * jnp.log(p_n / q_n)                     # single log

            kl8 = jnp.where(row8_t == 0, kl, 0.0)
            klg_ref[...] += dot_scatter(kl8, mask)            # [8, S_all]

            @pl.when(t == nt - 1)
            def _finalize():
                gcol = col - two_np
                valid = jnp.where((gcol >= 0) & (gcol < num_graphs), 1.0, 0.0)
                per_row = jnp.sum(klg_ref[...] * valid, axis=1, keepdims=True)
                total = jnp.sum(per_row, axis=0, keepdims=True)   # [1, 1]
                out_ref[...] = total * (1.0 / float(num_graphs))  # torch.mean

    return kernel


def _choose_edge_tile(s_all, n_edges, vmem_budget_bytes=20 * 1024 * 1024):
    # rough per-lane-column cost: f32 mask + i32 iota over S_all rows plus a
    # few dozen rows of [*, T] temporaries / double-buffered edge inputs.
    per_col = (3 * s_all + 64) * 4
    t = (vmem_budget_bytes // per_col) // 512 * 512
    t = max(512, min(8192, t))
    t = min(t, _round_up(max(n_edges, 1), 512))
    return int(t)


def tsne_score(node_pos, full_edge_attr, full_edge_index, edge_index,
               batch_vec, n_per_graph, sigma=1.0, edge_tile=None):
    """Pallas implementation of TSNEScore.forward (reduce = mean)."""
    E = int(full_edge_index.shape[1])
    N, D = int(node_pos.shape[0]), int(node_pos.shape[1])
    B = int(n_per_graph.shape[0])
    assert int(edge_index.shape[1]) == E, "module broadcasts n over full edges"
    assert D <= 6, "coordinate rows must fit the 8-row gather table"

    Np = _round_up(N + 1, 8)        # +1 dummy node for padding edges
    Bp = _round_up(B + 1, 8)        # +1 dummy graph for padding edges
    S_all = 2 * Np + Bp             # src rows | dst rows | graph rows

    if edge_tile is None:
        T = _choose_edge_tile(S_all, E)
    else:
        assert edge_tile % 128 == 0 and edge_tile >= 128
        T = int(edge_tile)
    Ep = _round_up(E, T)
    n_tiles = Ep // T

    d = full_edge_attr[:, 0].astype(jnp.float32)
    src = full_edge_index[0].astype(jnp.int32)
    dst = full_edge_index[1].astype(jnp.int32)
    gidx = batch_vec[src].astype(jnp.int32)
    n_e = n_per_graph[batch_vec[edge_index[0]]].astype(jnp.float32)

    # pad: dummy edges point at dummy node N / dummy graph B, d=0, n=1
    d_p = jnp.zeros((1, Ep), jnp.float32).at[0, :E].set(d)
    src_p = jnp.full((1, Ep), N, jnp.int32).at[0, :E].set(src)
    dst_p = jnp.full((1, Ep), N, jnp.int32).at[0, :E].set(dst)
    g_p = jnp.full((1, Ep), B, jnp.int32).at[0, :E].set(gidx)
    n_p = jnp.ones((1, Ep), jnp.float32).at[0, :E].set(n_e)

    # gather table: rows 2..2+D-1 hold +pos.T on src columns and -pos.T on
    # dst columns; rows 0/1 are replaced in-kernel by the inverse segment-sum
    # tables during phase 1.  Graph columns stay zero.
    posT = node_pos.astype(jnp.float32).T                     # [D, N]
    ptab = jnp.zeros((8, S_all), jnp.float32)
    ptab = ptab.at[2:2 + D, 0:N].set(posT)
    ptab = ptab.at[2:2 + D, Np:Np + N].set(-posT)

    kernel = _make_tsne_kernel(sigma, Np, B, S_all, T)
    edge_spec = pl.BlockSpec((1, T), lambda ph, t: (0, t))

    out = pl.pallas_call(
        kernel,
        out_shape=jax.ShapeDtypeStruct((1, 1), jnp.float32),
        grid_spec=pltpu.PrefetchScalarGridSpec(
            num_scalar_prefetch=0,
            grid=(2, n_tiles),                    # (phase, edge tile)
            in_specs=[edge_spec, edge_spec, edge_spec, edge_spec, edge_spec,
                      pl.BlockSpec((8, S_all), lambda ph, t: (0, 0))],
            out_specs=pl.BlockSpec((1, 1), lambda ph, t: (0, 0)),
            scratch_shapes=[pltpu.VMEM((8, S_all), jnp.float32),   # seg sums
                            pltpu.VMEM((8, S_all), jnp.float32)],  # graph KL
        ),
        compiler_params=pltpu.CompilerParams(
            dimension_semantics=("arbitrary", "arbitrary"),
            vmem_limit_bytes=48 * 1024 * 1024),
    )(d_p, src_p, dst_p, g_p, n_p, ptab)
    return out[0, 0]


def tsne_score_reference(node_pos, full_edge_attr, full_edge_index, edge_index,
                         batch_vec, n_per_graph, sigma=1.0):
    """Pure-JAX mirror of the torch module, for sanity checking."""
    N = node_pos.shape[0]
    B = n_per_graph.shape[0]
    d = full_edge_attr[:, 0]
    p = jnp.exp(d / (-2.0 * sigma ** 2))
    src, dst = full_edge_index[0], full_edge_index[1]
    sum_src = jax.ops.segment_sum(p, src, num_segments=N)[src]
    sum_dst = jax.ops.segment_sum(p, dst, num_segments=N)[dst]
    p = (p / sum_src + p / sum_dst) / (2.0 * n_per_graph[batch_vec[edge_index[0]]])
    start, end = node_pos[src], node_pos[dst]
    eu2 = jnp.sum((end - start) ** 2, axis=1)
    gidx = batch_vec[src]
    q = 1.0 / (1.0 + eu2)
    q = q / jax.ops.segment_sum(q, gidx, num_segments=B)[gidx]
    edge_kl = (jnp.log(p) - jnp.log(q)) * p
    graph_kl = jax.ops.segment_sum(edge_kl, gidx, num_segments=B)
    return jnp.mean(graph_kl)


if __name__ == "__main__":
    # small synthetic batch: 2 graphs with 20 and 17 nodes, complete edges
    sizes = [20, 17]
    B = len(sizes)
    N = sum(sizes)
    D = 2

    src_list, dst_list, batch_list = [], [], []
    offset = 0
    for g, n in enumerate(sizes):
        for i in range(n):
            batch_list.append(g)
            for j in range(n):
                if i != j:
                    src_list.append(offset + i)
                    dst_list.append(offset + j)
        offset += n

    full_edge_index = jnp.array([src_list, dst_list], dtype=jnp.int32)
    edge_index = full_edge_index          # synthetic: edge_index aliases full edges
    batch_vec = jnp.array(batch_list, dtype=jnp.int32)
    n_per_graph = jnp.array(sizes, dtype=jnp.float32)
    E = int(full_edge_index.shape[1])

    key = jax.random.PRNGKey(0)
    k1, k2 = jax.random.split(key)
    node_pos = jax.random.normal(k1, (N, D), dtype=jnp.float32)
    # column 0 plays the role of a positive graph-theoretic distance attribute
    full_edge_attr = jax.random.uniform(k2, (E, 2), dtype=jnp.float32,
                                        minval=1.0, maxval=4.0)

    ref = jax.block_until_ready(
        tsne_score_reference(node_pos, full_edge_attr, full_edge_index,
                             edge_index, batch_vec, n_per_graph, sigma=1.0))

    # auto-chosen tile (single edge tile for this size)
    out_auto = jax.block_until_ready(
        tsne_score(node_pos, full_edge_attr, full_edge_index, edge_index,
                   batch_vec, n_per_graph, sigma=1.0))
    np.testing.assert_allclose(np.asarray(out_auto), np.asarray(ref),
                               rtol=5e-4, atol=1e-5)

    # forced small tile -> exercises multi-tile accumulation + padding edges
    out_tiled = jax.block_until_ready(
        tsne_score(node_pos, full_edge_attr, full_edge_index, edge_index,
                   batch_vec, n_per_graph, sigma=1.0, edge_tile=512))
    np.testing.assert_allclose(np.asarray(out_tiled), np.asarray(ref),
                               rtol=5e-4, atol=1e-5)

    print("KERNEL_OK")
</pallas_src>

<mosaic_0001>
module attributes {stable_mosaic.version = 11 : i64} {
  func.func @kernel(%arg0: i32, %arg1: i32, %arg2: memref<1x1024xf32, #tpu.memory_space<vmem>>, %arg3: memref<1x1024xi32, #tpu.memory_space<vmem>>, %arg4: memref<1x1024xi32, #tpu.memory_space<vmem>>, %arg5: memref<1x1024xi32, #tpu.memory_space<vmem>>, %arg6: memref<1x1024xf32, #tpu.memory_space<vmem>>, %arg7: memref<8x88xf32, #tpu.memory_space<vmem>>, %arg8: memref<1x1xf32, #tpu.memory_space<vmem>>, %arg9: memref<8x88xf32, #tpu.memory_space<vmem>>, %arg10: memref<8x88xf32, #tpu.memory_space<vmem>>) attributes {dimension_semantics = [#tpu.dimension_semantics<arbitrary>, #tpu.dimension_semantics<arbitrary>], iteration_bounds = array<i64: 2, 1>, scalar_prefetch = 0 : i64, scratch_operands = 2 : i64, tpu.core_type = #tpu.core_type<tc>, window_params = [{transform_indices = @transform_0, window_bounds = array<i64: 1, 1024>}, {transform_indices = @transform_1, window_bounds = array<i64: 1, 1024>}, {transform_indices = @transform_2, window_bounds = array<i64: 1, 1024>}, {transform_indices = @transform_3, window_bounds = array<i64: 1, 1024>}, {transform_indices = @transform_4, window_bounds = array<i64: 1, 1024>}, {pipeline_mode = #tpu.pipeline_mode<synchronous>, transform_indices = @transform_5, window_bounds = array<i64: 8, 88>}, {pipeline_mode = #tpu.pipeline_mode<synchronous>, transform_indices = @transform_6, window_bounds = array<i64: 1, 1>}]} {
    %c0_i32 = arith.constant 0 : i32
    %0 = arith.cmpi eq, %arg0, %c0_i32 : i32
    %c0_i32_0 = arith.constant 0 : i32
    %1 = arith.cmpi eq, %arg1, %c0_i32_0 : i32
    %2 = arith.andi %0, %1 : i1
    %3 = arith.extui %2 : i1 to i32
    %c0_i32_1 = arith.constant 0 : i32
    %4 = arith.cmpi ne, %3, %c0_i32_1 : i32
    scf.if %4 {
      %cst_14 = arith.constant 0.000000e+00 : f32
      %35 = vector.broadcast %cst_14 : f32 to vector<8x88xf32>
      %c0_15 = arith.constant 0 : index
      %c0_16 = arith.constant 0 : index
      %36 = vector.load %arg9[%c0_15, %c0_16] : memref<8x88xf32, #tpu.memory_space<vmem>>, vector<8x88xf32>
      tpu.vector_store %arg9[%c0_15, %c0_16], %35 {strides = array<i32>} : memref<8x88xf32, #tpu.memory_space<vmem>>, vector<8x88xf32>,
      %cst_17 = arith.constant 0.000000e+00 : f32
      %37 = vector.broadcast %cst_17 : f32 to vector<8x88xf32>
      %c0_18 = arith.constant 0 : index
      %c0_19 = arith.constant 0 : index
      %38 = vector.load %arg10[%c0_18, %c0_19] : memref<8x88xf32, #tpu.memory_space<vmem>>, vector<8x88xf32>
      tpu.vector_store %arg10[%c0_18, %c0_19], %37 {strides = array<i32>} : memref<8x88xf32, #tpu.memory_space<vmem>>, vector<8x88xf32>,
    } else {
    }
    %5 = tpu.iota {dimensions = array<i32: 0>} : vector<88x1024xi32>
    %c0 = arith.constant 0 : index
    %c0_2 = arith.constant 0 : index
    %6 = vector.load %arg3[%c0, %c0_2] : memref<1x1024xi32, #tpu.memory_space<vmem>>, vector<1x1024xi32>
    %7 = vector.broadcast %6 : vector<1x1024xi32> to vector<88x1024xi32>
    %8 = arith.cmpi eq, %5, %7 : vector<88x1024xi32>
    %c0_3 = arith.constant 0 : index
    %c0_4 = arith.constant 0 : index
    %9 = vector.load %arg4[%c0_3, %c0_4] : memref<1x1024xi32, #tpu.memory_space<vmem>>, vector<1x1024xi32>
    %c40_i32 = arith.constant 40 : i32
    %10 = vector.broadcast %c40_i32 : i32 to vector<1x1024xi32>
    %11 = arith.addi %9, %10 : vector<1x1024xi32>
    %12 = vector.broadcast %11 : vector<1x1024xi32> to vector<88x1024xi32>
    %13 = arith.cmpi eq, %5, %12 : vector<88x1024xi32>
    %14 = arith.ori %8, %13 : vector<88x1024xi1>
    %c0_5 = arith.constant 0 : index
    %c0_6 = arith.constant 0 : index
    %15 = vector.load %arg5[%c0_5, %c0_6] : memref<1x1024xi32, #tpu.memory_space<vmem>>, vector<1x1024xi32>
    %c80_i32 = arith.constant 80 : i32
    %16 = vector.broadcast %c80_i32 : i32 to vector<1x1024xi32>
    %17 = arith.addi %15, %16 : vector<1x1024xi32>
    %18 = vector.broadcast %17 : vector<1x1024xi32> to vector<88x1024xi32>
    %19 = arith.cmpi eq, %5, %18 : vector<88x1024xi32>
    %20 = arith.ori %14, %19 : vector<88x1024xi1>
    %cst = arith.constant 1.000000e+00 : f32
    %cst_7 = arith.constant 0.000000e+00 : f32
    %21 = vector.broadcast %cst : f32 to vector<88x1024xf32>
    %22 = vector.broadcast %cst_7 : f32 to vector<88x1024xf32>
    %23 = arith.select %20, %21, %22 : vector<88x1024xi1>, vector<88x1024xf32>
    %c0_8 = arith.constant 0 : index
    %c0_9 = arith.constant 0 : index
    %24 = vector.load %arg2[%c0_8, %c0_9] : memref<1x1024xf32, #tpu.memory_space<vmem>>, vector<1x1024xf32>
    %cst_10 = arith.constant -5.000000e-01 : f32
    %25 = vector.broadcast %cst_10 : f32 to vector<1x1024xf32>
    %26 = arith.mulf %24, %25 : vector<1x1024xf32>
    %27 = math.exp %26 : vector<1x1024xf32>
    %28 = tpu.iota {dimensions = array<i32: 0>} : vector<8x1024xi32>
    %c0_i32_11 = arith.constant 0 : i32
    %29 = arith.cmpi eq, %arg0, %c0_i32_11 : i32
    %30 = arith.extui %29 : i1 to i32
    %c0_i32_12 = arith.constant 0 : i32
    %31 = arith.cmpi ne, %30, %c0_i32_12 : i32
    scf.if %31 {
      %c0_14 = arith.constant 0 : index
      %c0_15 = arith.constant 0 : index
      %35 = vector.load %arg7[%c0_14, %c0_15] : memref<8x88xf32, #tpu.memory_space<vmem>>, vector<8x88xf32>
      %cst_16 = arith.constant dense<0.000000e+00> : vector<8x1024xf32>
      %36 = tpu.matmul %35, %23, %cst_16 {dimension_numbers = #tpu.dot_dimension_numbers<[1], [0], [0], [1], [0, 0, 1, 1], [], []>, precision = #tpu.contract_precision<fp32>} : vector<8x88xf32>, vector<88x1024xf32>, vector<8x1024xf32> -> vector<8x1024xf32>
      %37 = arith.mulf %36, %36 : vector<8x1024xf32>
      %cst_17 = arith.constant dense<0.000000e+00> : vector<1024xf32>
      %38 = vector.multi_reduction <add>, %37, %cst_17 [0] : vector<8x1024xf32> to vector<1024xf32>
      %39 = vector.shape_cast %38 : vector<1024xf32> to vector<1x1024xf32>
      %cst_18 = arith.constant 1.000000e+00 : f32
      %40 = vector.broadcast %cst_18 : f32 to vector<1x1024xf32>
      %41 = arith.addf %40, %39 : vector<1x1024xf32>
      %cst_19 = arith.constant 1.000000e+00 : f32
      %42 = vector.broadcast %cst_19 : f32 to vector<1x1024xf32>
      %43 = arith.divf %42, %41 : vector<1x1024xf32>
      %c0_i32_20 = arith.constant 0 : i32
      %44 = vector.broadcast %c0_i32_20 : i32 to vector<8x1024xi32>
      %45 = arith.cmpi eq, %28, %44 : vector<8x1024xi32>
      %c1_i32_21 = arith.constant 1 : i32
      %46 = vector.broadcast %c1_i32_21 : i32 to vector<8x1024xi32>
      %47 = arith.cmpi eq, %28, %46 : vector<8x1024xi32>
      %cst_22 = arith.constant 0.000000e+00 : f32
      %48 = vector.shape_cast %43 : vector<1x1024xf32> to vector<1x1024xf32>
      %49 = vector.broadcast %48 : vector<1x1024xf32> to vector<8x1024xf32>
      %50 = vector.broadcast %cst_22 : f32 to vector<8x1024xf32>
      %51 = arith.select %47, %49, %50 : vector<8x1024xi1>, vector<8x1024xf32>
      %52 = vector.shape_cast %27 : vector<1x1024xf32> to vector<1x1024xf32>
      %53 = vector.broadcast %52 : vector<1x1024xf32> to vector<8x1024xf32>
      %54 = arith.select %45, %53, %51 : vector<8x1024xi1>, vector<8x1024xf32>
      %c0_23 = arith.constant 0 : index
      %c0_24 = arith.constant 0 : index
      %55 = vector.load %arg9[%c0_23, %c0_24] : memref<8x88xf32, #tpu.memory_space<vmem>>, vector<8x88xf32>
      %cst_25 = arith.constant dense<0.000000e+00> : vector<8x88xf32>
      %56 = tpu.matmul %54, %23, %cst_25 {dimension_numbers = #tpu.dot_dimension_numbers<[1], [1], [0], [0], [0, 0, 1, 0], [], []>, precision = #tpu.contract_precision<fp32>} : vector<8x1024xf32>, vector<88x1024xf32>, vector<8x88xf32> -> vector<8x88xf32>
      %57 = arith.addf %55, %56 : vector<8x88xf32>
      %c0_26 = arith.constant 0 : index
      %c0_27 = arith.constant 0 : index
      %58 = vector.load %arg9[%c0_26, %c0_27] : memref<8x88xf32, #tpu.memory_space<vmem>>, vector<8x88xf32>
      tpu.vector_store %arg9[%c0_26, %c0_27], %57 {strides = array<i32>} : memref<8x88xf32, #tpu.memory_space<vmem>>, vector<8x88xf32>,
    } else {
    }
    %c1_i32 = arith.constant 1 : i32
    %32 = arith.cmpi eq, %arg0, %c1_i32 : i32
    %33 = arith.extui %32 : i1 to i32
    %c0_i32_13 = arith.constant 0 : i32
    %34 = arith.cmpi ne, %33, %c0_i32_13 : i32
    scf.if %34 {
      %35 = tpu.iota {dimensions = array<i32: 1>} : vector<1x88xi32>
      %c0_14 = arith.constant 0 : index
      %c0_15 = arith.constant 0 : index
      %36 = vector.load %arg9[%c0_14, %c0_15] : memref<8x88xf32, #tpu.memory_space<vmem>>, vector<8x88xf32>
      %37 = vector.extract_strided_slice %36 {offsets = [0, 0], sizes = [1, 88], strides = [1, 1]} : vector<8x88xf32> to vector<1x88xf32>
      %38 = vector.extract_strided_slice %36 {offsets = [1, 0], sizes = [1, 88], strides = [1, 1]} : vector<8x88xf32> to vector<1x88xf32>
      %c80_i32_16 = arith.constant 80 : i32
      %39 = vector.broadcast %c80_i32_16 : i32 to vector<1x88xi32>
      %40 = arith.cmpi slt, %35, %39 : vector<1x88xi32>
      %cst_17 = arith.constant 0.000000e+00 : f32
      %41 = vector.broadcast %cst_17 : f32 to vector<1x88xf32>
      %42 = arith.cmpf ogt, %37, %41 : vector<1x88xf32>
      %43 = arith.andi %40, %42 : vector<1x88xi1>
      %c80_i32_18 = arith.constant 80 : i32
      %44 = vector.broadcast %c80_i32_18 : i32 to vector<1x88xi32>
      %45 = arith.cmpi sge, %35, %44 : vector<1x88xi32>
      %cst_19 = arith.constant 0.000000e+00 : f32
      %46 = vector.broadcast %cst_19 : f32 to vector<1x88xf32>
      %47 = arith.cmpf ogt, %38, %46 : vector<1x88xf32>
      %48 = arith.andi %45, %47 : vector<1x88xi1>
      %cst_20 = arith.constant 1.000000e+00 : f32
      %49 = vector.broadcast %cst_20 : f32 to vector<1x88xf32>
      %50 = arith.select %43, %37, %49 : vector<1x88xi1>, vector<1x88xf32>
      %cst_21 = arith.constant 1.000000e+00 : f32
      %51 = vector.broadcast %cst_21 : f32 to vector<1x88xf32>
      %52 = arith.divf %51, %50 : vector<1x88xf32>
      %cst_22 = arith.constant 0.000000e+00 : f32
      %53 = vector.broadcast %cst_22 : f32 to vector<1x88xf32>
      %54 = arith.select %43, %52, %53 : vector<1x88xi1>, vector<1x88xf32>
      %cst_23 = arith.constant 1.000000e+00 : f32
      %55 = vector.broadcast %cst_23 : f32 to vector<1x88xf32>
      %56 = arith.select %48, %38, %55 : vector<1x88xi1>, vector<1x88xf32>
      %cst_24 = arith.constant 1.000000e+00 : f32
      %57 = vector.broadcast %cst_24 : f32 to vector<1x88xf32>
      %58 = arith.divf %57, %56 : vector<1x88xf32>
      %cst_25 = arith.constant 0.000000e+00 : f32
      %59 = vector.broadcast %cst_25 : f32 to vector<1x88xf32>
      %60 = arith.select %48, %58, %59 : vector<1x88xi1>, vector<1x88xf32>
      %61 = tpu.iota {dimensions = array<i32: 0>} : vector<8x88xi32>
      %c0_i32_26 = arith.constant 0 : i32
      %62 = vector.broadcast %c0_i32_26 : i32 to vector<8x88xi32>
      %63 = arith.cmpi eq, %61, %62 : vector<8x88xi32>
      %c1_i32_27 = arith.constant 1 : i32
      %64 = vector.broadcast %c1_i32_27 : i32 to vector<8x88xi32>
      %65 = arith.cmpi eq, %61, %64 : vector<8x88xi32>
      %c0_28 = arith.constant 0 : index
      %c0_29 = arith.constant 0 : index
      %66 = vector.load %arg7[%c0_28, %c0_29] : memref<8x88xf32, #tpu.memory_space<vmem>>, vector<8x88xf32>
      %67 = vector.shape_cast %60 : vector<1x88xf32> to vector<1x88xf32>
      %68 = vector.broadcast %67 : vector<1x88xf32> to vector<8x88xf32>
      %69 = arith.select %65, %68, %66 : vector<8x88xi1>, vector<8x88xf32>
      %70 = vector.shape_cast %54 : vector<1x88xf32> to vector<1x88xf32>
      %71 = vector.broadcast %70 : vector<1x88xf32> to vector<8x88xf32>
      %72 = arith.select %63, %71, %69 : vector<8x88xi1>, vector<8x88xf32>
      %cst_30 = arith.constant dense<0.000000e+00> : vector<8x1024xf32>
      %73 = tpu.matmul %72, %23, %cst_30 {dimension_numbers = #tpu.dot_dimension_numbers<[1], [0], [0], [1], [0, 0, 1, 1], [], []>, precision = #tpu.contract_precision<fp32>} : vector<8x88xf32>, vector<88x1024xf32>, vector<8x1024xf32> -> vector<8x1024xf32>
      %74 = vector.extract_strided_slice %73 {offsets = [0, 0], sizes = [1, 1024], strides = [1, 1]} : vector<8x1024xf32> to vector<1x1024xf32>
      %75 = vector.extract_strided_slice %73 {offsets = [1, 0], sizes = [1, 1024], strides = [1, 1]} : vector<8x1024xf32> to vector<1x1024xf32>
      %c2_i32 = arith.constant 2 : i32
      %76 = vector.broadcast %c2_i32 : i32 to vector<8x1024xi32>
      %77 = arith.cmpi sge, %28, %76 : vector<8x1024xi32>
      %cst_31 = arith.constant 0.000000e+00 : f32
      %78 = vector.broadcast %cst_31 : f32 to vector<8x1024xf32>
      %79 = arith.select %77, %73, %78 : vector<8x1024xi1>, vector<8x1024xf32>
      %80 = arith.mulf %79, %79 : vector<8x1024xf32>
      %cst_32 = arith.constant dense<0.000000e+00> : vector<1024xf32>
      %81 = vector.multi_reduction <add>, %80, %cst_32 [0] : vector<8x1024xf32> to vector<1024xf32>
      %82 = vector.shape_cast %81 : vector<1024xf32> to vector<1x1024xf32>
      %cst_33 = arith.constant 1.000000e+00 : f32
      %83 = vector.broadcast %cst_33 : f32 to vector<1x1024xf32>
      %84 = arith.addf %83, %82 : vector<1x1024xf32>
      %cst_34 = arith.constant 1.000000e+00 : f32
      %85 = vector.broadcast %cst_34 : f32 to vector<1x1024xf32>
      %86 = arith.divf %85, %84 : vector<1x1024xf32>
      %87 = arith.mulf %27, %74 : vector<1x1024xf32>
      %c0_35 = arith.constant 0 : index
      %c0_36 = arith.constant 0 : index
      %88 = vector.load %arg6[%c0_35, %c0_36] : memref<1x1024xf32, #tpu.memory_space<vmem>>, vector<1x1024xf32>
      %cst_37 = arith.constant 5.000000e-01 : f32
      %89 = vector.broadcast %cst_37 : f32 to vector<1x1024xf32>
      %90 = arith.divf %89, %88 : vector<1x1024xf32>
      %91 = arith.mulf %87, %90 : vector<1x1024xf32>
      %92 = arith.mulf %86, %75 : vector<1x1024xf32>
      %93 = arith.divf %91, %92 : vector<1x1024xf32>
      %94 = math.log %93 : vector<1x1024xf32>
      %95 = arith.mulf %91, %94 : vector<1x1024xf32>
      %c0_i32_38 = arith.constant 0 : i32
      %96 = vector.broadcast %c0_i32_38 : i32 to vector<8x1024xi32>
      %97 = arith.cmpi eq, %28, %96 : vector<8x1024xi32>
      %cst_39 = arith.constant 0.000000e+00 : f32
      %98 = vector.shape_cast %95 : vector<1x1024xf32> to vector<1x1024xf32>
      %99 = vector.broadcast %98 : vector<1x1024xf32> to vector<8x1024xf32>
      %100 = vector.broadcast %cst_39 : f32 to vector<8x1024xf32>
      %101 = arith.select %97, %99, %100 : vector<8x1024xi1>, vector<8x1024xf32>
      %c0_40 = arith.constant 0 : index
      %c0_41 = arith.constant 0 : index
      %102 = vector.load %arg10[%c0_40, %c0_41] : memref<8x88xf32, #tpu.memory_space<vmem>>, vector<8x88xf32>
      %cst_42 = arith.constant dense<0.000000e+00> : vector<8x88xf32>
      %103 = tpu.matmul %101, %23, %cst_42 {dimension_numbers = #tpu.dot_dimension_numbers<[1], [1], [0], [0], [0, 0, 1, 0], [], []>, precision = #tpu.contract_precision<fp32>} : vector<8x1024xf32>, vector<88x1024xf32>, vector<8x88xf32> -> vector<8x88xf32>
      %104 = arith.addf %102, %103 : vector<8x88xf32>
      %c0_43 = arith.constant 0 : index
      %c0_44 = arith.constant 0 : index
      %105 = vector.load %arg10[%c0_43, %c0_44] : memref<8x88xf32, #tpu.memory_space<vmem>>, vector<8x88xf32>
      tpu.vector_store %arg10[%c0_43, %c0_44], %104 {strides = array<i32>} : memref<8x88xf32, #tpu.memory_space<vmem>>, vector<8x88xf32>,
      %c0_i32_45 = arith.constant 0 : i32
      %106 = arith.cmpi eq, %arg1, %c0_i32_45 : i32
      %107 = arith.extui %106 : i1 to i32
      %c0_i32_46 = arith.constant 0 : i32
      %108 = arith.cmpi ne, %107, %c0_i32_46 : i32
      scf.if %108 {
        %c80_i32_47 = arith.constant 80 : i32
        %109 = vector.broadcast %c80_i32_47 : i32 to vector<1x88xi32>
        %110 = arith.subi %35, %109 : vector<1x88xi32>
        %c0_i32_48 = arith.constant 0 : i32
        %111 = vector.broadcast %c0_i32_48 : i32 to vector<1x88xi32>
        %112 = arith.cmpi sge, %110, %111 : vector<1x88xi32>
        %c2_i32_49 = arith.constant 2 : i32
        %113 = vector.broadcast %c2_i32_49 : i32 to vector<1x88xi32>
        %114 = arith.cmpi slt, %110, %113 : vector<1x88xi32>
        %115 = arith.andi %112, %114 : vector<1x88xi1>
        %cst_50 = arith.constant 1.000000e+00 : f32
        %cst_51 = arith.constant 0.000000e+00 : f32
        %116 = vector.broadcast %cst_50 : f32 to vector<1x88xf32>
        %117 = vector.broadcast %cst_51 : f32 to vector<1x88xf32>
        %118 = arith.select %115, %116, %117 : vector<1x88xi1>, vector<1x88xf32>
        %c0_52 = arith.constant 0 : index
        %c0_53 = arith.constant 0 : index
        %119 = vector.load %arg10[%c0_52, %c0_53] : memref<8x88xf32, #tpu.memory_space<vmem>>, vector<8x88xf32>
        %120 = vector.broadcast %118 : vector<1x88xf32> to vector<8x88xf32>
        %121 = arith.mulf %119, %120 : vector<8x88xf32>
        %cst_54 = arith.constant dense<0.000000e+00> : vector<8xf32>
        %122 = vector.multi_reduction <add>, %121, %cst_54 [1] : vector<8x88xf32> to vector<8xf32>
        %123 = vector.shape_cast %122 : vector<8xf32> to vector<8x1xf32>
        %cst_55 = arith.constant dense<0.000000e+00> : vector<1xf32>
        %124 = vector.multi_reduction <add>, %123, %cst_55 [0] : vector<8x1xf32> to vector<1xf32>
        %125 = vector.shape_cast %124 : vector<1xf32> to vector<1x1xf32>
        %cst_56 = arith.constant 5.000000e-01 : f32
        %126 = vector.broadcast %cst_56 : f32 to vector<1x1xf32>
        %127 = arith.mulf %125, %126 : vector<1x1xf32>
        %c0_57 = arith.constant 0 : index
        %c0_58 = arith.constant 0 : index
        %128 = vector.load %arg8[%c0_57, %c0_58] : memref<1x1xf32, #tpu.memory_space<vmem>>, vector<1x1xf32>
        tpu.vector_store %arg8[%c0_57, %c0_58], %127 {strides = array<i32>} : memref<1x1xf32, #tpu.memory_space<vmem>>, vector<1x1xf32>,
      } else {
      }
    } else {
    }
    return
  }
  func.func @transform_0(%arg0: i32, %arg1: i32) -> (i32, i32) {
    %c0_i32 = arith.constant 0 : i32
    %c0_i32_0 = arith.constant 0 : i32
    return %c0_i32, %arg1 : i32, i32
  }
  func.func @transform_1(%arg0: i32, %arg1: i32) -> (i32, i32) {
    %c0_i32 = arith.constant 0 : i32
    %c0_i32_0 = arith.constant 0 : i32
    return %c0_i32, %arg1 : i32, i32
  }
  func.func @transform_2(%arg0: i32, %arg1: i32) -> (i32, i32) {
    %c0_i32 = arith.constant 0 : i32
    %c0_i32_0 = arith.constant 0 : i32
    return %c0_i32, %arg1 : i32, i32
  }
  func.func @transform_3(%arg0: i32, %arg1: i32) -> (i32, i32) {
    %c0_i32 = arith.constant 0 : i32
    %c0_i32_0 = arith.constant 0 : i32
    return %c0_i32, %arg1 : i32, i32
  }
  func.func @transform_4(%arg0: i32, %arg1: i32) -> (i32, i32) {
    %c0_i32 = arith.constant 0 : i32
    %c0_i32_0 = arith.constant 0 : i32
    return %c0_i32, %arg1 : i32, i32
  }
  func.func @transform_5(%arg0: i32, %arg1: i32) -> (i32, i32) {
    %c0_i32 = arith.constant 0 : i32
    %c0_i32_0 = arith.constant 0 : i32
    %c0_i32_1 = arith.constant 0 : i32
    return %c0_i32, %c0_i32_0 : i32, i32
  }
  func.func @transform_6(%arg0: i32, %arg1: i32) -> (i32, i32) {
    %c0_i32 = arith.constant 0 : i32
    %c0_i32_0 = arith.constant 0 : i32
    %c0_i32_1 = arith.constant 0 : i32
    return %c0_i32, %c0_i32_0 : i32, i32
  }
}

</mosaic_0001>

<bundles_post_ra>
// kernel: tpu_custom_call.1
= control target key start
LH: loop header
LB: loop body
LE: loop exit
PB: predicated region body
PF: predicated region fallthrough
CT: control target
= control target key end

     0   :  { %11 = vsyncpa [#allocation5], 0  ;;  %s23254_s0 = inlined_call_operand.hbm [shape: f32[1,1024], index: 0, kind: input, shape index: {}]   ;;  %s23255_s1 = inlined_call_operand.hbm [shape: s32[1,1024], index: 1, kind: input, shape index: {}]   ;;  %s23256_s2 = inlined_call_operand.hbm [shape: s32[1,1024], index: 2, kind: input, shape index: {}]   ;;  %s23257_s3 = inlined_call_operand.vmem [shape: s32[1,1024], index: 3, kind: input, shape index: {}]   ;;  %s23258_s4 = inlined_call_operand.hbm [shape: f32[1,1024], index: 4, kind: input, shape index: {}]   ;;  %s23259_s5 = inlined_call_operand.vmem [shape: f32[8,88], index: 5, kind: input, shape index: {}]   ;;  %s23260_s6 = inlined_call_operand.hbm [shape: f32[1,1], index: 6, kind: output, shape index: {}]  }
   0x1   :  { %12 = vsyncpa [#allocation8], 0 }
   0x2   :  { %13 = vsyncpa [#allocation11], 0 }
   0x3   :  { %14 = vsyncpa [#allocation6], 0  ;;  %s14551_s21 = smov 0   ;;  %s14553_s22 = smov 0  }
   0x4   :  { %s14555_s23 = smov 0  }
   0x5 LB: > { %s14502_s24 = smov [#allocation7]   ;;  %s11122_s26 = sadd.s32 4294967295, %s14500_s23   ;;  %s14500_s23 = sphi %s14555_s23, %s20_s23   ;;  %s14496_s22 = sphi %s14553_s22, %s27297_s22   ;;  %s14492_s21 = sphi %s14551_s21, %s27296_s21  }
   0x6   : > { %s239_s25 = sshll.u32 %s14502_s24, 4  ;;  %p11123_p0 = scmp.ge.s32.totalorder %s14500_s23, 1  ;;  %s240_s25 = int_to_ptr.vmem [resolvable:$true] %s239_s25 }
   0x7   : > { %p209_p1 = scmp.lt.s32.totalorder %s14500_s23, 3  ;;  %p14571_p2 = scmp.eq.s32.totalorder %s11122_s26, 0 }
   0x8   : > { %s32_s29 = sadd.s32 1, %s14496_s22  ;;  %s14503_s8 = smov [#allocation4]  }
   0x9   : > { %s24347_s27 = scalar_select %p14571_p2, 1, 0 }
   0xa   : > { %p14575_p3 = pnand %p11123_p0, %p209_p1  ;;  %p14588_p6 = scmp.ge.s32.totalorder %s32_s29, 2 }
   0xb   : > { %s225_s9 = sshll.u32 %s14503_s8, 4  ;;  %s14324_s12 = scalar_lea.hbm %s23255_s1, 128  ;;  %s14592_s9 = int_to_ptr.vmem [resolvable:$true] %s225_s9 }
   0xc   : > { %s24348_s28 = scalar_select %p14575_p3, 1, 0 }
   0xd   : > { %p14219_p4 = pneg %p14575_p3  ;;  %p14325_p7 = scmp.ne.s32.totalorder %s23255_s1, %s14324_s12 }
   0xe   : > { %s24350_s7 = scalar_select %p14588_p6, 1, 0 }
   0xf   : > { %p14584_p5 = pnand %p14571_p2, %p14219_p4  ;;  %p14331_p11 = scmp.lt.u32.totalorder %s14324_s12, %s23255_s1 }
  0x11   : > { %p14602_p8 = pneg %p14584_p5 }
  0x13   : > { %p14327_p9 = pnand %p14602_p8, %p14325_p7 }
  0x15   : > { %p14328_p10 = pneg %p14327_p9 }
  0x17   : > { %p14333_p12 = pnand %p14331_p11, %p14328_p10 }
  0x19   : > { %14336 = shalt.err (!%p14333_p12)
}
  0x1a   : > { %s14337_s18 = scalar_lea.vmem %s240_s25, 128  ;;  %p14345_p4 = scmp.lt.s32.totalorder %s240_s25, %s240_s25 }
  0x1b   : > { %p14338_p13 = scmp.ne.s32.totalorder %s240_s25, %s14337_s18  ;;  %p14346_p2 = scmp.lt.s32.totalorder %s14337_s18, %s14337_s18 }
  0x1d   : > { %p14340_p0 = pnand %p14338_p13, %p14602_p8  ;;  %p14347_p3 = por %p14346_p2, %p14345_p4 }
  0x1f   : > { %p14341_p1 = pneg %p14340_p0 }
  0x21   : > { %p14348_p6 = pnand %p14347_p3, %p14341_p1 }
  0x23   : > { %14351 = shalt.err (!%p14348_p6)
}
  0x24   : > { %14225 = dma.hbm_to_vmem [thread:$0]  (!%p14584_p5), %s23255_s1, 128, %s240_s25, [#allocation8]  }
  0x25   : > { %p24352_p7 = scmp.ne.s32.totalorder %s24350_s7, 0  ;;  %s14352_s10 = scalar_lea.hbm %s23254_s0, 128 }
  0x26   : > { %p14353_p2 = scmp.ne.s32.totalorder %s23254_s0, %s14352_s10  ;;  %p14359_p9 = scmp.lt.u32.totalorder %s14352_s10, %s23254_s0 }
  0x27   : > { %s27299_s29 = smov (%p24352_p7, %s32_s29), 0 }
  0x28   : > { %p14355_p3 = pnand %p14353_p2, %p14602_p8 }
  0x2a   : > { %p14356_p6 = pneg %p14355_p3 }
  0x2c   : > { %p14361_p10 = pnand %p14359_p9, %p14356_p6 }
  0x2e   : > { %14364 = shalt.err (!%p14361_p10)
}
  0x2f   : > { %s14365_s25 = scalar_lea.vmem %s14592_s9, 128  ;;  %p14373_p0 = scmp.lt.s32.totalorder %s14592_s9, %s14592_s9 }
  0x30   : > { %p14366_p11 = scmp.ne.s32.totalorder %s14592_s9, %s14365_s25  ;;  %p14374_p1 = scmp.lt.s32.totalorder %s14365_s25, %s14365_s25 }
  0x32   : > { %p14368_p12 = pnand %p14366_p11, %p14602_p8  ;;  %p14375_p4 = por %p14374_p1, %p14373_p0 }
  0x34   : > { %p14369_p13 = pneg %p14368_p12 }
  0x36   : > { %p14376_p7 = pnand %p14375_p4, %p14369_p13 }
  0x38   : > { %14379 = shalt.err (!%p14376_p7)
}
  0x39   : > { %14222 = dma.hbm_to_vmem [thread:$0]  (!%p14584_p5), %s23254_s0, 128, %s14592_s9, [#allocation5]  }
  0x3a   : > { %s14504_s17 = smov [#allocation9]   ;;  %s14505_s19 = smov [#allocation10]  }
  0x3b   : > { %s253_s18 = sshll.u32 %s14504_s17, 4  ;;  %s275_s20 = sshll.u32 %s14505_s19, 4  ;;  %s254_s18 = int_to_ptr.vmem [resolvable:$true] %s253_s18  ;;  %s276_s20 = int_to_ptr.vmem [resolvable:$true] %s275_s20 }
  0x3c   : > { %s14380_s10 = scalar_lea.hbm %s23256_s2, 128 }
  0x3d   : > { %p14381_p2 = scmp.ne.s32.totalorder %s23256_s2, %s14380_s10  ;;  %p14387_p9 = scmp.lt.u32.totalorder %s14380_s10, %s23256_s2 }
  0x3f   : > { %p14383_p3 = pnand %p14381_p2, %p14602_p8 }
  0x41   : > { %p14384_p6 = pneg %p14383_p3 }
  0x43   : > { %p14389_p10 = pnand %p14387_p9, %p14384_p6 }
  0x45   : > { %14392 = shalt.err (!%p14389_p10)
}
  0x46   : > { %s14393_s9 = scalar_lea.vmem %s254_s18, 128  ;;  %p14401_p0 = scmp.lt.s32.totalorder %s254_s18, %s254_s18 }
  0x47   : > { %p14394_p11 = scmp.ne.s32.totalorder %s254_s18, %s14393_s9  ;;  %p14402_p1 = scmp.lt.s32.totalorder %s14393_s9, %s14393_s9 }
  0x49   : > { %p14396_p12 = pnand %p14394_p11, %p14602_p8  ;;  %p14403_p4 = por %p14402_p1, %p14401_p0 }
  0x4b   : > { %p14397_p13 = pneg %p14396_p12 }
  0x4d   : > { %p14404_p7 = pnand %p14403_p4, %p14397_p13 }
  0x4f   : > { %14407 = shalt.err (!%p14404_p7)
}
  0x50   : > { %14228 = dma.hbm_to_vmem [thread:$0]  (!%p14584_p5), %s23256_s2, 128, %s254_s18, [#allocation8]  }
  0x51   : > { %s14408_s19 = scalar_lea.hbm %s23258_s4, 128 }
  0x52   : > { %p14409_p2 = scmp.ne.s32.totalorder %s23258_s4, %s14408_s19  ;;  %p14415_p9 = scmp.lt.u32.totalorder %s14408_s19, %s23258_s4 }
  0x54   : > { %p14411_p3 = pnand %p14409_p2, %p14602_p8 }
  0x56   : > { %p14412_p6 = pneg %p14411_p3 }
  0x58   : > { %p14417_p10 = pnand %p14415_p9, %p14412_p6 }
  0x5a   : > { %14420 = shalt.err (!%p14417_p10)
}
  0x5b   : > { %s14421_s12 = scalar_lea.vmem %s276_s20, 128  ;;  %p14429_p0 = scmp.lt.s32.totalorder %s276_s20, %s276_s20 }
  0x5c   : > { %p14422_p11 = scmp.ne.s32.totalorder %s276_s20, %s14421_s12  ;;  %p14430_p1 = scmp.lt.s32.totalorder %s14421_s12, %s14421_s12 }
  0x5e   : > { %p14424_p12 = pnand %p14422_p11, %p14602_p8  ;;  %p14431_p4 = por %p14430_p1, %p14429_p0 }
  0x60   : > { %p14425_p13 = pneg %p14424_p12 }
  0x62   : > { %p14432_p7 = pnand %p14431_p4, %p14425_p13 }
  0x64   : > { %14435 = shalt.err (!%p14432_p7)
}
  0x65   : > { %14231 = dma.hbm_to_vmem [thread:$0]  (!%p14584_p5), %s23258_s4, 128, %s276_s20, [#allocation11]  }
  0x66   : > { %p24353_p2 = scmp.ne.s32.totalorder %s24348_s28, 0 }
  0x68   : > { %291 = sbr.rel (%p24353_p2) target bundleno = 2992 (0xbb0), region = 44 }
  0x6f   : > { %p24354_p3 = scmp.ne.s32.totalorder %s24347_s27, 0 }
  0x71   : > { %14475 = dma.done.wait (%p24354_p3), [#allocation5], 128  }
  0x72   : > { %14477 = vsyncadd (%p24354_p3), [#allocation5], 4294967168 }
  0x73   : > { %14479 = dma.done.wait (%p24354_p3), [#allocation8], 256  }
  0x74   : > { %14481 = vsyncadd (%p24354_p3), [#allocation8], 4294967040 }
  0x75   : > { %14483 = dma.done.wait (%p24354_p3), [#allocation11], 128  }
  0x76   : > { %14485 = vsyncadd (%p24354_p3), [#allocation11], 4294967168  ;;  %p336_p5 = scmp.eq.s32.totalorder %s14492_s21, 0 }
  0x77   : > { %vm342_vm0 = vcmask (%p336_p5), 719872   ;;  %v14506_v0 = vmov (%p336_p5), 0.0  }
  0x78   : > { %341 = sbr.rel (!%p336_p5) target bundleno = 127 (0x7f), region = 64  ;;  %343 = vst.msk [vmem:[#allocation2] sm:$0xff] (%p336_p5), %vm342_vm0, %v14506_v0  ;;  %344 = vst.msk [vmem:[#allocation3] sm:$0xff] (%p336_p5), %vm342_vm0, %v14506_v0 }
  0x7f PF: > { %v986_v1 = vld [vmem:[#allocation4] sm:$0xff]  ;;  %v23266_v4 = vlaneseq  ;;  %v478_v7 = vld [vmem:[#allocation9] sm:$0xff]  ;;  %v357_v10 = vld [vmem:[#allocation7] sm:$0xff]  ;;  %v24379_v56 = vmov 0  ;;  %v24388_v62 = vmov 0  ;;  %v24392_v0 = vmov 0 }
  0x80   : > { %v987_v2 = vmul.f32 -0.5, %v986_v1  ;;  %v479_v9 = vadd.s32 40, %v478_v7  ;;  %v688_v14 = vld [vmem:[%s23257_s3] sm:$0xff]  ;;  %v24403_v7 = vmov 0  ;;  %v24421_v43 = vmov 0  ;;  %p11135_p8 = scmp.ne.s32.totalorder %s14492_s21, 0 }
  0x81   : > { %v14699_v6 = vshrl.u32 %v23266_v4, 7  ;;  %v14743_v24 = vadd.s32 80, %v688_v14  ;;  %v24446_v51 = vmov 0  ;;  %v24474_v58 = vmov 0 }
  0x82   : > { %v988_v3 = vmul.f32 1.442695, %v987_v2  ;;  %v24395_v2 = vmov 0  ;;  %v24483_v60 = vmov 0  ;;  %v24542_v46 = vmov 0 }
  0x83   : > { %24356 = vst [vmem:[#allocation18_spill] sm:$0xff] %v14699_v6  ;;  %v14702_v8 = vsub.s32 0, %v14699_v6  ;;  %v14705_v11 = vsub.s32 1, %v14699_v6  ;;  %v14708_v12 = vsub.s32 2, %v14699_v6  ;;  %v14711_v13 = vsub.s32 3, %v14699_v6 }
  0x84   : > { %14280 = vpow2.f32 %v988_v3  ;;  %v14720_v16 = vsub.s32 4, %v14699_v6  ;;  %v14729_v19 = vsub.s32 5, %v14699_v6  ;;  %v14738_v22 = vsub.s32 6, %v14699_v6 }
  0x85   : > { %24357 = vst [vmem:[#allocation19_spill] sm:$0xff] %v14702_v8  ;;  %24358 = vst [vmem:[#allocation20_spill] sm:$0xff] %v14705_v11  ;;  %v14717_v15 = vrot.slane %v357_v10, %v14702_v8  ;;  %v14723_v17 = vrot.slane %v479_v9, %v14702_v8  ;;  %v14726_v18 = vrot.slane %v357_v10, %v14705_v11  ;;  %v14746_v25 = vadd.s32 8, %v14699_v6 }
  0x86   : > { %24359 = vst [vmem:[#allocation21_spill] sm:$0xff] %v14708_v12  ;;  %24360 = vst [vmem:[#allocation22_spill] sm:$0xff] %v14711_v13  ;;  %v14732_v20 = vrot.slane %v479_v9, %v14705_v11  ;;  %v14735_v21 = vrot.slane %v357_v10, %v14708_v12  ;;  %v14741_v23 = vrot.slane %v479_v9, %v14708_v12  ;;  %v14752_v27 = vsub.s32 7, %v14699_v6 }
  0x87   : > { %24361 = vst [vmem:[#allocation23_spill] sm:$0xff] %v14720_v16  ;;  %24362 = vst [vmem:[#allocation24_spill] sm:$0xff] %v14729_v19  ;;  %v14749_v26 = vrot.slane %v357_v10, %v14711_v13  ;;  %v14755_v28 = vrot.slane %v479_v9, %v14711_v13  ;;  %v14758_v29 = vrot.slane %v357_v10, %v14720_v16  ;;  %v14805_v38 = vadd.s32 16, %v14699_v6 }
  0x88   : > { %24363 = vst [vmem:[#allocation25_spill] sm:$0xff] %v14738_v22  ;;  %24364 = vst [vmem:[#allocation26_spill] sm:$0xff] %v14752_v27  ;;  %vm390_vm1 = vcmp.eq.s32.totalorder %v14699_v6, %v14717_v15  ;;  %v14763_v30 = vrot.slane %v479_v9, %v14720_v16  ;;  %vm512_vm2 = vcmp.eq.s32.totalorder %v14699_v6, %v14723_v17  ;;  %v14808_v39 = vadd.s32 24, %v14699_v6 }
  0x89   : > { %v14768_v31 = vrot.slane %v357_v10, %v14729_v19  ;;  %vm391_vm3 = vcmp.eq.s32.totalorder %v14699_v6, %v14726_v18  ;;  %v14773_v32 = vrot.slane %v479_v9, %v14729_v19  ;;  %vm513_vm4 = vcmp.eq.s32.totalorder %v14699_v6, %v14732_v20  ;;  %vm14800_vm9 = vmor %vm390_vm1, %vm512_vm2 }
  0x8a   : > { %v14778_v33 = vrot.slane %v357_v10, %v14738_v22  ;;  %vm392_vm5 = vcmp.eq.s32.totalorder %v14699_v6, %v14735_v21  ;;  %v14783_v34 = vrot.slane %v479_v9, %v14738_v22  ;;  %vm514_vm6 = vcmp.eq.s32.totalorder %v14699_v6, %v14741_v23  ;;  %vm14817_vm12 = vmor %vm391_vm3, %vm513_vm4 }
  0x8b   : > { %v14788_v35 = vrot.slane %v357_v10, %v14752_v27  ;;  %vm393_vm7 = vcmp.eq.s32.totalorder %v14699_v6, %v14749_v26  ;;  %v14793_v36 = vrot.slane %v479_v9, %v14752_v27  ;;  %vm515_vm8 = vcmp.eq.s32.totalorder %v14699_v6, %v14755_v28  ;;  %vm14837_vm15 = vmor %vm392_vm5, %vm514_vm6 }
  0x8c   : > { %vm394_vm10 = vcmp.eq.s32.totalorder %v14699_v6, %v14758_v29  ;;  %vm516_vm11 = vcmp.eq.s32.totalorder %v14699_v6, %v14763_v30  ;;  %v14822_v41 = vadd.s32 32, %v14699_v6  ;;  %v14825_v42 = vadd.s32 40, %v14699_v6  ;;  %vm14857_vm2 = vmor %vm393_vm7, %vm515_vm8 }
  0x8d   : > { %vm395_vm13 = vcmp.eq.s32.totalorder %v14699_v6, %v14768_v31  ;;  %vm517_vm14 = vcmp.eq.s32.totalorder %v14699_v6, %v14773_v32  ;;  %v14842_v44 = vadd.s32 48, %v14699_v6  ;;  %v14845_v45 = vadd.s32 56, %v14699_v6  ;;  %vm14874_vm5 = vmor %vm394_vm10, %vm516_vm11 }
  0x8e   : > { %v14696_v5 = vpop.eup %14280  ;;  %vm396_vm0 = vcmp.eq.s32.totalorder %v14699_v6, %v14778_v33  ;;  %vm518_vm1 = vcmp.eq.s32.totalorder %v14699_v6, %v14783_v34  ;;  %v14862_v47 = vadd.s32 64, %v14699_v6  ;;  %vm397_vm3 = vcmp.eq.s32.totalorder %v14699_v6, %v14788_v35  ;;  %vm14895_vm8 = vmor %vm395_vm13, %vm517_vm14 }
  0x8f   : > { %24355 = vst [vmem:[#allocation17_spill] sm:$0xff] %v14696_v5  ;;  %vm519_vm4 = vcmp.eq.s32.totalorder %v14699_v6, %v14793_v36  ;;  %v14880_v49 = vrot.slane %v14743_v24, %v14702_v8  ;;  %v14883_v50 = vadd.s32 72, %v14699_v6  ;;  %vm520_vm7 = vcmp.eq.s32.totalorder %v14746_v25, %v14723_v17  ;;  %vm14916_vm13 = vmor %vm396_vm0, %vm518_vm1 }
  0x90   : > { %v14901_v52 = vrot.slane %v14743_v24, %v14705_v11  ;;  %v14904_v53 = vadd.s32 80, %v14699_v6  ;;  %vm521_vm11 = vcmp.eq.s32.totalorder %v14746_v25, %v14732_v20  ;;  %v14922_v55 = vrot.slane %v14743_v24, %v14708_v12  ;;  %vm14936_vm0 = vmor %vm397_vm3, %vm519_vm4 }
  0x91   : > { %vm522_vm6 = vcmp.eq.s32.totalorder %v14746_v25, %v14741_v23  ;;  %v24380_v56 = vsel %vm14936_vm0, 4294967295, %v24379_v56  ;;  %v14942_v57 = vrot.slane %v14743_v24, %v14711_v13  ;;  %vm24381_vm14 = vcmp.eq.s32.totalorder %v14746_v25, %v14717_v15 }
  0x92   : > { %vm14954_vm3 = vmor %vm24381_vm14, %vm520_vm7  ;;  %v14960_v59 = vrot.slane %v14743_v24, %v14720_v16  ;;  %vm24384_vm10 = vcmp.eq.s32.totalorder %v14746_v25, %v14726_v18  ;;  %v14975_v61 = vrot.slane %v14743_v24, %v14729_v19  ;;  %vm24387_vm4 = vcmp.eq.s32.totalorder %v14746_v25, %v14735_v21 }
  0x93   : > { %vm14969_vm0 = vmor %vm24384_vm10, %vm521_vm11  ;;  %v14992_v63 = vrot.slane %v14743_v24, %v14738_v22  ;;  %vm24390_vm7 = vcmp.eq.s32.totalorder %v14746_v25, %v14755_v28  ;;  %v15012_v1 = vrot.slane %v14743_v24, %v14752_v27  ;;  %vm24394_vm1 = vcmp.eq.s32.totalorder %v14699_v6, %v14880_v49 }
  0x94   : > { %vm14986_vm10 = vmor %vm24387_vm4, %vm522_vm6  ;;  %vm24391_vm6 = vcmp.eq.s32.totalorder %v14746_v25, %v14749_v26  ;;  %vm24399_vm14 = vcmp.eq.s32.totalorder %v14746_v25, %v14758_v29  ;;  %v23268_v9 = vmov 0.0   ;;  %v24412_v24 = vmov 0 }
  0x95   : > { %v24389_v62 = vsel %vm14986_vm10, 4294967295, %v24388_v62  ;;  %vm15006_vm4 = vmor %vm24391_vm6, %vm24390_vm7  ;;  %vm24416_vm6 = vcmp.eq.s32.totalorder %v14746_v25, %v14783_v34  ;;  %v24433_v22 = vmov 0.0   ;;  %v24440_v16 = vmov 0 }
  0x96   : > { %v24393_v0 = vsel %vm15006_vm4, 4294967295, %v24392_v0  ;;  %vm15021_vm11 = vmor %vm14800_vm9, %vm24394_vm1  ;;  %vm24398_vm4 = vcmp.eq.s32.totalorder %v14746_v25, %v14763_v30  ;;  %vm24402_vm1 = vcmp.eq.s32.totalorder %v14699_v6, %v14901_v52  ;;  %vm24407_vm9 = vcmp.eq.s32.totalorder %v14746_v25, %v14773_v32 }
  0x97   : > { %v24396_v2 = vsel %vm15021_vm11, 4294967295, %v24395_v2  ;;  %vm15035_vm10 = vmor %vm24399_vm14, %vm24398_vm4  ;;  %v15053_v10 = vsel %vm15021_vm11, 1.0, %v23268_v9  ;;  %vm24411_vm11 = vcmp.eq.s32.totalorder %v14699_v6, %v14922_v55  ;;  %vm24425_vm4 = vcmp.eq.s32.totalorder %v14746_v25, %v14793_v36 }
  0x98   : > { %24397 = vst [vmem:[#allocation27_spill] sm:$0xff] %v24396_v2  ;;  %vm15046_vm7 = vmor %vm14817_vm12, %vm24402_vm1  ;;  %vm24408_vm12 = vcmp.eq.s32.totalorder %v14746_v25, %v14768_v31  ;;  %v24449_v12 = vmov 0  ;;  %v24459_v11 = vmov 0  ;;  %v24468_v8 = vmov 0 }
  0x99   : > { %v24404_v7 = vsel %vm15046_vm7, 4294967295, %v24403_v7  ;;  %24406 = vst [vmem:[#allocation29_spill] sm:$0xff] %v15053_v10  ;;  %vm15065_vm1 = vmor %vm24408_vm12, %vm24407_vm9  ;;  %v15083_v37 = vsel %vm15046_vm7, 1.0, %v23268_v9  ;;  %vm24420_vm7 = vcmp.eq.s32.totalorder %v14699_v6, %v14942_v57  ;;  %vm24435_vm12 = vcmp.eq.s32.totalorder %v14805_v38, %v14723_v17 }
  0x9a   : > { %24405 = vst [vmem:[#allocation28_spill] sm:$0xff] %v24404_v7  ;;  %vm15076_vm14 = vmor %vm14837_vm15, %vm24411_vm11  ;;  %vm24417_vm15 = vcmp.eq.s32.totalorder %v14746_v25, %v14778_v33  ;;  %v24567_v54 = vmov 0  ;;  %v24632_v14 = vmov 0  ;;  %v24660_v48 = vmov 0 }
  0x9b   : > { %v24413_v24 = vsel %vm15076_vm14, 4294967295, %v24412_v24  ;;  %24415 = vst [vmem:[#allocation31_spill] sm:$0xff] %v15083_v37  ;;  %vm15095_vm11 = vmor %vm24417_vm15, %vm24416_vm6  ;;  %v15113_v4 = vsel %vm15076_vm14, 1.0, %v23268_v9  ;;  %vm24429_vm14 = vcmp.eq.s32.totalorder %v14699_v6, %v14960_v59  ;;  %v24430_v9 = vmov 0 }
  0x9c   : > { %24414 = vst [vmem:[#allocation30_spill] sm:$0xff] %v24413_v24  ;;  %vm15106_vm9 = vmor %vm14857_vm2, %vm24420_vm7  ;;  %vm24426_vm2 = vcmp.eq.s32.totalorder %v14746_v25, %v14788_v35  ;;  %vm24444_vm15 = vcmp.eq.s32.totalorder %v14805_v38, %v14732_v20  ;;  %v24753_v40 = vmov 0  ;;  %v24846_v3 = vmov 0 }
  0x9d   : > { %v24422_v43 = vsel %vm15106_vm9, 4294967295, %v24421_v43  ;;  %24424 = vst [vmem:[#allocation33_spill] sm:$0xff] %v15113_v4  ;;  %vm15125_vm7 = vmor %vm24426_vm2, %vm24425_vm4  ;;  %v15143_v27 = vsel %vm15106_vm9, 1.0, %v24433_v22  ;;  %vm24439_vm9 = vcmp.eq.s32.totalorder %v14699_v6, %v14975_v61  ;;  %vm24453_vm2 = vcmp.eq.s32.totalorder %v14805_v38, %v14741_v23 }
  0x9e   : > { %24423 = vst [vmem:[#allocation32_spill] sm:$0xff] %v24422_v43  ;;  %vm15136_vm6 = vmor %vm14874_vm5, %vm24429_vm14  ;;  %vm24436_vm5 = vcmp.eq.s32.totalorder %v14805_v38, %v14717_v15 }
  0x9f   : > { %v24431_v9 = vsel %vm15136_vm6, 4294967295, %v24430_v9  ;;  %24434 = vst [vmem:[#allocation35_spill] sm:$0xff] %v15143_v27  ;;  %vm15155_vm14 = vmor %vm24436_vm5, %vm24435_vm12  ;;  %v15173_v19 = vsel %vm15136_vm6, 1.0, %v24433_v22  ;;  %vm24448_vm6 = vcmp.eq.s32.totalorder %v14699_v6, %v14992_v63  ;;  %vm24463_vm5 = vcmp.eq.s32.totalorder %v14805_v38, %v14755_v28 }
  0xa0   : > { %24432 = vst [vmem:[#allocation34_spill] sm:$0xff] %v24431_v9  ;;  %vm15166_vm4 = vmor %vm14895_vm8, %vm24439_vm9  ;;  %vm24445_vm8 = vcmp.eq.s32.totalorder %v14805_v38, %v14726_v18 }
  0xa1   : > { %v24441_v16 = vsel %vm15166_vm4, 4294967295, %v24440_v16  ;;  %24443 = vst [vmem:[#allocation37_spill] sm:$0xff] %v15173_v19  ;;  %vm15185_vm9 = vmor %vm24445_vm8, %vm24444_vm15  ;;  %v15203_v13 = vsel %vm15166_vm4, 1.0, %v24433_v22  ;;  %vm24457_vm4 = vcmp.eq.s32.totalorder %v14699_v6, %v15012_v1  ;;  %vm24458_vm15 = vnez %v24380_v56 }
  0xa2   : > { %24442 = vst [vmem:[#allocation36_spill] sm:$0xff] %v24441_v16  ;;  %v24447_v51 = vsel %vm15185_vm9, 4294967295, %v24446_v51  ;;  %vm15196_vm12 = vmor %vm14916_vm13, %vm24448_vm6  ;;  %vm24454_vm13 = vcmp.eq.s32.totalorder %v14805_v38, %v14735_v21  ;;  %vm24472_vm8 = vcmp.eq.s32.totalorder %v14805_v38, %v14763_v30  ;;  %v24576_v56 = vmov 0 }
  0xa3   : > { %v24450_v12 = vsel %vm15196_vm12, 4294967295, %v24449_v12  ;;  %24452 = vst [vmem:[#allocation39_spill] sm:$0xff] %v15203_v13  ;;  %vm15215_vm6 = vmor %vm24454_vm13, %vm24453_vm2  ;;  %v15233_v5 = vsel %vm15196_vm12, 1.0, %v24433_v22  ;;  %vm24467_vm12 = vcmp.eq.s32.totalorder %v14746_v25, %v14880_v49  ;;  %vm24481_vm13 = vcmp.eq.s32.totalorder %v14805_v38, %v14773_v32 }
  0xa4   : > { %24451 = vst [vmem:[#allocation38_spill] sm:$0xff] %v24450_v12  ;;  %vm15226_vm9 = vmor %vm24458_vm15, %vm24457_vm4  ;;  %vm24464_vm4 = vcmp.eq.s32.totalorder %v14805_v38, %v14749_v26  ;;  %v24477_v12 = vmov 0 }
  0xa5   : > { %v24460_v11 = vsel %vm15226_vm9, 4294967295, %v24459_v11  ;;  %24462 = vst [vmem:[#allocation41_spill] sm:$0xff] %v15233_v5  ;;  %vm15245_vm15 = vmor %vm24464_vm4, %vm24463_vm5  ;;  %v15263_v6 = vsel %vm15226_vm9, 1.0, %v24433_v22  ;;  %vm24476_vm9 = vcmp.eq.s32.totalorder %v14746_v25, %v14901_v52  ;;  %vm24491_vm4 = vcmp.eq.s32.totalorder %v14805_v38, %v14783_v34 }
  0xa6   : > { %24461 = vst [vmem:[#allocation40_spill] sm:$0xff] %v24460_v11  ;;  %vm15256_vm2 = vmor %vm14954_vm3, %vm24467_vm12  ;;  %vm24473_vm3 = vcmp.eq.s32.totalorder %v14805_v38, %v14758_v29  ;;  %v24487_v11 = vmov 0  ;;  %v24497_v5 = vmov 0 }
  0xa7   : > { %v24469_v8 = vsel %vm15256_vm2, 4294967295, %v24468_v8  ;;  %24471 = vst [vmem:[#allocation43_spill] sm:$0xff] %v15263_v6  ;;  %vm15275_vm12 = vmor %vm24473_vm3, %vm24472_vm8  ;;  %v15293_v9 = vsel %vm15256_vm2, 1.0, %v24433_v22  ;;  %vm24485_vm2 = vcmp.eq.s32.totalorder %v14746_v25, %v14922_v55  ;;  %vm24486_vm8 = vnez %v24389_v62 }
  0xa8   : > { %24470 = vst [vmem:[#allocation42_spill] sm:$0xff] %v24469_v8  ;;  %v24475_v58 = vsel %vm15275_vm12, 4294967295, %v24474_v58  ;;  %vm15286_vm5 = vmor %vm14969_vm0, %vm24476_vm9  ;;  %vm24482_vm0 = vcmp.eq.s32.totalorder %v14805_v38, %v14768_v31  ;;  %vm24501_vm3 = vcmp.eq.s32.totalorder %v14805_v38, %v14793_v36  ;;  %v24506_v6 = vmov 0 }
  0xa9   : > { %v24478_v12 = vsel %vm15286_vm5, 4294967295, %v24477_v12  ;;  %24480 = vst [vmem:[#allocation45_spill] sm:$0xff] %v15293_v9  ;;  %vm15305_vm9 = vmor %vm24482_vm0, %vm24481_vm13  ;;  %v15323_v16 = vsel %vm15286_vm5, 1.0, %v24433_v22  ;;  %vm24495_vm5 = vcmp.eq.s32.totalorder %v14746_v25, %v14942_v57  ;;  %vm24496_vm13 = vnez %v24393_v0 }
  0xaa   : > { %24479 = vst [vmem:[#allocation44_spill] sm:$0xff] %v24478_v12  ;;  %v24484_v60 = vsel %vm15305_vm9, 4294967295, %v24483_v60  ;;  %vm15316_vm12 = vmor %vm24486_vm8, %vm24485_vm2  ;;  %vm24492_vm2 = vcmp.eq.s32.totalorder %v14805_v38, %v14778_v33  ;;  %vm24510_vm0 = vcmp.eq.s32.totalorder %v14808_v39, %v14723_v17  ;;  %v24617_v0 = vmov 0 }
  0xab   : > { %v24488_v11 = vsel %vm15316_vm12, 4294967295, %v24487_v11  ;;  %24490 = vst [vmem:[#allocation47_spill] sm:$0xff] %v15323_v16  ;;  %vm15335_vm8 = vmor %vm24492_vm2, %vm24491_vm4  ;;  %v15353_v19 = vsel %vm15316_vm12, 1.0, %v24433_v22  ;;  %vm24505_vm12 = vcmp.eq.s32.totalorder %v14746_v25, %v14960_v59  ;;  %vm24519_vm2 = vcmp.eq.s32.totalorder %v14808_v39, %v14732_v20 }
  0xac   : > { %24489 = vst [vmem:[#allocation46_spill] sm:$0xff] %v24488_v11  ;;  %vm15346_vm9 = vmor %vm24496_vm13, %vm24495_vm5  ;;  %vm24502_vm5 = vcmp.eq.s32.totalorder %v14805_v38, %v14788_v35  ;;  %v24939_v62 = vmov 0 }
  0xad   : > { %v24498_v5 = vsel %vm15346_vm9, 4294967295, %v24497_v5  ;;  %24500 = vst [vmem:[#allocation49_spill] sm:$0xff] %v15353_v19  ;;  %vm15365_vm13 = vmor %vm24502_vm5, %vm24501_vm3  ;;  %v15383_v13 = vsel %vm15346_vm9, 1.0, %v24433_v22  ;;  %vm24514_vm9 = vcmp.eq.s32.totalorder %v14746_v25, %v14975_v61  ;;  %v24515_v19 = vmov 0 }
  0xae   : > { %24499 = vst [vmem:[#allocation48_spill] sm:$0xff] %v24498_v5  ;;  %vm15376_vm4 = vmor %vm15035_vm10, %vm24505_vm12  ;;  %vm24511_vm10 = vcmp.eq.s32.totalorder %v14808_v39, %v14717_v15  ;;  %vm24528_vm5 = vcmp.eq.s32.totalorder %v14808_v39, %v14741_v23 }
  0xaf   : > { %v24507_v6 = vsel %vm15376_vm4, 4294967295, %v24506_v6  ;;  %24509 = vst [vmem:[#allocation51_spill] sm:$0xff] %v15383_v13  ;;  %vm15395_vm12 = vmor %vm24511_vm10, %vm24510_vm0  ;;  %v15413_v4 = vsel %vm15376_vm4, 1.0, %v24433_v22  ;;  %vm24523_vm4 = vcmp.eq.s32.totalorder %v14746_v25, %v14992_v63  ;;  %vm24537_vm10 = vcmp.eq.s32.totalorder %v14808_v39, %v14755_v28 }
  0xb0   : > { %24508 = vst [vmem:[#allocation50_spill] sm:$0xff] %v24507_v6  ;;  %vm15406_vm3 = vmor %vm15065_vm1, %vm24514_vm9  ;;  %vm24520_vm1 = vcmp.eq.s32.totalorder %v14808_v39, %v14726_v18  ;;  %v24524_v6 = vmov 0 }
  0xb1   : > { %v24516_v19 = vsel %vm15406_vm3, 4294967295, %v24515_v19  ;;  %24518 = vst [vmem:[#allocation53_spill] sm:$0xff] %v15413_v4  ;;  %vm15425_vm9 = vmor %vm24520_vm1, %vm24519_vm2  ;;  %v15443_v4 = vsel %vm15406_vm3, 1.0, %v24433_v22  ;;  %vm24532_vm3 = vcmp.eq.s32.totalorder %v14746_v25, %v15012_v1  ;;  %v24539_v25 = vmov 0 }
  0xb2   : > { %24517 = vst [vmem:[#allocation52_spill] sm:$0xff] %v24516_v19  ;;  %vm15436_vm0 = vmor %vm15095_vm11, %vm24523_vm4  ;;  %vm24529_vm11 = vcmp.eq.s32.totalorder %v14808_v39, %v14735_v21  ;;  %v24533_v19 = vmov 0  ;;  %vm24546_vm1 = vcmp.eq.s32.totalorder %v14808_v39, %v14763_v30 }
  0xb3   : > { %v24525_v6 = vsel %vm15436_vm0, 4294967295, %v24524_v6  ;;  %24527 = vst [vmem:[#allocation55_spill] sm:$0xff] %v15443_v4  ;;  %vm15455_vm4 = vmor %vm24529_vm11, %vm24528_vm5  ;;  %v15473_v4 = vsel %vm15436_vm0, 1.0, %v24433_v22  ;;  %vm24541_vm0 = vcmp.eq.s32.totalorder %v14805_v38, %v14880_v49  ;;  %vm24556_vm11 = vcmp.eq.s32.totalorder %v14808_v39, %v14773_v32 }
  0xb4   : > { %24526 = vst [vmem:[#allocation54_spill] sm:$0xff] %v24525_v6  ;;  %vm15466_vm2 = vmor %vm15125_vm7, %vm24532_vm3  ;;  %vm24538_vm7 = vcmp.eq.s32.totalorder %v14808_v39, %v14749_v26 }
  0xb5   : > { %v24534_v19 = vsel %vm15466_vm2, 4294967295, %v24533_v19  ;;  %24536 = vst [vmem:[#allocation57_spill] sm:$0xff] %v15473_v4  ;;  %vm15485_vm3 = vmor %vm24538_vm7, %vm24537_vm10  ;;  %v15503_v6 = vsel %vm15466_vm2, 1.0, %v24433_v22  ;;  %vm24550_vm2 = vcmp.eq.s32.totalorder %v14805_v38, %v14901_v52  ;;  %vm24551_vm10 = vnez %v24447_v51 }
  0xb6   : > { %24535 = vst [vmem:[#allocation56_spill] sm:$0xff] %v24534_v19  ;;  %v24540_v25 = vsel %vm15485_vm3, 4294967295, %v24539_v25  ;;  %vm15496_vm5 = vmor %vm15155_vm14, %vm24541_vm0  ;;  %vm24547_vm14 = vcmp.eq.s32.totalorder %v14808_v39, %v14758_v29  ;;  %v24552_v19 = vmov 0  ;;  %vm24565_vm7 = vcmp.eq.s32.totalorder %v14808_v39, %v14783_v34 }
  0xb7   : > { %v24543_v46 = vsel %vm15496_vm5, 4294967295, %v24542_v46  ;;  %24545 = vst [vmem:[#allocation59_spill] sm:$0xff] %v15503_v6  ;;  %vm15515_vm0 = vmor %vm24547_vm14, %vm24546_vm1  ;;  %v15533_v4 = vsel %vm15496_vm5, 1.0, %v24433_v22  ;;  %vm24560_vm5 = vcmp.eq.s32.totalorder %v14805_v38, %v14922_v55  ;;  %v24561_v6 = vmov 0 }
  0xb8   : > { %24544 = vst [vmem:[#allocation58_spill] sm:$0xff] %v24543_v46  ;;  %vm15526_vm3 = vmor %vm24551_vm10, %vm24550_vm2  ;;  %vm24557_vm2 = vcmp.eq.s32.totalorder %v14808_v39, %v14768_v31  ;;  %vm24574_vm14 = vcmp.eq.s32.totalorder %v14808_v39, %v14793_v36  ;;  %v24669_v51 = vmov 0 }
  0xb9   : > { %v24553_v19 = vsel %vm15526_vm3, 4294967295, %v24552_v19  ;;  %24555 = vst [vmem:[#allocation61_spill] sm:$0xff] %v15533_v4  ;;  %vm15545_vm10 = vmor %vm24557_vm2, %vm24556_vm11  ;;  %v15563_v4 = vsel %vm15526_vm3, 1.0, %v24433_v22  ;;  %vm24569_vm3 = vcmp.eq.s32.totalorder %v14805_v38, %v14942_v57  ;;  %vm24584_vm2 = vcmp.eq.s32.totalorder %v14822_v41, %v14723_v17 }
  0xba   : > { %24554 = vst [vmem:[#allocation60_spill] sm:$0xff] %v24553_v19  ;;  %vm15556_vm1 = vmor %vm15215_vm6, %vm24560_vm5  ;;  %vm24566_vm6 = vcmp.eq.s32.totalorder %v14808_v39, %v14778_v33 }
  0xbb   : > { %v24562_v6 = vsel %vm15556_vm1, 4294967295, %v24561_v6  ;;  %24564 = vst [vmem:[#allocation63_spill] sm:$0xff] %v15563_v4  ;;  %vm15575_vm5 = vmor %vm24566_vm6, %vm24565_vm7  ;;  %v24570_v4 = vmov 0  ;;  %v15593_v46 = vsel %vm15556_vm1, 1.0, %v24433_v22  ;;  %vm24578_vm1 = vcmp.eq.s32.totalorder %v14805_v38, %v14960_v59 }
  0xbc   : > { %24563 = vst [vmem:[#allocation62_spill] sm:$0xff] %v24562_v6  ;;  %v24568_v54 = vsel %vm15575_vm5, 4294967295, %v24567_v54  ;;  %vm15586_vm11 = vmor %vm15245_vm15, %vm24569_vm3  ;;  %vm24575_vm15 = vcmp.eq.s32.totalorder %v14808_v39, %v14788_v35  ;;  %vm24579_vm7 = vnez %v24475_v58  ;;  %vm24594_vm6 = vcmp.eq.s32.totalorder %v14822_v41, %v14732_v20 }
  0xbd   : > { %v24571_v4 = vsel %vm15586_vm11, 4294967295, %v24570_v4  ;;  %24573 = vst [vmem:[#allocation65_spill] sm:$0xff] %v15593_v46  ;;  %vm15605_vm3 = vmor %vm24575_vm15, %vm24574_vm14  ;;  %v24580_v46 = vmov 0  ;;  %v15623_v6 = vsel %vm15586_vm11, 1.0, %v24433_v22  ;;  %vm24588_vm11 = vcmp.eq.s32.totalorder %v14805_v38, %v14975_v61 }
  0xbe   : > { %24572 = vst [vmem:[#allocation64_spill] sm:$0xff] %v24571_v4  ;;  %v24577_v56 = vsel %vm15605_vm3, 4294967295, %v24576_v56  ;;  %vm15616_vm5 = vmor %vm24579_vm7, %vm24578_vm1  ;;  %vm24585_vm1 = vcmp.eq.s32.totalorder %v14822_v41, %v14717_v15  ;;  %vm24589_vm14 = vnez %v24484_v60  ;;  %vm24603_vm15 = vcmp.eq.s32.totalorder %v14822_v41, %v14741_v23 }
  0xbf   : > { %v24581_v46 = vsel %vm15616_vm5, 4294967295, %v24580_v46  ;;  %24583 = vst [vmem:[#allocation67_spill] sm:$0xff] %v15623_v6  ;;  %vm15635_vm7 = vmor %vm24585_vm1, %vm24584_vm2  ;;  %v24590_v6 = vmov 0  ;;  %v15653_v4 = vsel %vm15616_vm5, 1.0, %v24433_v22  ;;  %vm24598_vm5 = vcmp.eq.s32.totalorder %v14805_v38, %v14992_v63 }
  0xc0   : > { %24582 = vst [vmem:[#allocation66_spill] sm:$0xff] %v24581_v46  ;;  %vm15646_vm3 = vmor %vm24589_vm14, %vm24588_vm11  ;;  %vm24595_vm11 = vcmp.eq.s32.totalorder %v14822_v41, %v14726_v18  ;;  %v24599_v46 = vmov 0  ;;  %vm24612_vm1 = vcmp.eq.s32.totalorder %v14822_v41, %v14755_v28  ;;  %v24818_v60 = vmov 0 }
  0xc1   : > { %v24591_v6 = vsel %vm15646_vm3, 4294967295, %v24590_v6  ;;  %24593 = vst [vmem:[#allocation69_spill] sm:$0xff] %v15653_v4  ;;  %vm15665_vm14 = vmor %vm24595_vm11, %vm24594_vm6  ;;  %v15683_v4 = vsel %vm15646_vm3, 1.0, %v24433_v22  ;;  %vm24607_vm3 = vcmp.eq.s32.totalorder %v14805_v38, %v15012_v1  ;;  %vm24621_vm11 = vcmp.eq.s32.totalorder %v14822_v41, %v14763_v30 }
  0xc2   : > { %24592 = vst [vmem:[#allocation68_spill] sm:$0xff] %v24591_v6  ;;  %vm15676_vm2 = vmor %vm15335_vm8, %vm24598_vm5  ;;  %vm24604_vm8 = vcmp.eq.s32.totalorder %v14822_v41, %v14735_v21  ;;  %v24608_v6 = vmov 0  ;;  %v24725_v38 = vmov 0  ;;  %v25032_v58 = vmov 0 }
  0xc3   : > { %v24600_v46 = vsel %vm15676_vm2, 4294967295, %v24599_v46  ;;  %24602 = vst [vmem:[#allocation71_spill] sm:$0xff] %v15683_v4  ;;  %vm15695_vm5 = vmor %vm24604_vm8, %vm24603_vm15  ;;  %v15713_v4 = vsel %vm15676_vm2, 1.0, %v24433_v22  ;;  %vm24616_vm2 = vcmp.eq.s32.totalorder %v14808_v39, %v14880_v49  ;;  %vm24630_vm8 = vcmp.eq.s32.totalorder %v14822_v41, %v14773_v32 }
  0xc4   : > { %24601 = vst [vmem:[#allocation70_spill] sm:$0xff] %v24600_v46  ;;  %vm15706_vm6 = vmor %vm15365_vm13, %vm24607_vm3  ;;  %vm24613_vm13 = vcmp.eq.s32.totalorder %v14822_v41, %v14749_v26 }
  0xc5   : > { %v24609_v6 = vsel %vm15706_vm6, 4294967295, %v24608_v6  ;;  %24611 = vst [vmem:[#allocation73_spill] sm:$0xff] %v15713_v4  ;;  %vm15725_vm3 = vmor %vm24613_vm13, %vm24612_vm1  ;;  %v15743_v46 = vsel %vm15706_vm6, 1.0, %v24433_v22  ;;  %vm24625_vm6 = vcmp.eq.s32.totalorder %v14808_v39, %v14901_v52  ;;  %vm24639_vm13 = vcmp.eq.s32.totalorder %v14822_v41, %v14783_v34 }
  0xc6   : > { %24610 = vst [vmem:[#allocation72_spill] sm:$0xff] %v24609_v6  ;;  %vm15736_vm15 = vmor %vm15395_vm12, %vm24616_vm2  ;;  %vm24622_vm12 = vcmp.eq.s32.totalorder %v14822_v41, %v14758_v29  ;;  %v24626_v6 = vmov 0 }
  0xc7   : > { %v24618_v0 = vsel %vm15736_vm15, 4294967295, %v24617_v0  ;;  %24620 = vst [vmem:[#allocation75_spill] sm:$0xff] %v15743_v46  ;;  %vm15755_vm2 = vmor %vm24622_vm12, %vm24621_vm11  ;;  %v15773_v4 = vsel %vm15736_vm15, 1.0, %v24433_v22  ;;  %vm24634_vm15 = vcmp.eq.s32.totalorder %v14808_v39, %v14922_v55  ;;  %v24635_v46 = vmov 0 }
  0xc8   : > { %24619 = vst [vmem:[#allocation74_spill] sm:$0xff] %v24618_v0  ;;  %vm15766_vm1 = vmor %vm15425_vm9, %vm24625_vm6  ;;  %vm24631_vm9 = vcmp.eq.s32.totalorder %v14822_v41, %v14768_v31  ;;  %vm24649_vm12 = vcmp.eq.s32.totalorder %v14822_v41, %v14793_v36 }
  0xc9   : > { %v24627_v6 = vsel %vm15766_vm1, 4294967295, %v24626_v6  ;;  %24629 = vst [vmem:[#allocation77_spill] sm:$0xff] %v15773_v4  ;;  %vm15785_vm6 = vmor %vm24631_vm9, %vm24630_vm8  ;;  %v15803_v4 = vsel %vm15766_vm1, 1.0, %v24433_v22  ;;  %vm24643_vm1 = vcmp.eq.s32.totalorder %v14808_v39, %v14942_v57  ;;  %vm24644_vm8 = vnez %v24540_v25 }
  0xca   : > { %24628 = vst [vmem:[#allocation76_spill] sm:$0xff] %v24627_v6  ;;  %v24633_v14 = vsel %vm15785_vm6, 4294967295, %v24632_v14  ;;  %vm15796_vm11 = vmor %vm15455_vm4, %vm24634_vm15  ;;  %vm24640_vm4 = vcmp.eq.s32.totalorder %v14822_v41, %v14778_v33  ;;  %vm24658_vm9 = vcmp.eq.s32.totalorder %v14825_v42, %v14723_v17  ;;  %v24766_v25 = vmov 0 }
  0xcb   : > { %v24636_v46 = vsel %vm15796_vm11, 4294967295, %v24635_v46  ;;  %24638 = vst [vmem:[#allocation79_spill] sm:$0xff] %v15803_v4  ;;  %vm15815_vm15 = vmor %vm24640_vm4, %vm24639_vm13  ;;  %v24645_v4 = vmov 0  ;;  %v15833_v0 = vsel %vm15796_vm11, 1.0, %v24433_v22  ;;  %vm24653_vm11 = vcmp.eq.s32.totalorder %v14808_v39, %v14960_v59 }
  0xcc   : > { %24637 = vst [vmem:[#allocation78_spill] sm:$0xff] %v24636_v46  ;;  %vm15826_vm6 = vmor %vm24644_vm8, %vm24643_vm1  ;;  %vm24650_vm1 = vcmp.eq.s32.totalorder %v14822_v41, %v14788_v35  ;;  %vm24667_vm4 = vcmp.eq.s32.totalorder %v14825_v42, %v14732_v20 }
  0xcd   : > { %v24646_v4 = vsel %vm15826_vm6, 4294967295, %v24645_v4  ;;  %24648 = vst [vmem:[#allocation81_spill] sm:$0xff] %v15833_v0  ;;  %vm15845_vm8 = vmor %vm24650_vm1, %vm24649_vm12  ;;  %v24654_v0 = vmov 0  ;;  %v15863_v46 = vsel %vm15826_vm6, 1.0, %v24433_v22  ;;  %vm24662_vm6 = vcmp.eq.s32.totalorder %v14808_v39, %v14975_v61 }
  0xce   : > { %24647 = vst [vmem:[#allocation80_spill] sm:$0xff] %v24646_v4  ;;  %vm15856_vm13 = vmor %vm15515_vm0, %vm24653_vm11  ;;  %vm24659_vm0 = vcmp.eq.s32.totalorder %v14825_v42, %v14717_v15  ;;  %vm24677_vm1 = vcmp.eq.s32.totalorder %v14825_v42, %v14741_v23 }
  0xcf   : > { %v24655_v0 = vsel %vm15856_vm13, 4294967295, %v24654_v0  ;;  %24657 = vst [vmem:[#allocation83_spill] sm:$0xff] %v15863_v46  ;;  %vm15875_vm11 = vmor %vm24659_vm0, %vm24658_vm9  ;;  %v24663_v46 = vmov 0  ;;  %v15893_v4 = vsel %vm15856_vm13, 1.0, %v24433_v22  ;;  %vm24671_vm13 = vcmp.eq.s32.totalorder %v14808_v39, %v14992_v63 }
  0xd0   : > { %24656 = vst [vmem:[#allocation82_spill] sm:$0xff] %v24655_v0  ;;  %v24661_v48 = vsel %vm15875_vm11, 4294967295, %v24660_v48  ;;  %vm15886_vm12 = vmor %vm15545_vm10, %vm24662_vm6  ;;  %vm24668_vm10 = vcmp.eq.s32.totalorder %v14825_v42, %v14726_v18  ;;  %vm24672_vm9 = vnez %v24568_v54  ;;  %v24673_v0 = vmov 0 }
  0xd1   : > { %v24664_v46 = vsel %vm15886_vm12, 4294967295, %v24663_v46  ;;  %24666 = vst [vmem:[#allocation85_spill] sm:$0xff] %v15893_v4  ;;  %vm15905_vm6 = vmor %vm24668_vm10, %vm24667_vm4  ;;  %v15923_v4 = vsel %vm15886_vm12, 1.0, %v24433_v22  ;;  %vm24681_vm12 = vcmp.eq.s32.totalorder %v14808_v39, %v15012_v1  ;;  %vm24682_vm4 = vnez %v24577_v56 }
  0xd2   : > { %24665 = vst [vmem:[#allocation84_spill] sm:$0xff] %v24664_v46  ;;  %v24670_v51 = vsel %vm15905_vm6, 4294967295, %v24669_v51  ;;  %vm15916_vm11 = vmor %vm24672_vm9, %vm24671_vm13  ;;  %vm24678_vm13 = vcmp.eq.s32.totalorder %v14825_v42, %v14735_v21  ;;  %v24683_v46 = vmov 0  ;;  %vm24687_vm0 = vcmp.eq.s32.totalorder %v14825_v42, %v14755_v28 }
  0xd3   : > { %v24674_v0 = vsel %vm15916_vm11, 4294967295, %v24673_v0  ;;  %24676 = vst [vmem:[#allocation87_spill] sm:$0xff] %v15923_v4  ;;  %vm15935_vm9 = vmor %vm24678_vm13, %vm24677_vm1  ;;  %v15953_v4 = vsel %vm15916_vm11, 1.0, %v24433_v22  ;;  %vm24691_vm11 = vcmp.eq.s32.totalorder %v14822_v41, %v14880_v49  ;;  %v24692_v56 = vmov 0 }
  0xd4   : > { %24675 = vst [vmem:[#allocation86_spill] sm:$0xff] %v24674_v0  ;;  %vm15946_vm6 = vmor %vm24682_vm4, %vm24681_vm12  ;;  %vm24688_vm12 = vcmp.eq.s32.totalorder %v14825_v42, %v14749_v26  ;;  %vm24696_vm10 = vcmp.eq.s32.totalorder %v14825_v42, %v14763_v30  ;;  %vm24705_vm13 = vcmp.eq.s32.totalorder %v14825_v42, %v14773_v32  ;;  %v24914_v39 = vmov 0 }
  0xd5   : > { %v24684_v46 = vsel %vm15946_vm6, 4294967295, %v24683_v46  ;;  %24686 = vst [vmem:[#allocation89_spill] sm:$0xff] %v15953_v4  ;;  %vm15965_vm4 = vmor %vm24688_vm12, %vm24687_vm0  ;;  %v15983_v0 = vsel %vm15946_vm6, 1.0, %v24433_v22  ;;  %vm24700_vm6 = vcmp.eq.s32.totalorder %v14822_v41, %v14901_v52  ;;  %vm24714_vm12 = vcmp.eq.s32.totalorder %v14825_v42, %v14783_v34 }
  0xd6   : > { %24685 = vst [vmem:[#allocation88_spill] sm:$0xff] %v24684_v46  ;;  %vm15976_vm1 = vmor %vm15635_vm7, %vm24691_vm11  ;;  %vm24697_vm7 = vcmp.eq.s32.totalorder %v14825_v42, %v14758_v29  ;;  %v24701_v46 = vmov 0  ;;  %v25120_v54 = vmov 0 }
  0xd7   : > { %v24693_v56 = vsel %vm15976_vm1, 4294967295, %v24692_v56  ;;  %24695 = vst [vmem:[#allocation91_spill] sm:$0xff] %v15983_v0  ;;  %vm15995_vm11 = vmor %vm24697_vm7, %vm24696_vm10  ;;  %v16013_v4 = vsel %vm15976_vm1, 1.0, %v24433_v22  ;;  %vm24709_vm1 = vcmp.eq.s32.totalorder %v14822_v41, %v14922_v55  ;;  %v24710_v0 = vmov 0 }
  0xd8   : > { %24694 = vst [vmem:[#allocation90_spill] sm:$0xff] %v24693_v56  ;;  %vm16006_vm0 = vmor %vm15665_vm14, %vm24700_vm6  ;;  %vm24706_vm14 = vcmp.eq.s32.totalorder %v14825_v42, %v14768_v31  ;;  %vm24723_vm7 = vcmp.eq.s32.totalorder %v14825_v42, %v14793_v36 }
  0xd9   : > { %v24702_v46 = vsel %vm16006_vm0, 4294967295, %v24701_v46  ;;  %24704 = vst [vmem:[#allocation93_spill] sm:$0xff] %v16013_v4  ;;  %vm16025_vm6 = vmor %vm24706_vm14, %vm24705_vm13  ;;  %v16043_v4 = vsel %vm16006_vm0, 1.0, %v24433_v22  ;;  %vm24718_vm0 = vcmp.eq.s32.totalorder %v14822_v41, %v14942_v57  ;;  %vm24732_vm14 = vcmp.eq.s32.totalorder %v14842_v44, %v14723_v17 }
  0xda   : > { %24703 = vst [vmem:[#allocation92_spill] sm:$0xff] %v24702_v46  ;;  %vm16036_vm10 = vmor %vm15695_vm5, %vm24709_vm1  ;;  %vm24715_vm5 = vcmp.eq.s32.totalorder %v14825_v42, %v14778_v33 }
  0xdb   : > { %v24711_v0 = vsel %vm16036_vm10, 4294967295, %v24710_v0  ;;  %24713 = vst [vmem:[#allocation95_spill] sm:$0xff] %v16043_v4  ;;  %vm16055_vm1 = vmor %vm24715_vm5, %vm24714_vm12  ;;  %v24719_v4 = vmov 0  ;;  %v16073_v56 = vsel %vm16036_vm10, 1.0, %v24433_v22  ;;  %vm24727_vm10 = vcmp.eq.s32.totalorder %v14822_v41, %v14960_v59 }
  0xdc   : > { %24712 = vst [vmem:[#allocation94_spill] sm:$0xff] %v24711_v0  ;;  %vm16066_vm13 = vmor %vm15725_vm3, %vm24718_vm0  ;;  %vm24724_vm3 = vcmp.eq.s32.totalorder %v14825_v42, %v14788_v35  ;;  %vm24742_vm5 = vcmp.eq.s32.totalorder %v14842_v44, %v14732_v20 }
  0xdd   : > { %v24720_v4 = vsel %vm16066_vm13, 4294967295, %v24719_v4  ;;  %24722 = vst [vmem:[#allocation97_spill] sm:$0xff] %v16073_v56  ;;  %vm16085_vm0 = vmor %vm24724_vm3, %vm24723_vm7  ;;  %v24728_v56 = vmov 0  ;;  %v16103_v0 = vsel %vm16066_vm13, 1.0, %v24433_v22  ;;  %vm24736_vm13 = vcmp.eq.s32.totalorder %v14822_v41, %v14975_v61 }
  0xde   : > { %24721 = vst [vmem:[#allocation96_spill] sm:$0xff] %v24720_v4  ;;  %v24726_v38 = vsel %vm16085_vm0, 4294967295, %v24725_v38  ;;  %vm16096_vm12 = vmor %vm15755_vm2, %vm24727_vm10  ;;  %vm24733_vm2 = vcmp.eq.s32.totalorder %v14842_v44, %v14717_v15  ;;  %vm24737_vm7 = vnez %v24633_v14  ;;  %vm24751_vm3 = vcmp.eq.s32.totalorder %v14842_v44, %v14741_v23 }
  0xdf   : > { %v24729_v56 = vsel %vm16096_vm12, 4294967295, %v24728_v56  ;;  %24731 = vst [vmem:[#allocation99_spill] sm:$0xff] %v16103_v0  ;;  %vm16115_vm10 = vmor %vm24733_vm2, %vm24732_vm14  ;;  %v24738_v0 = vmov 0  ;;  %v16133_v4 = vsel %vm16096_vm12, 1.0, %v24433_v22  ;;  %vm24746_vm12 = vcmp.eq.s32.totalorder %v14822_v41, %v14992_v63 }
  0xe0   : > { %24730 = vst [vmem:[#allocation98_spill] sm:$0xff] %v24729_v56  ;;  %vm16126_vm0 = vmor %vm24737_vm7, %vm24736_vm13  ;;  %vm24743_vm13 = vcmp.eq.s32.totalorder %v14842_v44, %v14726_v18  ;;  %v24747_v56 = vmov 0  ;;  %vm24760_vm2 = vcmp.eq.s32.totalorder %v14842_v44, %v14755_v28  ;;  %v24855_v14 = vmov 0 }
  0xe1   : > { %v24739_v0 = vsel %vm16126_vm0, 4294967295, %v24738_v0  ;;  %24741 = vst [vmem:[#allocation101_spill] sm:$0xff] %v16133_v4  ;;  %vm16145_vm7 = vmor %vm24743_vm13, %vm24742_vm5  ;;  %v16163_v4 = vsel %vm16126_vm0, 1.0, %v24433_v22  ;;  %vm24755_vm0 = vcmp.eq.s32.totalorder %v14822_v41, %v15012_v1  ;;  %v24762_v41 = vmov 0 }
  0xe2   : > { %24740 = vst [vmem:[#allocation100_spill] sm:$0xff] %v24739_v0  ;;  %vm16156_vm14 = vmor %vm15815_vm15, %vm24746_vm12  ;;  %vm24752_vm15 = vcmp.eq.s32.totalorder %v14842_v44, %v14735_v21  ;;  %v24756_v0 = vmov 0  ;;  %vm24770_vm13 = vcmp.eq.s32.totalorder %v14842_v44, %v14763_v30 }
  0xe3   : > { %v24748_v56 = vsel %vm16156_vm14, 4294967295, %v24747_v56  ;;  %24750 = vst [vmem:[#allocation103_spill] sm:$0xff] %v16163_v4  ;;  %vm16175_vm12 = vmor %vm24752_vm15, %vm24751_vm3  ;;  %v16193_v4 = vsel %vm16156_vm14, 1.0, %v24433_v22  ;;  %vm24764_vm14 = vcmp.eq.s32.totalorder %v14825_v42, %v14880_v49  ;;  %vm24765_vm3 = vnez %v24661_v48 }
  0xe4   : > { %24749 = vst [vmem:[#allocation102_spill] sm:$0xff] %v24748_v56  ;;  %v24754_v40 = vsel %vm16175_vm12, 4294967295, %v24753_v40  ;;  %vm16186_vm5 = vmor %vm15845_vm8, %vm24755_vm0  ;;  %vm24761_vm8 = vcmp.eq.s32.totalorder %v14842_v44, %v14749_v26  ;;  %vm24780_vm15 = vcmp.eq.s32.totalorder %v14842_v44, %v14773_v32  ;;  %v25110_v48 = vmov 0 }
  0xe5   : > { %v24757_v0 = vsel %vm16186_vm5, 4294967295, %v24756_v0  ;;  %24759 = vst [vmem:[#allocation105_spill] sm:$0xff] %v16193_v4  ;;  %vm16205_vm0 = vmor %vm24761_vm8, %vm24760_vm2  ;;  %v16223_v56 = vsel %vm16186_vm5, 1.0, %v24433_v22  ;;  %vm24774_vm5 = vcmp.eq.s32.totalorder %v14825_v42, %v14901_v52  ;;  %vm24775_vm2 = vnez %v24670_v51 }
  0xe6   : > { %24758 = vst [vmem:[#allocation104_spill] sm:$0xff] %v24757_v0  ;;  %v24763_v41 = vsel %vm16205_vm0, 4294967295, %v24762_v41  ;;  %vm16216_vm12 = vmor %vm24765_vm3, %vm24764_vm14  ;;  %vm24771_vm14 = vcmp.eq.s32.totalorder %v14842_v44, %v14758_v29  ;;  %v24776_v0 = vmov 0  ;;  %vm24789_vm8 = vcmp.eq.s32.totalorder %v14842_v44, %v14783_v34 }
  0xe7   : > { %v24767_v25 = vsel %vm16216_vm12, 4294967295, %v24766_v25  ;;  %24769 = vst [vmem:[#allocation107_spill] sm:$0xff] %v16223_v56  ;;  %vm16235_vm3 = vmor %vm24771_vm14, %vm24770_vm13  ;;  %v16253_v4 = vsel %vm16216_vm12, 1.0, %v24433_v22  ;;  %vm24784_vm12 = vcmp.eq.s32.totalorder %v14825_v42, %v14922_v55  ;;  %v24785_v56 = vmov 0 }
  0xe8   : > { %24768 = vst [vmem:[#allocation106_spill] sm:$0xff] %v24767_v25  ;;  %vm16246_vm0 = vmor %vm24775_vm2, %vm24774_vm5  ;;  %vm24781_vm5 = vcmp.eq.s32.totalorder %v14842_v44, %v14768_v31  ;;  %vm24798_vm14 = vcmp.eq.s32.totalorder %v14842_v44, %v14793_v36  ;;  %v25004_v51 = vmov 0 }
  0xe9   : > { %v24777_v0 = vsel %vm16246_vm0, 4294967295, %v24776_v0  ;;  %24779 = vst [vmem:[#allocation109_spill] sm:$0xff] %v16253_v4  ;;  %vm16265_vm2 = vmor %vm24781_vm5, %vm24780_vm15  ;;  %v16283_v4 = vsel %vm16246_vm0, 1.0, %v24433_v22  ;;  %vm24793_vm0 = vcmp.eq.s32.totalorder %v14825_v42, %v14942_v57  ;;  %vm24807_vm5 = vcmp.eq.s32.totalorder %v14845_v45, %v14723_v17 }
  0xea   : > { %24778 = vst [vmem:[#allocation108_spill] sm:$0xff] %v24777_v0  ;;  %vm16276_vm13 = vmor %vm15935_vm9, %vm24784_vm12  ;;  %vm24790_vm9 = vcmp.eq.s32.totalorder %v14842_v44, %v14778_v33 }
  0xeb   : > { %v24786_v56 = vsel %vm16276_vm13, 4294967295, %v24785_v56  ;;  %24788 = vst [vmem:[#allocation111_spill] sm:$0xff] %v16283_v4  ;;  %vm16295_vm12 = vmor %vm24790_vm9, %vm24789_vm8  ;;  %v24794_v4 = vmov 0  ;;  %v16313_v25 = vsel %vm16276_vm13, 1.0, %v24433_v22  ;;  %vm24802_vm13 = vcmp.eq.s32.totalorder %v14825_v42, %v14960_v59 }
  0xec   : > { %24787 = vst [vmem:[#allocation110_spill] sm:$0xff] %v24786_v56  ;;  %vm16306_vm15 = vmor %vm15965_vm4, %vm24793_vm0  ;;  %vm24799_vm4 = vcmp.eq.s32.totalorder %v14842_v44, %v14788_v35  ;;  %vm24816_vm9 = vcmp.eq.s32.totalorder %v14845_v45, %v14732_v20 }
  0xed   : > { %v24795_v4 = vsel %vm16306_vm15, 4294967295, %v24794_v4  ;;  %24797 = vst [vmem:[#allocation113_spill] sm:$0xff] %v16313_v25  ;;  %vm16325_vm0 = vmor %vm24799_vm4, %vm24798_vm14  ;;  %v24803_v25 = vmov 0  ;;  %v16343_v56 = vsel %vm16306_vm15, 1.0, %v24433_v22  ;;  %vm24811_vm15 = vcmp.eq.s32.totalorder %v14825_v42, %v14975_v61 }
  0xee   : > { %24796 = vst [vmem:[#allocation112_spill] sm:$0xff] %v24795_v4  ;;  %vm16336_vm8 = vmor %vm15995_vm11, %vm24802_vm13  ;;  %vm24808_vm11 = vcmp.eq.s32.totalorder %v14845_v45, %v14717_v15  ;;  %vm24825_vm4 = vcmp.eq.s32.totalorder %v14845_v45, %v14741_v23 }
  0xef   : > { %v24804_v25 = vsel %vm16336_vm8, 4294967295, %v24803_v25  ;;  %24806 = vst [vmem:[#allocation115_spill] sm:$0xff] %v16343_v56  ;;  %vm16355_vm13 = vmor %vm24808_vm11, %vm24807_vm5  ;;  %v24812_v56 = vmov 0  ;;  %v16373_v4 = vsel %vm16336_vm8, 1.0, %v24433_v22  ;;  %vm24820_vm8 = vcmp.eq.s32.totalorder %v14825_v42, %v14992_v63 }
  0xf0   : > { %24805 = vst [vmem:[#allocation114_spill] sm:$0xff] %v24804_v25  ;;  %vm16366_vm14 = vmor %vm16025_vm6, %vm24811_vm15  ;;  %vm24817_vm6 = vcmp.eq.s32.totalorder %v14845_v45, %v14726_v18  ;;  %v24821_v25 = vmov 0  ;;  %vm24835_vm11 = vcmp.eq.s32.totalorder %v14845_v45, %v14755_v28 }
  0xf1   : > { %v24813_v56 = vsel %vm16366_vm14, 4294967295, %v24812_v56  ;;  %24815 = vst [vmem:[#allocation117_spill] sm:$0xff] %v16373_v4  ;;  %vm16385_vm15 = vmor %vm24817_vm6, %vm24816_vm9  ;;  %v16403_v4 = vsel %vm16366_vm14, 1.0, %v24433_v22  ;;  %vm24829_vm14 = vcmp.eq.s32.totalorder %v14825_v42, %v15012_v1  ;;  %vm24830_vm9 = vnez %v24726_v38 }
  0xf2   : > { %24814 = vst [vmem:[#allocation116_spill] sm:$0xff] %v24813_v56  ;;  %v24819_v60 = vsel %vm16385_vm15, 4294967295, %v24818_v60  ;;  %vm16396_vm5 = vmor %vm16055_vm1, %vm24820_vm8  ;;  %vm24826_vm1 = vcmp.eq.s32.totalorder %v14845_v45, %v14735_v21  ;;  %v24831_v56 = vmov 0  ;;  %v24840_v38 = vmov 0 }
  0xf3   : > { %v24822_v25 = vsel %vm16396_vm5, 4294967295, %v24821_v25  ;;  %24824 = vst [vmem:[#allocation119_spill] sm:$0xff] %v16403_v4  ;;  %vm16415_vm8 = vmor %vm24826_vm1, %vm24825_vm4  ;;  %v16433_v4 = vsel %vm16396_vm5, 1.0, %v24433_v22  ;;  %vm24839_vm5 = vcmp.eq.s32.totalorder %v14842_v44, %v14880_v49  ;;  %vm24844_vm6 = vcmp.eq.s32.totalorder %v14845_v45, %v14763_v30 }
  0xf4   : > { %24823 = vst [vmem:[#allocation118_spill] sm:$0xff] %v24822_v25  ;;  %vm16426_vm15 = vmor %vm24830_vm9, %vm24829_vm14  ;;  %vm24836_vm14 = vcmp.eq.s32.totalorder %v14845_v45, %v14749_v26  ;;  %vm24853_vm1 = vcmp.eq.s32.totalorder %v14845_v45, %v14773_v32  ;;  %v24948_v42 = vmov 0 }
  0xf5   : > { %v24832_v56 = vsel %vm16426_vm15, 4294967295, %v24831_v56  ;;  %24834 = vst [vmem:[#allocation121_spill] sm:$0xff] %v16433_v4  ;;  %vm16445_vm9 = vmor %vm24836_vm14, %vm24835_vm11  ;;  %v16463_v25 = vsel %vm16426_vm15, 1.0, %v24433_v22  ;;  %vm24848_vm15 = vcmp.eq.s32.totalorder %v14842_v44, %v14901_v52  ;;  %vm24863_vm14 = vcmp.eq.s32.totalorder %v14845_v45, %v14783_v34 }
  0xf6   : > { %24833 = vst [vmem:[#allocation120_spill] sm:$0xff] %v24832_v56  ;;  %vm16456_vm4 = vmor %vm16115_vm10, %vm24839_vm5  ;;  %vm24845_vm10 = vcmp.eq.s32.totalorder %v14845_v45, %v14758_v29  ;;  %v24849_v56 = vmov 0 }
  0xf7   : > { %v24841_v38 = vsel %vm16456_vm4, 4294967295, %v24840_v38  ;;  %24843 = vst [vmem:[#allocation123_spill] sm:$0xff] %v16463_v25  ;;  %vm16475_vm5 = vmor %vm24845_vm10, %vm24844_vm6  ;;  %v16493_v4 = vsel %vm16456_vm4, 1.0, %v24433_v22  ;;  %vm24857_vm4 = vcmp.eq.s32.totalorder %v14842_v44, %v14922_v55  ;;  %vm24858_vm6 = vnez %v24754_v40 }
  0xf8   : > { %24842 = vst [vmem:[#allocation122_spill] sm:$0xff] %v24841_v38  ;;  %v24847_v3 = vsel %vm16475_vm5, 4294967295, %v24846_v3  ;;  %vm16486_vm11 = vmor %vm16145_vm7, %vm24848_vm15  ;;  %vm24854_vm7 = vcmp.eq.s32.totalorder %v14845_v45, %v14768_v31  ;;  %v24859_v25 = vmov 0  ;;  %vm24873_vm10 = vcmp.eq.s32.totalorder %v14845_v45, %v14793_v36 }
  0xf9   : > { %v24850_v56 = vsel %vm16486_vm11, 4294967295, %v24849_v56  ;;  %24852 = vst [vmem:[#allocation125_spill] sm:$0xff] %v16493_v4  ;;  %vm16505_vm15 = vmor %vm24854_vm7, %vm24853_vm1  ;;  %v16523_v4 = vsel %vm16486_vm11, 1.0, %v24433_v22  ;;  %vm24867_vm11 = vcmp.eq.s32.totalorder %v14842_v44, %v14942_v57  ;;  %vm24868_vm1 = vnez %v24763_v41 }
  0xfa   : > { %24851 = vst [vmem:[#allocation124_spill] sm:$0xff] %v24850_v56  ;;  %v24856_v14 = vsel %vm16505_vm15, 4294967295, %v24855_v14  ;;  %vm16516_vm5 = vmor %vm24858_vm6, %vm24857_vm4  ;;  %vm24864_vm4 = vcmp.eq.s32.totalorder %v14845_v45, %v14778_v33  ;;  %vm24882_vm7 = vcmp.eq.s32.totalorder %v14862_v47, %v14723_v17  ;;  %v24989_v41 = vmov 0 }
  0xfb   : > { %v24860_v25 = vsel %vm16516_vm5, 4294967295, %v24859_v25  ;;  %24862 = vst [vmem:[#allocation127_spill] sm:$0xff] %v16523_v4  ;;  %vm16535_vm6 = vmor %vm24864_vm4, %vm24863_vm14  ;;  %v24869_v4 = vmov 0  ;;  %v16553_v38 = vsel %vm16516_vm5, 1.0, %v24433_v22  ;;  %vm24877_vm5 = vcmp.eq.s32.totalorder %v14842_v44, %v14960_v59 }
  0xfc   : > { %24861 = vst [vmem:[#allocation126_spill] sm:$0xff] %v24860_v25  ;;  %vm16546_vm15 = vmor %vm24868_vm1, %vm24867_vm11  ;;  %vm24874_vm11 = vcmp.eq.s32.totalorder %v14845_v45, %v14788_v35  ;;  %vm24891_vm4 = vcmp.eq.s32.totalorder %v14862_v47, %v14732_v20  ;;  %v25102_v40 = vmov 0 }
  0xfd   : > { %v24870_v4 = vsel %vm16546_vm15, 4294967295, %v24869_v4  ;;  %24872 = vst [vmem:[#allocation129_spill] sm:$0xff] %v16553_v38  ;;  %vm16565_vm1 = vmor %vm24874_vm11, %vm24873_vm10  ;;  %v24878_v38 = vmov 0  ;;  %v16583_v25 = vsel %vm16546_vm15, 1.0, %v24433_v22  ;;  %vm24886_vm15 = vcmp.eq.s32.totalorder %v14842_v44, %v14975_v61 }
  0xfe   : > { %24871 = vst [vmem:[#allocation128_spill] sm:$0xff] %v24870_v4  ;;  %vm16576_vm14 = vmor %vm16235_vm3, %vm24877_vm5  ;;  %vm24883_vm3 = vcmp.eq.s32.totalorder %v14862_v47, %v14717_v15  ;;  %vm24900_vm11 = vcmp.eq.s32.totalorder %v14862_v47, %v14741_v23 }
  0xff   : > { %v24879_v38 = vsel %vm16576_vm14, 4294967295, %v24878_v38  ;;  %24881 = vst [vmem:[#allocation131_spill] sm:$0xff] %v16583_v25  ;;  %vm16595_vm5 = vmor %vm24883_vm3, %vm24882_vm7  ;;  %v24887_v25 = vmov 0  ;;  %v16613_v4 = vsel %vm16576_vm14, 1.0, %v24433_v22  ;;  %vm24895_vm14 = vcmp.eq.s32.totalorder %v14842_v44, %v14992_v63 }
 0x100   : > { %24880 = vst [vmem:[#allocation130_spill] sm:$0xff] %v24879_v38  ;;  %vm16606_vm10 = vmor %vm16265_vm2, %vm24886_vm15  ;;  %vm24892_vm2 = vcmp.eq.s32.totalorder %v14862_v47, %v14726_v18  ;;  %v24896_v38 = vmov 0  ;;  %vm24909_vm3 = vcmp.eq.s32.totalorder %v14862_v47, %v14755_v28 }
 0x101   : > { %v24888_v25 = vsel %vm16606_vm10, 4294967295, %v24887_v25  ;;  %24890 = vst [vmem:[#allocation133_spill] sm:$0xff] %v16613_v4  ;;  %vm16625_vm15 = vmor %vm24892_vm2, %vm24891_vm4  ;;  %v16643_v4 = vsel %vm16606_vm10, 1.0, %v24433_v22  ;;  %vm24904_vm10 = vcmp.eq.s32.totalorder %v14842_v44, %v15012_v1  ;;  %v24911_v44 = vmov 0 }
 0x102   : > { %24889 = vst [vmem:[#allocation132_spill] sm:$0xff] %v24888_v25  ;;  %vm16636_vm7 = vmor %vm16295_vm12, %vm24895_vm14  ;;  %vm24901_vm12 = vcmp.eq.s32.totalorder %v14862_v47, %v14735_v21  ;;  %v24905_v25 = vmov 0  ;;  %vm24918_vm2 = vcmp.eq.s32.totalorder %v14862_v47, %v14763_v30 }
 0x103   : > { %v24897_v38 = vsel %vm16636_vm7, 4294967295, %v24896_v38  ;;  %24899 = vst [vmem:[#allocation135_spill] sm:$0xff] %v16643_v4  ;;  %vm16655_vm14 = vmor %vm24901_vm12, %vm24900_vm11  ;;  %v16673_v4 = vsel %vm16636_vm7, 1.0, %v24433_v22  ;;  %vm24913_vm7 = vcmp.eq.s32.totalorder %v14845_v45, %v14880_v49  ;;  %vm24928_vm12 = vcmp.eq.s32.totalorder %v14862_v47, %v14773_v32 }
 0x104   : > { %24898 = vst [vmem:[#allocation134_spill] sm:$0xff] %v24897_v38  ;;  %vm16666_vm4 = vmor %vm16325_vm0, %vm24904_vm10  ;;  %vm24910_vm0 = vcmp.eq.s32.totalorder %v14862_v47, %v14749_v26 }
 0x105   : > { %v24906_v25 = vsel %vm16666_vm4, 4294967295, %v24905_v25  ;;  %24908 = vst [vmem:[#allocation137_spill] sm:$0xff] %v16673_v4  ;;  %vm16685_vm10 = vmor %vm24910_vm0, %vm24909_vm3  ;;  %v16703_v38 = vsel %vm16666_vm4, 1.0, %v24433_v22  ;;  %vm24922_vm4 = vcmp.eq.s32.totalorder %v14845_v45, %v14901_v52  ;;  %vm24923_vm3 = vnez %v24819_v60 }
 0x106   : > { %24907 = vst [vmem:[#allocation136_spill] sm:$0xff] %v24906_v25  ;;  %v24912_v44 = vsel %vm16685_vm10, 4294967295, %v24911_v44  ;;  %vm16696_vm11 = vmor %vm16355_vm13, %vm24913_vm7  ;;  %vm24919_vm13 = vcmp.eq.s32.totalorder %v14862_v47, %v14758_v29  ;;  %v24924_v25 = vmov 0  ;;  %vm24937_vm0 = vcmp.eq.s32.totalorder %v14862_v47, %v14783_v34 }
 0x107   : > { %v24915_v39 = vsel %vm16696_vm11, 4294967295, %v24914_v39  ;;  %24917 = vst [vmem:[#allocation139_spill] sm:$0xff] %v16703_v38  ;;  %vm16715_vm7 = vmor %vm24919_vm13, %vm24918_vm2  ;;  %v16733_v4 = vsel %vm16696_vm11, 1.0, %v24433_v22  ;;  %vm24932_vm11 = vcmp.eq.s32.totalorder %v14845_v45, %v14922_v55  ;;  %v24933_v38 = vmov 0 }
 0x108   : > { %24916 = vst [vmem:[#allocation138_spill] sm:$0xff] %v24915_v39  ;;  %vm16726_vm10 = vmor %vm24923_vm3, %vm24922_vm4  ;;  %vm24929_vm4 = vcmp.eq.s32.totalorder %v14862_v47, %v14768_v31  ;;  %vm24946_vm13 = vcmp.eq.s32.totalorder %v14862_v47, %v14793_v36  ;;  %v25045_v60 = vmov 0 }
 0x109   : > { %v24925_v25 = vsel %vm16726_vm10, 4294967295, %v24924_v25  ;;  %24927 = vst [vmem:[#allocation141_spill] sm:$0xff] %v16733_v4  ;;  %vm16745_vm3 = vmor %vm24929_vm4, %vm24928_vm12  ;;  %v16763_v4 = vsel %vm16726_vm10, 1.0, %v24433_v22  ;;  %vm24941_vm10 = vcmp.eq.s32.totalorder %v14845_v45, %v14942_v57  ;;  %vm24956_vm4 = vcmp.eq.s32.totalorder %v14883_v50, %v14723_v17 }
 0x10a   : > { %24926 = vst [vmem:[#allocation140_spill] sm:$0xff] %v24925_v25  ;;  %vm16756_vm2 = vmor %vm16415_vm8, %vm24932_vm11  ;;  %vm24938_vm8 = vcmp.eq.s32.totalorder %v14862_v47, %v14778_v33 }
 0x10b   : > { %v24934_v38 = vsel %vm16756_vm2, 4294967295, %v24933_v38  ;;  %24936 = vst [vmem:[#allocation143_spill] sm:$0xff] %v16763_v4  ;;  %vm16775_vm11 = vmor %vm24938_vm8, %vm24937_vm0  ;;  %v24942_v4 = vmov 0  ;;  %v16793_v39 = vsel %vm16756_vm2, 1.0, %v24433_v22  ;;  %vm24950_vm2 = vcmp.eq.s32.totalorder %v14845_v45, %v14960_v59 }
 0x10c   : > { %24935 = vst [vmem:[#allocation142_spill] sm:$0xff] %v24934_v38  ;;  %v24940_v62 = vsel %vm16775_vm11, 4294967295, %v24939_v62  ;;  %vm16786_vm12 = vmor %vm16445_vm9, %vm24941_vm10  ;;  %vm24947_vm9 = vcmp.eq.s32.totalorder %v14862_v47, %v14788_v35  ;;  %vm24951_vm0 = vnez %v24847_v3  ;;  %vm24966_vm8 = vcmp.eq.s32.totalorder %v14883_v50, %v14732_v20 }
 0x10d   : > { %v24943_v4 = vsel %vm16786_vm12, 4294967295, %v24942_v4  ;;  %24945 = vst [vmem:[#allocation145_spill] sm:$0xff] %v16793_v39  ;;  %vm16805_vm10 = vmor %vm24947_vm9, %vm24946_vm13  ;;  %v24952_v39 = vmov 0  ;;  %v16823_v38 = vsel %vm16786_vm12, 1.0, %v24433_v22  ;;  %vm24960_vm12 = vcmp.eq.s32.totalorder %v14845_v45, %v14975_v61 }
 0x10e   : > { %24944 = vst [vmem:[#allocation144_spill] sm:$0xff] %v24943_v4  ;;  %v24949_v42 = vsel %vm16805_vm10, 4294967295, %v24948_v42  ;;  %vm16816_vm11 = vmor %vm24951_vm0, %vm24950_vm2  ;;  %vm24957_vm2 = vcmp.eq.s32.totalorder %v14883_v50, %v14717_v15  ;;  %vm24961_vm13 = vnez %v24856_v14  ;;  %vm24975_vm9 = vcmp.eq.s32.totalorder %v14883_v50, %v14741_v23 }
 0x10f   : > { %v24953_v39 = vsel %vm16816_vm11, 4294967295, %v24952_v39  ;;  %24955 = vst [vmem:[#allocation147_spill] sm:$0xff] %v16823_v38  ;;  %vm16835_vm0 = vmor %vm24957_vm2, %vm24956_vm4  ;;  %v24962_v38 = vmov 0  ;;  %v16853_v4 = vsel %vm16816_vm11, 1.0, %v24433_v22  ;;  %vm24970_vm11 = vcmp.eq.s32.totalorder %v14845_v45, %v14992_v63 }
 0x110   : > { %24954 = vst [vmem:[#allocation146_spill] sm:$0xff] %v24953_v39  ;;  %vm16846_vm10 = vmor %vm24961_vm13, %vm24960_vm12  ;;  %vm24967_vm12 = vcmp.eq.s32.totalorder %v14883_v50, %v14726_v18  ;;  %v24971_v39 = vmov 0  ;;  %vm24984_vm2 = vcmp.eq.s32.totalorder %v14883_v50, %v14755_v28  ;;  %v25097_v3 = vmov 0 }
 0x111   : > { %v24963_v38 = vsel %vm16846_vm10, 4294967295, %v24962_v38  ;;  %24965 = vst [vmem:[#allocation149_spill] sm:$0xff] %v16853_v4  ;;  %vm16865_vm13 = vmor %vm24967_vm12, %vm24966_vm8  ;;  %v16883_v4 = vsel %vm16846_vm10, 1.0, %v24433_v22  ;;  %vm24979_vm10 = vcmp.eq.s32.totalorder %v14845_v45, %v15012_v1  ;;  %vm24993_vm12 = vcmp.eq.s32.totalorder %v14883_v50, %v14763_v30 }
 0x112   : > { %24964 = vst [vmem:[#allocation148_spill] sm:$0xff] %v24963_v38  ;;  %vm16876_vm4 = vmor %vm16535_vm6, %vm24970_vm11  ;;  %vm24976_vm6 = vcmp.eq.s32.totalorder %v14883_v50, %v14735_v21  ;;  %v24980_v38 = vmov 0  ;;  %v25106_v45 = vmov 0 }
 0x113   : > { %v24972_v39 = vsel %vm16876_vm4, 4294967295, %v24971_v39  ;;  %24974 = vst [vmem:[#allocation151_spill] sm:$0xff] %v16883_v4  ;;  %vm16895_vm11 = vmor %vm24976_vm6, %vm24975_vm9  ;;  %v16913_v4 = vsel %vm16876_vm4, 1.0, %v24433_v22  ;;  %vm24988_vm4 = vcmp.eq.s32.totalorder %v14862_v47, %v14880_v49  ;;  %vm25002_vm6 = vcmp.eq.s32.totalorder %v14883_v50, %v14773_v32 }
 0x114   : > { %24973 = vst [vmem:[#allocation150_spill] sm:$0xff] %v24972_v39  ;;  %vm16906_vm8 = vmor %vm16565_vm1, %vm24979_vm10  ;;  %vm24985_vm1 = vcmp.eq.s32.totalorder %v14883_v50, %v14749_v26 }
 0x115   : > { %v24981_v38 = vsel %vm16906_vm8, 4294967295, %v24980_v38  ;;  %24983 = vst [vmem:[#allocation153_spill] sm:$0xff] %v16913_v4  ;;  %vm16925_vm10 = vmor %vm24985_vm1, %vm24984_vm2  ;;  %v16943_v39 = vsel %vm16906_vm8, 1.0, %v24433_v22  ;;  %vm24997_vm8 = vcmp.eq.s32.totalorder %v14862_v47, %v14901_v52  ;;  %vm25011_vm1 = vcmp.eq.s32.totalorder %v14883_v50, %v14783_v34 }
 0x116   : > { %24982 = vst [vmem:[#allocation152_spill] sm:$0xff] %v24981_v38  ;;  %vm16936_vm9 = vmor %vm16595_vm5, %vm24988_vm4  ;;  %vm24994_vm5 = vcmp.eq.s32.totalorder %v14883_v50, %v14758_v29  ;;  %v24998_v38 = vmov 0 }
 0x117   : > { %v24990_v41 = vsel %vm16936_vm9, 4294967295, %v24989_v41  ;;  %24992 = vst [vmem:[#allocation155_spill] sm:$0xff] %v16943_v39  ;;  %vm16955_vm4 = vmor %vm24994_vm5, %vm24993_vm12  ;;  %v16973_v4 = vsel %vm16936_vm9, 1.0, %v24433_v22  ;;  %vm25006_vm9 = vcmp.eq.s32.totalorder %v14862_v47, %v14922_v55  ;;  %v25007_v39 = vmov 0 }
 0x118   : > { %24991 = vst [vmem:[#allocation154_spill] sm:$0xff] %v24990_v41  ;;  %vm16966_vm2 = vmor %vm16625_vm15, %vm24997_vm8  ;;  %vm25003_vm15 = vcmp.eq.s32.totalorder %v14883_v50, %v14768_v31  ;;  %vm25021_vm5 = vcmp.eq.s32.totalorder %v14883_v50, %v14793_v36 }
 0x119   : > { %v24999_v38 = vsel %vm16966_vm2, 4294967295, %v24998_v38  ;;  %25001 = vst [vmem:[#allocation157_spill] sm:$0xff] %v16973_v4  ;;  %vm16985_vm8 = vmor %vm25003_vm15, %vm25002_vm6  ;;  %v17003_v4 = vsel %vm16966_vm2, 1.0, %v24433_v22  ;;  %vm25015_vm2 = vcmp.eq.s32.totalorder %v14862_v47, %v14942_v57  ;;  %vm25016_vm6 = vnez %v24912_v44 }
 0x11a   : > { %25000 = vst [vmem:[#allocation156_spill] sm:$0xff] %v24999_v38  ;;  %v25005_v51 = vsel %vm16985_vm8, 4294967295, %v25004_v51  ;;  %vm16996_vm12 = vmor %vm16655_vm14, %vm25006_vm9  ;;  %vm25012_vm14 = vcmp.eq.s32.totalorder %v14883_v50, %v14778_v33  ;;  %vm25030_vm15 = vcmp.eq.s32.totalorder %v14904_v53, %v14723_v17  ;;  %v25041_v17 = vmov 0 }
 0x11b   : > { %v25008_v39 = vsel %vm16996_vm12, 4294967295, %v25007_v39  ;;  %25010 = vst [vmem:[#allocation159_spill] sm:$0xff] %v17003_v4  ;;  %vm17015_vm9 = vmor %vm25012_vm14, %vm25011_vm1  ;;  %v25017_v4 = vmov 0  ;;  %v17033_v41 = vsel %vm16996_vm12, 1.0, %v24433_v22  ;;  %vm25025_vm12 = vcmp.eq.s32.totalorder %v14862_v47, %v14960_v59 }
 0x11c   : > { %25009 = vst [vmem:[#allocation158_spill] sm:$0xff] %v25008_v39  ;;  %vm17026_vm8 = vmor %vm25016_vm6, %vm25015_vm2  ;;  %vm25022_vm2 = vcmp.eq.s32.totalorder %v14883_v50, %v14788_v35  ;;  %vm25039_vm14 = vcmp.eq.s32.totalorder %v14904_v53, %v14732_v20  ;;  %v25124_v44 = vmov 0  ;;  %v25139_v20 = vmov 0 }
 0x11d   : > { %v25018_v4 = vsel %vm17026_vm8, 4294967295, %v25017_v4  ;;  %25020 = vst [vmem:[#allocation161_spill] sm:$0xff] %v17033_v41  ;;  %vm17045_vm6 = vmor %vm25022_vm2, %vm25021_vm5  ;;  %v25026_v41 = vmov 0  ;;  %v17063_v39 = vsel %vm17026_vm8, 1.0, %v24433_v22  ;;  %vm25034_vm8 = vcmp.eq.s32.totalorder %v14862_v47, %v14975_v61 }
 0x11e   : > { %25019 = vst [vmem:[#allocation160_spill] sm:$0xff] %v25018_v4  ;;  %vm17056_vm1 = vmor %vm16715_vm7, %vm25025_vm12  ;;  %vm25031_vm7 = vcmp.eq.s32.totalorder %v14904_v53, %v14717_v15  ;;  %vm25049_vm2 = vcmp.eq.s32.totalorder %v14904_v53, %v14741_v23  ;;  %v25061_v23 = vmov 0 }
 0x11f   : > { %v25027_v41 = vsel %vm17056_vm1, 4294967295, %v25026_v41  ;;  %25029 = vst [vmem:[#allocation163_spill] sm:$0xff] %v17063_v39  ;;  %vm17075_vm12 = vmor %vm25031_vm7, %vm25030_vm15  ;;  %v25035_v39 = vmov 0  ;;  %v17093_v15 = vsel %vm17056_vm1, 1.0, %v24433_v22  ;;  %vm25043_vm1 = vcmp.eq.s32.totalorder %v14862_v47, %v14992_v63 }
 0x120   : > { %25028 = vst [vmem:[#allocation162_spill] sm:$0xff] %v25027_v41  ;;  %v25033_v58 = vsel %vm17075_vm12, 4294967295, %v25032_v58  ;;  %vm17086_vm5 = vmor %vm16745_vm3, %vm25034_vm8  ;;  %vm25040_vm3 = vcmp.eq.s32.totalorder %v14904_v53, %v14726_v18  ;;  %vm25044_vm15 = vnez %v24940_v62  ;;  %v25055_v62 = vmov 0 }
 0x121   : > { %v25036_v39 = vsel %vm17086_vm5, 4294967295, %v25035_v39  ;;  %25038 = vst [vmem:[#allocation165_spill] sm:$0xff] %v17093_v15  ;;  %vm17105_vm8 = vmor %vm25040_vm3, %vm25039_vm14  ;;  %v17123_v18 = vsel %vm17086_vm5, 1.0, %v24433_v22  ;;  %vm25053_vm5 = vcmp.eq.s32.totalorder %v14862_v47, %v15012_v1  ;;  %vm25054_vm14 = vnez %v24949_v42 }
 0x122   : > { %25037 = vst [vmem:[#allocation164_spill] sm:$0xff] %v25036_v39  ;;  %v25042_v17 = vsel %vm17105_vm8, 4294967295, %v25041_v17  ;;  %vm17116_vm12 = vmor %vm25044_vm15, %vm25043_vm1  ;;  %vm25050_vm1 = vcmp.eq.s32.totalorder %v14904_v53, %v14735_v21  ;;  %vm25059_vm7 = vcmp.eq.s32.totalorder %v14904_v53, %v14755_v28  ;;  %v25064_v47 = vmov 0 }
 0x123   : > { %v25046_v60 = vsel %vm17116_vm12, 4294967295, %v25045_v60  ;;  %25048 = vst [vmem:[#allocation167_spill] sm:$0xff] %v17123_v18  ;;  %vm17135_vm15 = vmor %vm25050_vm1, %vm25049_vm2  ;;  %v17153_v21 = vsel %vm17116_vm12, 1.0, %v24433_v22  ;;  %vm25063_vm12 = vcmp.eq.s32.totalorder %v14883_v50, %v14880_v49  ;;  %vm25068_vm3 = vcmp.eq.s32.totalorder %v14904_v53, %v14763_v30 }
 0x124   : > { %25047 = vst [vmem:[#allocation166_spill] sm:$0xff] %v25046_v60  ;;  %vm17146_vm8 = vmor %vm25054_vm14, %vm25053_vm5  ;;  %vm25060_vm5 = vcmp.eq.s32.totalorder %v14904_v53, %v14749_v26  ;;  %v25070_v28 = vmov 0  ;;  %vm798_vm1 = vcmp.eq.s32.totalorder %v14883_v50, %v14960_v59  ;;  %v25079_v30 = vmov 0 }
 0x125   : > { %v25056_v62 = vsel %vm17146_vm8, 4294967295, %v25055_v62  ;;  %25058 = vst [vmem:[#allocation169_spill] sm:$0xff] %v17153_v21  ;;  %vm17165_vm14 = vmor %vm25060_vm5, %vm25059_vm7  ;;  %v17183_v26 = vsel %vm17146_vm8, 1.0, %v24433_v22  ;;  %vm477_vm7 = vcmp.eq.s32.totalorder %v14904_v53, %v14788_v35  ;;  %vm599_vm5 = vcmp.eq.s32.totalorder %v14904_v53, %v14793_v36 }
 0x126   : > { %25057 = vst [vmem:[#allocation168_spill] sm:$0xff] %v25056_v62  ;;  %v25062_v23 = vsel %vm17165_vm14, 4294967295, %v25061_v23  ;;  %vm17176_vm2 = vmor %vm16835_vm0, %vm25063_vm12  ;;  %vm25069_vm0 = vcmp.eq.s32.totalorder %v14904_v53, %v14758_v29  ;;  %vm25072_vm8 = vcmp.eq.s32.totalorder %v14883_v50, %v14901_v52  ;;  %v25073_v35 = vmov 0 }
 0x127   : > { %v25065_v47 = vsel %vm17176_vm2, 4294967295, %v25064_v47  ;;  %25067 = vst [vmem:[#allocation171_spill] sm:$0xff] %v17183_v26  ;;  %vm17195_vm12 = vmor %vm25069_vm0, %vm25068_vm3  ;;  %v17213_v29 = vsel %vm17176_vm2, 1.0, %v24433_v22  ;;  %vm25077_vm3 = vcmp.eq.s32.totalorder %v14904_v53, %v14773_v32  ;;  %vm25078_vm0 = vcmp.eq.s32.totalorder %v14904_v53, %v14768_v31 }
 0x128   : > { %25066 = vst [vmem:[#allocation170_spill] sm:$0xff] %v25065_v47  ;;  %v25071_v28 = vsel %vm17195_vm12, 4294967295, %v25070_v28  ;;  %vm17206_vm14 = vmor %vm16865_vm13, %vm25072_vm8  ;;  %vm799_vm13 = vcmp.eq.s32.totalorder %v14883_v50, %v14975_v61  ;;  %vm25081_vm8 = vcmp.eq.s32.totalorder %v14883_v50, %v14922_v55  ;;  %v25082_v36 = vmov 0 }
 0x129   : > { %v25074_v35 = vsel %vm17206_vm14, 4294967295, %v25073_v35  ;;  %25076 = vst [vmem:[#allocation173_spill] sm:$0xff] %v17213_v29  ;;  %vm17221_vm12 = vmor %vm25078_vm0, %vm25077_vm3  ;;  %v17239_v31 = vsel %vm17206_vm14, 1.0, %v24433_v22  ;;  %vm25086_vm3 = vcmp.eq.s32.totalorder %v14904_v53, %v14783_v34  ;;  %vm25087_vm0 = vcmp.eq.s32.totalorder %v14904_v53, %v14778_v33 }
 0x12a   : > { %25075 = vst [vmem:[#allocation172_spill] sm:$0xff] %v25074_v35  ;;  %v25080_v30 = vsel %vm17221_vm12, 4294967295, %v25079_v30  ;;  %vm17232_vm2 = vmor %vm16895_vm11, %vm25081_vm8  ;;  %v25088_v32 = vmov 0  ;;  %vm800_vm11 = vcmp.eq.s32.totalorder %v14883_v50, %v14992_v63  ;;  %vm25090_vm8 = vcmp.eq.s32.totalorder %v14883_v50, %v14942_v57 }
 0x12b   : > { %v25083_v36 = vsel %vm17232_vm2, 4294967295, %v25082_v36  ;;  %25085 = vst [vmem:[#allocation175_spill] sm:$0xff] %v17239_v31  ;;  %vm17247_vm12 = vmor %vm25087_vm0, %vm25086_vm3  ;;  %v25091_v42 = vmov 0  ;;  %v17265_v33 = vsel %vm17232_vm2, 1.0, %v24433_v22  ;;  %vm801_vm0 = vcmp.eq.s32.totalorder %v14883_v50, %v15012_v1 }
 0x12c   : > { %25084 = vst [vmem:[#allocation174_spill] sm:$0xff] %v25083_v36  ;;  %v25089_v32 = vsel %vm17247_vm12, 4294967295, %v25088_v32  ;;  %vm17258_vm14 = vmor %vm16925_vm10, %vm25090_vm8  ;;  %vm802_vm10 = vcmp.eq.s32.totalorder %v14904_v53, %v14880_v49 }
 0x12d   : > { %v25092_v42 = vsel %vm17258_vm14, 4294967295, %v25091_v42  ;;  %25094 = vst [vmem:[#allocation177_spill] sm:$0xff] %v17265_v33  ;;  %vm17267_vm3 = vmor %vm477_vm7, %vm599_vm5  ;;  %v17282_v14 = vsel %vm17258_vm14, 1.0, %v24433_v22  ;;  %vm25101_vm7 = vnez %v25005_v51  ;;  %v25115_v51 = vmov 0 }
 0x12e   : > { %25093 = vst [vmem:[#allocation176_spill] sm:$0xff] %v25092_v42  ;;  %vm17275_vm12 = vmor %vm16955_vm4, %vm798_vm1  ;;  %vm803_vm4 = vcmp.eq.s32.totalorder %v14904_v53, %v14901_v52 }
 0x12f   : > { %v25098_v3 = vsel %vm17275_vm12, 4294967295, %v25097_v3  ;;  %25100 = vst [vmem:[#allocation179_spill] sm:$0xff] %v17282_v14  ;;  %vm17288_vm5 = vmor %vm25101_vm7, %vm799_vm13  ;;  %v17295_v50 = vsel %vm17275_vm12, 1.0, %v24433_v22  ;;  %vm804_vm13 = vcmp.eq.s32.totalorder %v14904_v53, %v14922_v55 }
 0x130   : > { %25099 = vst [vmem:[#allocation178_spill] sm:$0xff] %v25098_v3  ;;  %v25103_v40 = vsel %vm17288_vm5, 4294967295, %v25102_v40  ;;  %25105 = vst [vmem:[#allocation181_spill] sm:$0xff] %v17295_v50  ;;  %v17308_v49 = vsel %vm17288_vm5, 1.0, %v24433_v22 }
 0x131   : > { %25104 = vst [vmem:[#allocation180_spill] sm:$0xff] %v25103_v40  ;;  %vm17301_vm1 = vmor %vm17015_vm9, %vm800_vm11  ;;  %vm805_vm9 = vcmp.eq.s32.totalorder %v14904_v53, %v14942_v57  ;;  %vm25114_vm11 = vnez %v25033_v58  ;;  %v25129_v58 = vmov 0 }
 0x132   : > { %v25107_v45 = vsel %vm17301_vm1, 4294967295, %v25106_v45  ;;  %25109 = vst [vmem:[#allocation183_spill] sm:$0xff] %v17308_v49  ;;  %vm17314_vm8 = vmor %vm17045_vm6, %vm801_vm0  ;;  %v17321_v52 = vsel %vm17301_vm1, 1.0, %v24433_v22  ;;  %vm806_vm6 = vcmp.eq.s32.totalorder %v14904_v53, %v14960_v59  ;;  %vm25119_vm0 = vnez %v25042_v17 }
 0x133   : > { %25108 = vst [vmem:[#allocation182_spill] sm:$0xff] %v25107_v45  ;;  %v25111_v48 = vsel %vm17314_vm8, 4294967295, %v25110_v48  ;;  %25113 = vst [vmem:[#allocation185_spill] sm:$0xff] %v17321_v52  ;;  %v17334_v55 = vsel %vm17314_vm8, 1.0, %v24433_v22  ;;  %v25134_v17 = vmov 0 }
 0x134   : > { %25112 = vst [vmem:[#allocation184_spill] sm:$0xff] %v25111_v48  ;;  %vm17327_vm7 = vmor %vm25114_vm11, %vm802_vm10  ;;  %vm807_vm10 = vcmp.eq.s32.totalorder %v14904_v53, %v14975_v61 }
 0x135   : > { %v25116_v51 = vsel %vm17327_vm7, 4294967295, %v25115_v51  ;;  %25118 = vst [vmem:[#allocation187_spill] sm:$0xff] %v17334_v55  ;;  %vm17340_vm1 = vmor %vm25119_vm0, %vm803_vm4  ;;  %v17347_v57 = vsel %vm17327_vm7, 1.0, %v24433_v22  ;;  %vm808_vm4 = vcmp.eq.s32.totalorder %v14904_v53, %v14992_v63  ;;  %vm25128_vm0 = vnez %v25062_v23 }
 0x136   : > { %25117 = vst [vmem:[#allocation186_spill] sm:$0xff] %v25116_v51  ;;  %v25121_v54 = vsel %vm17340_vm1, 4294967295, %v25120_v54  ;;  %25123 = vst [vmem:[#allocation189_spill] sm:$0xff] %v17347_v57  ;;  %v17360_v59 = vsel %vm17340_vm1, 1.0, %v24433_v22 }
 0x137   : > { %25122 = vst [vmem:[#allocation188_spill] sm:$0xff] %v25121_v54  ;;  %vm17353_vm11 = vmor %vm17135_vm15, %vm804_vm13  ;;  %vm809_vm15 = vcmp.eq.s32.totalorder %v14904_v53, %v15012_v1  ;;  %vm25133_vm13 = vnez %v25071_v28  ;;  %v25144_v1 = vmov 0  ;;  %v25148_v28 = vmov 0 }
 0x138   : > { %v25125_v44 = vsel %vm17353_vm11, 4294967295, %v25124_v44  ;;  %25127 = vst [vmem:[#allocation191_spill] sm:$0xff] %v17360_v59  ;;  %vm17366_vm12 = vmor %vm25128_vm0, %vm805_vm9  ;;  %v17373_v61 = vsel %vm17353_vm11, 1.0, %v24433_v22  ;;  %vm25138_vm9 = vnez %v25080_v30 }
 0x139   : > { %25126 = vst [vmem:[#allocation190_spill] sm:$0xff] %v25125_v44  ;;  %v25130_v58 = vsel %vm17366_vm12, 4294967295, %v25129_v58  ;;  %25132 = vst [vmem:[#allocation193_spill] sm:$0xff] %v17373_v61  ;;  %v17386_v63 = vsel %vm17366_vm12, 1.0, %v24433_v22 }
 0x13a   : > { %25131 = vst [vmem:[#allocation192_spill] sm:$0xff] %v25130_v58  ;;  %vm17379_vm8 = vmor %vm25133_vm13, %vm806_vm6  ;;  %vm25143_vm6 = vnez %v25089_v32  ;;  %992 = sbr.rel (%p11135_p8) target bundleno = 1451 (0x5ab), region = 68 }
 0x13b   : > { %v25135_v17 = vsel %vm17379_vm8, 4294967295, %v25134_v17  ;;  %25137 = vst [vmem:[#allocation195_spill] sm:$0xff] %v17386_v63  ;;  %vm17390_vm0 = vmor %vm25138_vm9, %vm807_vm10  ;;  %v17397_v53 = vsel %vm17379_vm8, 1.0, %v24433_v22 }
 0x13c   : > { %25136 = vst [vmem:[#allocation194_spill] sm:$0xff] %v25135_v17  ;;  %v25140_v20 = vsel %vm17390_vm0, 4294967295, %v25139_v20  ;;  %25142 = vst [vmem:[#allocation197_spill] sm:$0xff] %v17397_v53  ;;  %v17408_v23 = vsel %vm17390_vm0, 1.0, %v24433_v22 }
 0x13d   : > { %25141 = vst [vmem:[#allocation196_spill] sm:$0xff] %v25140_v20  ;;  %vm17401_vm13 = vmor %vm25143_vm6, %vm808_vm4 }
 0x13e   : > { %v25145_v1 = vsel %vm17401_vm13, 4294967295, %v25144_v1  ;;  %25147 = vst [vmem:[#allocation199_spill] sm:$0xff] %v17408_v23  ;;  %vm17412_vm10 = vmor %vm17267_vm3, %vm809_vm15  ;;  %v17419_v30 = vsel %vm17401_vm13, 1.0, %v24433_v22 }
 0x13f   : > { %25146 = vst [vmem:[#allocation198_spill] sm:$0xff] %v25145_v1  ;;  %v25149_v28 = vsel %vm17412_vm10, 4294967295, %v25148_v28  ;;  %25151 = vst [vmem:[#allocation201_spill] sm:$0xff] %v17419_v30  ;;  %v17424_v32 = vsel %vm17412_vm10, 1.0, %v24433_v22 }
 0x140   : > { %25150 = vst [vmem:[#allocation200_spill] sm:$0xff] %v25149_v28  ;;  %25152 = vst [vmem:[#allocation202_spill] sm:$0xff] %v17424_v32 }
 0x141   : > { %vm25153_vm4 = vnez %v24404_v7  ;;  %vm25154_vm3 = vnez %v24478_v12  ;;  %v25155_v34 = vmov 0  ;;  %v17437_v53 = vsub.f32 %v15083_v37, %v15083_v37  ;;  %v993_v22 = vld [vmem:[%s23259_s5] sm:$0xff]  ;;  %v25252_v55 = vld [vmem:[#allocation77_spill] sm:$0xff] }
 0x142   : > { %vm17431_vm15 = vmpackc.low %vm25154_vm3, %vm25153_vm4  ;;  %v23413_v30 = vmov 1.0|1.0   ;;  %vm25158_vm9 = vnez %v24422_v43  ;;  %vm25159_vm6 = vnez %v24498_v5  ;;  %v25160_v12 = vmov 0  ;;  %v25195_v45 = vld [vmem:[#allocation74_spill] sm:$0xff]  ;;  %v25234_v21 = vld [vmem:[#allocation79_spill] sm:$0xff] }
 0x143   : > { %v25156_v34 = vsel %vm17431_vm15, 4294967295, %v25155_v34  ;;  %12200 = vmatprep.subr.msk.bf16.mxu0 %vm17431_vm15, %v23413_v30  ;;  %vm17449_vm4 = vmpackc.low %vm25159_vm6, %vm25158_vm9  ;;  %v23419_v7 = vmov 0.0   ;;  %v17456_v37 = vsub.f32 %v15323_v16, %v15323_v16  ;;  %v17460_v32 = vsub.f32 %v15143_v27, %v15143_v27  ;;  %v25261_v18 = vld [vmem:[#allocation65_spill] sm:$0xff] }
 0x144   : > { %25157 = vst [vmem:[#allocation203_spill] sm:$0xff] %v25156_v34  ;;  %v25161_v12 = vsel %vm17449_vm4, 4294967295, %v25160_v12  ;;  %1062 = vmatprep.mubr.f32.mxu0 %v23419_v7  ;;  %v17464_v30 = vsub.f32 %v15383_v13, %v15383_v13  ;;  %vm23431_vm3 = vcmask 719872   ;;  %v25163_v5 = vmov 1.0|1.0  }
 0x145   : > { %25162 = vst [vmem:[#allocation204_spill] sm:$0xff] %v25161_v12  ;;  %12320 = vmatprep.subr.msk.bf16.mxu1 %vm17449_vm4, %v25163_v5  ;;  %vm25164_vm9 = vnez %v24396_v2  ;;  %vm25165_vm6 = vnez %v24469_v8  ;;  %v25166_v7 = vmov 0  ;;  %v25169_v16 = vmov 0.0   ;;  %v25181_v2 = vld [vmem:[#allocation33_spill] sm:$0xff] }
 0x146   : > { %vm17473_vm13 = vmpackc.low %vm25165_vm6, %vm25164_vm9  ;;  %1655 = vmatprep.mubr.f32.mxu1 %v25169_v16  ;;  %v996_v13 = vsel %vm23431_vm3, %v993_v22, 0  ;;  %v17482_v43 = vsub.f32 %v15053_v10, %v15053_v10  ;;  %v17486_v23 = vsub.f32 %v15293_v9, %v15293_v9  ;;  %vm25170_vm9 = vnez %v24413_v24  ;;  %v25338_v12 = vld [vmem:[#allocation145_spill] sm:$0xff] }
 0x147   : > { %v25167_v7 = vsel %vm17473_vm13, 4294967295, %v25166_v7  ;;  %12202 = vmatpush1.bf16.msk.msra.mxu0 %vm17473_vm13, %v25163_v5  ;;  %vm25171_vm6 = vnez %v24488_v11  ;;  %v25172_v27 = vmov 0  ;;  %v17502_v9 = vand.u32 4294901760, %v996_v13 }
 0x148   : > { %25168 = vst [vmem:[#allocation205_spill] sm:$0xff] %v25167_v7  ;;  %vm17495_vm8 = vmpackc.low %vm25171_vm6, %vm25170_vm9  ;;  %vm25175_vm3 = vnez %v24553_v19  ;;  %vm25176_vm10 = vnez %v24627_v6  ;;  %v25177_v11 = vmov 0  ;;  %v25180_v22 = vand.u32 4294901760, %v17437_v53  ;;  %v25182_v6 = vld [vmem:[#allocation64_spill] sm:$0xff] }
 0x149   : > { %v25173_v27 = vsel %vm17495_vm8, 4294967295, %v25172_v27  ;;  %12322 = vmatpush1.bf16.msk.msra.mxu1 %vm17495_vm8, %v25163_v5  ;;  %vm17511_vm9 = vmpackc.low %vm25176_vm10, %vm25175_vm3  ;;  %v17522_v1 = vsub.f32 %v25181_v2, %v25181_v2  ;;  %vm25183_vm10 = vnez %v25182_v6  ;;  %v25184_v19 = vld [vmem:[#allocation80_spill] sm:$0xff]  ;;  %v25186_v17 = vmov 0 }
 0x14a   : > { %25174 = vst [vmem:[#allocation206_spill] sm:$0xff] %v25173_v27  ;;  %v25178_v11 = vsel %vm17511_vm9, 4294967295, %v25177_v11  ;;  %v1076_v10 = vsub.f32 %v17437_v53, %v25180_v22  ;;  %12204 = vmatprep.subr.msk.bf16.mxu0 %vm17511_vm9, %v25163_v5  ;;  %vm25185_vm3 = vnez %v25184_v19  ;;  %v25189_v22 = vand.u32 4294901760, %v17456_v37  ;;  %v25193_v19 = vld [vmem:[#allocation58_spill] sm:$0xff] }
 0x14b   : > { %25179 = vst [vmem:[#allocation207_spill] sm:$0xff] %v25178_v11  ;;  %vm17531_vm6 = vmpackc.low %vm25185_vm3, %vm25183_vm10  ;;  %v25190_v8 = vand.u32 4294901760, %v17460_v32  ;;  %v25191_v28 = vand.u32 4294901760, %v17464_v30  ;;  %v17545_v6 = vsub.f32 %v996_v13, %v17502_v9  ;;  %vm25194_vm10 = vnez %v25193_v19  ;;  %v25204_v19 = vld [vmem:[#allocation78_spill] sm:$0xff] }
 0x14c   : > { %v25187_v17 = vsel %vm17531_vm6, 4294967295, %v25186_v17  ;;  %v1086_v24 = vsub.f32 %v17456_v37, %v25189_v22  ;;  %12324 = vmatprep.subr.msk.bf16.mxu1 %vm17531_vm6, %v25163_v5  ;;  %vm25196_vm3 = vnez %v25195_v45  ;;  %v25197_v22 = vmov 0  ;;  %v25202_v45 = vld [vmem:[#allocation62_spill] sm:$0xff] }
 0x14d   : > { %25188 = vst [vmem:[#allocation208_spill] sm:$0xff] %v25187_v17  ;;  %v1669_v2 = vsub.f32 %v17460_v32, %v25190_v8  ;;  %v1679_v20 = vsub.f32 %v17464_v30, %v25191_v28  ;;  %25192 = vst [vmem:[#allocation209_spill] sm:$0xff] %v17545_v6  ;;  %v1077_v8 = vand.u32 4294901760, %v1076_v10  ;;  %v25200_v60 = vand.u32 4294901760, %v17482_v43 }
 0x14e   : > { %vm17554_vm0 = vmpackc.low %vm25196_vm3, %vm25194_vm10  ;;  %v25201_v13 = vand.u32 4294901760, %v17486_v23  ;;  %v23472_v41 = vand.u32 4294901760, %v17522_v1  ;;  %vm25203_vm10 = vnez %v25202_v45  ;;  %vm25205_vm3 = vnez %v25204_v19 }
 0x14f   : > { %v25198_v22 = vsel %vm17554_vm0, 4294967295, %v25197_v22  ;;  %v1081_v28 = vsub.f32 %v17482_v43, %v25200_v60  ;;  %12206 = vmatpush1.bf16.msk.msra.mxu0 %vm17554_vm0, %v25163_v5  ;;  %vm17572_vm5 = vmpackc.low %vm25205_vm3, %vm25203_vm10  ;;  %v25206_v10 = vmov 0  ;;  %v1087_v48 = vand.u32 4294901760, %v1086_v24 }
 0x150   : > { %25199 = vst [vmem:[#allocation210_spill] sm:$0xff] %v25198_v22  ;;  %v1091_v3 = vsub.f32 %v17486_v23, %v25201_v13  ;;  %v25207_v10 = vsel %vm17572_vm5, 4294967295, %v25206_v10  ;;  %v1670_v60 = vand.u32 4294901760, %v1669_v2  ;;  %v1680_v62 = vand.u32 4294901760, %v1679_v20  ;;  %12326 = vmatpush1.bf16.msk.msra.mxu1 %vm17572_vm5, %v25163_v5  ;;  %v25215_v20 = vld [vmem:[#allocation49_spill] sm:$0xff] }
 0x151   : > { %25208 = vst [vmem:[#allocation211_spill] sm:$0xff] %v25207_v10  ;;  %v17577_v40 = vand.u32 4294901760, %v17545_v6  ;;  %vm25210_vm0 = vnez %v24702_v46  ;;  %vm25211_vm6 = vnez %v24777_v0  ;;  %v25212_v13 = vmov 0  ;;  %v25216_v46 = vld [vmem:[#allocation96_spill] sm:$0xff] }
 0x152   : > { %vm17586_vm8 = vmpackc.low %vm25211_vm6, %vm25210_vm0  ;;  %v1082_v45 = vand.u32 4294901760, %v1081_v28  ;;  %v1092_v19 = vand.u32 4294901760, %v1091_v3  ;;  %v1674_v24 = vsub.f32 %v17522_v1, %v23472_v41  ;;  %v17595_v2 = vsub.f32 %v25215_v20, %v25215_v20  ;;  %v25218_v0 = vld [vmem:[#allocation112_spill] sm:$0xff]  ;;  %v25225_v41 = vld [vmem:[#allocation63_spill] sm:$0xff] }
 0x153   : > { %25209 = vst [vmem:[#allocation212_spill] sm:$0xff] %v17577_v40  ;;  %v25213_v13 = vsel %vm17586_vm8, 4294967295, %v25212_v13  ;;  %12208 = vmatprep.subr.msk.bf16.mxu0 %vm17586_vm8, %v25163_v5  ;;  %vm25217_vm10 = vnez %v25216_v46  ;;  %vm25219_vm0 = vnez %v25218_v0  ;;  %v25220_v39 = vmov 0  ;;  %v25226_v46 = vld [vmem:[#allocation90_spill] sm:$0xff] }
 0x154   : > { %25214 = vst [vmem:[#allocation213_spill] sm:$0xff] %v25213_v13  ;;  %vm17604_vm6 = vmpackc.low %vm25219_vm0, %vm25217_vm10  ;;  %v17608_v3 = vpack.c.bf16 %v1087_v48, %v1077_v8  ;;  %v17610_v28 = vpack.c.bf16 %v1680_v62, %v1670_v60  ;;  %v1066_v20 = vsub.f32 %v17545_v6, %v17577_v40  ;;  %v17616_v52 = vsub.f32 %v25225_v41, %v25225_v41  ;;  %v25228_v0 = vld [vmem:[#allocation106_spill] sm:$0xff]  ;;  %v25244_v60 = vld [vmem:[#allocation83_spill] sm:$0xff] }
 0x155   : > { %v25221_v39 = vsel %vm17604_vm6, 4294967295, %v25220_v39  ;;  %12328 = vmatprep.subr.msk.bf16.mxu1 %vm17604_vm6, %v25163_v5  ;;  %vm25227_vm3 = vnez %v25226_v46  ;;  %vm25229_vm10 = vnez %v25228_v0  ;;  %v25230_v48 = vmov 0  ;;  %v25235_v46 = vld [vmem:[#allocation94_spill] sm:$0xff] }
 0x156   : > { %25222 = vst [vmem:[#allocation214_spill] sm:$0xff] %v25221_v39  ;;  %25223 = vst [vmem:[#allocation215_spill] sm:$0xff] %v17608_v3  ;;  %v17629_v62 = vpack.c.bf16 %v1092_v19, %v1082_v45  ;;  %v1675_v8 = vand.u32 4294901760, %v1674_v24  ;;  %v17634_v41 = vsub.f32 %v25234_v21, %v25234_v21  ;;  %vm25236_vm6 = vnez %v25235_v46  ;;  %v25237_v0 = vld [vmem:[#allocation110_spill] sm:$0xff]  ;;  %v25243_v24 = vld [vmem:[#allocation67_spill] sm:$0xff] }
 0x157   : > { %25224 = vst [vmem:[#allocation216_spill] sm:$0xff] %v17610_v28  ;;  %vm17625_vm0 = vmpackc.low %vm25229_vm10, %vm25227_vm3  ;;  %vm25238_vm3 = vnez %v25237_v0  ;;  %v25239_v50 = vmov 0  ;;  %v17647_v45 = vand.u32 4294901760, %v1066_v20  ;;  %v17652_v21 = vsub.f32 %v25243_v24, %v25243_v24  ;;  %v25315_v39 = vld [vmem:[#allocation97_spill] sm:$0xff] }
 0x158   : > { %v25231_v48 = vsel %vm17625_vm0, 4294967295, %v25230_v48  ;;  %25233 = vst [vmem:[#allocation218_spill] sm:$0xff] %v17629_v62  ;;  %12210 = vmatpush1.bf16.msk.msra.mxu0 %vm17625_vm0, %v25163_v5  ;;  %vm17643_vm10 = vmpackc.low %vm25238_vm3, %vm25236_vm6  ;;  %v17656_v15 = vsub.f32 %v25244_v60, %v25244_v60  ;;  %vm25245_vm6 = vnez %v24850_v56  ;;  %vm25246_vm3 = vnez %v24925_v25  ;;  %v25251_v60 = vld [vmem:[#allocation61_spill] sm:$0xff]  ;;  %v25253_v25 = vld [vmem:[#allocation128_spill] sm:$0xff] }
 0x159   : > { %25232 = vst [vmem:[#allocation217_spill] sm:$0xff] %v25231_v48  ;;  %v25240_v50 = vsel %vm17643_vm10, 4294967295, %v25239_v50  ;;  %25242 = vst [vmem:[#allocation220_spill] sm:$0xff] %v17647_v45  ;;  %12330 = vmatpush1.bf16.msk.msra.mxu1 %vm17643_vm10, %v25163_v5  ;;  %v25247_v20 = vmov 0  ;;  %v25250_v46 = vand.u32 4294901760, %v17595_v2  ;;  %v17675_v19 = vsub.f32 %v25251_v60, %v25251_v60  ;;  %v25255_v56 = vld [vmem:[#allocation144_spill] sm:$0xff] }
 0x15a   : > { %25241 = vst [vmem:[#allocation219_spill] sm:$0xff] %v25240_v50  ;;  %vm17665_vm0 = vmpackc.low %vm25246_vm3, %vm25245_vm6  ;;  %v17679_v26 = vsub.f32 %v25252_v55, %v25252_v55  ;;  %vm25254_vm6 = vnez %v25253_v25  ;;  %vm25256_vm3 = vnez %v25255_v56  ;;  %v25260_v24 = vand.u32 4294901760, %v17616_v52  ;;  %v25262_v56 = vld [vmem:[#allocation122_spill] sm:$0xff] }
 0x15b   : > { %v25248_v20 = vsel %vm17665_vm0, 4294967295, %v25247_v20  ;;  %v1684_v0 = vsub.f32 %v17595_v2, %v25250_v46  ;;  %12212 = vmatprep.subr.msk.bf16.mxu0 %vm17665_vm0, %v25163_v5  ;;  %vm17688_vm10 = vmpackc.low %vm25256_vm3, %vm25254_vm6  ;;  %v25257_v46 = vmov 0  ;;  %v17699_v40 = vsub.f32 %v25261_v18, %v25261_v18  ;;  %v25264_v25 = vld [vmem:[#allocation138_spill] sm:$0xff] }
 0x15c   : > { %25249 = vst [vmem:[#allocation221_spill] sm:$0xff] %v25248_v20  ;;  %v25258_v46 = vsel %vm17688_vm10, 4294967295, %v25257_v46  ;;  %v1096_v60 = vsub.f32 %v17616_v52, %v25260_v24  ;;  %12332 = vmatprep.subr.msk.bf16.mxu1 %vm17688_vm10, %v25163_v5  ;;  %vm25263_vm6 = vnez %v25262_v56  ;;  %vm25265_vm3 = vnez %v25264_v25  ;;  %v25270_v56 = vld [vmem:[#allocation126_spill] sm:$0xff] }
 0x15d   : > { %25259 = vst [vmem:[#allocation222_spill] sm:$0xff] %v25258_v46  ;;  %vm17708_vm0 = vmpackc.low %vm25265_vm3, %vm25263_vm6  ;;  %v25266_v50 = vmov 0  ;;  %v1685_v24 = vand.u32 4294901760, %v1684_v0  ;;  %v25269_v49 = vand.u32 4294901760, %v17634_v41  ;;  %vm25271_vm10 = vnez %v25270_v56  ;;  %v25272_v25 = vld [vmem:[#allocation142_spill] sm:$0xff] }
 0x15e   : > { %v25267_v50 = vsel %vm17708_vm0, 4294967295, %v25266_v50  ;;  %12214 = vmatpush1.bf16.msk.msra.mxu0 %vm17708_vm0, %v25163_v5  ;;  %vm25273_vm6 = vnez %v25272_v25  ;;  %v25274_v46 = vmov 0  ;;  %v1097_v0 = vand.u32 4294901760, %v1096_v60 }
 0x15f   : > { %25268 = vst [vmem:[#allocation223_spill] sm:$0xff] %v25267_v50  ;;  %v1106_v55 = vsub.f32 %v17634_v41, %v25269_v49  ;;  %vm17724_vm3 = vmpackc.low %vm25273_vm6, %vm25271_vm10  ;;  %v25277_v48 = vand.u32 4294901760, %v17652_v21  ;;  %v25278_v18 = vand.u32 4294901760, %v17656_v15  ;;  %vm25279_vm10 = vnez %v24999_v38  ;;  %v25292_v38 = vld [vmem:[#allocation81_spill] sm:$0xff] }
 0x160   : > { %v25275_v46 = vsel %vm17724_vm3, 4294967295, %v25274_v46  ;;  %12334 = vmatpush1.bf16.msk.msra.mxu1 %vm17724_vm3, %v25163_v5  ;;  %vm25280_vm6 = vnez %v25074_v35  ;;  %v25281_v60 = vmov 0  ;;  %v17746_v56 = vpack.c.bf16 %v1685_v24, %v1675_v8 }
 0x161   : > { %25276 = vst [vmem:[#allocation224_spill] sm:$0xff] %v25275_v46  ;;  %v1689_v49 = vsub.f32 %v17652_v21, %v25277_v48  ;;  %v1699_v20 = vsub.f32 %v17656_v15, %v25278_v18  ;;  %vm17742_vm0 = vmpackc.low %vm25280_vm6, %vm25279_vm10  ;;  %v1107_v48 = vand.u32 4294901760, %v1106_v55  ;;  %v25285_v25 = vand.u32 4294901760, %v17675_v19 }
 0x162   : > { %v25282_v60 = vsel %vm17742_vm0, 4294967295, %v25281_v60  ;;  %25284 = vst [vmem:[#allocation226_spill] sm:$0xff] %v17746_v56  ;;  %v25286_v50 = vand.u32 4294901760, %v17679_v26  ;;  %12216 = vmatprep.subr.msk.bf16.mxu0 %vm17742_vm0, %v25163_v5  ;;  %vm25287_vm10 = vnez %v25018_v4  ;;  %v25288_v8 = vmov 0  ;;  %v25293_v4 = vld [vmem:[#allocation154_spill] sm:$0xff] }
 0x163   : > { %25283 = vst [vmem:[#allocation225_spill] sm:$0xff] %v25282_v60  ;;  %v1101_v18 = vsub.f32 %v17675_v19, %v25285_v25  ;;  %vm17761_vm6 = vmpackc.low %vm17258_vm14, %vm25287_vm10  ;;  %v1690_v55 = vand.u32 4294901760, %v1689_v49  ;;  %v1700_v24 = vand.u32 4294901760, %v1699_v20  ;;  %v25291_v25 = vand.u32 4294901760, %v17699_v40  ;;  %v25300_v60 = vld [vmem:[#allocation95_spill] sm:$0xff] }
 0x164   : > { %v1111_v46 = vsub.f32 %v17679_v26, %v25286_v50  ;;  %v25289_v8 = vsel %vm17761_vm6, 4294967295, %v25288_v8  ;;  %v17770_v50 = vsub.f32 %v25292_v38, %v25292_v38  ;;  %12336 = vmatprep.subr.msk.bf16.mxu1 %vm17761_vm6, %v25163_v5  ;;  %vm25294_vm3 = vnez %v25293_v4 }
 0x165   : > { %25290 = vst [vmem:[#allocation227_spill] sm:$0xff] %v25289_v8  ;;  %v1694_v35 = vsub.f32 %v17699_v40, %v25291_v25  ;;  %vm25295_vm10 = vnez %v25065_v47  ;;  %v25296_v42 = vmov 0  ;;  %v17783_v20 = vpack.c.bf16 %v1107_v48, %v1097_v0  ;;  %v25301_v8 = vld [vmem:[#allocation158_spill] sm:$0xff] }
 0x166   : > { %vm17779_vm14 = vmpackc.low %vm25295_vm10, %vm25294_vm3  ;;  %v1102_v49 = vand.u32 4294901760, %v1101_v18  ;;  %v1112_v25 = vand.u32 4294901760, %v1111_v46  ;;  %v17787_v38 = vsub.f32 %v25300_v60, %v25300_v60  ;;  %vm25302_vm6 = vnez %v25301_v8  ;;  %v25307_v18 = vld [vmem:[#allocation111_spill] sm:$0xff] }
 0x167   : > { %v25297_v42 = vsel %vm17779_vm14, 4294967295, %v25296_v42  ;;  %25299 = vst [vmem:[#allocation229_spill] sm:$0xff] %v17783_v20  ;;  %12218 = vmatpush1.bf16.msk.msra.mxu0 %vm17779_vm14, %v25163_v5  ;;  %vm17796_vm3 = vmpackc.low %vm17232_vm2, %vm25302_vm6  ;;  %v25303_v4 = vmov 0  ;;  %v17800_v0 = vpack.c.bf16 %v1700_v24, %v1690_v55  ;;  %v1695_v48 = vand.u32 4294901760, %v1694_v35  ;;  %v25309_v35 = vld [vmem:[#allocation99_spill] sm:$0xff] }
 0x168   : > { %25298 = vst [vmem:[#allocation228_spill] sm:$0xff] %v25297_v42  ;;  %v25304_v4 = vsel %vm17796_vm3, 4294967295, %v25303_v4  ;;  %v17805_v60 = vsub.f32 %v25307_v18, %v25307_v18  ;;  %12338 = vmatpush1.bf16.msk.msra.mxu1 %vm17796_vm3, %v25163_v5  ;;  %v23523_v8 = vmov 1.0   ;;  %v17813_v36 = vpack.c.bf16 %v1112_v25, %v1102_v49  ;;  %v25310_v46 = vld [vmem:[#allocation115_spill] sm:$0xff]  ;;  %v25312_v25 = vld [vmem:[#allocation93_spill] sm:$0xff] }
 0x169   : > { %25305 = vst [vmem:[#allocation230_spill] sm:$0xff] %v25304_v4  ;;  %25306 = vst [vmem:[#allocation231_spill] sm:$0xff] %v17800_v0  ;;  %11156 = vmatprep.subr.msk.mxu0 %vm17340_vm1, %v23523_v8  ;;  %v17818_v24 = vsub.f32 %v25309_v35, %v25309_v35  ;;  %v17822_v18 = vsub.f32 %v25310_v46, %v25310_v46  ;;  %11222 = vmatprep.subr.msk.mxu1 %vm17366_vm12, %v23523_v8  ;;  %v25311_v47 = vand.u32 4294901760, %v17770_v50  ;;  %v25313_v35 = vld [vmem:[#allocation109_spill] sm:$0xff]  ;;  %v25316_v49 = vmov 1.0  }
 0x16a   : > { %25308 = vst [vmem:[#allocation232_spill] sm:$0xff] %v17813_v36  ;;  %v17833_v55 = vsub.f32 %v25312_v25, %v25312_v25  ;;  %v17837_v54 = vsub.f32 %v25313_v35, %v25313_v35  ;;  %v25314_v46 = vand.u32 4294901760, %v17787_v38  ;;  %v25317_v35 = vand.u32 4294901760, %v17805_v60 }
 0x16b   : > { %v1704_v4 = vsub.f32 %v17770_v50, %v25311_v47  ;;  %v23541_v8 = vand.u32 4294901760, %v17818_v24  ;;  %v17846_v47 = vsub.f32 %v25315_v39, %v25315_v39  ;;  %11157 = vmatpush1.msk.msra.mxu0 %vm17327_vm7, %v25316_v49  ;;  %v25382_v5 = vand.u32 4294901760, %v17482_v43 }
 0x16c   : > { %v1116_v42 = vsub.f32 %v17787_v38, %v25314_v46  ;;  %v1126_v10 = vsub.f32 %v17805_v60, %v25317_v35  ;;  %11223 = vmatpush1.msk.msra.mxu1 %vm17353_vm11, %v25316_v49  ;;  %12220 = vmatprep.subr.bf16.mxu0 %v17608_v3  ;;  %v25320_v3 = vand.u32 4294901760, %v17833_v55  ;;  %v25321_v44 = vand.u32 4294901760, %v17837_v54  ;;  %v25325_v49 = vld [vmem:[#allocation127_spill] sm:$0xff] }
 0x16d   : > { %v1705_v25 = vand.u32 4294901760, %v1704_v4  ;;  %v1709_v58 = vsub.f32 %v17818_v24, %v23541_v8  ;;  %v25318_v4 = vand.u32 4294901760, %v17822_v18  ;;  %12340 = vmatprep.subr.bf16.mxu1 %v17610_v28  ;;  %1068 = vmatmul.mubr.f32.vlgmr.msra.gmra.mrb[0].mxu0 %v17647_v45  ;;  %v25322_v28 = vand.u32 4294901760, %v17846_v47 }
 0x16e   : > { %v1117_v39 = vand.u32 4294901760, %v1116_v42  ;;  %v1127_v13 = vand.u32 4294901760, %v1126_v10  ;;  %v1121_v42 = vsub.f32 %v17833_v55, %v25320_v3  ;;  %v1131_v8 = vsub.f32 %v17837_v54, %v25321_v44  ;;  %12222 = vmatpush1.bf16.msra.mxu0 %v17629_v62  ;;  %1661 = vmatmul.mubr.f32.vlgmr.msra.gmra.mrb[0].mxu1 %v17647_v45  ;;  %v25327_v45 = vld [vmem:[#allocation143_spill] sm:$0xff] }
 0x16f   : > { %v1719_v51 = vsub.f32 %v17822_v18, %v25318_v4  ;;  %v17869_v46 = vpack.c.bf16 %v1705_v25, %v1695_v48  ;;  %v1710_v4 = vand.u32 4294901760, %v1709_v58  ;;  %v1714_v48 = vsub.f32 %v17846_v47, %v25322_v28  ;;  %v25323_v25 = vld [vmem:[#allocation113_spill] sm:$0xff]  ;;  %12342 = vmatpush1.bf16.msra.mxu1 %v17746_v56  ;;  %12224 = vmatprep.subr.bf16.mxu0 %v17783_v20 }
 0x170   : > { %v17884_v10 = vsub.f32 %v25323_v25, %v25323_v25  ;;  %v17888_v3 = vpack.c.bf16 %v1127_v13, %v1117_v39  ;;  %v1122_v44 = vand.u32 4294901760, %v1121_v42  ;;  %v1132_v62 = vand.u32 4294901760, %v1131_v8  ;;  %12344 = vmatprep.subr.bf16.mxu1 %v17800_v0  ;;  %1226 = vmatprep.mubr.f32.mxu0 %v25169_v16  ;;  %v25329_v39 = vld [vmem:[#allocation131_spill] sm:$0xff]  ;;  %v25333_v0 = vld [vmem:[#allocation129_spill] sm:$0xff] }
 0x171   : > { %25319 = vst [vmem:[#allocation233_spill] sm:$0xff] %v17869_v46  ;;  %v1720_v35 = vand.u32 4294901760, %v1719_v51  ;;  %v17892_v58 = vsub.f32 %v25325_v49, %v25325_v49  ;;  %v1715_v28 = vand.u32 4294901760, %v1714_v48  ;;  %v17900_v56 = vsub.f32 %v25327_v45, %v25327_v45  ;;  %v25330_v42 = vld [vmem:[#allocation147_spill] sm:$0xff]  ;;  %1819 = vmatprep.mubr.f32.mxu1 %v25169_v16 }
 0x172   : > { %25324 = vst [vmem:[#allocation234_spill] sm:$0xff] %v17888_v3  ;;  %v23548_v25 = vand.u32 4294901760, %v17884_v10  ;;  %v17903_v13 = vpack.c.bf16 %v1132_v62, %v1122_v44  ;;  %v17908_v49 = vsub.f32 %v25329_v39, %v25329_v39  ;;  %12226 = vmatpush1.bf16.msra.mxu0 %v17813_v36  ;;  %v25332_v44 = vld [vmem:[#allocation141_spill] sm:$0xff] }
 0x173   : > { %v17895_v51 = vpack.c.bf16 %v1720_v35, %v1710_v4  ;;  %v23554_v8 = vand.u32 4294901760, %v17892_v58  ;;  %v17912_v35 = vsub.f32 %v25330_v42, %v25330_v42  ;;  %v25331_v4 = vld [vmem:[#allocation125_spill] sm:$0xff]  ;;  %v17926_v39 = vsub.f32 %v25332_v44, %v25332_v44  ;;  %12346 = vmatpush1.bf16.msra.mxu1 %v17869_v46  ;;  %12228 = vmatprep.subr.bf16.mxu0 %v17888_v3 }
 0x174   : > { %25328 = vst [vmem:[#allocation236_spill] sm:$0xff] %v17903_v13  ;;  %v1724_v45 = vsub.f32 %v17884_v10, %v23548_v25  ;;  %v17922_v48 = vsub.f32 %v25331_v4, %v25331_v4  ;;  %v23560_v25 = vand.u32 4294901760, %v17908_v49  ;;  %v17937_v4 = vsub.f32 %v25333_v0, %v25333_v0 }
 0x175   : > { %25326 = vst [vmem:[#allocation235_spill] sm:$0xff] %v17895_v51  ;;  %v1136_v42 = vsub.f32 %v17892_v58, %v23554_v8  ;;  %12348 = vmatprep.subr.bf16.mxu1 %v17895_v51  ;;  %v25334_v36 = vand.u32 4294901760, %v17900_v56  ;;  %v25335_v22 = vand.u32 4294901760, %v17912_v35 }
 0x176   : > { %v1725_v44 = vand.u32 4294901760, %v1724_v45  ;;  %v23566_v3 = vand.u32 4294901760, %v17922_v48  ;;  %v1729_v62 = vsub.f32 %v17908_v49, %v23560_v25  ;;  %v23569_v51 = vand.u32 4294901760, %v17937_v4  ;;  %12230 = vmatpush1.bf16.msra.mxu0 %v17903_v13 }
 0x177   : > { %v1146_v46 = vsub.f32 %v17900_v56, %v25334_v36  ;;  %v1137_v8 = vand.u32 4294901760, %v1136_v42  ;;  %v1739_v0 = vsub.f32 %v17912_v35, %v25335_v22  ;;  %v25337_v42 = vand.u32 4294901760, %v17926_v39 }
 0x178   : > { %v17953_v45 = vpack.c.bf16 %v1725_v44, %v1715_v28  ;;  %v1141_v20 = vsub.f32 %v17922_v48, %v23566_v3  ;;  %v1730_v25 = vand.u32 4294901760, %v1729_v62  ;;  %v1734_v22 = vsub.f32 %v17937_v4, %v23569_v51  ;;  %v25340_v3 = vld [vmem:[#allocation159_spill] sm:$0xff] }
 0x179   : > { %v1147_v36 = vand.u32 4294901760, %v1146_v46  ;;  %v1151_v17 = vsub.f32 %v17926_v39, %v25337_v42  ;;  %v1740_v27 = vand.u32 4294901760, %v1739_v0  ;;  %v17966_v13 = vsub.f32 %v25338_v12, %v25338_v12 }
 0x17a   : > { %25336 = vst [vmem:[#allocation237_spill] sm:$0xff] %v17953_v45  ;;  %12350 = vmatpush1.bf16.msra.mxu1 %v17953_v45  ;;  %v1142_v28 = vand.u32 4294901760, %v1141_v20  ;;  %v17973_v11 = vsub.f32 %v25340_v3, %v25340_v3  ;;  %v1735_v0 = vand.u32 4294901760, %v1734_v22  ;;  %v17980_v51 = vsub.f32 %v17239_v31, %v17239_v31 }
 0x17b   : > { %v17969_v46 = vpack.c.bf16 %v1147_v36, %v1137_v8  ;;  %v1152_v44 = vand.u32 4294901760, %v1151_v17  ;;  %v17975_v62 = vpack.c.bf16 %v1740_v27, %v1730_v25  ;;  %v23570_v42 = vand.u32 4294901760, %v17966_v13  ;;  %v25343_v17 = vld [vmem:[#allocation163_spill] sm:$0xff]  ;;  %v25344_v36 = vld [vmem:[#allocation157_spill] sm:$0xff] }
 0x17c   : > { %v23577_v20 = vand.u32 4294901760, %v17973_v11  ;;  %v17988_v8 = vsub.f32 %v25343_v17, %v25343_v17  ;;  %v17992_v27 = vsub.f32 %v17282_v14, %v17282_v14  ;;  %v18001_v22 = vsub.f32 %v25344_v36, %v25344_v36  ;;  %v25345_v14 = vld [vmem:[#allocation161_spill] sm:$0xff] }
 0x17d   : > { %25339 = vst [vmem:[#allocation238_spill] sm:$0xff] %v17969_v46  ;;  %25341 = vst [vmem:[#allocation239_spill] sm:$0xff] %v17975_v62  ;;  %12232 = vmatprep.subr.bf16.mxu0 %v17969_v46  ;;  %v17983_v12 = vpack.c.bf16 %v1152_v44, %v1142_v28  ;;  %12352 = vmatprep.subr.bf16.mxu1 %v17975_v62  ;;  %v1744_v3 = vsub.f32 %v17966_v13, %v23570_v42  ;;  %v25346_v31 = vand.u32 4294901760, %v17980_v51 }
 0x17e   : > { %v18005_v28 = vsub.f32 %v17213_v29, %v17213_v29  ;;  %v1156_v44 = vsub.f32 %v17973_v11, %v23577_v20  ;;  %v23585_v17 = vand.u32 4294901760, %v17988_v8  ;;  %v23586_v42 = vand.u32 4294901760, %v17992_v27 }
 0x17f   : > { %25342 = vst [vmem:[#allocation240_spill] sm:$0xff] %v17983_v12  ;;  %12234 = vmatpush1.bf16.msra.mxu0 %v17983_v12  ;;  %v18015_v25 = vsub.f32 %v25345_v14, %v25345_v14  ;;  %v1745_v36 = vand.u32 4294901760, %v1744_v3  ;;  %v1166_v29 = vsub.f32 %v17980_v51, %v25346_v31  ;;  %v23587_v62 = vand.u32 4294901760, %v18001_v22 }
 0x180   : > { %v23589_v45 = vand.u32 4294901760, %v18005_v28  ;;  %v1157_v12 = vand.u32 4294901760, %v1156_v44  ;;  %v1749_v20 = vsub.f32 %v17988_v8, %v23585_v17  ;;  %v1759_v46 = vsub.f32 %v17992_v27, %v23586_v42 }
 0x181   : > { %v23588_v14 = vand.u32 4294901760, %v18015_v25  ;;  %v18029_v3 = vpack.c.bf16 %v1745_v36, %v1735_v0  ;;  %v1167_v7 = vand.u32 4294901760, %v1166_v29  ;;  %v1161_v31 = vsub.f32 %v18001_v22, %v23587_v62 }
 0x182   : > { %v1171_v44 = vsub.f32 %v18005_v28, %v23589_v45  ;;  %v1750_v6 = vand.u32 4294901760, %v1749_v20  ;;  %v1760_v34 = vand.u32 4294901760, %v1759_v46  ;;  %v18042_v42 = vsub.f32 %v17265_v33, %v17265_v33 }
 0x183   : > { %25347 = vst [vmem:[#allocation241_spill] sm:$0xff] %v18029_v3  ;;  %v1754_v17 = vsub.f32 %v18015_v25, %v23588_v14  ;;  %12354 = vmatpush1.bf16.msra.mxu1 %v18029_v3  ;;  %v18045_v29 = vpack.c.bf16 %v1167_v7, %v1157_v12  ;;  %v1162_v0 = vand.u32 4294901760, %v1161_v31  ;;  %v18049_v62 = vsub.f32 %v17360_v59, %v17360_v59 }
 0x184   : > { %v1172_v36 = vand.u32 4294901760, %v1171_v44  ;;  %v18051_v20 = vpack.c.bf16 %v1760_v34, %v1750_v6  ;;  %v23593_v46 = vand.u32 4294901760, %v18042_v42  ;;  %v18056_v14 = vsub.f32 %v17386_v63, %v17386_v63 }
 0x185   : > { %25348 = vst [vmem:[#allocation242_spill] sm:$0xff] %v18045_v29  ;;  %25349 = vst [vmem:[#allocation243_spill] sm:$0xff] %v18049_v62  ;;  %12236 = vmatprep.subr.bf16.mxu0 %v18045_v29  ;;  %v18062_v7 = vand.u32 4294901760, %v18049_v62  ;;  %v18066_v12 = vsub.f32 %v17347_v57, %v17347_v57  ;;  %v18070_v34 = vsub.f32 %v17373_v61, %v17373_v61  ;;  %v1755_v6 = vand.u32 4294901760, %v1754_v17 }
 0x186   : > { %25350 = vst [vmem:[#allocation244_spill] sm:$0xff] %v18051_v20  ;;  %25351 = vst [vmem:[#allocation245_spill] sm:$0xff] %v18056_v14  ;;  %v18059_v45 = vpack.c.bf16 %v1172_v36, %v1162_v0  ;;  %12356 = vmatprep.subr.bf16.mxu1 %v18051_v20  ;;  %v1764_v31 = vsub.f32 %v18042_v42, %v23593_v46  ;;  %v18077_v44 = vand.u32 4294901760, %v18056_v14 }
 0x187   : > { %25353 = vst [vmem:[#allocation247_spill] sm:$0xff] %v18062_v7  ;;  %25354 = vst [vmem:[#allocation248_spill] sm:$0xff] %v18066_v12  ;;  %v1176_v0 = vsub.f32 %v18049_v62, %v18062_v7  ;;  %v18083_v36 = vand.u32 4294901760, %v18066_v12  ;;  %v18086_v61 = vand.u32 4294901760, %v18070_v34  ;;  %v18102_v3 = vpack.c.bf16 %v17456_v37, %v17437_v53 }
 0x188   : > { %25352 = vst [vmem:[#allocation246_spill] sm:$0xff] %v18059_v45  ;;  %25355 = vst [vmem:[#allocation249_spill] sm:$0xff] %v18070_v34  ;;  %12238 = vmatpush1.bf16.msra.mxu0 %v18059_v45  ;;  %v1765_v57 = vand.u32 4294901760, %v1764_v31  ;;  %v1769_v17 = vsub.f32 %v18056_v14, %v18077_v44  ;;  %v18113_v45 = vpack.c.bf16 %v17486_v23, %v17482_v43  ;;  %v25380_v7 = vand.u32 4294901760, %v17464_v30 }
 0x189   : > { %25356 = vst [vmem:[#allocation250_spill] sm:$0xff] %v18077_v44  ;;  %25357 = vst [vmem:[#allocation251_spill] sm:$0xff] %v18083_v36  ;;  %v18090_v63 = vand.u32 4294901760, %v1176_v0  ;;  %v1181_v46 = vsub.f32 %v18066_v12, %v18083_v36  ;;  %v1774_v59 = vsub.f32 %v18070_v34, %v18086_v61  ;;  %v18109_v0 = vpack.c.bf16 %v17464_v30, %v17460_v32 }
 0x18a   : > { %25358 = vst [vmem:[#allocation252_spill] sm:$0xff] %v18086_v61  ;;  %v18096_v33 = vpack.c.bf16 %v1765_v57, %v1755_v6  ;;  %v18098_v20 = vand.u32 4294901760, %v1769_v17  ;;  %25362 = vst [vmem:[#allocation256_spill] sm:$0xff] %v18102_v3  ;;  %v18120_v6 = vpack.c.bf16 %v17595_v2, %v17522_v1  ;;  %v18128_v17 = vpack.c.bf16 %v17656_v15, %v17652_v21 }
 0x18b   : > { %25359 = vst [vmem:[#allocation253_spill] sm:$0xff] %v18090_v63  ;;  %1178 = vmatprep.subr.mxu0 %v18090_v63  ;;  %v18105_v31 = vand.u32 4294901760, %v1181_v46  ;;  %25364 = vst [vmem:[#allocation258_spill] sm:$0xff] %v18109_v0  ;;  %v18116_v57 = vand.u32 4294901760, %v1774_v59  ;;  %v18124_v46 = vpack.c.bf16 %v17634_v41, %v17616_v52  ;;  %v18134_v59 = vpack.c.bf16 %v17679_v26, %v17675_v19 }
 0x18c   : > { %25360 = vst [vmem:[#allocation254_spill] sm:$0xff] %v18096_v33  ;;  %25361 = vst [vmem:[#allocation255_spill] sm:$0xff] %v18098_v20  ;;  %12358 = vmatpush1.bf16.msra.mxu1 %v18096_v33  ;;  %v18138_v33 = vpack.c.bf16 %v17770_v50, %v17699_v40  ;;  %v18142_v63 = vpack.c.bf16 %v17805_v60, %v17787_v38  ;;  %v18156_v29 = vpack.c.bf16 %v17900_v56, %v17892_v58 }
 0x18d   : > { %25363 = vst [vmem:[#allocation257_spill] sm:$0xff] %v18105_v31  ;;  %25365 = vst [vmem:[#allocation259_spill] sm:$0xff] %v18113_v45  ;;  %1771 = vmatprep.subr.mxu1 %v18098_v20  ;;  %1183 = vmatpush1.msra.mxu0 %v18105_v31  ;;  %v18148_v20 = vpack.c.bf16 %v17822_v18, %v17818_v24  ;;  %v18152_v31 = vpack.c.bf16 %v17837_v54, %v17833_v55  ;;  %v25377_v61 = vand.u32 4294901760, %v17456_v37 }
 0x18e   : > { %25366 = vst [vmem:[#allocation260_spill] sm:$0xff] %v18116_v57  ;;  %25367 = vst [vmem:[#allocation261_spill] sm:$0xff] %v18120_v6  ;;  %12240 = vmatprep.subr.bf16.mxu0 %v18102_v3  ;;  %1228 = vmatmul.mubr.f32.vlgmr.msra.gmra.mrb[0].mxu0 %v17502_v9  ;;  %v25376_v3 = vand.u32 4294901760, %v17437_v53  ;;  %v25379_v44 = vand.u32 4294901760, %v17460_v32  ;;  %v25383_v12 = vand.u32 4294901760, %v17486_v23  ;;  %v25385_v37 = vand.u32 4294901760, %v17522_v1 }
 0x18f   : > { %25368 = vst [vmem:[#allocation262_spill] sm:$0xff] %v18124_v46  ;;  %25369 = vst [vmem:[#allocation263_spill] sm:$0xff] %v18128_v17  ;;  %12242 = vmatpush1.bf16.msra.mxu0 %v18113_v45  ;;  %1320 = vmatprep.mubr.f32.mxu0 %v25169_v16  ;;  %v25388_v30 = vand.u32 4294901760, %v17616_v52  ;;  %v25389_v32 = vand.u32 4294901760, %v17634_v41  ;;  %v25391_v43 = vand.u32 4294901760, %v17652_v21  ;;  %v25394_v1 = vand.u32 4294901760, %v17675_v19 }
 0x190   : > { %25370 = vst [vmem:[#allocation264_spill] sm:$0xff] %v18134_v59  ;;  %25371 = vst [vmem:[#allocation265_spill] sm:$0xff] %v18138_v33  ;;  %v18164_v36 = vpack.c.bf16 %v25377_v61, %v25376_v3  ;;  %v18170_v34 = vpack.c.bf16 %v25380_v7, %v25379_v44  ;;  %v18176_v14 = vpack.c.bf16 %v25383_v12, %v25382_v5  ;;  %1776 = vmatpush1.msra.mxu1 %v18116_v57 }
 0x191   : > { %25372 = vst [vmem:[#allocation266_spill] sm:$0xff] %v18142_v63  ;;  %25373 = vst [vmem:[#allocation267_spill] sm:$0xff] %v18148_v20  ;;  %12244 = vmatprep.subr.bf16.mxu0 %v18124_v46  ;;  %v25386_v61 = vand.u32 4294901760, %v17595_v2  ;;  %v18190_v3 = vpack.c.bf16 %v25389_v32, %v25388_v30  ;;  %v25392_v5 = vand.u32 4294901760, %v17656_v15  ;;  %12360 = vmatprep.subr.bf16.mxu1 %v18109_v0  ;;  %v25395_v2 = vand.u32 4294901760, %v17679_v26  ;;  %v25484_v0 = vld [vmem:[#allocation59_spill] sm:$0xff] }
 0x192   : > { %25374 = vst [vmem:[#allocation268_spill] sm:$0xff] %v18152_v31  ;;  %25375 = vst [vmem:[#allocation269_spill] sm:$0xff] %v18156_v29  ;;  %1821 = vmatmul.mubr.f32.vlgmr.msra.gmra.mrb[0].mxu1 %v17502_v9  ;;  %v25397_v52 = vand.u32 4294901760, %v17699_v40  ;;  %v25398_v41 = vand.u32 4294901760, %v17770_v50  ;;  %v25400_v15 = vand.u32 4294901760, %v17787_v38  ;;  %v25401_v21 = vand.u32 4294901760, %v17805_v60 }
 0x193   : > { %25378 = vst [vmem:[#allocation270_spill] sm:$0xff] %v18164_v36  ;;  %25381 = vst [vmem:[#allocation271_spill] sm:$0xff] %v18170_v34  ;;  %v18184_v53 = vpack.c.bf16 %v25386_v61, %v25385_v37  ;;  %v18196_v23 = vpack.c.bf16 %v25392_v5, %v25391_v43  ;;  %v18204_v7 = vpack.c.bf16 %v25395_v2, %v25394_v1  ;;  %12362 = vmatpush1.bf16.msra.mxu1 %v18120_v6 }
 0x194   : > { %25384 = vst [vmem:[#allocation272_spill] sm:$0xff] %v18176_v14  ;;  %25390 = vst [vmem:[#allocation274_spill] sm:$0xff] %v18190_v3  ;;  %v18210_v12 = vpack.c.bf16 %v25398_v41, %v25397_v52  ;;  %v18216_v44 = vpack.c.bf16 %v25401_v21, %v25400_v15  ;;  %1913 = vmatprep.mubr.f32.mxu1 %v25169_v16  ;;  %v25403_v26 = vand.u32 4294901760, %v17818_v24  ;;  %v25404_v19 = vand.u32 4294901760, %v17822_v18 }
 0x195   : > { %25387 = vst [vmem:[#allocation273_spill] sm:$0xff] %v18184_v53  ;;  %25393 = vst [vmem:[#allocation275_spill] sm:$0xff] %v18196_v23  ;;  %v25406_v40 = vand.u32 4294901760, %v17833_v55  ;;  %v25407_v50 = vand.u32 4294901760, %v17837_v54  ;;  %v25409_v38 = vand.u32 4294901760, %v17846_v47  ;;  %v25410_v60 = vand.u32 4294901760, %v17884_v10  ;;  %12364 = vmatprep.subr.bf16.mxu1 %v18128_v17  ;;  %12246 = vmatpush1.bf16.msra.mxu0 %v18134_v59 }
 0x196   : > { %25396 = vst [vmem:[#allocation276_spill] sm:$0xff] %v18204_v7  ;;  %25399 = vst [vmem:[#allocation277_spill] sm:$0xff] %v18210_v12  ;;  %v18224_v37 = vpack.c.bf16 %v25404_v19, %v25403_v26  ;;  %v25412_v24 = vand.u32 4294901760, %v17892_v58  ;;  %v25413_v18 = vand.u32 4294901760, %v17900_v56  ;;  %v25415_v54 = vand.u32 4294901760, %v17908_v49  ;;  %12248 = vmatprep.subr.bf16.mxu0 %v18142_v63  ;;  %v25483_v17 = vld [vmem:[#allocation43_spill] sm:$0xff] }
 0x197   : > { %25402 = vst [vmem:[#allocation278_spill] sm:$0xff] %v18216_v44  ;;  %v18230_v61 = vpack.c.bf16 %v25407_v50, %v25406_v40  ;;  %v18236_v30 = vpack.c.bf16 %v25410_v60, %v25409_v38  ;;  %v25416_v55 = vand.u32 4294901760, %v17912_v35  ;;  %v25418_v5 = vand.u32 4294901760, %v17922_v48  ;;  %12366 = vmatpush1.bf16.msra.mxu1 %v18138_v33  ;;  %v25493_v59 = vld [vmem:[#allocation57_spill] sm:$0xff] }
 0x198   : > { %25405 = vst [vmem:[#allocation279_spill] sm:$0xff] %v18224_v37  ;;  %v18244_v32 = vpack.c.bf16 %v25413_v18, %v25412_v24  ;;  %v25419_v1 = vand.u32 4294901760, %v17926_v39  ;;  %v25421_v58 = vand.u32 4294901760, %v17937_v4  ;;  %v25422_v56 = vand.u32 4294901760, %v17966_v13  ;;  %12368 = vmatprep.subr.bf16.mxu1 %v18148_v20  ;;  %v25482_v20 = vld [vmem:[#allocation55_spill] sm:$0xff] }
 0x199   : > { %25408 = vst [vmem:[#allocation280_spill] sm:$0xff] %v18230_v61  ;;  %25411 = vst [vmem:[#allocation281_spill] sm:$0xff] %v18236_v30  ;;  %v18250_v43 = vpack.c.bf16 %v25416_v55, %v25415_v54  ;;  %v25424_v41 = vand.u32 4294901760, %v17973_v11  ;;  %v25425_v15 = vand.u32 4294901760, %v17980_v51  ;;  %v25427_v26 = vand.u32 4294901760, %v17988_v8  ;;  %12250 = vmatpush1.bf16.msra.mxu0 %v18152_v31  ;;  %v25497_v31 = vld [vmem:[#allocation75_spill] sm:$0xff] }
 0x19a   : > { %25414 = vst [vmem:[#allocation282_spill] sm:$0xff] %v18244_v32  ;;  %v18256_v2 = vpack.c.bf16 %v25419_v1, %v25418_v5  ;;  %v18263_v52 = vpack.c.bf16 %v25422_v56, %v25421_v58  ;;  %v25428_v19 = vand.u32 4294901760, %v17992_v27  ;;  %v25430_v50 = vand.u32 4294901760, %v18001_v22  ;;  %12252 = vmatprep.subr.bf16.mxu0 %v18156_v29  ;;  %v25459_v56 = vld [vmem:[#allocation213_spill] sm:$0xff] }
 0x19b   : > { %25417 = vst [vmem:[#allocation283_spill] sm:$0xff] %v18250_v43  ;;  %v18269_v21 = vpack.c.bf16 %v25425_v15, %v25424_v41  ;;  %v25431_v38 = vand.u32 4294901760, %v18005_v28  ;;  %v25433_v24 = vand.u32 4294901760, %v18015_v25  ;;  %v25434_v18 = vand.u32 4294901760, %v18042_v42  ;;  %v25461_v15 = vld [vmem:[#allocation214_spill] sm:$0xff] }
 0x19c   : > { %25420 = vst [vmem:[#allocation284_spill] sm:$0xff] %v18256_v2  ;;  %25423 = vst [vmem:[#allocation285_spill] sm:$0xff] %v18263_v52  ;;  %v18275_v40 = vpack.c.bf16 %v25428_v19, %v25427_v26  ;;  %v18292_v55 = vpack.c.bf16 %v17884_v10, %v17846_v47  ;;  %v18298_v5 = vpack.c.bf16 %v17912_v35, %v17908_v49  ;;  %v25446_v35 = vmov 1.0|1.0   ;;  %v25463_v26 = vld [vmem:[#allocation217_spill] sm:$0xff] }
 0x19d   : > { %25426 = vst [vmem:[#allocation286_spill] sm:$0xff] %v18269_v21  ;;  %v18281_v60 = vpack.c.bf16 %v25431_v38, %v25430_v50  ;;  %v18287_v54 = vpack.c.bf16 %v25434_v18, %v25433_v24  ;;  %v18302_v1 = vpack.c.bf16 %v17926_v39, %v17922_v48  ;;  %v18307_v58 = vpack.c.bf16 %v17980_v51, %v17973_v11  ;;  %v25444_v51 = vld [vmem:[#allocation245_spill] sm:$0xff]  ;;  %v25467_v50 = vld [vmem:[#allocation219_spill] sm:$0xff]  ;;  %v25469_v38 = vld [vmem:[#allocation222_spill] sm:$0xff] }
 0x19e   : > { %25429 = vst [vmem:[#allocation287_spill] sm:$0xff] %v18275_v40  ;;  %25436 = vst [vmem:[#allocation290_spill] sm:$0xff] %v18292_v55  ;;  %12370 = vmatpush1.bf16.msra.mxu1 %v18292_v55  ;;  %v18312_v47 = vpack.c.bf16 %v17966_v13, %v17937_v4  ;;  %v18318_v10 = vpack.c.bf16 %v17992_v27, %v17988_v8  ;;  %v18322_v49 = vpack.c.bf16 %v18005_v28, %v18001_v22  ;;  %v25445_v13 = vld [vmem:[#allocation248_spill] sm:$0xff]  ;;  %v25448_v39 = vld [vmem:[#allocation209_spill] sm:$0xff] }
 0x19f   : > { %25432 = vst [vmem:[#allocation288_spill] sm:$0xff] %v18281_v60  ;;  %25435 = vst [vmem:[#allocation289_spill] sm:$0xff] %v18287_v54  ;;  %12372 = vmatprep.subr.bf16.mxu1 %v18298_v5  ;;  %12254 = vmatpush1.bf16.msra.mxu0 %v18302_v1  ;;  %v18328_v11 = vpack.c.bf16 %v18042_v42, %v18015_v25  ;;  %v25450_v42 = vld [vmem:[#allocation249_spill] sm:$0xff]  ;;  %v25452_v27 = vld [vmem:[#allocation204_spill] sm:$0xff]  ;;  %v18407_v33 = vsub.f32 %v25482_v20, %v25482_v20 }
 0x1a0   : > { %25437 = vst [vmem:[#allocation291_spill] sm:$0xff] %v18298_v5  ;;  %25438 = vst [vmem:[#allocation292_spill] sm:$0xff] %v18302_v1  ;;  %12256 = vmatprep.subr.bf16.mxu0 %v18307_v58  ;;  %v25453_v25 = vld [vmem:[#allocation206_spill] sm:$0xff]  ;;  %v25455_v22 = vld [vmem:[#allocation208_spill] sm:$0xff]  ;;  %v25480_v5 = vmov 1.0   ;;  %v18411_v6 = vsub.f32 %v25483_v17, %v25483_v17  ;;  %v18415_v57 = vsub.f32 %v25484_v0, %v25484_v0  ;;  %v18445_v46 = vsub.f32 %v25493_v59, %v25493_v59 }
 0x1a1   : > { %25439 = vst [vmem:[#allocation293_spill] sm:$0xff] %v18307_v58  ;;  %25440 = vst [vmem:[#allocation294_spill] sm:$0xff] %v18312_v47  ;;  %vm25454_vm6 = vnez %v25453_v25  ;;  %vm25456_vm10 = vnez %v25455_v22  ;;  %v25457_v28 = vld [vmem:[#allocation210_spill] sm:$0xff]  ;;  %v25465_v19 = vld [vmem:[#allocation221_spill] sm:$0xff]  ;;  %v18460_v63 = vsub.f32 %v25497_v31, %v25497_v31  ;;  %v25672_v8 = vand.u32 4294901760, %v18407_v33 }
 0x1a2   : > { %25441 = vst [vmem:[#allocation295_spill] sm:$0xff] %v18318_v10  ;;  %25442 = vst [vmem:[#allocation296_spill] sm:$0xff] %v18322_v49  ;;  %12374 = vmatpush1.bf16.msra.mxu1 %v18312_v47  ;;  %vm25458_vm2 = vnez %v25457_v28  ;;  %v25471_v24 = vld [vmem:[#allocation223_spill] sm:$0xff]  ;;  %v25489_v0 = vld [vmem:[#allocation53_spill] sm:$0xff] }
 0x1a3   : > { %25443 = vst [vmem:[#allocation297_spill] sm:$0xff] %v18328_v11  ;;  %12376 = vmatprep.subr.bf16.mxu1 %v18318_v10  ;;  %12258 = vmatpush1.bf16.msra.mxu0 %v18322_v49  ;;  %v25479_v10 = vld [vmem:[#allocation39_spill] sm:$0xff]  ;;  %v18433_v58 = vsub.f32 %v25489_v0, %v25489_v0  ;;  %v25490_v1 = vld [vmem:[#allocation41_spill] sm:$0xff]  ;;  %25494 = vst [vmem:[#allocation299_spill] sm:$0xff] %v18445_v46  ;;  %v2272_v4 = vsub.f32 %v18407_v33, %v25672_v8 }
 0x1a4   : > { %1275 = vmatprep.subr.mxu0 %v18049_v62  ;;  %v18400_v47 = vsub.f32 %v25479_v10, %v25479_v10  ;;  %v25486_v10 = vld [vmem:[#allocation37_spill] sm:$0xff]  ;;  %v18437_v29 = vsub.f32 %v25490_v1, %v25490_v1  ;;  %v25495_v17 = vld [vmem:[#allocation71_spill] sm:$0xff] }
 0x1a5   : > { %v18422_v62 = vsub.f32 %v25486_v10, %v25486_v10  ;;  %v25492_v10 = vld [vmem:[#allocation212_spill] sm:$0xff]  ;;  %v18449_v0 = vsub.f32 %v25495_v17, %v25495_v17  ;;  %v25498_v59 = vld [vmem:[#allocation91_spill] sm:$0xff]  ;;  %v25502_v20 = vld [vmem:[#allocation85_spill] sm:$0xff] }
 0x1a6   : > { %12378 = vmatpush1.bf16.msra.mxu1 %v18328_v11  ;;  %25491 = vst [vmem:[#allocation298_spill] sm:$0xff] %v18437_v29  ;;  %v18477_v31 = vsub.f32 %v25502_v20, %v25502_v20  ;;  %v25504_v49 = vld [vmem:[#allocation73_spill] sm:$0xff]  ;;  %v25510_v20 = vld [vmem:[#allocation119_spill] sm:$0xff] }
 0x1a7   : > { %1868 = vmatprep.subr.mxu1 %v25444_v51  ;;  %1277 = vmatpush1.msra.mxu0 %v25445_v13  ;;  %v25476_v51 = vld [vmem:[#allocation227_spill] sm:$0xff]  ;;  %v25506_v17 = vld [vmem:[#allocation89_spill] sm:$0xff]  ;;  %v18496_v55 = vsub.f32 %v25510_v20, %v25510_v20 }
 0x1a8   : > { %12260 = vmatprep.subr.msk.bf16.mxu0 %vm17431_vm15, %v25446_v35  ;;  %1323 = vmatmul.mubr.f32.vlgmr.msra.gmra.mrb[0].mxu0 %v25448_v39  ;;  %25503 = vst [vmem:[#allocation301_spill] sm:$0xff] %v18477_v31  ;;  %v18488_v1 = vsub.f32 %v25506_v17, %v25506_v17  ;;  %v25514_v17 = vld [vmem:[#allocation123_spill] sm:$0xff]  ;;  %v25520_v11 = vld [vmem:[#allocation105_spill] sm:$0xff] }
 0x1a9   : > { %12262 = vmatpush1.bf16.msk.msra.mxu0 %vm17473_vm13, %v25446_v35  ;;  %1393 = vmatprep.mubr.f32.mxu0 %v25169_v16  ;;  %25511 = vst [vmem:[#allocation305_spill] sm:$0xff] %v18496_v55  ;;  %v25524_v20 = vld [vmem:[#allocation135_spill] sm:$0xff] }
 0x1aa   : > { %1870 = vmatpush1.msra.mxu1 %v25450_v42  ;;  %12264 = vmatprep.subr.msk.bf16.mxu0 %vm17511_vm9, %v25446_v35  ;;  %v25474_v42 = vld [vmem:[#allocation224_spill] sm:$0xff]  ;;  %25507 = vst [vmem:[#allocation303_spill] sm:$0xff] %v18488_v1  ;;  %v25532_v18 = vld [vmem:[#allocation167_spill] sm:$0xff] }
 0x1ab   : > { %12380 = vmatprep.subr.msk.bf16.mxu1 %vm17449_vm4, %v25446_v35  ;;  %1916 = vmatmul.mubr.f32.vlgmr.msra.gmra.mrb[0].mxu1 %v25448_v39  ;;  %vm25464_vm4 = vnez %v25463_v26  ;;  %v18464_v39 = vsub.f32 %v25498_v59, %v25498_v59  ;;  %v18481_v59 = vsub.f32 %v25504_v49, %v25504_v49  ;;  %v25522_v49 = vld [vmem:[#allocation121_spill] sm:$0xff] }
 0x1ac   : > { %12382 = vmatpush1.bf16.msk.msra.mxu1 %vm25454_vm6, %v25446_v35  ;;  %1986 = vmatprep.mubr.f32.mxu1 %v25169_v16  ;;  %vm25462_vm6 = vnez %v25461_v15  ;;  %v25538_v26 = vld [vmem:[#allocation169_spill] sm:$0xff]  ;;  %v25548_v15 = vand.u32 4294901760, %v18433_v58 }
 0x1ad   : > { %12384 = vmatprep.subr.msk.bf16.mxu1 %vm25456_vm10, %v25446_v35  ;;  %12266 = vmatpush1.bf16.msk.msra.mxu0 %vm25458_vm2, %v25446_v35  ;;  %vm25466_vm10 = vnez %v25465_v19  ;;  %vm25468_vm2 = vnez %v25467_v50  ;;  %25505 = vst [vmem:[#allocation302_spill] sm:$0xff] %v18481_v59 }
 0x1ae   : > { %12268 = vmatprep.subr.msk.bf16.mxu0 %vm17586_vm8, %v25446_v35  ;;  %vm25470_vm8 = vnez %v25469_v38 }
 0x1b0   : > { %12386 = vmatpush1.bf16.msk.msra.mxu1 %vm17572_vm5, %v25446_v35  ;;  %vm25472_vm5 = vnez %v25471_v24 }
 0x1b1   : > { %12388 = vmatprep.subr.msk.bf16.mxu1 %vm25462_vm6, %v25446_v35  ;;  %12270 = vmatpush1.bf16.msk.msra.mxu0 %vm25464_vm4, %v25446_v35  ;;  %vm25475_vm4 = vnez %v25474_v42  ;;  %v18545_v42 = vsub.f32 %v25522_v49, %v25522_v49  ;;  %v25528_v49 = vld [vmem:[#allocation133_spill] sm:$0xff] }
 0x1b2   : > { %12272 = vmatprep.subr.msk.bf16.mxu0 %vm25466_vm10, %v25446_v35  ;;  %vm25477_vm10 = vnez %v25476_v51  ;;  %v25527_v51 = vld [vmem:[#allocation155_spill] sm:$0xff] }
 0x1b3   : > { %25523 = vst [vmem:[#allocation311_spill] sm:$0xff] %v18545_v42 }
 0x1b4   : > { %12390 = vmatpush1.bf16.msk.msra.mxu1 %vm25468_vm2, %v25446_v35 }
 0x1b5   : > { %12392 = vmatprep.subr.msk.bf16.mxu1 %vm25470_vm8, %v25446_v35  ;;  %12274 = vmatpush1.bf16.msk.msra.mxu0 %vm25472_vm5, %v25446_v35 }
 0x1b6   : > { %12276 = vmatprep.subr.msk.bf16.mxu0 %vm17742_vm0, %v25446_v35 }
 0x1b8   : > { %12394 = vmatpush1.bf16.msk.msra.mxu1 %vm25475_vm4, %v25446_v35 }
 0x1b9   : > { %12396 = vmatprep.subr.msk.bf16.mxu1 %vm25477_vm10, %v25446_v35  ;;  %12278 = vmatpush1.bf16.msk.msra.mxu0 %vm17779_vm14, %v25446_v35 }
 0x1ba   : > { %11178 = vmatprep.subr.msk.mxu0 %vm17340_vm1, %v25480_v5 }
 0x1bc   : > { %12398 = vmatpush1.bf16.msk.msra.mxu1 %vm17796_vm3, %v25446_v35 }
 0x1bd   : > { %11244 = vmatprep.subr.msk.mxu1 %vm17366_vm12, %v25480_v5  ;;  %11179 = vmatpush1.msk.msra.mxu0 %vm17327_vm7, %v25480_v5  ;;  %vm25607_vm7 = vnez %v25457_v28  ;;  %v25668_v28 = vmov 0 }
 0x1be   : > { %12280 = vmatprep.subr.bf16.mxu0 %v18164_v36  ;;  %1397 = vmatmul.mubr.f32.vlgmr.msra.gmra.mrb[0].mxu0 %v25492_v10  ;;  %v25496_v36 = vld [vmem:[#allocation87_spill] sm:$0xff] }
 0x1bf   : > { %12282 = vmatpush1.bf16.msra.mxu0 %v18176_v14  ;;  %1511 = vmatprep.mubr.f32.mxu0 %v25169_v16  ;;  %v18456_v45 = vsub.f32 %v25496_v36, %v25496_v36  ;;  %v25500_v14 = vld [vmem:[#allocation69_spill] sm:$0xff] }
 0x1c0   : > { %11245 = vmatpush1.msk.msra.mxu1 %vm17353_vm11, %v25480_v5  ;;  %12284 = vmatprep.subr.bf16.mxu0 %v18190_v3  ;;  %v18473_v36 = vsub.f32 %v25500_v14, %v25500_v14  ;;  %v25508_v14 = vld [vmem:[#allocation103_spill] sm:$0xff]  ;;  %vm25606_vm11 = vnez %v25455_v22  ;;  %v25632_v22 = vld [vmem:[#allocation40_spill] sm:$0xff] }
 0x1c1   : > { %12400 = vmatprep.subr.bf16.mxu1 %v18170_v34  ;;  %1990 = vmatmul.mubr.f32.vlgmr.msra.gmra.mrb[0].mxu1 %v25492_v10  ;;  %v18492_v13 = vsub.f32 %v25508_v14, %v25508_v14  ;;  %v25512_v34 = vld [vmem:[#allocation107_spill] sm:$0xff]  ;;  %v18507_v10 = vsub.f32 %v25514_v17, %v25514_v17  ;;  %v25516_v14 = vld [vmem:[#allocation101_spill] sm:$0xff]  ;;  %v18523_v17 = vsub.f32 %v25520_v11, %v25520_v11 }
 0x1c2   : > { %25501 = vst [vmem:[#allocation300_spill] sm:$0xff] %v18473_v36  ;;  %12402 = vmatpush1.bf16.msra.mxu1 %v18184_v53  ;;  %2104 = vmatprep.mubr.f32.mxu1 %v25169_v16  ;;  %v18503_v3 = vsub.f32 %v25512_v34, %v25512_v34  ;;  %v18511_v5 = vsub.f32 %v25516_v14, %v25516_v14  ;;  %v25518_v53 = vld [vmem:[#allocation117_spill] sm:$0xff]  ;;  %v25526_v14 = vld [vmem:[#allocation139_spill] sm:$0xff] }
 0x1c3   : > { %25509 = vst [vmem:[#allocation304_spill] sm:$0xff] %v18492_v13  ;;  %25515 = vst [vmem:[#allocation307_spill] sm:$0xff] %v18507_v10  ;;  %12404 = vmatprep.subr.bf16.mxu1 %v18196_v23  ;;  %12286 = vmatpush1.bf16.msra.mxu0 %v18204_v7  ;;  %v18519_v34 = vsub.f32 %v25518_v53, %v25518_v53  ;;  %v18549_v11 = vsub.f32 %v25524_v20, %v25524_v20  ;;  %v25525_v23 = vld [vmem:[#allocation151_spill] sm:$0xff]  ;;  %v25529_v20 = vld [vmem:[#allocation149_spill] sm:$0xff] }
 0x1c4   : > { %25513 = vst [vmem:[#allocation306_spill] sm:$0xff] %v18503_v3  ;;  %25517 = vst [vmem:[#allocation308_spill] sm:$0xff] %v18511_v5  ;;  %12288 = vmatprep.subr.bf16.mxu0 %v18216_v44  ;;  %v18554_v7 = vsub.f32 %v25525_v23, %v25525_v23  ;;  %v18562_v53 = vsub.f32 %v25527_v51, %v25527_v51  ;;  %v25531_v44 = vld [vmem:[#allocation153_spill] sm:$0xff]  ;;  %v18582_v51 = vsub.f32 %v25532_v18, %v25532_v18 }
 0x1c5   : > { %25519 = vst [vmem:[#allocation309_spill] sm:$0xff] %v18519_v34  ;;  %25521 = vst [vmem:[#allocation310_spill] sm:$0xff] %v18523_v17 }
 0x1c6   : > { %12406 = vmatpush1.bf16.msra.mxu1 %v18210_v12  ;;  %v18566_v12 = vsub.f32 %v25528_v49, %v25528_v49  ;;  %v25533_v49 = vld [vmem:[#allocation183_spill] sm:$0xff] }
 0x1c7   : > { %12408 = vmatprep.subr.bf16.mxu1 %v18224_v37  ;;  %12290 = vmatpush1.bf16.msra.mxu0 %v18230_v61  ;;  %v18558_v37 = vsub.f32 %v25526_v14, %v25526_v14  ;;  %v18570_v61 = vsub.f32 %v25529_v20, %v25529_v20  ;;  %v18578_v14 = vsub.f32 %v25531_v44, %v25531_v44  ;;  %v25534_v20 = vld [vmem:[#allocation171_spill] sm:$0xff]  ;;  %v25536_v44 = vld [vmem:[#allocation165_spill] sm:$0xff] }
 0x1c8   : > { %12292 = vmatprep.subr.bf16.mxu0 %v18244_v32  ;;  %v25530_v32 = vld [vmem:[#allocation137_spill] sm:$0xff]  ;;  %v18587_v24 = vsub.f32 %v25533_v49, %v25533_v49  ;;  %v18591_v38 = vsub.f32 %v25534_v20, %v25534_v20  ;;  %v18599_v19 = vsub.f32 %v25536_v44, %v25536_v44  ;;  %v25541_v44 = vand.u32 4294901760, %v18407_v33 }
 0x1c9   : > { %v18574_v23 = vsub.f32 %v25530_v32, %v25530_v32  ;;  %v25535_v32 = vld [vmem:[#allocation187_spill] sm:$0xff]  ;;  %v25539_v49 = vld [vmem:[#allocation185_spill] sm:$0xff] }
 0x1ca   : > { %12410 = vmatpush1.bf16.msra.mxu1 %v18236_v30  ;;  %v18595_v50 = vsub.f32 %v25535_v32, %v25535_v32  ;;  %v25537_v30 = vld [vmem:[#allocation181_spill] sm:$0xff]  ;;  %v18611_v32 = vsub.f32 %v25538_v26, %v25538_v26  ;;  %v18633_v41 = vsub.f32 %v25539_v49, %v25539_v49  ;;  %v25540_v26 = vand.u32 4294901760, %v18400_v47 }
 0x1cb   : > { %12412 = vmatprep.subr.bf16.mxu1 %v18250_v43  ;;  %12294 = vmatpush1.bf16.msra.mxu0 %v18256_v2  ;;  %v18607_v20 = vsub.f32 %v25537_v30, %v25537_v30  ;;  %v25543_v43 = vld [vmem:[#allocation247_spill] sm:$0xff]  ;;  %v25544_v2 = vand.u32 4294901760, %v18411_v6  ;;  %v25547_v30 = vand.u32 4294901760, %v18422_v62 }
 0x1cc   : > { %12296 = vmatprep.subr.bf16.mxu0 %v18269_v21  ;;  %v18639_v18 = vpack.c.bf16 %v25541_v44, %v25540_v26  ;;  %v25551_v21 = vand.u32 4294901760, %v18445_v46  ;;  %v25553_v26 = vand.u32 4294901760, %v18449_v0 }
 0x1cd   : > { %v18652_v49 = vpack.c.bf16 %v25548_v15, %v25547_v30  ;;  %v25559_v15 = vand.u32 4294901760, %v18473_v36  ;;  %v25560_v30 = vand.u32 4294901760, %v18477_v31 }
 0x1ce   : > { %12414 = vmatpush1.bf16.msra.mxu1 %v18263_v52  ;;  %25542 = vst [vmem:[#allocation312_spill] sm:$0xff] %v18639_v18 }
 0x1cf   : > { %12416 = vmatprep.subr.bf16.mxu1 %v18275_v40  ;;  %12298 = vmatpush1.bf16.msra.mxu0 %v18281_v60  ;;  %v25545_v40 = vand.u32 4294901760, %v18415_v57  ;;  %25549 = vst [vmem:[#allocation314_spill] sm:$0xff] %v18652_v49  ;;  %v25550_v60 = vand.u32 4294901760, %v18437_v29  ;;  %v18676_v49 = vpack.c.bf16 %v25560_v30, %v25559_v15  ;;  %v25571_v30 = vand.u32 4294901760, %v18511_v5 }
 0x1d0   : > { %1465 = vmatprep.subr.mxu0 %v25543_v43  ;;  %v25554_v43 = vand.u32 4294901760, %v18456_v45 }
 0x1d1   : > { %v18646_v52 = vpack.c.bf16 %v25545_v40, %v25544_v2  ;;  %v18658_v44 = vpack.c.bf16 %v25551_v21, %v25550_v60  ;;  %v25556_v2 = vand.u32 4294901760, %v18460_v63  ;;  %v25557_v40 = vand.u32 4294901760, %v18464_v39  ;;  %25561 = vst [vmem:[#allocation318_spill] sm:$0xff] %v18676_v49 }
 0x1d2   : > { %v18664_v18 = vpack.c.bf16 %v25554_v43, %v25553_v26  ;;  %v25562_v21 = vand.u32 4294901760, %v18481_v59  ;;  %v25563_v60 = vand.u32 4294901760, %v18488_v1  ;;  %v25565_v43 = vand.u32 4294901760, %v18492_v13  ;;  %12418 = vmatpush1.bf16.msra.mxu1 %v18287_v54 }
 0x1d3   : > { %25546 = vst [vmem:[#allocation313_spill] sm:$0xff] %v18646_v52  ;;  %25552 = vst [vmem:[#allocation315_spill] sm:$0xff] %v18658_v44  ;;  %v18670_v52 = vpack.c.bf16 %v25557_v40, %v25556_v2  ;;  %v25566_v26 = vand.u32 4294901760, %v18496_v55  ;;  %v25568_v2 = vand.u32 4294901760, %v18503_v3  ;;  %v25569_v40 = vand.u32 4294901760, %v18507_v10 }
 0x1d4   : > { %25555 = vst [vmem:[#allocation316_spill] sm:$0xff] %v18664_v18  ;;  %v18682_v44 = vpack.c.bf16 %v25563_v60, %v25562_v21  ;;  %v25572_v49 = vand.u32 4294901760, %v18519_v34  ;;  %v25574_v60 = vand.u32 4294901760, %v18523_v17  ;;  %v25578_v54 = vand.u32 4294901760, %v18554_v7 }
 0x1d5   : > { %25558 = vst [vmem:[#allocation317_spill] sm:$0xff] %v18670_v52  ;;  %v18688_v18 = vpack.c.bf16 %v25566_v26, %v25565_v43  ;;  %v18695_v15 = vpack.c.bf16 %v25569_v40, %v25568_v2  ;;  %v25577_v26 = vand.u32 4294901760, %v18549_v11  ;;  %v25580_v2 = vld [vmem:[#allocation250_spill] sm:$0xff]  ;;  %v25581_v40 = vld [vmem:[#allocation251_spill] sm:$0xff]  ;;  %v25694_v52 = vand.u32 4294901760, %v18445_v46 }
 0x1d6   : > { %25564 = vst [vmem:[#allocation319_spill] sm:$0xff] %v18682_v44  ;;  %v18701_v21 = vpack.c.bf16 %v25572_v49, %v25571_v30  ;;  %v25575_v44 = vand.u32 4294901760, %v18545_v42  ;;  %2058 = vmatprep.subr.mxu1 %v25580_v2  ;;  %1468 = vmatpush1.msra.mxu0 %v25581_v40  ;;  %v25582_v49 = vand.u32 4294901760, %v18558_v37  ;;  %v25583_v30 = vand.u32 4294901760, %v18562_v53 }
 0x1d7   : > { %25567 = vst [vmem:[#allocation320_spill] sm:$0xff] %v18688_v18  ;;  %25570 = vst [vmem:[#allocation321_spill] sm:$0xff] %v18695_v15  ;;  %v18713_v18 = vpack.c.bf16 %v25578_v54, %v25577_v26  ;;  %v25588_v54 = vand.u32 4294901760, %v18574_v23  ;;  %v25589_v26 = vand.u32 4294901760, %v18578_v14  ;;  %12300 = vmatprep.subr.msk.bf16.mxu0 %vm17431_vm15, %v25446_v35  ;;  %1513 = vmatmul.mubr.f32.vlgmr.msra.gmra.mrb[0].mxu0 %v17502_v9  ;;  %vm25604_vm15 = vnez %v25452_v27  ;;  %v25640_v27 = vld [vmem:[#allocation34_spill] sm:$0xff] }
 0x1d8   : > { %25573 = vst [vmem:[#allocation322_spill] sm:$0xff] %v18701_v21  ;;  %v18707_v43 = vpack.c.bf16 %v25575_v44, %v25574_v60  ;;  %v18722_v21 = vpack.c.bf16 %v25583_v30, %v25582_v49  ;;  %v25585_v44 = vand.u32 4294901760, %v18566_v12  ;;  %v25586_v60 = vand.u32 4294901760, %v18570_v61  ;;  %12302 = vmatpush1.bf16.msk.msra.mxu0 %vm17473_vm13, %v25446_v35  ;;  %1583 = vmatprep.mubr.f32.mxu0 %v25169_v16 }
 0x1d9   : > { %25579 = vst [vmem:[#allocation324_spill] sm:$0xff] %v18713_v18  ;;  %v18734_v2 = vpack.c.bf16 %v25589_v26, %v25588_v54  ;;  %v25591_v49 = vand.u32 4294901760, %v18582_v51  ;;  %v25592_v30 = vand.u32 4294901760, %v18587_v24  ;;  %v25597_v54 = vand.u32 4294901760, %v18599_v19  ;;  %12304 = vmatprep.subr.msk.bf16.mxu0 %vm17511_vm9, %v25446_v35 }
 0x1da   : > { %25576 = vst [vmem:[#allocation323_spill] sm:$0xff] %v18707_v43  ;;  %25584 = vst [vmem:[#allocation325_spill] sm:$0xff] %v18722_v21  ;;  %v18728_v43 = vpack.c.bf16 %v25586_v60, %v25585_v44  ;;  %v25594_v44 = vand.u32 4294901760, %v18591_v38  ;;  %v25595_v60 = vand.u32 4294901760, %v18595_v50  ;;  %v25598_v26 = vand.u32 4294901760, %v18607_v20 }
 0x1db   : > { %25590 = vst [vmem:[#allocation327_spill] sm:$0xff] %v18734_v2  ;;  %v18744_v15 = vpack.c.bf16 %v25592_v30, %v25591_v49  ;;  %v25600_v49 = vand.u32 4294901760, %v18611_v32  ;;  %v25601_v30 = vand.u32 4294901760, %v18633_v41  ;;  %vm25605_vm13 = vnez %v25453_v25  ;;  %v25634_v25 = vld [vmem:[#allocation56_spill] sm:$0xff] }
 0x1dc   : > { %25587 = vst [vmem:[#allocation326_spill] sm:$0xff] %v18728_v43  ;;  %v18750_v40 = vpack.c.bf16 %v25595_v60, %v25594_v44  ;;  %v18756_v48 = vpack.c.bf16 %v25598_v26, %v25597_v54  ;;  %v25603_v44 = vld [vmem:[#allocation252_spill] sm:$0xff]  ;;  %12306 = vmatpush1.bf16.msk.msra.mxu0 %vm25607_vm7, %v25446_v35  ;;  %vm25608_vm9 = vnez %v25459_v56  ;;  %v25609_v60 = vld [vmem:[#allocation211_spill] sm:$0xff]  ;;  %v25612_v26 = vld [vmem:[#allocation217_spill] sm:$0xff] }
 0x1dd   : > { %25593 = vst [vmem:[#allocation328_spill] sm:$0xff] %v18744_v15  ;;  %v18766_v2 = vpack.c.bf16 %v25601_v30, %v25600_v49  ;;  %2061 = vmatpush1.msra.mxu1 %v25603_v44  ;;  %12308 = vmatprep.subr.msk.bf16.mxu0 %vm25608_vm9, %v25446_v35  ;;  %v25614_v49 = vld [vmem:[#allocation221_spill] sm:$0xff]  ;;  %v25623_v44 = vmov 1.0   ;;  %v25627_v54 = vld [vmem:[#allocation52_spill] sm:$0xff]  ;;  %v25684_v15 = vand.u32 4294901760, %v18422_v62 }
 0x1de   : > { %25596 = vst [vmem:[#allocation329_spill] sm:$0xff] %v18750_v40  ;;  %25599 = vst [vmem:[#allocation330_spill] sm:$0xff] %v18756_v48  ;;  %12420 = vmatprep.subr.msk.bf16.mxu1 %vm25604_vm15, %v25446_v35  ;;  %2106 = vmatmul.mubr.f32.vlgmr.msra.gmra.mrb[0].mxu1 %v17502_v9  ;;  %vm25610_vm15 = vnez %v25609_v60  ;;  %v25625_v60 = vld [vmem:[#allocation36_spill] sm:$0xff]  ;;  %v25679_v48 = vmov 0  ;;  %v25683_v40 = vand.u32 4294901760, %v18415_v57 }
 0x1df   : > { %25602 = vst [vmem:[#allocation331_spill] sm:$0xff] %v18766_v2  ;;  %12422 = vmatpush1.bf16.msk.msra.mxu1 %vm25605_vm13, %v25446_v35  ;;  %2176 = vmatprep.mubr.f32.mxu1 %v25169_v16  ;;  %vm25613_vm13 = vnez %v25612_v26  ;;  %v25636_v26 = vmov 0  ;;  %v25650_v56 = vld [vmem:[#allocation68_spill] sm:$0xff]  ;;  %v25673_v2 = vld [vmem:[#allocation190_spill] sm:$0xff]  ;;  %v2267_v43 = vsub.f32 %v18422_v62, %v25684_v15  ;;  %v25693_v15 = vand.u32 4294901760, %v18437_v29 }
 0x1e0   : > { %12424 = vmatprep.subr.msk.bf16.mxu1 %vm25606_vm11, %v25446_v35  ;;  %12310 = vmatpush1.bf16.msk.msra.mxu0 %vm25613_vm13, %v25446_v35  ;;  %vm25615_vm11 = vnez %v25614_v49  ;;  %v25629_v49 = vmov 0  ;;  %v25652_v30 = vld [vmem:[#allocation84_spill] sm:$0xff] }
 0x1e1   : > { %12312 = vmatprep.subr.msk.bf16.mxu0 %vm25615_vm11, %v25446_v35  ;;  %v2860_v18 = vsub.f32 %v18437_v29, %v25693_v15  ;;  %v25706_v15 = vmov 0 }
 0x1e3   : > { %12426 = vmatpush1.bf16.msk.msra.mxu1 %vm25610_vm15, %v25446_v35  ;;  %v2861_v29 = vand.u32 4294901760, %v2860_v18  ;;  %v25730_v18 = vld [vmem:[#allocation136_spill] sm:$0xff] }
 0x1e4   : > { %12428 = vmatprep.subr.msk.bf16.mxu1 %vm25462_vm6, %v25446_v35  ;;  %12314 = vmatpush1.bf16.msk.msra.mxu0 %vm25472_vm5, %v25446_v35 }
 0x1e5   : > { %12316 = vmatprep.subr.msk.bf16.mxu0 %vm17742_vm0, %v25446_v35 }
 0x1e7   : > { %12430 = vmatpush1.bf16.msk.msra.mxu1 %vm25468_vm2, %v25446_v35  ;;  %vm25628_vm2 = vnez %v25627_v54  ;;  %v25644_v54 = vmov 0 }
 0x1e8   : > { %12432 = vmatprep.subr.msk.bf16.mxu1 %vm25470_vm8, %v25446_v35  ;;  %12318 = vmatpush1.bf16.msk.msra.mxu0 %vm17779_vm14, %v25446_v35  ;;  %vm25626_vm8 = vnez %v25625_v60  ;;  %v25642_v60 = vld [vmem:[#allocation50_spill] sm:$0xff] }
 0x1e9   : > { %11200 = vmatprep.subr.msk.mxu0 %vm17340_vm1, %v25623_v44  ;;  %vm18829_vm6 = vmpackc.low %vm25628_vm2, %vm25626_vm8  ;;  %vm25641_vm1 = vnez %v25640_v27  ;;  %vm25643_vm14 = vnez %v25642_v60  ;;  %v25654_v27 = vmov 0  ;;  %v25657_v60 = vld [vmem:[#allocation38_spill] sm:$0xff] }
 0x1ea   : > { %v25630_v49 = vsel %vm18829_vm6, 4294967295, %v25629_v49  ;;  %vm18848_vm2 = vmpackc.low %vm25643_vm14, %vm25641_vm1  ;;  %vm25658_vm14 = vnez %v25657_v60 }
 0x1eb   : > { %12434 = vmatpush1.bf16.msk.msra.mxu1 %vm25475_vm4, %v25446_v35  ;;  %25631 = vst [vmem:[#allocation332_spill] sm:$0xff] %v25630_v49  ;;  %vm25633_vm4 = vnez %v25632_v22  ;;  %v25645_v54 = vsel %vm18848_vm2, 4294967295, %v25644_v54  ;;  %v25659_v22 = vld [vmem:[#allocation54_spill] sm:$0xff]  ;;  %v25718_v49 = vld [vmem:[#allocation148_spill] sm:$0xff] }
 0x1ec   : > { %12436 = vmatprep.subr.msk.bf16.mxu1 %vm25477_vm10, %v25446_v35  ;;  %vm25635_vm10 = vnez %v25634_v25  ;;  %25646 = vst [vmem:[#allocation334_spill] sm:$0xff] %v25645_v54  ;;  %v25648_v25 = vld [vmem:[#allocation186_spill] sm:$0xff]  ;;  %vm25660_vm1 = vnez %v25659_v22  ;;  %v25671_v22 = vand.u32 4294901760, %v18400_v47  ;;  %v25716_v54 = vld [vmem:[#allocation132_spill] sm:$0xff] }
 0x1ed   : > { %vm18837_vm15 = vmpackc.low %vm25635_vm10, %vm25633_vm4  ;;  %vm25649_vm8 = vnez %v25648_v25  ;;  %vm25651_vm4 = vnez %v25650_v56  ;;  %vm25653_vm10 = vnez %v25652_v30  ;;  %v25661_v25 = vmov 0  ;;  %v25664_v56 = vld [vmem:[#allocation72_spill] sm:$0xff] }
 0x1ee   : > { %v25637_v26 = vsel %vm18837_vm15, 4294967295, %v25636_v26  ;;  %11201 = vmatpush1.msk.msra.mxu0 %vm25649_vm8, %v25623_v44  ;;  %v25666_v30 = vld [vmem:[#allocation88_spill] sm:$0xff]  ;;  %v2262_v60 = vsub.f32 %v18400_v47, %v25671_v22  ;;  %v25682_v22 = vand.u32 4294901760, %v18411_v6 }
 0x1ef   : > { %25638 = vst [vmem:[#allocation333_spill] sm:$0xff] %v25637_v26  ;;  %12438 = vmatpush1.bf16.msk.msra.mxu1 %vm17796_vm3, %v25446_v35  ;;  %vm18862_vm3 = vmpackc.low %vm25653_vm10, %vm25651_vm4  ;;  %1585 = vmatmul.mubr.f32.vlgmr.msra.gmra.mrb[0].mxu0 %v17502_v9  ;;  %vm25665_vm4 = vnez %v25664_v56  ;;  %vm25667_vm10 = vnez %v25666_v30  ;;  %v25675_v56 = vld [vmem:[#allocation66_spill] sm:$0xff]  ;;  %v2870_v26 = vsub.f32 %v18445_v46, %v25694_v52  ;;  %v25702_v52 = vld [vmem:[#allocation104_spill] sm:$0xff]  ;;  %v25720_v46 = vmov 0 }
 0x1f0   : > { %11266 = vmatprep.subr.msk.mxu1 %vm17366_vm12, %v25623_v44  ;;  %v25655_v27 = vsel %vm18862_vm3, 4294967295, %v25654_v27  ;;  %12440 = vmatprep.subr.msk.bf16.mxu0 %vm18829_vm6, %v25446_v35  ;;  %vm18874_vm12 = vmpackc.low %vm25660_vm1, %vm25658_vm14  ;;  %vm25674_vm14 = vnez %v25673_v2  ;;  %vm25676_vm1 = vnez %v25675_v56  ;;  %v25677_v30 = vld [vmem:[#allocation82_spill] sm:$0xff]  ;;  %v2855_v8 = vsub.f32 %v18411_v6, %v25682_v22  ;;  %v25685_v56 = vld [vmem:[#allocation100_spill] sm:$0xff] }
 0x1f1   : > { %25656 = vst [vmem:[#allocation335_spill] sm:$0xff] %v25655_v27  ;;  %v25662_v25 = vsel %vm18874_vm12, 4294967295, %v25661_v25  ;;  %12442 = vmatpush1.bf16.msk.msra.mxu0 %vm18848_vm2, %v25446_v35  ;;  %vm18885_vm8 = vmpackc.low %vm25667_vm10, %vm25665_vm4  ;;  %2248 = vmatprep.mubr.f32.mxu0 %v25169_v16  ;;  %vm25678_vm4 = vnez %v25677_v30  ;;  %v2865_v2 = vsub.f32 %v18415_v57, %v25683_v40  ;;  %v25687_v30 = vld [vmem:[#allocation116_spill] sm:$0xff]  ;;  %v25689_v22 = vmov 0 }
 0x1f2   : > { %25663 = vst [vmem:[#allocation336_spill] sm:$0xff] %v25662_v25  ;;  %v25669_v28 = vsel %vm18885_vm8, 4294967295, %v25668_v28  ;;  %12444 = vmatprep.subr.msk.bf16.mxu0 %vm18862_vm3, %v25446_v35  ;;  %vm18906_vm10 = vmpackc.low %vm25678_vm4, %vm25676_vm1  ;;  %vm25686_vm1 = vnez %v25685_v56  ;;  %vm25688_vm4 = vnez %v25687_v30  ;;  %v25692_v40 = vand.u32 4294901760, %v18433_v58  ;;  %v25695_v56 = vld [vmem:[#allocation70_spill] sm:$0xff] }
 0x1f3   : > { %25670 = vst [vmem:[#allocation337_spill] sm:$0xff] %v25669_v28  ;;  %11267 = vmatpush1.msk.msra.mxu1 %vm25674_vm14, %v25623_v44  ;;  %v25680_v48 = vsel %vm18906_vm10, 4294967295, %v25679_v48  ;;  %vm18927_vm14 = vmpackc.low %vm25688_vm4, %vm25686_vm1  ;;  %vm25696_vm1 = vnez %v25695_v56  ;;  %v25697_v30 = vld [vmem:[#allocation86_spill] sm:$0xff]  ;;  %v25699_v27 = vmov 0  ;;  %vm25703_vm5 = vnez %v25702_v52 }
 0x1f4   : > { %25681 = vst [vmem:[#allocation338_spill] sm:$0xff] %v25680_v48  ;;  %2178 = vmatmul.mubr.f32.vlgmr.msra.gmra.mrb[0].mxu1 %v17502_v9  ;;  %12560 = vmatprep.subr.msk.bf16.mxu1 %vm18837_vm15, %v25446_v35  ;;  %v25690_v22 = vsel %vm18927_vm14, 4294967295, %v25689_v22  ;;  %v2277_v21 = vsub.f32 %v18433_v58, %v25692_v40  ;;  %vm25698_vm4 = vnez %v25697_v30  ;;  %v25704_v40 = vld [vmem:[#allocation120_spill] sm:$0xff]  ;;  %v25709_v56 = vld [vmem:[#allocation98_spill] sm:$0xff]  ;;  %v25713_v28 = vmov 0 }
 0x1f5   : > { %25691 = vst [vmem:[#allocation339_spill] sm:$0xff] %v25690_v22  ;;  %12562 = vmatpush1.bf16.msk.msra.mxu1 %vm18874_vm12, %v25446_v35  ;;  %vm18947_vm0 = vmpackc.low %vm25698_vm4, %vm25696_vm1  ;;  %2841 = vmatprep.mubr.f32.mxu1 %v25169_v16  ;;  %vm25705_vm11 = vnez %v25704_v40  ;;  %vm25710_vm1 = vnez %v25709_v56  ;;  %v25711_v30 = vld [vmem:[#allocation114_spill] sm:$0xff]  ;;  %v2263_v48 = vand.u32 4294901760, %v2262_v60  ;;  %v2273_v52 = vand.u32 4294901760, %v2272_v4 }
 0x1f6   : > { %v25700_v27 = vsel %vm18947_vm0, 4294967295, %v25699_v27  ;;  %12564 = vmatprep.subr.msk.bf16.mxu1 %vm18885_vm8, %v25446_v35  ;;  %12446 = vmatpush1.bf16.msk.msra.mxu0 %vm18906_vm10, %v25446_v35  ;;  %vm18962_vm13 = vmpackc.low %vm25705_vm11, %vm25703_vm5  ;;  %vm25712_vm4 = vnez %v25711_v30  ;;  %v2856_v25 = vand.u32 4294901760, %v2855_v8  ;;  %v2866_v40 = vand.u32 4294901760, %v2865_v2  ;;  %v25723_v60 = vld [vmem:[#allocation102_spill] sm:$0xff] }
 0x1f7   : > { %25701 = vst [vmem:[#allocation340_spill] sm:$0xff] %v25700_v27  ;;  %v25707_v15 = vsel %vm18962_vm13, 4294967295, %v25706_v15  ;;  %12448 = vmatprep.subr.msk.bf16.mxu0 %vm18927_vm14, %v25446_v35  ;;  %vm18973_vm9 = vmpackc.low %vm25712_vm4, %vm25710_vm1  ;;  %vm25717_vm5 = vnez %v25716_v54  ;;  %vm25719_vm11 = vnez %v25718_v49  ;;  %v2268_v22 = vand.u32 4294901760, %v2267_v43  ;;  %v25725_v4 = vld [vmem:[#allocation118_spill] sm:$0xff] }
 0x1f8   : > { %25708 = vst [vmem:[#allocation341_spill] sm:$0xff] %v25707_v15  ;;  %v25714_v28 = vsel %vm18973_vm9, 4294967295, %v25713_v28  ;;  %vm18981_vm7 = vmpackc.low %vm25719_vm11, %vm25717_vm5  ;;  %v2278_v56 = vand.u32 4294901760, %v2277_v21  ;;  %v2871_v30 = vand.u32 4294901760, %v2870_v26  ;;  %vm25724_vm1 = vnez %v25723_v60  ;;  %v25732_v21 = vld [vmem:[#allocation152_spill] sm:$0xff]  ;;  %v25737_v26 = vld [vmem:[#allocation130_spill] sm:$0xff] }
 0x1f9   : > { %25715 = vst [vmem:[#allocation342_spill] sm:$0xff] %v25714_v28  ;;  %v25721_v46 = vsel %vm18981_vm7, 4294967295, %v25720_v46  ;;  %12566 = vmatpush1.bf16.msk.msra.mxu1 %vm18947_vm0, %v25446_v35  ;;  %vm25726_vm4 = vnez %v25725_v4  ;;  %v25727_v2 = vmov 0  ;;  %vm25731_vm5 = vnez %v25730_v18  ;;  %v25739_v49 = vld [vmem:[#allocation146_spill] sm:$0xff]  ;;  %v25748_v28 = vld [vmem:[#allocation164_spill] sm:$0xff] }
 0x1fa   : > { %25722 = vst [vmem:[#allocation343_spill] sm:$0xff] %v25721_v46  ;;  %vm18992_vm14 = vmpackc.low %vm25726_vm4, %vm25724_vm1  ;;  %12568 = vmatprep.subr.msk.bf16.mxu1 %vm18962_vm13, %v25446_v35  ;;  %12450 = vmatpush1.bf16.msk.msra.mxu0 %vm18973_vm9, %v25446_v35  ;;  %vm25733_vm11 = vnez %v25732_v21  ;;  %v25734_v43 = vmov 0  ;;  %vm25738_vm1 = vnez %v25737_v26  ;;  %vm25740_vm4 = vnez %v25739_v49  ;;  %v25750_v26 = vld [vmem:[#allocation180_spill] sm:$0xff] }
 0x1fb   : > { %v25728_v2 = vsel %vm18992_vm14, 4294967295, %v25727_v2  ;;  %vm19006_vm0 = vmpackc.low %vm25733_vm11, %vm25731_vm5  ;;  %12452 = vmatprep.subr.msk.bf16.mxu0 %vm18981_vm7, %v25446_v35  ;;  %v25741_v54 = vmov 0  ;;  %v19021_v8 = vpack.c.bf16 %v2273_v52, %v2263_v48  ;;  %v19023_v60 = vpack.c.bf16 %v2866_v40, %v2856_v25  ;;  %v25772_v15 = vld [vmem:[#allocation184_spill] sm:$0xff] }
 0x1fc   : > { %25729 = vst [vmem:[#allocation344_spill] sm:$0xff] %v25728_v2  ;;  %v25735_v43 = vsel %vm19006_vm0, 4294967295, %v25734_v43  ;;  %vm19017_vm13 = vmpackc.low %vm25740_vm4, %vm25738_vm1  ;;  %v25746_v4 = vand.u32 4294901760, %v18449_v0  ;;  %v25747_v21 = vand.u32 4294901760, %v18456_v45  ;;  %vm25749_vm5 = vnez %v25748_v28  ;;  %v25759_v28 = vld [vmem:[#allocation134_spill] sm:$0xff] }
 0x1fd   : > { %25736 = vst [vmem:[#allocation345_spill] sm:$0xff] %v25735_v43  ;;  %v25742_v54 = vsel %vm19017_vm13, 4294967295, %v25741_v54  ;;  %25744 = vst [vmem:[#allocation347_spill] sm:$0xff] %v19021_v8  ;;  %vm25751_vm11 = vnez %v25750_v26  ;;  %v25752_v49 = vmov 0  ;;  %v19039_v48 = vpack.c.bf16 %v2278_v56, %v2268_v22  ;;  %12570 = vmatpush1.bf16.msk.msra.mxu1 %vm18992_vm14, %v25446_v35  ;;  %v25761_v26 = vld [vmem:[#allocation150_spill] sm:$0xff] }
 0x1fe   : > { %25743 = vst [vmem:[#allocation346_spill] sm:$0xff] %v25742_v54  ;;  %25745 = vst [vmem:[#allocation348_spill] sm:$0xff] %v19023_v60  ;;  %v2282_v18 = vsub.f32 %v18449_v0, %v25746_v4  ;;  %v2292_v46 = vsub.f32 %v18456_v45, %v25747_v21  ;;  %v19041_v25 = vpack.c.bf16 %v2871_v30, %v2861_v29  ;;  %v25757_v52 = vand.u32 4294901760, %v18460_v63 }
 0x1ff   : > { %vm19035_vm1 = vmpackc.low %vm25751_vm11, %vm25749_vm5  ;;  %25755 = vst [vmem:[#allocation350_spill] sm:$0xff] %v19039_v48  ;;  %v25758_v4 = vand.u32 4294901760, %v18464_v39  ;;  %vm25760_vm4 = vnez %v25759_v28  ;;  %vm25762_vm5 = vnez %v25761_v26  ;;  %v25763_v22 = vmov 0  ;;  %12572 = vmatprep.subr.msk.bf16.mxu1 %vm19006_vm0, %v25446_v35  ;;  %12454 = vmatpush1.bf16.msk.msra.mxu0 %vm19017_vm13, %v25446_v35 }
 0x200   : > { %v25753_v49 = vsel %vm19035_vm1, 4294967295, %v25752_v49  ;;  %25756 = vst [vmem:[#allocation351_spill] sm:$0xff] %v19041_v25  ;;  %v2875_v40 = vsub.f32 %v18460_v63, %v25757_v52  ;;  %vm19056_vm11 = vmpackc.low %vm25762_vm5, %vm25760_vm4  ;;  %v25766_v29 = vand.u32 4294901760, %v18473_v36  ;;  %v25767_v30 = vand.u32 4294901760, %v18477_v31  ;;  %12456 = vmatprep.subr.msk.bf16.mxu0 %vm19035_vm1, %v25446_v35 }
 0x201   : > { %25754 = vst [vmem:[#allocation349_spill] sm:$0xff] %v25753_v49  ;;  %v2885_v21 = vsub.f32 %v18464_v39, %v25758_v4  ;;  %v25764_v22 = vsel %vm19056_vm11, 4294967295, %v25763_v22  ;;  %v25768_v4 = vand.u32 4294901760, %v18481_v59  ;;  %v25769_v28 = vand.u32 4294901760, %v18488_v1  ;;  %12574 = vmatpush1.bf16.msk.msra.mxu1 %vm19056_vm11, %v25446_v35 }
 0x202   : > { %25765 = vst [vmem:[#allocation352_spill] sm:$0xff] %v25764_v22  ;;  %v2287_v56 = vsub.f32 %v18473_v36, %v25766_v29  ;;  %v2297_v52 = vsub.f32 %v18477_v31, %v25767_v30  ;;  %v25770_v29 = vld [vmem:[#allocation168_spill] sm:$0xff]  ;;  %vm25773_vm5 = vnez %v25772_v15  ;;  %v25774_v30 = vmov 0  ;;  %v25780_v15 = vld [vmem:[#allocation162_spill] sm:$0xff] }
 0x203   : > { %v2880_v2 = vsub.f32 %v18481_v59, %v25768_v4  ;;  %v2890_v26 = vsub.f32 %v18488_v1, %v25769_v28  ;;  %vm25771_vm4 = vnez %v25770_v29  ;;  %v25777_v4 = vand.u32 4294901760, %v18492_v13  ;;  %v25782_v29 = vld [vmem:[#allocation178_spill] sm:$0xff]  ;;  %v25799_v22 = vld [vmem:[#allocation196_spill] sm:$0xff] }
 0x204   : > { %vm19082_vm14 = vmpackc.low %vm25773_vm5, %vm25771_vm4  ;;  %v25778_v27 = vand.u32 4294901760, %v18496_v55  ;;  %v25779_v1 = vand.u32 4294901760, %v18503_v3  ;;  %vm25781_vm4 = vnez %v25780_v15  ;;  %vm25783_vm5 = vnez %v25782_v29 }
 0x205   : > { %v25775_v30 = vsel %vm19082_vm14, 4294967295, %v25774_v30  ;;  %v2302_v28 = vsub.f32 %v18492_v13, %v25777_v4  ;;  %vm19102_vm13 = vmpackc.low %vm25783_vm5, %vm25781_vm4  ;;  %v25784_v59 = vmov 0  ;;  %v2283_v4 = vand.u32 4294901760, %v2282_v18  ;;  %12576 = vmatprep.subr.msk.bf16.mxu1 %vm19082_vm14, %v25446_v35 }
 0x206   : > { %25776 = vst [vmem:[#allocation353_spill] sm:$0xff] %v25775_v30  ;;  %v2312_v43 = vsub.f32 %v18496_v55, %v25778_v27  ;;  %v2895_v54 = vsub.f32 %v18503_v3, %v25779_v1  ;;  %v25785_v59 = vsel %vm19102_vm13, 4294967295, %v25784_v59  ;;  %v2293_v13 = vand.u32 4294901760, %v2292_v46  ;;  %12458 = vmatpush1.bf16.msk.msra.mxu0 %vm19102_vm13, %v25446_v35 }
 0x207   : > { %25786 = vst [vmem:[#allocation354_spill] sm:$0xff] %v25785_v59  ;;  %v25787_v27 = vand.u32 4294901760, %v18507_v10  ;;  %v25788_v1 = vand.u32 4294901760, %v18511_v5  ;;  %v2876_v49 = vand.u32 4294901760, %v2875_v40  ;;  %v25789_v31 = vand.u32 4294901760, %v18519_v34 }
 0x208   : > { %v25790_v29 = vand.u32 4294901760, %v18523_v17  ;;  %v25791_v18 = vand.u32 4294901760, %v18545_v42  ;;  %v2881_v40 = vand.u32 4294901760, %v2880_v2  ;;  %v2896_v2 = vand.u32 4294901760, %v2895_v54 }
 0x209   : > { %v2905_v55 = vsub.f32 %v18507_v10, %v25787_v27  ;;  %v2307_v3 = vsub.f32 %v18511_v5, %v25788_v1  ;;  %v2317_v15 = vsub.f32 %v18519_v34, %v25789_v31  ;;  %v2886_v27 = vand.u32 4294901760, %v2885_v21  ;;  %v25792_v31 = vld [vmem:[#allocation166_spill] sm:$0xff] }
 0x20a   : > { %v2900_v36 = vsub.f32 %v18523_v17, %v25790_v29  ;;  %v2910_v46 = vsub.f32 %v18545_v42, %v25791_v18  ;;  %v2288_v10 = vand.u32 4294901760, %v2287_v56  ;;  %v2298_v1 = vand.u32 4294901760, %v2297_v52  ;;  %v25794_v29 = vld [vmem:[#allocation182_spill] sm:$0xff] }
 0x20b   : > { %vm25793_vm4 = vnez %v25792_v31  ;;  %vm25795_vm5 = vnez %v25794_v29  ;;  %v25796_v18 = vmov 0  ;;  %v2891_v21 = vand.u32 4294901760, %v2890_v26 }
 0x20c   : > { %vm19134_vm1 = vmpackc.low %vm25795_vm5, %vm25793_vm4  ;;  %v2303_v56 = vand.u32 4294901760, %v2302_v28  ;;  %v2313_v52 = vand.u32 4294901760, %v2312_v43  ;;  %vm25800_vm11 = vnez %v25799_v22  ;;  %v2906_v30 = vand.u32 4294901760, %v2905_v55 }
 0x20d   : > { %v25797_v18 = vsel %vm19134_vm1, 4294967295, %v25796_v18  ;;  %11288 = vmatprep.subr.msk.mxu0 %vm25800_vm11, %v25623_v44  ;;  %v2308_v42 = vand.u32 4294901760, %v2307_v3  ;;  %v25801_v59 = vand.u32 4294901760, %v18549_v11  ;;  %v25802_v29 = vand.u32 4294901760, %v18554_v7  ;;  %12578 = vmatpush1.bf16.msk.msra.mxu1 %vm19134_vm1, %v25446_v35 }
 0x20e   : > { %25798 = vst [vmem:[#allocation355_spill] sm:$0xff] %v25797_v18  ;;  %v2318_v34 = vand.u32 4294901760, %v2317_v15  ;;  %v2901_v5 = vand.u32 4294901760, %v2900_v36  ;;  %v2911_v26 = vand.u32 4294901760, %v2910_v46  ;;  %v25803_v43 = vand.u32 4294901760, %v18558_v37  ;;  %v25808_v36 = vld [vmem:[#allocation200_spill] sm:$0xff] }
 0x20f   : > { %v2322_v31 = vsub.f32 %v18549_v11, %v25801_v59  ;;  %v2332_v17 = vsub.f32 %v18554_v7, %v25802_v29  ;;  %v19153_v3 = vpack.c.bf16 %v2293_v13, %v2283_v4  ;;  %v19155_v55 = vpack.c.bf16 %v2886_v27, %v2876_v49  ;;  %v25810_v46 = vld [vmem:[#allocation194_spill] sm:$0xff]  ;;  %v25815_v27 = vld [vmem:[#allocation220_spill] sm:$0xff] }
 0x210   : > { %v2915_v54 = vsub.f32 %v18558_v37, %v25803_v43  ;;  %v19157_v59 = vpack.c.bf16 %v2298_v1, %v2288_v10  ;;  %v25807_v28 = vand.u32 4294901760, %v18562_v53  ;;  %vm25809_vm4 = vnez %v25808_v36  ;;  %v25962_v18 = vld [vmem:[#allocation242_spill] sm:$0xff] }
 0x211   : > { %25804 = vst [vmem:[#allocation356_spill] sm:$0xff] %v19153_v3  ;;  %25805 = vst [vmem:[#allocation357_spill] sm:$0xff] %v19155_v55  ;;  %11354 = vmatprep.subr.msk.mxu1 %vm25809_vm4, %v25623_v44  ;;  %vm25811_vm5 = vnez %v25810_v46  ;;  %v19168_v29 = vpack.c.bf16 %v2891_v21, %v2881_v40  ;;  %v25813_v13 = vand.u32 4294901760, %v18566_v12  ;;  %v25814_v10 = vand.u32 4294901760, %v18570_v61 }
 0x212   : > { %25806 = vst [vmem:[#allocation358_spill] sm:$0xff] %v19157_v59  ;;  %v2925_v15 = vsub.f32 %v18562_v53, %v25807_v28  ;;  %11289 = vmatpush1.msk.msra.mxu0 %vm25811_vm5, %v25623_v44  ;;  %v19178_v1 = vpack.c.bf16 %v2313_v52, %v2303_v56  ;;  %v19180_v43 = vpack.c.bf16 %v2906_v30, %v2896_v2  ;;  %v2323_v28 = vand.u32 4294901760, %v2322_v31  ;;  %v25819_v56 = vld [vmem:[#allocation198_spill] sm:$0xff]  ;;  %v25823_v52 = vld [vmem:[#allocation199_spill] sm:$0xff] }
 0x213   : > { %25812 = vst [vmem:[#allocation359_spill] sm:$0xff] %v19168_v29  ;;  %v2327_v49 = vsub.f32 %v18566_v12, %v25813_v13  ;;  %v2337_v4 = vsub.f32 %v18570_v61, %v25814_v10  ;;  %12460 = vmatprep.subr.bf16.mxu0 %v19021_v8  ;;  %2254 = vmatmul.mubr.f32.vlgmr.msra.gmra.mrb[2].mxu0 %v25815_v27  ;;  %v2333_v46 = vand.u32 4294901760, %v2332_v17  ;;  %v2916_v13 = vand.u32 4294901760, %v2915_v54 }
 0x214   : > { %25816 = vst [vmem:[#allocation220_spill] sm:$0xff] %v19180_v43  ;;  %12462 = vmatpush1.bf16.msra.mxu0 %v19039_v48  ;;  %v19183_v40 = vpack.c.bf16 %v2318_v34, %v2308_v42  ;;  %v19185_v21 = vpack.c.bf16 %v2911_v26, %v2901_v5  ;;  %v25818_v36 = vand.u32 4294901760, %v18574_v23  ;;  %2412 = vmatprep.mubr.f32.mxu0 %v25169_v16  ;;  %vm25820_vm5 = vnez %v25819_v56 }
 0x215   : > { %11355 = vmatpush1.msk.msra.mxu1 %vm25820_vm5, %v25623_v44  ;;  %12464 = vmatprep.subr.bf16.mxu0 %v19153_v3  ;;  %v2926_v17 = vand.u32 4294901760, %v2925_v15  ;;  %v25821_v30 = vand.u32 4294901760, %v18582_v51  ;;  %v25822_v5 = vand.u32 4294901760, %v18587_v24  ;;  %v19203_v2 = vsub.f32 %v25823_v52, %v25823_v52 }
 0x216   : > { %25817 = vst [vmem:[#allocation360_spill] sm:$0xff] %v19185_v21  ;;  %v2920_v10 = vsub.f32 %v18574_v23, %v25818_v36  ;;  %12580 = vmatprep.subr.bf16.mxu1 %v19023_v60  ;;  %2847 = vmatmul.mubr.f32.vlgmr.msra.gmra.mrb[2].mxu1 %v25815_v27  ;;  %v2328_v31 = vand.u32 4294901760, %v2327_v49  ;;  %v2338_v26 = vand.u32 4294901760, %v2337_v4  ;;  %v25825_v54 = vand.u32 4294901760, %v18578_v14 }
 0x217   : > { %v2342_v42 = vsub.f32 %v18582_v51, %v25821_v30  ;;  %v2352_v34 = vsub.f32 %v18587_v24, %v25822_v5  ;;  %25824 = vst [vmem:[#allocation361_spill] sm:$0xff] %v19203_v2  ;;  %v25826_v36 = vand.u32 4294901760, %v18591_v38  ;;  %12582 = vmatpush1.bf16.msra.mxu1 %v19041_v25  ;;  %v19214_v5 = vpack.c.bf16 %v2333_v46, %v2323_v28  ;;  %v25830_v46 = vld [vmem:[#allocation202_spill] sm:$0xff] }
 0x218   : > { %v2930_v15 = vsub.f32 %v18578_v14, %v25825_v54  ;;  %v25827_v52 = vand.u32 4294901760, %v18595_v50  ;;  %v25828_v27 = vand.u32 4294901760, %v18599_v19  ;;  %3005 = vmatprep.mubr.f32.mxu1 %v25169_v16  ;;  %12584 = vmatprep.subr.bf16.mxu1 %v19155_v55  ;;  %v25829_v4 = vand.u32 4294901760, %v18607_v20 }
 0x219   : > { %v2935_v30 = vsub.f32 %v18591_v38, %v25826_v36  ;;  %12466 = vmatpush1.bf16.msra.mxu0 %v19157_v59  ;;  %v19230_v28 = vsub.f32 %v25830_v46, %v25830_v46  ;;  %v25832_v36 = vld [vmem:[#allocation197_spill] sm:$0xff]  ;;  %v2343_v25 = vand.u32 4294901760, %v2342_v42  ;;  %v2353_v55 = vand.u32 4294901760, %v2352_v34 }
 0x21a   : > { %v2945_v60 = vsub.f32 %v18595_v50, %v25827_v52  ;;  %v2347_v49 = vsub.f32 %v18599_v19, %v25828_v27  ;;  %v2357_v54 = vsub.f32 %v18607_v20, %v25829_v4  ;;  %v19234_v52 = vsub.f32 %v25832_v36, %v25832_v36  ;;  %12468 = vmatprep.subr.bf16.mxu0 %v19178_v1  ;;  %v25838_v42 = vld [vmem:[#allocation201_spill] sm:$0xff] }
 0x21b   : > { %25831 = vst [vmem:[#allocation362_spill] sm:$0xff] %v19230_v28  ;;  %v19237_v27 = vpack.c.bf16 %v2926_v17, %v2916_v13  ;;  %v19240_v59 = vand.u32 4294901760, %v19203_v2  ;;  %v19242_v3 = vpack.c.bf16 %v2338_v26, %v2328_v31  ;;  %v2921_v4 = vand.u32 4294901760, %v2920_v10  ;;  %12586 = vmatpush1.bf16.msra.mxu1 %v19168_v29  ;;  %v25916_v29 = vld [vmem:[#allocation322_spill] sm:$0xff] }
 0x21c   : > { %25833 = vst [vmem:[#allocation363_spill] sm:$0xff] %v19234_v52  ;;  %v2931_v48 = vand.u32 4294901760, %v2930_v15  ;;  %v2936_v8 = vand.u32 4294901760, %v2935_v30  ;;  %v2946_v46 = vand.u32 4294901760, %v2945_v60  ;;  %v25836_v36 = vand.u32 4294901760, %v18611_v32  ;;  %12588 = vmatprep.subr.bf16.mxu1 %v19180_v43  ;;  %v25915_v43 = vld [vmem:[#allocation321_spill] sm:$0xff] }
 0x21d   : > { %25834 = vst [vmem:[#allocation364_spill] sm:$0xff] %v19237_v27  ;;  %25835 = vst [vmem:[#allocation365_spill] sm:$0xff] %v19240_v59  ;;  %v25837_v13 = vand.u32 4294901760, %v18633_v41  ;;  %v19253_v34 = vsub.f32 %v25838_v42, %v25838_v42  ;;  %12470 = vmatpush1.bf16.msra.mxu0 %v19183_v40  ;;  %v2348_v10 = vand.u32 4294901760, %v2347_v49  ;;  %v2358_v31 = vand.u32 4294901760, %v2357_v54 }
 0x21e   : > { %v2940_v56 = vsub.f32 %v18611_v32, %v25836_v36  ;;  %v19258_v60 = vand.u32 4294901760, %v19230_v28  ;;  %v19261_v26 = vand.u32 4294901760, %v19234_v52  ;;  %12472 = vmatprep.subr.bf16.mxu0 %v19214_v5  ;;  %v19264_v15 = vpack.c.bf16 %v2353_v55, %v2343_v25 }
 0x21f   : > { %v2950_v17 = vsub.f32 %v18633_v41, %v25837_v13  ;;  %25839 = vst [vmem:[#allocation366_spill] sm:$0xff] %v19253_v34  ;;  %v2362_v30 = vsub.f32 %v19203_v2, %v19240_v59  ;;  %v19268_v36 = vpack.c.bf16 %v2931_v48, %v2921_v4  ;;  %12590 = vmatpush1.bf16.msra.mxu1 %v19185_v21  ;;  %v19274_v42 = vand.u32 4294901760, %v19253_v34  ;;  %v25914_v21 = vld [vmem:[#allocation319_spill] sm:$0xff] }
 0x220   : > { %25840 = vst [vmem:[#allocation367_spill] sm:$0xff] %v19258_v60  ;;  %25841 = vst [vmem:[#allocation368_spill] sm:$0xff] %v19261_v26  ;;  %v19271_v13 = vpack.c.bf16 %v2946_v46, %v2936_v8  ;;  %v2941_v49 = vand.u32 4294901760, %v2940_v56  ;;  %12592 = vmatprep.subr.bf16.mxu1 %v19237_v27  ;;  %v19278_v25 = vpack.c.bf16 %v2358_v31, %v2348_v10  ;;  %v25913_v27 = vld [vmem:[#allocation320_spill] sm:$0xff] }
 0x221   : > { %25842 = vst [vmem:[#allocation369_spill] sm:$0xff] %v19268_v36  ;;  %v2951_v54 = vand.u32 4294901760, %v2950_v17  ;;  %25844 = vst [vmem:[#allocation371_spill] sm:$0xff] %v19274_v42  ;;  %12474 = vmatpush1.bf16.msra.mxu0 %v19242_v3  ;;  %v2955_v55 = vsub.f32 %v19230_v28, %v19258_v60  ;;  %v2367_v48 = vsub.f32 %v19234_v52, %v19261_v26  ;;  %v19285_v8 = vand.u32 4294901760, %v2362_v30 }
 0x222   : > { %25843 = vst [vmem:[#allocation370_spill] sm:$0xff] %v19271_v13  ;;  %12476 = vmatprep.subr.bf16.mxu0 %v19264_v15  ;;  %v2960_v4 = vsub.f32 %v19253_v34, %v19274_v42  ;;  %v19301_v10 = vpack.c.bf16 %v18407_v33, %v18400_v47  ;;  %v19305_v31 = vpack.c.bf16 %v18433_v58, %v18422_v62  ;;  %v25849_v62 = vld [vmem:[#allocation298_spill] sm:$0xff]  ;;  %v25850_v58 = vld [vmem:[#allocation299_spill] sm:$0xff] }
 0x223   : > { %12594 = vmatpush1.bf16.msra.mxu1 %v19268_v36  ;;  %v19288_v56 = vpack.c.bf16 %v2951_v54, %v2941_v49  ;;  %v19294_v46 = vand.u32 4294901760, %v2955_v55  ;;  %v19296_v17 = vand.u32 4294901760, %v2367_v48  ;;  %v19312_v49 = vpack.c.bf16 %v18456_v45, %v18449_v0  ;;  %v25853_v0 = vld [vmem:[#allocation300_spill] sm:$0xff]  ;;  %v25854_v54 = vld [vmem:[#allocation301_spill] sm:$0xff]  ;;  %v25912_v36 = vld [vmem:[#allocation318_spill] sm:$0xff] }
 0x224   : > { %12596 = vmatprep.subr.bf16.mxu1 %v19271_v13  ;;  %v19308_v30 = vand.u32 4294901760, %v2960_v4  ;;  %v19318_v33 = vpack.c.bf16 %v18415_v57, %v18411_v6  ;;  %v19324_v47 = vpack.c.bf16 %v25850_v58, %v25849_v62  ;;  %v19329_v45 = vpack.c.bf16 %v18464_v39, %v18460_v63  ;;  %v25855_v57 = vld [vmem:[#allocation304_spill] sm:$0xff]  ;;  %v25856_v6 = vld [vmem:[#allocation305_spill] sm:$0xff]  ;;  %v25857_v63 = vld [vmem:[#allocation302_spill] sm:$0xff] }
 0x225   : > { %25845 = vst [vmem:[#allocation372_spill] sm:$0xff] %v19288_v56  ;;  %12478 = vmatpush1.bf16.msra.mxu0 %v19278_v25  ;;  %25846 = vst [vmem:[#allocation373_spill] sm:$0xff] %v19294_v46  ;;  %v19333_v55 = vpack.c.bf16 %v25854_v54, %v25853_v0  ;;  %v19340_v48 = vpack.c.bf16 %v25856_v6, %v25855_v57  ;;  %v25858_v39 = vld [vmem:[#allocation303_spill] sm:$0xff]  ;;  %v25860_v62 = vld [vmem:[#allocation306_spill] sm:$0xff] }
 0x226   : > { %2364 = vmatprep.subr.mxu0 %v19285_v8  ;;  %25847 = vst [vmem:[#allocation374_spill] sm:$0xff] %v19308_v30  ;;  %25848 = vst [vmem:[#allocation375_spill] sm:$0xff] %v19318_v33  ;;  %v19347_v4 = vpack.c.bf16 %v25858_v39, %v25857_v63  ;;  %v25861_v58 = vld [vmem:[#allocation307_spill] sm:$0xff]  ;;  %v25863_v54 = vld [vmem:[#allocation308_spill] sm:$0xff]  ;;  %v19363_v63 = vpack.c.bf16 %v18554_v7, %v18549_v11  ;;  %v19383_v7 = vpack.c.bf16 %v18587_v24, %v18582_v51 }
 0x227   : > { %12598 = vmatpush1.bf16.msra.mxu1 %v19288_v56  ;;  %25851 = vst [vmem:[#allocation298_spill] sm:$0xff] %v19324_v47  ;;  %25852 = vst [vmem:[#allocation299_spill] sm:$0xff] %v19329_v45  ;;  %v19354_v0 = vpack.c.bf16 %v25861_v58, %v25860_v62  ;;  %v25864_v57 = vld [vmem:[#allocation309_spill] sm:$0xff]  ;;  %v25865_v39 = vld [vmem:[#allocation310_spill] sm:$0xff]  ;;  %v19374_v62 = vpack.c.bf16 %v18562_v53, %v18558_v37  ;;  %v19378_v58 = vpack.c.bf16 %v18570_v61, %v18566_v12 }
 0x228   : > { %2957 = vmatprep.subr.mxu1 %v19294_v46  ;;  %25859 = vst [vmem:[#allocation300_spill] sm:$0xff] %v19347_v4  ;;  %v19358_v6 = vpack.c.bf16 %v25864_v57, %v25863_v54  ;;  %25869 = vst [vmem:[#allocation302_spill] sm:$0xff] %v19383_v7  ;;  %v19388_v11 = vpack.c.bf16 %v18578_v14, %v18574_v23  ;;  %v19394_v12 = vpack.c.bf16 %v18595_v50, %v18591_v38  ;;  %v25875_v50 = vld [vmem:[#allocation209_spill] sm:$0xff]  ;;  %v25877_v38 = vld [vmem:[#allocation335_spill] sm:$0xff] }
 0x229   : > { %2369 = vmatpush1.msra.mxu0 %v19296_v17  ;;  %25862 = vst [vmem:[#allocation301_spill] sm:$0xff] %v19354_v0  ;;  %25868 = vst [vmem:[#allocation305_spill] sm:$0xff] %v19374_v62  ;;  %v19398_v37 = vpack.c.bf16 %v18607_v20, %v18599_v19  ;;  %v19404_v61 = vpack.c.bf16 %v18633_v41, %v18611_v32  ;;  %v25874_v19 = vld [vmem:[#allocation332_spill] sm:$0xff]  ;;  %v25876_v41 = vld [vmem:[#allocation334_spill] sm:$0xff] }
 0x22a   : > { %12480 = vmatprep.subr.bf16.mxu0 %v19301_v10  ;;  %2414 = vmatmul.mubr.f32.vlgmr.msra.gmra.mrb[2].mxu0 %v17502_v9  ;;  %25870 = vst [vmem:[#allocation303_spill] sm:$0xff] %v19388_v11  ;;  %25871 = vst [vmem:[#allocation306_spill] sm:$0xff] %v19394_v12  ;;  %v25878_v24 = vld [vmem:[#allocation333_spill] sm:$0xff]  ;;  %v25879_v53 = vld [vmem:[#allocation336_spill] sm:$0xff] }
 0x22b   : > { %12482 = vmatpush1.bf16.msra.mxu0 %v19305_v31  ;;  %2506 = vmatprep.mubr.f32.mxu0 %v25169_v16  ;;  %25872 = vst [vmem:[#allocation307_spill] sm:$0xff] %v19398_v37  ;;  %25873 = vst [vmem:[#allocation308_spill] sm:$0xff] %v19404_v61  ;;  %v25881_v14 = vld [vmem:[#allocation338_spill] sm:$0xff]  ;;  %v25882_v51 = vld [vmem:[#allocation339_spill] sm:$0xff] }
 0x22c   : > { %2962 = vmatpush1.msra.mxu1 %v19308_v30  ;;  %12484 = vmatprep.subr.bf16.mxu0 %v19312_v49  ;;  %v25884_v20 = vld [vmem:[#allocation340_spill] sm:$0xff]  ;;  %v25886_v32 = vld [vmem:[#allocation341_spill] sm:$0xff]  ;;  %v25889_v54 = vld [vmem:[#allocation343_spill] sm:$0xff] }
 0x22d   : > { %12600 = vmatprep.subr.bf16.mxu1 %v19318_v33  ;;  %3007 = vmatmul.mubr.f32.vlgmr.msra.gmra.mrb[2].mxu1 %v17502_v9  ;;  %v25890_v57 = vld [vmem:[#allocation344_spill] sm:$0xff]  ;;  %v25907_v33 = vld [vmem:[#allocation198_spill] sm:$0xff]  ;;  %v25909_v46 = vld [vmem:[#allocation313_spill] sm:$0xff] }
 0x22e   : > { %12602 = vmatpush1.bf16.msra.mxu1 %v19324_v47  ;;  %3099 = vmatprep.mubr.f32.mxu1 %v25169_v16  ;;  %v25908_v30 = vld [vmem:[#allocation316_spill] sm:$0xff]  ;;  %v25910_v56 = vld [vmem:[#allocation315_spill] sm:$0xff]  ;;  %v25911_v13 = vld [vmem:[#allocation317_spill] sm:$0xff] }
 0x22f   : > { %12604 = vmatprep.subr.bf16.mxu1 %v19329_v45  ;;  %12486 = vmatpush1.bf16.msra.mxu0 %v19333_v55  ;;  %v25866_v45 = vld [vmem:[#allocation311_spill] sm:$0xff] }
 0x230   : > { %12488 = vmatprep.subr.bf16.mxu0 %v19340_v48  ;;  %v19368_v47 = vpack.c.bf16 %v25866_v45, %v25865_v39  ;;  %v25888_v45 = vld [vmem:[#allocation342_spill] sm:$0xff] }
 0x231   : > { %v25969_v39 = vld [vmem:[#allocation186_spill] sm:$0xff] }
 0x232   : > { %12606 = vmatpush1.bf16.msra.mxu1 %v19347_v4  ;;  %25867 = vst [vmem:[#allocation304_spill] sm:$0xff] %v19368_v47  ;;  %v25906_v4 = vld [vmem:[#allocation314_spill] sm:$0xff] }
 0x233   : > { %12608 = vmatprep.subr.bf16.mxu1 %v19354_v0  ;;  %12490 = vmatpush1.bf16.msra.mxu0 %v19358_v6  ;;  %v25905_v0 = vld [vmem:[#allocation212_spill] sm:$0xff] }
 0x234   : > { %12492 = vmatprep.subr.bf16.mxu0 %v19363_v63 }
 0x236   : > { %12610 = vmatpush1.bf16.msra.mxu1 %v19368_v47  ;;  %v25904_v47 = vld [vmem:[#allocation312_spill] sm:$0xff] }
 0x237   : > { %12612 = vmatprep.subr.bf16.mxu1 %v19374_v62  ;;  %12494 = vmatpush1.bf16.msra.mxu0 %v19378_v58  ;;  %v25902_v62 = vld [vmem:[#allocation194_spill] sm:$0xff] }
 0x238   : > { %12496 = vmatprep.subr.bf16.mxu0 %v19383_v7 }
 0x23a   : > { %12614 = vmatpush1.bf16.msra.mxu1 %v19388_v11  ;;  %v25957_v11 = vld [vmem:[#allocation223_spill] sm:$0xff] }
 0x23b   : > { %12616 = vmatprep.subr.bf16.mxu1 %v19394_v12  ;;  %12498 = vmatpush1.bf16.msra.mxu0 %v19398_v37  ;;  %v25900_v12 = vld [vmem:[#allocation354_spill] sm:$0xff]  ;;  %v25975_v37 = vld [vmem:[#allocation17_spill] sm:$0xff] }
 0x23c   : > { %2461 = vmatprep.subr.mxu0 %v19203_v2 }
 0x23e   : > { %12618 = vmatpush1.bf16.msra.mxu1 %v19404_v61  ;;  %v25963_v61 = vld [vmem:[#allocation228_spill] sm:$0xff] }
 0x23f   : > { %3054 = vmatprep.subr.mxu1 %v19230_v28  ;;  %2463 = vmatpush1.msra.mxu0 %v19234_v52  ;;  %v25897_v28 = vld [vmem:[#allocation352_spill] sm:$0xff] }
 0x240   : > { %12500 = vmatprep.subr.msk.bf16.mxu0 %vm18829_vm6, %v25446_v35  ;;  %2509 = vmatmul.mubr.f32.vlgmr.msra.gmra.mrb[2].mxu0 %v25875_v50 }
 0x241   : > { %12502 = vmatpush1.bf16.msk.msra.mxu0 %vm18848_vm2, %v25446_v35  ;;  %2579 = vmatprep.mubr.f32.mxu0 %v25169_v16 }
 0x242   : > { %3056 = vmatpush1.msra.mxu1 %v19253_v34  ;;  %12504 = vmatprep.subr.msk.bf16.mxu0 %vm18862_vm3, %v25446_v35  ;;  %vm25883_vm3 = vnez %v25882_v51  ;;  %v25895_v34 = vld [vmem:[#allocation349_spill] sm:$0xff]  ;;  %v26088_v51 = vld [vmem:[#allocation324_spill] sm:$0xff] }
 0x243   : > { %12620 = vmatprep.subr.msk.bf16.mxu1 %vm18837_vm15, %v25446_v35  ;;  %3102 = vmatmul.mubr.f32.vlgmr.msra.gmra.mrb[2].mxu1 %v25875_v50  ;;  %vm25885_vm15 = vnez %v25884_v20  ;;  %v25893_v50 = vld [vmem:[#allocation346_spill] sm:$0xff] }
 0x244   : > { %12622 = vmatpush1.bf16.msk.msra.mxu1 %vm18874_vm12, %v25446_v35  ;;  %3172 = vmatprep.mubr.f32.mxu1 %v25169_v16  ;;  %vm25887_vm12 = vnez %v25886_v32 }
 0x245   : > { %12624 = vmatprep.subr.msk.bf16.mxu1 %vm18885_vm8, %v25446_v35  ;;  %12506 = vmatpush1.bf16.msk.msra.mxu0 %vm18906_vm10, %v25446_v35  ;;  %vm25891_vm10 = vnez %v25890_v57  ;;  %v25971_v57 = vld [vmem:[#allocation256_spill] sm:$0xff] }
 0x246   : > { %12508 = vmatprep.subr.msk.bf16.mxu0 %vm25883_vm3, %v25446_v35 }
 0x248   : > { %12626 = vmatpush1.bf16.msk.msra.mxu1 %vm25885_vm15, %v25446_v35  ;;  %vm25894_vm15 = vnez %v25893_v50 }
 0x249   : > { %12628 = vmatprep.subr.msk.bf16.mxu1 %vm25887_vm12, %v25446_v35  ;;  %12510 = vmatpush1.bf16.msk.msra.mxu0 %vm18973_vm9, %v25446_v35  ;;  %vm25896_vm12 = vnez %v25895_v34  ;;  %vm25898_vm9 = vnez %v25897_v28 }
 0x24a   : > { %12512 = vmatprep.subr.msk.bf16.mxu0 %vm18981_vm7, %v25446_v35 }
 0x24c   : > { %12630 = vmatpush1.bf16.msk.msra.mxu1 %vm25891_vm10, %v25446_v35 }
 0x24d   : > { %12632 = vmatprep.subr.msk.bf16.mxu1 %vm19006_vm0, %v25446_v35  ;;  %12514 = vmatpush1.bf16.msk.msra.mxu0 %vm25894_vm15, %v25446_v35 }
 0x24e   : > { %12516 = vmatprep.subr.msk.bf16.mxu0 %vm25896_vm12, %v25446_v35 }
 0x250   : > { %12634 = vmatpush1.bf16.msk.msra.mxu1 %vm25898_vm9, %v25446_v35  ;;  %vm25903_vm9 = vnez %v25902_v62 }
 0x251   : > { %12636 = vmatprep.subr.msk.bf16.mxu1 %vm19082_vm14, %v25446_v35  ;;  %12518 = vmatpush1.bf16.msk.msra.mxu0 %vm19102_vm13, %v25446_v35 }
 0x252   : > { %11310 = vmatprep.subr.msk.mxu0 %vm25800_vm11, %v25623_v44 }
 0x254   : > { %12638 = vmatpush1.bf16.msk.msra.mxu1 %vm19134_vm1, %v25446_v35 }
 0x255   : > { %11376 = vmatprep.subr.msk.mxu1 %vm25809_vm4, %v25623_v44  ;;  %11311 = vmatpush1.msk.msra.mxu0 %vm25903_vm9, %v25623_v44  ;;  %vm25927_vm9 = vnez %v25878_v24 }
 0x256   : > { %12520 = vmatprep.subr.bf16.mxu0 %v25904_v47  ;;  %2583 = vmatmul.mubr.f32.vlgmr.msra.gmra.mrb[2].mxu0 %v25905_v0 }
 0x257   : > { %12522 = vmatpush1.bf16.msra.mxu0 %v25906_v4  ;;  %2697 = vmatprep.mubr.f32.mxu0 %v25169_v16  ;;  %v25921_v4 = vld [vmem:[#allocation328_spill] sm:$0xff] }
 0x258   : > { %11377 = vmatpush1.msk.msra.mxu1 %vm25820_vm5, %v25623_v44  ;;  %12524 = vmatprep.subr.bf16.mxu0 %v25908_v30  ;;  %v25917_v30 = vld [vmem:[#allocation324_spill] sm:$0xff]  ;;  %vm25926_vm5 = vnez %v25877_v38 }
 0x259   : > { %12640 = vmatprep.subr.bf16.mxu1 %v25909_v46  ;;  %3176 = vmatmul.mubr.f32.vlgmr.msra.gmra.mrb[2].mxu1 %v25905_v0  ;;  %v25918_v46 = vld [vmem:[#allocation323_spill] sm:$0xff]  ;;  %v25919_v0 = vld [vmem:[#allocation325_spill] sm:$0xff] }
 0x25a   : > { %12642 = vmatpush1.bf16.msra.mxu1 %v25910_v56  ;;  %3290 = vmatprep.mubr.f32.mxu1 %v25169_v16  ;;  %v25920_v56 = vld [vmem:[#allocation326_spill] sm:$0xff] }
 0x25b   : > { %12644 = vmatprep.subr.bf16.mxu1 %v25911_v13  ;;  %12526 = vmatpush1.bf16.msra.mxu0 %v25912_v36  ;;  %v25922_v13 = vld [vmem:[#allocation327_spill] sm:$0xff]  ;;  %v25923_v36 = vld [vmem:[#allocation329_spill] sm:$0xff] }
 0x25c   : > { %12528 = vmatprep.subr.bf16.mxu0 %v25913_v27  ;;  %v25924_v27 = vld [vmem:[#allocation330_spill] sm:$0xff] }
 0x25e   : > { %12646 = vmatpush1.bf16.msra.mxu1 %v25914_v21  ;;  %v25951_v21 = vld [vmem:[#allocation217_spill] sm:$0xff] }
 0x25f   : > { %12648 = vmatprep.subr.bf16.mxu1 %v25915_v43  ;;  %12530 = vmatpush1.bf16.msra.mxu0 %v25916_v29  ;;  %v25925_v43 = vld [vmem:[#allocation331_spill] sm:$0xff] }
 0x260   : > { %12532 = vmatprep.subr.bf16.mxu0 %v25917_v30 }
 0x262   : > { %12650 = vmatpush1.bf16.msra.mxu1 %v25918_v46  ;;  %v25950_v46 = vld [vmem:[#allocation234_spill] sm:$0xff] }
 0x263   : > { %12652 = vmatprep.subr.bf16.mxu1 %v25919_v0  ;;  %12534 = vmatpush1.bf16.msra.mxu0 %v25920_v56  ;;  %v25945_v0 = vld [vmem:[#allocation210_spill] sm:$0xff] }
 0x264   : > { %12536 = vmatprep.subr.bf16.mxu0 %v25921_v4 }
 0x266   : > { %12654 = vmatpush1.bf16.msra.mxu1 %v25922_v13  ;;  %v25944_v13 = vld [vmem:[#allocation229_spill] sm:$0xff] }
 0x267   : > { %12656 = vmatprep.subr.bf16.mxu1 %v25923_v36  ;;  %12538 = vmatpush1.bf16.msra.mxu0 %v25924_v27  ;;  %v25943_v36 = vld [vmem:[#allocation218_spill] sm:$0xff] }
 0x268   : > { %2651 = vmatprep.subr.mxu0 %v19240_v59 }
 0x26a   : > { %12658 = vmatpush1.bf16.msra.mxu1 %v25925_v43  ;;  %v25941_v43 = vld [vmem:[#allocation207_spill] sm:$0xff] }
 0x26b   : > { %3244 = vmatprep.subr.mxu1 %v19258_v60  ;;  %2654 = vmatpush1.msra.mxu0 %v19261_v26  ;;  %v25939_v60 = vld [vmem:[#allocation205_spill] sm:$0xff] }
 0x26c   : > { %12540 = vmatprep.subr.msk.bf16.mxu0 %vm18829_vm6, %v25446_v35  ;;  %2699 = vmatmul.mubr.f32.vlgmr.msra.gmra.mrb[2].mxu0 %v17502_v9  ;;  %vm25928_vm6 = vnez %v25879_v53 }
 0x26d   : > { %12542 = vmatpush1.bf16.msk.msra.mxu0 %vm18848_vm2, %v25446_v35  ;;  %2769 = vmatprep.mubr.f32.mxu0 %v25169_v16  ;;  %vm25929_vm2 = vnez %v25881_v14  ;;  %v26087_v14 = vld [vmem:[#allocation322_spill] sm:$0xff] }
 0x26e   : > { %3247 = vmatpush1.msra.mxu1 %v19274_v42  ;;  %12544 = vmatprep.subr.msk.bf16.mxu0 %vm25926_vm5, %v25446_v35  ;;  %vm25932_vm5 = vnez %v25888_v45  ;;  %v25938_v42 = vld [vmem:[#allocation215_spill] sm:$0xff] }
 0x26f   : > { %12660 = vmatprep.subr.msk.bf16.mxu1 %vm25927_vm9, %v25446_v35  ;;  %3292 = vmatmul.mubr.f32.vlgmr.msra.gmra.mrb[2].mxu1 %v17502_v9  ;;  %vm25930_vm9 = vnez %v25884_v20 }
 0x270   : > { %12662 = vmatpush1.bf16.msk.msra.mxu1 %vm25928_vm6, %v25446_v35  ;;  %3362 = vmatprep.mubr.f32.mxu1 %v25169_v16  ;;  %vm25931_vm6 = vnez %v25886_v32  ;;  %v25935_v16 = vld [vmem:[#allocation203_spill] sm:$0xff] }
 0x271   : > { %12664 = vmatprep.subr.msk.bf16.mxu1 %vm18885_vm8, %v25446_v35  ;;  %12546 = vmatpush1.bf16.msk.msra.mxu0 %vm25929_vm2, %v25446_v35 }
 0x272   : > { %12548 = vmatprep.subr.msk.bf16.mxu0 %vm25883_vm3, %v25446_v35 }
 0x274   : > { %12666 = vmatpush1.bf16.msk.msra.mxu1 %vm25930_vm9, %v25446_v35  ;;  %vm25952_vm9 = vnez %v25951_v21  ;;  %v25995_v21 = vld [vmem:[#allocation22_spill] sm:$0xff] }
 0x275   : > { %12668 = vmatprep.subr.msk.bf16.mxu1 %vm25931_vm6, %v25446_v35  ;;  %12550 = vmatpush1.bf16.msk.msra.mxu0 %vm25932_vm5, %v25446_v35  ;;  %vm25933_vm6 = vnez %v25897_v28  ;;  %v25968_v28 = vld [vmem:[#allocation253_spill] sm:$0xff] }
 0x276   : > { %12552 = vmatprep.subr.msk.bf16.mxu0 %vm18981_vm7, %v25446_v35 }
 0x278   : > { %12670 = vmatpush1.bf16.msk.msra.mxu1 %vm25891_vm10, %v25446_v35  ;;  %vm25946_vm10 = vnez %v25945_v0  ;;  %v25993_v0 = vld [vmem:[#allocation280_spill] sm:$0xff] }
 0x279   : > { %12672 = vmatprep.subr.msk.bf16.mxu1 %vm19006_vm0, %v25446_v35  ;;  %12554 = vmatpush1.bf16.msk.msra.mxu0 %vm25894_vm15, %v25446_v35  ;;  %vm25937_vm0 = vnez %v25907_v33  ;;  %v25956_v33 = vld [vmem:[#allocation238_spill] sm:$0xff]  ;;  %vm25970_vm15 = vnez %v25969_v39  ;;  %v26004_v39 = vld [vmem:[#allocation204_spill] sm:$0xff] }
 0x27a   : > { %12556 = vmatprep.subr.msk.bf16.mxu0 %vm25896_vm12, %v25446_v35 }
 0x27c   : > { %12674 = vmatpush1.bf16.msk.msra.mxu1 %vm25933_vm6, %v25446_v35  ;;  %vm25934_vm6 = vnez %v25902_v62 }
 0x27d   : > { %12676 = vmatprep.subr.msk.bf16.mxu1 %vm19082_vm14, %v25446_v35  ;;  %12558 = vmatpush1.bf16.msk.msra.mxu0 %vm19102_vm13, %v25446_v35  ;;  %vm25936_vm14 = vnez %v25935_v16  ;;  %vm25964_vm13 = vnez %v25963_v61  ;;  %v25999_v61 = vld [vmem:[#allocation247_spill] sm:$0xff] }
 0x27e   : > { %11332 = vmatprep.subr.msk.mxu0 %vm25800_vm11, %v25623_v44 }
 0x280   : > { %12678 = vmatpush1.bf16.msk.msra.mxu1 %vm19134_vm1, %v25446_v35  ;;  %vm25942_vm1 = vnez %v25941_v43 }
 0x281   : > { %11398 = vmatprep.subr.msk.mxu1 %vm25809_vm4, %v25623_v44  ;;  %11333 = vmatpush1.msk.msra.mxu0 %vm25934_vm6, %v25623_v44  ;;  %vm25940_vm4 = vnez %v25939_v60  ;;  %vm25958_vm6 = vnez %v25957_v11  ;;  %v25990_v60 = vld [vmem:[#allocation274_spill] sm:$0xff] }
 0x282   : > { %2771 = vmatmul.mubr.f32.vlgmr.msra.gmra.mrb[2].mxu0 %v17502_v9  ;;  %12680 = vmatprep.subr.msk.bf16.mxu0 %vm25936_vm14, %v25446_v35 }
 0x284   : > { %11399 = vmatpush1.msk.msra.mxu1 %vm25937_vm0, %v25623_v44 }
 0x285   : > { %3364 = vmatmul.mubr.f32.vlgmr.msra.gmra.mrb[2].mxu1 %v17502_v9  ;;  %12700 = vmatprep.subr.bf16.mxu1 %v25938_v42  ;;  %v25947_v9 = vld [vmem:[#allocation213_spill] sm:$0xff]  ;;  %v25949_v42 = vld [vmem:[#allocation232_spill] sm:$0xff] }
 0x286   : > { %vm25948_vm0 = vnez %v25947_v9  ;;  %v25994_v9 = vld [vmem:[#allocation282_spill] sm:$0xff] }
 0x288   : > { %12682 = vmatpush1.bf16.xpose.msk.msra.mxu0 %vm25940_vm4, %v25446_v35 }
 0x289   : > { %12684 = vmatprep.subr.msk.bf16.mxu0 %vm25942_vm1, %v25446_v35 }
 0x28b   : > { %12702 = vmatpush1.bf16.xpose.msra.mxu1 %v25943_v36  ;;  %v25953_v36 = vld [vmem:[#allocation221_spill] sm:$0xff] }
 0x28c   : > { %12704 = vmatprep.subr.bf16.mxu1 %v25944_v13  ;;  %vm25954_vm8 = vnez %v25953_v36  ;;  %v25955_v13 = vld [vmem:[#allocation236_spill] sm:$0xff]  ;;  %v3476_v36 = vrot.slane %v25975_v37, %v25995_v21 }
 0x290   : > { %12686 = vmatpush1.bf16.xpose.msk.msra.mxu0 %vm25946_vm10, %v25446_v35 }
 0x291   : > { %12688 = vmatprep.subr.msk.bf16.mxu0 %vm25948_vm0, %v25446_v35 }
 0x293   : > { %12706 = vmatpush1.bf16.xpose.msra.mxu1 %v25949_v42  ;;  %v25959_v42 = vld [vmem:[#allocation225_spill] sm:$0xff] }
 0x294   : > { %12708 = vmatprep.subr.bf16.mxu1 %v25950_v46  ;;  %vm25960_vm11 = vnez %v25959_v42  ;;  %v25961_v46 = vld [vmem:[#allocation240_spill] sm:$0xff] }
 0x298   : > { %12690 = vmatpush1.bf16.xpose.msk.msra.mxu0 %vm25952_vm9, %v25446_v35 }
 0x299   : > { %12692 = vmatprep.subr.msk.bf16.mxu0 %vm25954_vm8, %v25446_v35 }
 0x29b   : > { %12710 = vmatpush1.bf16.xpose.msra.mxu1 %v25955_v13  ;;  %v25965_v13 = vld [vmem:[#allocation188_spill] sm:$0xff] }
 0x29c   : > { %12712 = vmatprep.subr.bf16.mxu1 %v25956_v33  ;;  %vm25966_vm12 = vnez %v25965_v13  ;;  %v25967_v33 = vld [vmem:[#allocation246_spill] sm:$0xff] }
 0x29d   : > { %v26001_v13 = vld [vmem:[#allocation226_spill] sm:$0xff] }
 0x2a0   : > { %12694 = vmatpush1.bf16.xpose.msk.msra.mxu0 %vm25958_vm6, %v25446_v35 }
 0x2a1   : > { %12696 = vmatprep.subr.msk.bf16.mxu0 %vm25960_vm11, %v25446_v35 }
 0x2a3   : > { %12714 = vmatpush1.bf16.xpose.msra.mxu1 %v25961_v46  ;;  %v25972_v46 = vld [vmem:[#allocation257_spill] sm:$0xff] }
 0x2a4   : > { %12716 = vmatprep.subr.bf16.mxu1 %v25962_v18 }
 0x2a8   : > { %12698 = vmatpush1.bf16.xpose.msk.msra.mxu0 %vm25964_vm13, %v25446_v35 }
 0x2a9   : > { %11420 = vmatprep.subr.msk.mxu0 %vm25966_vm12, %v25623_v44 }
 0x2ab   : > { %12718 = vmatpush1.bf16.xpose.msra.mxu1 %v25967_v33 }
 0x2ac   : > { %3694 = vmatprep.subr.mxu1 %v25968_v28 }
 0x2b0   : > { %11421 = vmatpush1.xpose.msk.msra.mxu0 %vm25970_vm15, %v25623_v44 }
 0x2b1   : > { %12720 = vmatprep.subr.bf16.mxu0 %v25971_v57 }
 0x2b3   : > { %3699 = vmatpush1.xpose.msra.mxu1 %v25972_v46 }
 0x2b4   : > { %12740 = vmatprep.subr.msk.bf16.mxu1 %vm25936_vm14, %v25446_v35 }
 0x2c2   : > { %v1586_v18 = vpop.f32.mrb[0].mxu0 }
 0x2c3   : > { %v3370_v32 = vmul.f32 %v1586_v18, %v1586_v18  ;;  %v1588_v20 = vpop.f32.mrb[1].mxu0  ;;  %v25974_v18 = vld [vmem:[#allocation19_spill] sm:$0xff] }
 0x2c4   : > { %v3371_v23 = vmul.f32 %v1588_v20, %v1588_v20  ;;  %v25973_v20 = vld [vmem:[#allocation18_spill] sm:$0xff]  ;;  %v3464_v7 = vrot.slane %v25975_v37, %v25974_v18 }
 0x2c5   : > { %v3378_v53 = vrot.slane %v3370_v32, 4  ;;  %vm3451_vm7 = vcmp.eq.s32.totalorder %v25973_v20, 1  ;;  %vm3450_vm5 = vcmp.eq.s32.totalorder %v25973_v20, 0  ;;  %v26125_v20 = vld [vmem:[#allocation355_spill] sm:$0xff] }
 0x2c6   : > { %v3384_v28 = vrot.slane %v3371_v23, 4 }
 0x2c7   : > { %v19647_v33 = vpop.f32.mrb[0].mxu1  ;;  %v3379_v26 = vadd.f32 %v3378_v53, %v3370_v32  ;;  %v25976_v53 = vld [vmem:[#allocation20_spill] sm:$0xff] }
 0x2c8   : > { %v2181_v24 = vpop.f32.mrb[1].mxu1  ;;  %v3385_v59 = vadd.f32 %v3384_v28, %v3371_v23  ;;  %v3468_v23 = vrot.slane %v25975_v37, %v25976_v53  ;;  %v25977_v53 = vld [vmem:[#allocation259_spill] sm:$0xff] }
 0x2c9   : > { %v3380_v27 = vrot.slane %v3379_v26, 2 }
 0x2ca   : > { %v3386_v4 = vrot.slane %v3385_v59, 2 }
 0x2cb   : > { %v3381_v57 = vadd.f32 %v3380_v27, %v3379_v26 }
 0x2cc   : > { %v3387_v56 = vadd.f32 %v3386_v4, %v3385_v59 }
 0x2cd   : > { %v3382_v46 = vrot.slane %v3381_v57, 1 }
 0x2ce   : > { %v3388_v30 = vrot.slane %v3387_v56, 1 }
 0x2cf   : > { %v3383_v29 = vadd.f32 %v3382_v46, %v3381_v57 }
 0x2d0   : > { %v3389_v47 = vadd.f32 %v3388_v30, %v3387_v56 }
 0x2d1   : > { %v3426_v52 = vadd.f32 1.0, %v3383_v29 }
 0x2d2   : > { %v3427_v2 = vadd.f32 1.0, %v3389_v47 }
 0x2d3   : > { %14282 = vrcp.f32 %v3426_v52 }
 0x2d4   : > { %14284 = vrcp.f32 %v3427_v2 }
 0x2dd   : > { %v14283_v27 = vpop.eup %14282 }
 0x2de   : > { %v14285_v59 = vpop.eup %14284  ;;  %v3452_v26 = vsel %vm3451_vm7, %v14283_v27, 0.0  ;;  %v25979_v27 = vld [vmem:[#allocation264_spill] sm:$0xff] }
 0x2df   : > { %v3453_v29 = vsel %vm3451_vm7, %v14285_v59, 0.0  ;;  %v3501_v2 = vsel %vm3450_vm5, %v3464_v7, %v3452_v26  ;;  %v25980_v59 = vld [vmem:[#allocation266_spill] sm:$0xff]  ;;  %v25981_v26 = vld [vmem:[#allocation268_spill] sm:$0xff] }
 0x2e0   : > { %v3502_v52 = vsel %vm3450_vm5, %v3468_v23, %v3453_v29  ;;  %v19663_v56 = vand.u32 4294901760, %v3501_v2  ;;  %v25978_v23 = vld [vmem:[#allocation262_spill] sm:$0xff]  ;;  %v25982_v29 = vld [vmem:[#allocation269_spill] sm:$0xff] }
 0x2e1   : > { %v3574_v30 = vand.u32 4294901760, %v3502_v52 }
 0x2e2   : > { %v3581_v47 = vsub.f32 %v3501_v2, %v19663_v56  ;;  %v3373_v2 = vmul.f32 %v2181_v24, %v2181_v24  ;;  %v25986_v24 = vld [vmem:[#allocation243_spill] sm:$0xff] }
 0x2e3   : > { %3743 = vmatprep.mubr.f32.mxu1 %v3574_v30  ;;  %v3575_v4 = vsub.f32 %v3502_v52, %v3574_v30 }
 0x2e4   : > { %3745 = vmatmul.mubr.f32.vlgmr.msra.gmra.mrb[4].mxu1 %v19663_v56  ;;  %v3582_v32 = vand.u32 4294901760, %v3581_v47  ;;  %v3396_v52 = vrot.slane %v3373_v2, 4 }
 0x2e5   : > { %12742 = vmatpush1.bf16.xpose.msk.msra.mxu1 %vm25940_vm4, %v25446_v35  ;;  %v3576_v28 = vand.u32 4294901760, %v3575_v4 }
 0x2e6   : > { %12744 = vmatprep.subr.msk.bf16.mxu1 %vm25942_vm1, %v25446_v35  ;;  %v3583_v7 = vsub.f32 %v3581_v47, %v3582_v32 }
 0x2e7   : > { %3913 = vmatprep.mubr.f32.mxu1 %v3576_v28  ;;  %v3577_v57 = vsub.f32 %v3575_v4, %v3576_v28  ;;  %v25984_v28 = vld [vmem:[#allocation293_spill] sm:$0xff] }
 0x2e8   : > { %v3584_v18 = vand.u32 4294901760, %v3583_v7  ;;  %v3397_v7 = vadd.f32 %v3396_v52, %v3373_v2  ;;  %v25996_v52 = vld [vmem:[#allocation284_spill] sm:$0xff] }
 0x2e9   : > { %v3578_v46 = vand.u32 4294901760, %v3577_v57 }
 0x2ea   : > { %v3398_v57 = vrot.slane %v3397_v7, 2 }
 0x2eb   : > { %3579 = vmatprep.mubr.f32.mxu0 %v3578_v46  ;;  %v25985_v46 = vld [vmem:[#allocation296_spill] sm:$0xff] }
 0x2ec   : > { %3585 = vmatmul.mubr.f32.vlgmr.msra.gmra.mrb[4].mxu0 %v3584_v18  ;;  %v3399_v18 = vadd.f32 %v3398_v57, %v3397_v7  ;;  %v25998_v57 = vld [vmem:[#allocation288_spill] sm:$0xff] }
 0x2ed   : > { %12722 = vmatpush1.bf16.xpose.msra.mxu0 %v25977_v53  ;;  %12746 = vmatpush1.bf16.xpose.msk.msra.mxu1 %vm25946_vm10, %v25446_v35 }
 0x2ee   : > { %3838 = vmatprep.mubr.f32.mxu0 %v3575_v4  ;;  %12724 = vmatprep.subr.bf16.mxu0 %v25978_v23  ;;  %v25983_v4 = vld [vmem:[#allocation292_spill] sm:$0xff]  ;;  %v3400_v53 = vrot.slane %v3399_v18, 1 }
 0x2ef   : > { %12748 = vmatprep.subr.msk.bf16.mxu1 %vm25948_vm0, %v25446_v35  ;;  %v25987_v23 = vld [vmem:[#allocation248_spill] sm:$0xff] }
 0x2f0   : > { %v3401_v16 = vadd.f32 %v3400_v53, %v3399_v18 }
 0x2f2   : > { %v3429_v43 = vadd.f32 1.0, %v3401_v16  ;;  %v26003_v16 = vld [vmem:[#allocation251_spill] sm:$0xff] }
 0x2f4   : > { %14286 = vrcp.f32 %v3429_v43  ;;  %v26006_v43 = vld [vmem:[#allocation206_spill] sm:$0xff] }
 0x2f5   : > { %12726 = vmatpush1.bf16.xpose.msra.mxu0 %v25979_v27  ;;  %12750 = vmatpush1.bf16.xpose.msk.msra.mxu1 %vm25952_vm9, %v25446_v35  ;;  %v25988_v27 = vld [vmem:[#allocation270_spill] sm:$0xff] }
 0x2f6   : > { %12728 = vmatprep.subr.bf16.mxu0 %v25980_v59  ;;  %12752 = vmatprep.subr.msk.bf16.mxu1 %vm25954_vm8, %v25446_v35  ;;  %v25989_v59 = vld [vmem:[#allocation272_spill] sm:$0xff] }
 0x2fd   : > { %12730 = vmatpush1.bf16.xpose.msra.mxu0 %v25981_v26  ;;  %12754 = vmatpush1.bf16.xpose.msk.msra.mxu1 %vm25958_vm6, %v25446_v35  ;;  %v3372_v26 = vmul.f32 %v19647_v33, %v19647_v33  ;;  %v25997_v33 = vld [vmem:[#allocation286_spill] sm:$0xff] }
 0x2fe   : > { %12732 = vmatprep.subr.bf16.mxu0 %v25982_v29  ;;  %12756 = vmatprep.subr.msk.bf16.mxu1 %vm25960_vm11, %v25446_v35 }
 0x2ff   : > { %v3390_v2 = vrot.slane %v3372_v26, 4 }
 0x301   : > { %v3391_v42 = vadd.f32 %v3390_v2, %v3372_v26  ;;  %v26011_v26 = vld [vmem:[#allocation235_spill] sm:$0xff]  ;;  %v26015_v2 = vld [vmem:[#allocation214_spill] sm:$0xff] }
 0x305   : > { %12734 = vmatpush1.bf16.xpose.msra.mxu0 %v25983_v4  ;;  %12758 = vmatpush1.bf16.xpose.msk.msra.mxu1 %vm25964_vm13, %v25446_v35 }
 0x306   : > { %12736 = vmatprep.subr.bf16.mxu0 %v25984_v28  ;;  %11442 = vmatprep.subr.msk.mxu1 %vm25966_vm12, %v25623_v44  ;;  %v3392_v28 = vrot.slane %v3391_v42, 2 }
 0x30d   : > { %12738 = vmatpush1.bf16.xpose.msra.mxu0 %v25985_v46  ;;  %11443 = vmatpush1.xpose.msk.msra.mxu1 %vm25970_vm15, %v25623_v44  ;;  %v3393_v46 = vadd.f32 %v3392_v28, %v3391_v42  ;;  %v26020_v42 = vld [vmem:[#allocation241_spill] sm:$0xff]  ;;  %v26021_v28 = vld [vmem:[#allocation222_spill] sm:$0xff] }
 0x30e   : > { %12780 = vmatprep.subr.msk.bf16.mxu1 %vm25936_vm14, %v25446_v35  ;;  %3791 = vmatprep.subr.mxu0 %v25986_v24  ;;  %v26000_v24 = vld [vmem:[#allocation216_spill] sm:$0xff] }
 0x30f   : > { %v3394_v53 = vrot.slane %v3393_v46, 1 }
 0x310   : > { %3917 = vmatmul.mubr.f32.vlgmr.msra.gmra.mrb[6].mxu1 %v3582_v32  ;;  %v25991_v32 = vld [vmem:[#allocation276_spill] sm:$0xff] }
 0x311   : > { %12782 = vmatpush1.bf16.xpose.msk.msra.mxu1 %vm25940_vm4, %v25446_v35  ;;  %4103 = vmatprep.mubr.f32.mxu1 %v3574_v30 }
 0x312   : > { %12784 = vmatprep.subr.msk.bf16.mxu1 %vm25942_vm1, %v25446_v35 }
 0x315   : > { %3793 = vmatpush1.xpose.msra.mxu0 %v25987_v23  ;;  %v26002_v23 = vld [vmem:[#allocation231_spill] sm:$0xff] }
 0x316   : > { %12760 = vmatprep.subr.bf16.mxu0 %v25988_v27 }
 0x318   : > { %3841 = vmatmul.mubr.f32.vlgmr.msra.gmra.mrb[6].mxu0 %v3581_v47  ;;  %v25992_v47 = vld [vmem:[#allocation278_spill] sm:$0xff] }
 0x319   : > { %12762 = vmatpush1.bf16.xpose.msra.mxu0 %v25989_v59  ;;  %4031 = vmatprep.mubr.f32.mxu0 %v3574_v30  ;;  %v14287_v30 = vpop.eup %14286  ;;  %v3395_v59 = vadd.f32 %v3394_v53, %v3393_v46  ;;  %v26025_v53 = vld [vmem:[#allocation224_spill] sm:$0xff] }
 0x31a   : > { %12786 = vmatpush1.bf16.xpose.msk.msra.mxu1 %vm25946_vm10, %v25446_v35  ;;  %12764 = vmatprep.subr.bf16.mxu0 %v25990_v60  ;;  %v3455_v29 = vsel %vm3451_vm7, %v14287_v30, 0.0  ;;  %vm26026_vm14 = vnez %v26025_v53 }
 0x31b   : > { %12788 = vmatprep.subr.msk.bf16.mxu1 %vm25948_vm0, %v25446_v35  ;;  %v3504_v11 = vsel %vm3450_vm5, %v3476_v36, %v3455_v29  ;;  %v3428_v30 = vadd.f32 1.0, %v3395_v59  ;;  %v26012_v36 = vld [vmem:[#allocation211_spill] sm:$0xff]  ;;  %v26014_v29 = vld [vmem:[#allocation237_spill] sm:$0xff]  ;;  %vm26016_vm0 = vnez %v26015_v2 }
 0x31c   : > { %v19761_v4 = vand.u32 4294901760, %v3504_v11  ;;  %v26030_v59 = vld [vmem:[#allocation255_spill] sm:$0xff] }
 0x31d   : > { %14288 = vrcp.f32 %v3428_v30  ;;  %v26033_v30 = vld [vmem:[#allocation260_spill] sm:$0xff]  ;;  %v26056_v2 = vld [vmem:[#allocation283_spill] sm:$0xff] }
 0x31e   : > { %v4175_v7 = vsub.f32 %v3504_v11, %v19761_v4  ;;  %v26017_v11 = vld [vmem:[#allocation239_spill] sm:$0xff] }
 0x320   : > { %v4176_v18 = vand.u32 4294901760, %v4175_v7 }
 0x321   : > { %12766 = vmatpush1.bf16.xpose.msra.mxu0 %v25991_v32  ;;  %v26008_v32 = vld [vmem:[#allocation233_spill] sm:$0xff] }
 0x322   : > { %12790 = vmatpush1.bf16.xpose.msk.msra.mxu1 %vm25952_vm9, %v25446_v35  ;;  %12768 = vmatprep.subr.bf16.mxu0 %v25992_v47  ;;  %v4177_v27 = vsub.f32 %v4175_v7, %v4176_v18  ;;  %vm26013_vm9 = vnez %v26012_v36 }
 0x323   : > { %12792 = vmatprep.subr.msk.bf16.mxu1 %vm25954_vm8, %v25446_v35  ;;  %vm26022_vm8 = vnez %v26021_v28 }
 0x324   : > { %v4178_v60 = vand.u32 4294901760, %v4177_v27  ;;  %v26028_v27 = vld [vmem:[#allocation227_spill] sm:$0xff] }
 0x325   : > { %vm26029_vm10 = vnez %v26028_v27 }
 0x329   : > { %12770 = vmatpush1.bf16.xpose.msra.mxu0 %v25993_v0  ;;  %v26009_v0 = vld [vmem:[#allocation208_spill] sm:$0xff] }
 0x32a   : > { %12794 = vmatpush1.bf16.xpose.msk.msra.mxu1 %vm25958_vm6, %v25446_v35  ;;  %12772 = vmatprep.subr.bf16.mxu0 %v25994_v9 }
 0x32b   : > { %12796 = vmatprep.subr.msk.bf16.mxu1 %vm25960_vm11, %v25446_v35 }
 0x331   : > { %12774 = vmatpush1.bf16.xpose.msra.mxu0 %v25996_v52  ;;  %v14289_v52 = vpop.eup %14288 }
 0x332   : > { %12798 = vmatpush1.bf16.xpose.msk.msra.mxu1 %vm25964_vm13, %v25446_v35  ;;  %12776 = vmatprep.subr.bf16.mxu0 %v25997_v33  ;;  %vm26007_vm13 = vnez %v26006_v43  ;;  %v26018_v33 = vld [vmem:[#allocation219_spill] sm:$0xff] }
 0x333   : > { %11464 = vmatprep.subr.msk.mxu1 %vm25966_vm12, %v25623_v44  ;;  %vm26005_vm12 = vnez %v26004_v39  ;;  %vm26019_vm6 = vnez %v26018_v33  ;;  %v26051_v39 = vld [vmem:[#allocation273_spill] sm:$0xff]  ;;  %v26052_v43 = vld [vmem:[#allocation275_spill] sm:$0xff]  ;;  %v26057_v33 = vld [vmem:[#allocation24_spill] sm:$0xff] }
 0x334   : > { %v3484_v28 = vrot.slane %v25975_v37, %v26057_v33 }
 0x339   : > { %12778 = vmatpush1.bf16.xpose.msra.mxu0 %v25998_v57  ;;  %v26023_v57 = vld [vmem:[#allocation244_spill] sm:$0xff] }
 0x33a   : > { %11465 = vmatpush1.xpose.msk.msra.mxu1 %vm25970_vm15, %v25623_v44  ;;  %3984 = vmatprep.subr.mxu0 %v25999_v61  ;;  %vm26010_vm15 = vnez %v26009_v0  ;;  %v26024_v61 = vld [vmem:[#allocation21_spill] sm:$0xff] }
 0x33b   : > { %12820 = vmatprep.subr.bf16.mxu1 %v26000_v24  ;;  %v3472_v46 = vrot.slane %v25975_v37, %v26024_v61  ;;  %v3454_v24 = vsel %vm3451_vm7, %v14289_v52, 0.0  ;;  %v26036_v52 = vld [vmem:[#allocation190_spill] sm:$0xff]  ;;  %v26039_v61 = vld [vmem:[#allocation261_spill] sm:$0xff] }
 0x33c   : > { %vm26037_vm4 = vnez %v26036_v52 }
 0x33d   : > { %4105 = vmatmul.mubr.f32.vlgmr.msra.gmra.mrb[8].mxu1 %v19663_v56 }
 0x33e   : > { %12822 = vmatpush1.bf16.xpose.msra.mxu1 %v26001_v13  ;;  %4343 = vmatprep.mubr.f32.mxu1 %v19761_v4  ;;  %v3503_v13 = vsel %vm3450_vm5, %v3472_v46, %v3454_v24  ;;  %v26041_v46 = vld [vmem:[#allocation265_spill] sm:$0xff]  ;;  %v26042_v24 = vld [vmem:[#allocation267_spill] sm:$0xff] }
 0x33f   : > { %12824 = vmatprep.subr.bf16.mxu1 %v26002_v23  ;;  %v26027_v23 = vld [vmem:[#allocation254_spill] sm:$0xff] }
 0x341   : > { %3987 = vmatpush1.xpose.msra.mxu0 %v26003_v16  ;;  %v19822_v16 = vand.u32 4294901760, %v3503_v13 }
 0x342   : > { %12800 = vmatprep.subr.msk.bf16.mxu0 %vm26005_vm12, %v25446_v35 }
 0x344   : > { %4033 = vmatmul.mubr.f32.vlgmr.msra.gmra.mrb[8].mxu0 %v19663_v56 }
 0x345   : > { %12802 = vmatpush1.bf16.xpose.msk.msra.mxu0 %vm26007_vm13, %v25446_v35  ;;  %4179 = vmatprep.mubr.f32.mxu0 %v4178_v60  ;;  %v4181_v60 = vsub.f32 %v3503_v13, %v19822_v16  ;;  %v26044_v13 = vld [vmem:[#allocation291_spill] sm:$0xff] }
 0x346   : > { %12826 = vmatpush1.bf16.xpose.msra.mxu1 %v26008_v32  ;;  %12804 = vmatprep.subr.msk.bf16.mxu0 %vm26010_vm15, %v25446_v35  ;;  %v26031_v32 = vld [vmem:[#allocation230_spill] sm:$0xff] }
 0x347   : > { %12828 = vmatprep.subr.bf16.mxu1 %v26011_v26  ;;  %vm26032_vm1 = vnez %v26031_v32  ;;  %v26034_v26 = vld [vmem:[#allocation192_spill] sm:$0xff]  ;;  %v26061_v32 = vld [vmem:[#allocation250_spill] sm:$0xff] }
 0x348   : > { %vm26035_vm11 = vnez %v26034_v26 }
 0x34d   : > { %12806 = vmatpush1.bf16.xpose.msk.msra.mxu0 %vm26013_vm9, %v25446_v35 }
 0x34e   : > { %12830 = vmatpush1.bf16.xpose.msra.mxu1 %v26014_v29  ;;  %12808 = vmatprep.subr.msk.bf16.mxu0 %vm26016_vm0, %v25446_v35  ;;  %v4182_v29 = vand.u32 4294901760, %v4181_v60 }
 0x34f   : > { %12832 = vmatprep.subr.bf16.mxu1 %v26017_v11 }
 0x350   : > { %v4183_v11 = vsub.f32 %v4181_v60, %v4182_v29 }
 0x355   : > { %v19783_v47 = vpop.f32.mrb[2].mxu0  ;;  %12810 = vmatpush1.bf16.xpose.msk.msra.mxu0 %vm26019_vm6, %v25446_v35 }
 0x356   : > { %v2774_v9 = vpop.f32.mrb[3].mxu0  ;;  %12834 = vmatpush1.bf16.xpose.msra.mxu1 %v26020_v42  ;;  %12812 = vmatprep.subr.msk.bf16.mxu0 %vm26022_vm8, %v25446_v35  ;;  %v4184_v42 = vand.u32 4294901760, %v4183_v11  ;;  %v26046_v11 = vld [vmem:[#allocation295_spill] sm:$0xff] }
 0x357   : > { %12836 = vmatprep.subr.bf16.mxu1 %v26023_v57  ;;  %v26038_v57 = vld [vmem:[#allocation258_spill] sm:$0xff] }
 0x358   : > { %v19789_v21 = vpop.f32.mrb[2].mxu1 }
 0x359   : > { %v19791_v56 = vpop.f32.mrb[3].mxu1 }
 0x35d   : > { %12814 = vmatpush1.bf16.xpose.msk.msra.mxu0 %vm26026_vm14, %v25446_v35 }
 0x35e   : > { %12838 = vmatpush1.bf16.xpose.msra.mxu1 %v26027_v23  ;;  %12816 = vmatprep.subr.msk.bf16.mxu0 %vm26029_vm10, %v25446_v35  ;;  %v3375_v23 = vmul.f32 %v2774_v9, %v2774_v9  ;;  %v26048_v9 = vld [vmem:[#allocation245_spill] sm:$0xff] }
 0x35f   : > { %4294 = vmatprep.subr.mxu1 %v26030_v59 }
 0x360   : > { %v3408_v59 = vrot.slane %v3375_v23, 4 }
 0x365   : > { %12818 = vmatpush1.bf16.xpose.msk.msra.mxu0 %vm26032_vm1, %v25446_v35 }
 0x366   : > { %4299 = vmatpush1.xpose.msra.mxu1 %v26033_v30  ;;  %11486 = vmatprep.subr.msk.mxu0 %vm26035_vm11, %v25623_v44  ;;  %v26045_v30 = vld [vmem:[#allocation294_spill] sm:$0xff] }
 0x367   : > { %12860 = vmatprep.subr.msk.bf16.mxu1 %vm26005_vm12, %v25446_v35 }
 0x369   : > { %4345 = vmatmul.mubr.f32.vlgmr.msra.gmra.mrb[10].mxu1 %v19822_v16 }
 0x36a   : > { %12862 = vmatpush1.bf16.xpose.msk.msra.mxu1 %vm26007_vm13, %v25446_v35  ;;  %4513 = vmatprep.mubr.f32.mxu1 %v4176_v18  ;;  %v26040_v18 = vld [vmem:[#allocation263_spill] sm:$0xff] }
 0x36b   : > { %12864 = vmatprep.subr.msk.bf16.mxu1 %vm26010_vm15, %v25446_v35 }
 0x36d   : > { %11487 = vmatpush1.xpose.msk.msra.mxu0 %vm26037_vm4, %v25623_v44 }
 0x36e   : > { %12840 = vmatprep.subr.bf16.mxu0 %v26038_v57 }
 0x370   : > { %4185 = vmatmul.mubr.f32.vlgmr.msra.gmra.mrb[10].mxu0 %v4184_v42  ;;  %v3409_v42 = vadd.f32 %v3408_v59, %v3375_v23  ;;  %v3374_v23 = vmul.f32 %v19783_v47, %v19783_v47  ;;  %v26059_v47 = vld [vmem:[#allocation287_spill] sm:$0xff] }
 0x371   : > { %12842 = vmatpush1.bf16.xpose.msra.mxu0 %v26039_v61  ;;  %4438 = vmatprep.mubr.f32.mxu0 %v4175_v7  ;;  %v26043_v7 = vld [vmem:[#allocation290_spill] sm:$0xff]  ;;  %v26047_v61 = vld [vmem:[#allocation297_spill] sm:$0xff] }
 0x372   : > { %12866 = vmatpush1.bf16.xpose.msk.msra.mxu1 %vm26013_vm9, %v25446_v35  ;;  %12844 = vmatprep.subr.bf16.mxu0 %v26040_v18  ;;  %v3410_v57 = vrot.slane %v3409_v42, 2 }
 0x373   : > { %12868 = vmatprep.subr.msk.bf16.mxu1 %vm26016_vm0, %v25446_v35 }
 0x374   : > { %v3411_v18 = vadd.f32 %v3410_v57, %v3409_v42 }
 0x379   : > { %12846 = vmatpush1.bf16.xpose.msra.mxu0 %v26041_v46  ;;  %v3412_v46 = vrot.slane %v3411_v18, 1 }
 0x37a   : > { %12870 = vmatpush1.bf16.xpose.msk.msra.mxu1 %vm26019_vm6, %v25446_v35  ;;  %12848 = vmatprep.subr.bf16.mxu0 %v26042_v24  ;;  %v26049_v24 = vld [vmem:[#allocation249_spill] sm:$0xff] }
 0x37b   : > { %12872 = vmatprep.subr.msk.bf16.mxu1 %vm26022_vm8, %v25446_v35 }
 0x381   : > { %12850 = vmatpush1.bf16.xpose.msra.mxu0 %v26043_v7  ;;  %v26050_v7 = vld [vmem:[#allocation271_spill] sm:$0xff] }
 0x382   : > { %12874 = vmatpush1.bf16.xpose.msk.msra.mxu1 %vm26026_vm14, %v25446_v35  ;;  %12852 = vmatprep.subr.bf16.mxu0 %v26044_v13  ;;  %v3413_v13 = vadd.f32 %v3412_v46, %v3411_v18  ;;  %v26060_v46 = vld [vmem:[#allocation289_spill] sm:$0xff] }
 0x383   : > { %12876 = vmatprep.subr.msk.bf16.mxu1 %vm26029_vm10, %v25446_v35 }
 0x384   : > { %v3431_v0 = vadd.f32 1.0, %v3413_v13  ;;  %v26062_v13 = vld [vmem:[#allocation347_spill] sm:$0xff] }
 0x386   : > { %14290 = vrcp.f32 %v3431_v0  ;;  %v26063_v0 = vld [vmem:[#allocation350_spill] sm:$0xff] }
 0x389   : > { %12854 = vmatpush1.bf16.xpose.msra.mxu0 %v26045_v30  ;;  %v3402_v30 = vrot.slane %v3374_v23, 4 }
 0x38a   : > { %12878 = vmatpush1.bf16.xpose.msk.msra.mxu1 %vm26032_vm1, %v25446_v35  ;;  %12856 = vmatprep.subr.bf16.mxu0 %v26046_v11  ;;  %v26058_v11 = vld [vmem:[#allocation285_spill] sm:$0xff] }
 0x38b   : > { %11508 = vmatprep.subr.msk.mxu1 %vm26035_vm11, %v25623_v44  ;;  %v3403_v27 = vadd.f32 %v3402_v30, %v3374_v23  ;;  %v26068_v23 = vld [vmem:[#allocation358_spill] sm:$0xff] }
 0x390   : > { %v14291_v36 = vpop.eup %14290 }
 0x391   : > { %12858 = vmatpush1.bf16.xpose.msra.mxu0 %v26047_v61  ;;  %v3457_v59 = vsel %vm3451_vm7, %v14291_v36, 0.0 }
 0x392   : > { %11509 = vmatpush1.xpose.msk.msra.mxu1 %vm26037_vm4, %v25623_v44  ;;  %4391 = vmatprep.subr.mxu0 %v26048_v9  ;;  %v3506_v53 = vsel %vm3450_vm5, %v3484_v28, %v3457_v59  ;;  %v3404_v9 = vrot.slane %v3403_v27, 2 }
 0x393   : > { %12900 = vmatprep.subr.msk.bf16.mxu1 %vm26005_vm12, %v25446_v35  ;;  %v19937_v57 = vand.u32 4294901760, %v3506_v53  ;;  %vm26066_vm12 = vnez %v25874_v19  ;;  %v26082_v19 = vld [vmem:[#allocation312_spill] sm:$0xff] }
 0x395   : > { %4517 = vmatmul.mubr.f32.vlgmr.msra.gmra.mrb[12].mxu1 %v4182_v29  ;;  %v26053_v29 = vld [vmem:[#allocation277_spill] sm:$0xff]  ;;  %v19940_v18 = vsub.f32 %v3506_v53, %v19937_v57 }
 0x396   : > { %12902 = vmatpush1.bf16.xpose.msk.msra.mxu1 %vm26007_vm13, %v25446_v35  ;;  %4703 = vmatprep.mubr.f32.mxu1 %v19761_v4  ;;  %vm26067_vm13 = vnez %v25876_v41  ;;  %v26084_v41 = vld [vmem:[#allocation316_spill] sm:$0xff] }
 0x397   : > { %12904 = vmatprep.subr.msk.bf16.mxu1 %vm26010_vm15, %v25446_v35  ;;  %v4776_v26 = vand.u32 4294901760, %v19940_v18  ;;  %vm26069_vm15 = vnez %v25877_v38 }
 0x399   : > { %4393 = vmatpush1.xpose.msra.mxu0 %v26049_v24  ;;  %v3405_v24 = vadd.f32 %v3404_v9, %v3403_v27  ;;  %v4777_v52 = vsub.f32 %v19940_v18, %v4776_v26 }
 0x39a   : > { %12880 = vmatprep.subr.bf16.mxu0 %v26050_v7 }
 0x39c   : > { %4441 = vmatmul.mubr.f32.vlgmr.msra.gmra.mrb[12].mxu0 %v4181_v60  ;;  %v26054_v60 = vld [vmem:[#allocation279_spill] sm:$0xff] }
 0x39d   : > { %12882 = vmatpush1.bf16.xpose.msra.mxu0 %v26051_v39  ;;  %4631 = vmatprep.mubr.f32.mxu0 %v19761_v4  ;;  %v26055_v4 = vld [vmem:[#allocation281_spill] sm:$0xff] }
 0x39e   : > { %12906 = vmatpush1.bf16.xpose.msk.msra.mxu1 %vm26013_vm9, %v25446_v35  ;;  %12884 = vmatprep.subr.bf16.mxu0 %v26052_v43  ;;  %vm26070_vm9 = vnez %v25888_v45  ;;  %v26089_v45 = vld [vmem:[#allocation26_spill] sm:$0xff] }
 0x39f   : > { %12908 = vmatprep.subr.msk.bf16.mxu1 %vm26016_vm0, %v25446_v35  ;;  %vm26071_vm0 = vnez %v25889_v54  ;;  %v3492_v54 = vrot.slane %v25975_v37, %v26089_v45 }
 0x3a5   : > { %12886 = vmatpush1.bf16.xpose.msra.mxu0 %v26053_v29  ;;  %v3406_v29 = vrot.slane %v3405_v24, 1 }
 0x3a6   : > { %12910 = vmatpush1.bf16.xpose.msk.msra.mxu1 %vm26019_vm6, %v25446_v35  ;;  %12888 = vmatprep.subr.bf16.mxu0 %v26054_v60  ;;  %v26064_v60 = vld [vmem:[#allocation356_spill] sm:$0xff]  ;;  %vm26073_vm6 = vnez %v25893_v50 }
 0x3a7   : > { %12912 = vmatprep.subr.msk.bf16.mxu1 %vm26022_vm8, %v25446_v35  ;;  %v3407_v36 = vadd.f32 %v3406_v29, %v3405_v24  ;;  %vm26074_vm8 = vnez %v25895_v34  ;;  %v26081_v24 = vld [vmem:[#allocation363_spill] sm:$0xff] }
 0x3a9   : > { %v3430_v33 = vadd.f32 1.0, %v3407_v36 }
 0x3ab   : > { %14292 = vrcp.f32 %v3430_v33  ;;  %v26092_v33 = vld [vmem:[#allocation330_spill] sm:$0xff] }
 0x3ad   : > { %12890 = vmatpush1.bf16.xpose.msra.mxu0 %v26055_v4  ;;  %v26065_v4 = vld [vmem:[#allocation252_spill] sm:$0xff] }
 0x3ae   : > { %12914 = vmatpush1.bf16.xpose.msk.msra.mxu1 %vm26026_vm14, %v25446_v35  ;;  %12892 = vmatprep.subr.bf16.mxu0 %v26056_v2  ;;  %v4778_v2 = vand.u32 4294901760, %v4777_v52  ;;  %vm26075_vm14 = vnez %v25900_v12  ;;  %v26093_v12 = vld [vmem:[#allocation365_spill] sm:$0xff] }
 0x3af   : > { %12916 = vmatprep.subr.msk.bf16.mxu1 %vm26029_vm10, %v25446_v35  ;;  %vm26076_vm10 = vnez %v25799_v22  ;;  %v26094_v22 = vld [vmem:[#allocation348_spill] sm:$0xff] }
 0x3b5   : > { %12894 = vmatpush1.bf16.xpose.msra.mxu0 %v26058_v11 }
 0x3b6   : > { %12918 = vmatpush1.bf16.xpose.msk.msra.mxu1 %vm26032_vm1, %v25446_v35  ;;  %12896 = vmatprep.subr.bf16.mxu0 %v26059_v47  ;;  %vm26077_vm1 = vnez %v25902_v62  ;;  %v26096_v62 = vld [vmem:[#allocation357_spill] sm:$0xff] }
 0x3b7   : > { %v3746_v42 = vpop.f32.mrb[4].mxu1  ;;  %11530 = vmatprep.subr.msk.mxu1 %vm26035_vm11, %v25623_v44 }
 0x3b8   : > { %v3748_v61 = vpop.f32.mrb[5].mxu1 }
 0x3bd   : > { %12898 = vmatpush1.bf16.xpose.msra.mxu0 %v26060_v46 }
 0x3be   : > { %11531 = vmatpush1.xpose.msk.msra.mxu1 %vm26037_vm4, %v25623_v44  ;;  %4584 = vmatprep.subr.mxu0 %v26061_v32 }
 0x3bf   : > { %v3586_v7 = vpop.f32.mrb[4].mxu0  ;;  %12940 = vmatprep.subr.bf16.mxu1 %v26062_v13  ;;  %v26083_v13 = vld [vmem:[#allocation314_spill] sm:$0xff] }
 0x3c0   : > { %v3747_v39 = vadd.f32 %v3746_v42, %v3586_v7  ;;  %v3588_v43 = vpop.f32.mrb[5].mxu0  ;;  %v26079_v42 = vld [vmem:[#allocation307_spill] sm:$0xff] }
 0x3c1   : > { %4705 = vmatmul.mubr.f32.vlgmr.msra.gmra.mrb[14].mxu1 %v19822_v16  ;;  %v3376_v43 = vmul.f32 %v19789_v21, %v19789_v21  ;;  %v26091_v21 = vld [vmem:[#allocation328_spill] sm:$0xff] }
 0x3c2   : > { %12942 = vmatpush1.bf16.xpose.msra.mxu1 %v26063_v0  ;;  %4943 = vmatprep.mubr.f32.mxu1 %v19937_v57 }
 0x3c3   : > { %12944 = vmatprep.subr.bf16.mxu1 %v26064_v60  ;;  %v3414_v29 = vrot.slane %v3376_v43, 4  ;;  %v26090_v60 = vld [vmem:[#allocation326_spill] sm:$0xff] }
 0x3c5   : > { %4587 = vmatpush1.xpose.msra.mxu0 %v26065_v4  ;;  %v3415_v34 = vadd.f32 %v3414_v29, %v3376_v43  ;;  %v26130_v29 = vld [vmem:[#allocation198_spill] sm:$0xff] }
 0x3c6   : > { %12920 = vmatprep.subr.msk.bf16.mxu0 %vm26066_vm12, %v25446_v35 }
 0x3c8   : > { %4633 = vmatmul.mubr.f32.vlgmr.msra.gmra.mrb[14].mxu0 %v19822_v16  ;;  %v14293_v16 = vpop.eup %14292 }
 0x3c9   : > { %12922 = vmatpush1.bf16.xpose.msk.msra.mxu0 %vm26067_vm13, %v25446_v35  ;;  %4779 = vmatprep.mubr.f32.mxu0 %v4778_v2  ;;  %v3456_v28 = vsel %vm3451_vm7, %v14293_v16, 0.0  ;;  %v3416_v2 = vrot.slane %v3415_v34, 2 }
 0x3ca   : > { %12946 = vmatpush1.bf16.xpose.msra.mxu1 %v26068_v23  ;;  %12924 = vmatprep.subr.msk.bf16.mxu0 %vm26069_vm15, %v25446_v35 }
 0x3cb   : > { %12948 = vmatprep.subr.bf16.mxu1 %v19178_v1  ;;  %v26072_v1 = vld [vmem:[#allocation23_spill] sm:$0xff]  ;;  %v3417_v16 = vadd.f32 %v3416_v2, %v3415_v34  ;;  %v26137_v2 = vld [vmem:[#allocation304_spill] sm:$0xff] }
 0x3cc   : > { %v26134_v34 = vld [vmem:[#allocation299_spill] sm:$0xff] }
 0x3d1   : > { %12926 = vmatpush1.bf16.xpose.msk.msra.mxu0 %vm25929_vm2, %v25446_v35 }
 0x3d2   : > { %12950 = vmatpush1.bf16.xpose.msra.mxu1 %v19183_v40  ;;  %12928 = vmatprep.subr.msk.bf16.mxu0 %vm25883_vm3, %v25446_v35  ;;  %v3480_v40 = vrot.slane %v25975_v37, %v26072_v1 }
 0x3d3   : > { %12952 = vmatprep.subr.bf16.mxu1 %v19214_v5 }
 0x3d4   : > { %v3505_v5 = vsel %vm3450_vm5, %v3480_v40, %v3456_v28 }
 0x3d9   : > { %12930 = vmatpush1.bf16.xpose.msk.msra.mxu0 %vm26070_vm9, %v25446_v35 }
 0x3da   : > { %12954 = vmatpush1.bf16.xpose.msra.mxu1 %v19242_v3  ;;  %12932 = vmatprep.subr.msk.bf16.mxu0 %vm26071_vm0, %v25446_v35  ;;  %v19996_v3 = vand.u32 4294901760, %v3505_v5 }
 0x3db   : > { %12956 = vmatprep.subr.bf16.mxu1 %v19264_v15 }
 0x3dc   : > { %v4781_v30 = vsub.f32 %v3505_v5, %v19996_v3 }
 0x3e1   : > { %12934 = vmatpush1.bf16.xpose.msk.msra.mxu0 %vm26073_vm6, %v25446_v35 }
 0x3e2   : > { %12958 = vmatpush1.bf16.xpose.msra.mxu1 %v19278_v25  ;;  %12936 = vmatprep.subr.msk.bf16.mxu0 %vm26074_vm8, %v25446_v35  ;;  %v4782_v25 = vand.u32 4294901760, %v4781_v30 }
 0x3e3   : > { %v3918_v15 = vpop.f32.mrb[6].mxu1  ;;  %4894 = vmatprep.subr.mxu1 %v19285_v8 }
 0x3e4   : > { %v3920_v59 = vpop.f32.mrb[7].mxu1 }
 0x3e9   : > { %12938 = vmatpush1.bf16.xpose.msk.msra.mxu0 %vm26075_vm14, %v25446_v35 }
 0x3ea   : > { %4899 = vmatpush1.xpose.msra.mxu1 %v19296_v17  ;;  %11552 = vmatprep.subr.msk.mxu0 %vm26076_vm10, %v25623_v44  ;;  %v4783_v17 = vsub.f32 %v4781_v30, %v4782_v25 }
 0x3eb   : > { %v3842_v53 = vpop.f32.mrb[6].mxu0  ;;  %12980 = vmatprep.subr.msk.bf16.mxu1 %vm26066_vm12, %v25446_v35 }
 0x3ec   : > { %v3843_v8 = vadd.f32 %v3842_v53, %v3747_v39  ;;  %v3844_v11 = vpop.f32.mrb[7].mxu0  ;;  %v4784_v27 = vand.u32 4294901760, %v4783_v17  ;;  %v26086_v39 = vld [vmem:[#allocation320_spill] sm:$0xff] }
 0x3ed   : > { %4945 = vmatmul.mubr.f32.vlgmr.msra.gmra.mrb[16].mxu1 %v19996_v3  ;;  %v26097_v53 = vld [vmem:[#allocation368_spill] sm:$0xff] }
 0x3ee   : > { %12982 = vmatpush1.bf16.xpose.msk.msra.mxu1 %vm26067_vm13, %v25446_v35  ;;  %5113 = vmatprep.mubr.f32.mxu1 %v4776_v26  ;;  %v3919_v47 = vadd.f32 %v3918_v15, %v3843_v8  ;;  %v26085_v26 = vld [vmem:[#allocation318_spill] sm:$0xff]  ;;  %v26095_v15 = vld [vmem:[#allocation351_spill] sm:$0xff]  ;;  %v26098_v8 = vld [vmem:[#allocation333_spill] sm:$0xff] }
 0x3ef   : > { %12984 = vmatprep.subr.msk.bf16.mxu1 %vm26069_vm15, %v25446_v35 }
 0x3f1   : > { %11553 = vmatpush1.xpose.msk.msra.mxu0 %vm26077_vm1, %v25623_v44 }
 0x3f2   : > { %12960 = vmatprep.subr.bf16.mxu0 %v19301_v10  ;;  %v3377_v10 = vmul.f32 %v19791_v56, %v19791_v56 }
 0x3f4   : > { %4785 = vmatmul.mubr.f32.vlgmr.msra.gmra.mrb[16].mxu0 %v4784_v27  ;;  %v26102_v27 = vld [vmem:[#allocation359_spill] sm:$0xff] }
 0x3f5   : > { %12962 = vmatpush1.bf16.xpose.msra.mxu0 %v19305_v31  ;;  %5038 = vmatprep.mubr.f32.mxu0 %v19940_v18  ;;  %v3420_v31 = vrot.slane %v3377_v10, 4 }
 0x3f6   : > { %12986 = vmatpush1.bf16.xpose.msk.msra.mxu1 %vm25929_vm2, %v25446_v35  ;;  %12964 = vmatprep.subr.bf16.mxu0 %v19312_v49  ;;  %v26078_v49 = vld [vmem:[#allocation302_spill] sm:$0xff] }
 0x3f7   : > { %12988 = vmatprep.subr.msk.bf16.mxu1 %vm25883_vm3, %v25446_v35 }
 0x3fd   : > { %12966 = vmatpush1.bf16.xpose.msra.mxu0 %v19333_v55  ;;  %v3421_v55 = vadd.f32 %v3420_v31, %v3377_v10  ;;  %v26103_v10 = vld [vmem:[#allocation337_spill] sm:$0xff] }
 0x3fe   : > { %12990 = vmatpush1.bf16.xpose.msk.msra.mxu1 %vm26070_vm9, %v25446_v35  ;;  %12968 = vmatprep.subr.bf16.mxu0 %v19340_v48  ;;  %vm26104_vm11 = vnez %v26103_v10 }
 0x3ff   : > { %12992 = vmatprep.subr.msk.bf16.mxu1 %vm26071_vm0, %v25446_v35 }
 0x405   : > { %12970 = vmatpush1.bf16.xpose.msra.mxu0 %v19358_v6 }
 0x406   : > { %12994 = vmatpush1.bf16.xpose.msk.msra.mxu1 %vm26073_vm6, %v25446_v35  ;;  %12972 = vmatprep.subr.bf16.mxu0 %v19363_v63  ;;  %v3422_v63 = vrot.slane %v3421_v55, 2 }
 0x407   : > { %12996 = vmatprep.subr.msk.bf16.mxu1 %vm26074_vm8, %v25446_v35 }
 0x408   : > { %v3423_v61 = vadd.f32 %v3422_v63, %v3421_v55  ;;  %v26106_v55 = vld [vmem:[#allocation340_spill] sm:$0xff] }
 0x409   : > { %vm26107_vm4 = vnez %v26106_v55  ;;  %v26154_v55 = vld [vmem:[#allocation367_spill] sm:$0xff] }
 0x40a   : > { %v3424_v32 = vrot.slane %v3423_v61, 1 }
 0x40c   : > { %v3425_v7 = vadd.f32 %v3424_v32, %v3423_v61  ;;  %v26117_v61 = vld [vmem:[#allocation370_spill] sm:$0xff] }
 0x40d   : > { %12974 = vmatpush1.bf16.xpose.msra.mxu0 %v19378_v58  ;;  %v26080_v58 = vld [vmem:[#allocation361_spill] sm:$0xff] }
 0x40e   : > { %12998 = vmatpush1.bf16.xpose.msk.msra.mxu1 %vm26075_vm14, %v25446_v35  ;;  %12976 = vmatprep.subr.bf16.mxu0 %v26078_v49  ;;  %v3433_v38 = vadd.f32 1.0, %v3425_v7  ;;  %v26105_v49 = vld [vmem:[#allocation220_spill] sm:$0xff]  ;;  %v26122_v7 = vld [vmem:[#allocation353_spill] sm:$0xff] }
 0x40f   : > { %11574 = vmatprep.subr.msk.mxu1 %vm26076_vm10, %v25623_v44 }
 0x410   : > { %v4106_v48 = vpop.f32.mrb[8].mxu1  ;;  %14294 = vrcp.f32 %v3433_v38 }
 0x411   : > { %v4108_v6 = vpop.f32.mrb[9].mxu1 }
 0x412   : > { %v26111_v6 = vld [vmem:[#allocation364_spill] sm:$0xff] }
 0x415   : > { %12978 = vmatpush1.bf16.xpose.msra.mxu0 %v26079_v42  ;;  %v26112_v42 = vld [vmem:[#allocation344_spill] sm:$0xff] }
 0x416   : > { %11575 = vmatpush1.xpose.msk.msra.mxu1 %vm26077_vm1, %v25623_v44  ;;  %4991 = vmatprep.subr.mxu0 %v26080_v58  ;;  %v26114_v58 = vld [vmem:[#allocation369_spill] sm:$0xff] }
 0x417   : > { %v4034_v56 = vpop.f32.mrb[8].mxu0  ;;  %13020 = vmatprep.subr.msk.bf16.mxu1 %vm26066_vm12, %v25446_v35 }
 0x418   : > { %v4035_v9 = vadd.f32 %v4034_v56, %v3919_v47  ;;  %v4036_v18 = vpop.f32.mrb[9].mxu0  ;;  %v26100_v47 = vld [vmem:[#allocation336_spill] sm:$0xff]  ;;  %v26115_v56 = vld [vmem:[#allocation345_spill] sm:$0xff] }
 0x419   : > { %5117 = vmatmul.mubr.f32.vlgmr.msra.gmra.mrb[18].mxu1 %v4782_v25 }
 0x41a   : > { %13022 = vmatpush1.bf16.xpose.msk.msra.mxu1 %vm26067_vm13, %v25446_v35  ;;  %5303 = vmatprep.mubr.f32.mxu1 %v19937_v57  ;;  %v4107_v46 = vadd.f32 %v4106_v48, %v4035_v9  ;;  %v26109_v48 = vld [vmem:[#allocation341_spill] sm:$0xff]  ;;  %vm26113_vm13 = vnez %v26112_v42 }
 0x41b   : > { %13024 = vmatprep.subr.msk.bf16.mxu1 %vm26069_vm15, %v25446_v35  ;;  %vm26110_vm12 = vnez %v26109_v48  ;;  %vm26116_vm15 = vnez %v26115_v56  ;;  %v26118_v9 = vld [vmem:[#allocation25_spill] sm:$0xff] }
 0x41c   : > { %v3488_v18 = vrot.slane %v25975_v37, %v26118_v9 }
 0x41d   : > { %4993 = vmatpush1.xpose.msra.mxu0 %v26081_v24  ;;  %v26119_v24 = vld [vmem:[#allocation352_spill] sm:$0xff] }
 0x41e   : > { %13000 = vmatprep.subr.bf16.mxu0 %v26082_v19  ;;  %v26121_v19 = vld [vmem:[#allocation372_spill] sm:$0xff] }
 0x420   : > { %5041 = vmatmul.mubr.f32.vlgmr.msra.gmra.mrb[18].mxu0 %v4781_v30  ;;  %v3418_v30 = vrot.slane %v3417_v16, 1 }
 0x421   : > { %13002 = vmatpush1.bf16.xpose.msra.mxu0 %v26083_v13  ;;  %5231 = vmatprep.mubr.f32.mxu0 %v19937_v57  ;;  %v14295_v57 = vpop.eup %14294 }
 0x422   : > { %13026 = vmatpush1.bf16.xpose.msk.msra.mxu1 %vm25929_vm2, %v25446_v35  ;;  %13004 = vmatprep.subr.bf16.mxu0 %v26084_v41  ;;  %v3459_v0 = vsel %vm3451_vm7, %v14295_v57, 0.0  ;;  %v3419_v11 = vadd.f32 %v3418_v30, %v3417_v16  ;;  %vm26101_vm2 = vnez %v26100_v47  ;;  %v26124_v41 = vld [vmem:[#allocation373_spill] sm:$0xff]  ;;  %v26143_v30 = vld [vmem:[#allocation366_spill] sm:$0xff]  ;;  %v26151_v47 = vld [vmem:[#allocation327_spill] sm:$0xff] }
 0x423   : > { %13028 = vmatprep.subr.msk.bf16.mxu1 %vm25883_vm3, %v25446_v35  ;;  %v3508_v50 = vsel %vm3450_vm5, %v3492_v54, %v3459_v0  ;;  %vm26099_vm3 = vnez %v26098_v8  ;;  %v26147_v8 = vld [vmem:[#allocation319_spill] sm:$0xff] }
 0x424   : > { %v20114_v52 = vand.u32 4294901760, %v3508_v50  ;;  %v3432_v31 = vadd.f32 1.0, %v3419_v11  ;;  %v26148_v11 = vld [vmem:[#allocation321_spill] sm:$0xff] }
 0x426   : > { %v20117_v23 = vsub.f32 %v3508_v50, %v20114_v52  ;;  %14296 = vrcp.f32 %v3432_v31 }
 0x428   : > { %v5376_v40 = vand.u32 4294901760, %v20117_v23 }
 0x429   : > { %13006 = vmatpush1.bf16.xpose.msra.mxu0 %v26085_v26 }
 0x42a   : > { %13030 = vmatpush1.bf16.xpose.msk.msra.mxu1 %vm26070_vm9, %v25446_v35  ;;  %13008 = vmatprep.subr.bf16.mxu0 %v26086_v39  ;;  %v5377_v25 = vsub.f32 %v20117_v23, %v5376_v40  ;;  %vm26120_vm9 = vnez %v26119_v24  ;;  %v26127_v39 = vld [vmem:[#allocation374_spill] sm:$0xff] }
 0x42b   : > { %13032 = vmatprep.subr.msk.bf16.mxu1 %vm26071_vm0, %v25446_v35  ;;  %vm26123_vm0 = vnez %v26122_v7 }
 0x42c   : > { %v5378_v17 = vand.u32 4294901760, %v5377_v25  ;;  %v26145_v25 = vld [vmem:[#allocation315_spill] sm:$0xff] }
 0x430   : > { %v14297_v63 = vpop.eup %14296 }
 0x431   : > { %13010 = vmatpush1.bf16.xpose.msra.mxu0 %v26087_v14  ;;  %v26128_v14 = vld [vmem:[#allocation200_spill] sm:$0xff] }
 0x432   : > { %13034 = vmatpush1.bf16.xpose.msk.msra.mxu1 %vm26073_vm6, %v25446_v35  ;;  %13012 = vmatprep.subr.bf16.mxu0 %v26088_v51  ;;  %vm26131_vm6 = vnez %v26130_v29 }
 0x433   : > { %13036 = vmatprep.subr.msk.bf16.mxu1 %vm26074_vm8, %v25446_v35  ;;  %vm26156_vm8 = vcmask 719872  }
 0x439   : > { %13014 = vmatpush1.bf16.xpose.msra.mxu0 %v26090_v60  ;;  %v26132_v60 = vld [vmem:[#allocation375_spill] sm:$0xff] }
 0x43a   : > { %13038 = vmatpush1.bf16.xpose.msk.msra.mxu1 %vm26075_vm14, %v25446_v35  ;;  %13016 = vmatprep.subr.bf16.mxu0 %v26091_v21  ;;  %v26133_v21 = vld [vmem:[#allocation298_spill] sm:$0xff] }
 0x43b   : > { %11596 = vmatprep.subr.msk.mxu1 %vm26076_vm10, %v25623_v44 }
 0x43c   : > { %v4346_v4 = vpop.f32.mrb[10].mxu1 }
 0x43d   : > { %v4348_v36 = vpop.f32.mrb[11].mxu1 }
 0x43e   : > { %v26136_v36 = vld [vmem:[#allocation301_spill] sm:$0xff] }
 0x441   : > { %13018 = vmatpush1.bf16.xpose.msra.mxu0 %v26092_v33  ;;  %v26139_v33 = vld [vmem:[#allocation303_spill] sm:$0xff] }
 0x442   : > { %11597 = vmatpush1.xpose.msk.msra.mxu1 %vm26077_vm1, %v25623_v44  ;;  %5184 = vmatprep.subr.mxu0 %v26093_v12  ;;  %v26140_v12 = vld [vmem:[#allocation306_spill] sm:$0xff] }
 0x443   : > { %v4186_v1 = vpop.f32.mrb[10].mxu0  ;;  %13060 = vmatprep.subr.bf16.mxu1 %v26094_v22  ;;  %v26141_v22 = vld [vmem:[#allocation308_spill] sm:$0xff] }
 0x444   : > { %v4187_v28 = vadd.f32 %v4186_v1, %v4107_v46  ;;  %v4188_v5 = vpop.f32.mrb[11].mxu0  ;;  %v3458_v46 = vsel %vm3451_vm7, %v14297_v63, 0.0  ;;  %vm26126_vm7 = vnez %v26125_v20  ;;  %v26155_v63 = vld [vmem:[#allocation371_spill] sm:$0xff] }
 0x445   : > { %5305 = vmatmul.mubr.f32.vlgmr.msra.gmra.mrb[20].mxu1 %v19996_v3  ;;  %v3507_v32 = vsel %vm3450_vm5, %v3488_v18, %v3458_v46  ;;  %vm26129_vm5 = vnez %v26128_v14 }
 0x446   : > { %13062 = vmatpush1.bf16.xpose.msra.mxu1 %v26095_v15  ;;  %5543 = vmatprep.mubr.f32.mxu1 %v20114_v52  ;;  %v4347_v59 = vadd.f32 %v4346_v4, %v4187_v28  ;;  %v20173_v13 = vand.u32 4294901760, %v3507_v32  ;;  %v26135_v4 = vld [vmem:[#allocation300_spill] sm:$0xff] }
 0x447   : > { %13064 = vmatprep.subr.bf16.mxu1 %v26096_v62  ;;  %v26144_v62 = vld [vmem:[#allocation313_spill] sm:$0xff] }
 0x448   : > { %v5381_v26 = vsub.f32 %v3507_v32, %v20173_v13 }
 0x449   : > { %5187 = vmatpush1.xpose.msra.mxu0 %v26097_v53  ;;  %v26146_v53 = vld [vmem:[#allocation317_spill] sm:$0xff] }
 0x44a   : > { %13040 = vmatprep.subr.msk.bf16.mxu0 %vm26099_vm3, %v25446_v35  ;;  %v5382_v57 = vand.u32 4294901760, %v5381_v26 }
 0x44c   : > { %5233 = vmatmul.mubr.f32.vlgmr.msra.gmra.mrb[20].mxu0 %v19996_v3  ;;  %v26108_v3 = vld [vmem:[#allocation360_spill] sm:$0xff]  ;;  %v5383_v54 = vsub.f32 %v5381_v26, %v5382_v57 }
 0x44d   : > { %13042 = vmatpush1.bf16.xpose.msk.msra.mxu0 %vm26101_vm2, %v25446_v35  ;;  %5379 = vmatprep.mubr.f32.mxu0 %v5378_v17  ;;  %v26150_v17 = vld [vmem:[#allocation325_spill] sm:$0xff] }
 0x44e   : > { %13066 = vmatpush1.bf16.xpose.msra.mxu1 %v26102_v27  ;;  %13044 = vmatprep.subr.msk.bf16.mxu0 %vm26104_vm11, %v25446_v35  ;;  %v5384_v50 = vand.u32 4294901760, %v5383_v54  ;;  %v26152_v27 = vld [vmem:[#allocation329_spill] sm:$0xff] }
 0x44f   : > { %13068 = vmatprep.subr.bf16.mxu1 %v26105_v49  ;;  %v26153_v49 = vld [vmem:[#allocation331_spill] sm:$0xff] }
 0x455   : > { %13046 = vmatpush1.bf16.xpose.msk.msra.mxu0 %vm26107_vm4, %v25446_v35 }
 0x456   : > { %13070 = vmatpush1.bf16.xpose.msra.mxu1 %v26108_v3  ;;  %13048 = vmatprep.subr.msk.bf16.mxu0 %vm26110_vm12, %v25446_v35 }
 0x457   : > { %13072 = vmatprep.subr.bf16.mxu1 %v26111_v6 }
 0x45d   : > { %13050 = vmatpush1.bf16.xpose.msk.msra.mxu0 %vm26113_vm13, %v25446_v35 }
 0x45e   : > { %13074 = vmatpush1.bf16.xpose.msra.mxu1 %v26114_v58  ;;  %13052 = vmatprep.subr.msk.bf16.mxu0 %vm26116_vm15, %v25446_v35 }
 0x45f   : > { %13076 = vmatprep.subr.bf16.mxu1 %v26117_v61 }
 0x465   : > { %13054 = vmatpush1.bf16.xpose.msk.msra.mxu0 %vm26120_vm9, %v25446_v35 }
 0x466   : > { %13078 = vmatpush1.bf16.xpose.msra.mxu1 %v26121_v19  ;;  %13056 = vmatprep.subr.msk.bf16.mxu0 %vm26123_vm0, %v25446_v35 }
 0x467   : > { %5494 = vmatprep.subr.mxu1 %v26124_v41 }
 0x468   : > { %v4518_v37 = vpop.f32.mrb[12].mxu1 }
 0x469   : > { %v4520_v38 = vpop.f32.mrb[13].mxu1 }
 0x46d   : > { %13058 = vmatpush1.bf16.xpose.msk.msra.mxu0 %vm26126_vm7, %v25446_v35 }
 0x46e   : > { %5499 = vmatpush1.xpose.msra.mxu1 %v26127_v39  ;;  %11618 = vmatprep.subr.msk.mxu0 %vm26129_vm5, %v25623_v44 }
 0x46f   : > { %v4442_v51 = vpop.f32.mrb[12].mxu0  ;;  %13100 = vmatprep.subr.msk.bf16.mxu1 %vm26099_vm3, %v25446_v35 }
 0x470   : > { %v4443_v43 = vadd.f32 %v4442_v51, %v4347_v59  ;;  %v4444_v45 = vpop.f32.mrb[13].mxu0 }
 0x471   : > { %5545 = vmatmul.mubr.f32.vlgmr.msra.gmra.mrb[22].mxu1 %v20173_v13 }
 0x472   : > { %13102 = vmatpush1.bf16.xpose.msk.msra.mxu1 %vm26101_vm2, %v25446_v35  ;;  %5713 = vmatprep.mubr.f32.mxu1 %v5376_v40  ;;  %v4519_v0 = vadd.f32 %v4518_v37, %v4443_v43  ;;  %v26142_v40 = vld [vmem:[#allocation362_spill] sm:$0xff] }
 0x473   : > { %13104 = vmatprep.subr.msk.bf16.mxu1 %vm26104_vm11, %v25446_v35 }
 0x475   : > { %11619 = vmatpush1.xpose.msk.msra.mxu0 %vm26131_vm6, %v25623_v44 }
 0x476   : > { %13080 = vmatprep.subr.bf16.mxu0 %v26132_v60 }
 0x478   : > { %5385 = vmatmul.mubr.f32.vlgmr.msra.gmra.mrb[22].mxu0 %v5384_v50 }
 0x479   : > { %13082 = vmatpush1.bf16.xpose.msra.mxu0 %v26133_v21  ;;  %5638 = vmatprep.mubr.f32.mxu0 %v20117_v23  ;;  %v26138_v23 = vld [vmem:[#allocation305_spill] sm:$0xff]  ;;  %v3509_v21 = vld [vmem:[#allocation2] sm:$0xff] }
 0x47a   : > { %13106 = vmatpush1.bf16.xpose.msk.msra.mxu1 %vm26107_vm4, %v25446_v35  ;;  %13084 = vmatprep.subr.bf16.mxu0 %v26134_v34 }
 0x47b   : > { %13108 = vmatprep.subr.msk.bf16.mxu1 %vm26110_vm12, %v25446_v35 }
 0x481   : > { %13086 = vmatpush1.bf16.xpose.msra.mxu0 %v26135_v4 }
 0x482   : > { %13110 = vmatpush1.bf16.xpose.msk.msra.mxu1 %vm26113_vm13, %v25446_v35  ;;  %13088 = vmatprep.subr.bf16.mxu0 %v26136_v36 }
 0x483   : > { %13112 = vmatprep.subr.msk.bf16.mxu1 %vm26116_vm15, %v25446_v35 }
 0x489   : > { %13090 = vmatpush1.bf16.xpose.msra.mxu0 %v26137_v2 }
 0x48a   : > { %13114 = vmatpush1.bf16.xpose.msk.msra.mxu1 %vm26120_vm9, %v25446_v35  ;;  %13092 = vmatprep.subr.bf16.mxu0 %v26138_v23 }
 0x48b   : > { %13116 = vmatprep.subr.msk.bf16.mxu1 %vm26123_vm0, %v25446_v35 }
 0x491   : > { %13094 = vmatpush1.bf16.xpose.msra.mxu0 %v26139_v33 }
 0x492   : > { %13118 = vmatpush1.bf16.xpose.msk.msra.mxu1 %vm26126_vm7, %v25446_v35  ;;  %13096 = vmatprep.subr.bf16.mxu0 %v26140_v12 }
 0x493   : > { %11640 = vmatprep.subr.msk.mxu1 %vm26129_vm5, %v25623_v44 }
 0x494   : > { %v4706_v16 = vpop.f32.mrb[14].mxu1 }
 0x495   : > { %v4708_v1 = vpop.f32.mrb[15].mxu1 }
 0x499   : > { %13098 = vmatpush1.bf16.xpose.msra.mxu0 %v26141_v22 }
 0x49a   : > { %11641 = vmatpush1.xpose.msk.msra.mxu1 %vm26131_vm6, %v25623_v44  ;;  %5591 = vmatprep.subr.mxu0 %v26142_v40 }
 0x49b   : > { %v4634_v28 = vpop.f32.mrb[14].mxu0  ;;  %13140 = vmatprep.subr.msk.bf16.mxu1 %vm26099_vm3, %v25446_v35 }
 0x49c   : > { %v4635_v5 = vadd.f32 %v4634_v28, %v4519_v0  ;;  %v4636_v15 = vpop.f32.mrb[15].mxu0 }
 0x49d   : > { %5717 = vmatmul.mubr.f32.vlgmr.msra.gmra.mrb[24].mxu1 %v5382_v57 }
 0x49e   : > { %13142 = vmatpush1.bf16.xpose.msk.msra.mxu1 %vm26101_vm2, %v25446_v35  ;;  %5903 = vmatprep.mubr.f32.mxu1 %v20114_v52  ;;  %v4707_v59 = vadd.f32 %v4706_v16, %v4635_v5 }
 0x49f   : > { %13144 = vmatprep.subr.msk.bf16.mxu1 %vm26104_vm11, %v25446_v35 }
 0x4a1   : > { %5593 = vmatpush1.xpose.msra.mxu0 %v26143_v30 }
 0x4a2   : > { %13120 = vmatprep.subr.bf16.mxu0 %v26144_v62 }
 0x4a4   : > { %5641 = vmatmul.mubr.f32.vlgmr.msra.gmra.mrb[24].mxu0 %v5381_v26 }
 0x4a5   : > { %13122 = vmatpush1.bf16.xpose.msra.mxu0 %v26145_v25  ;;  %5831 = vmatprep.mubr.f32.mxu0 %v20114_v52  ;;  %v26149_v52 = vld [vmem:[#allocation323_spill] sm:$0xff] }
 0x4a6   : > { %13146 = vmatpush1.bf16.xpose.msk.msra.mxu1 %vm26107_vm4, %v25446_v35  ;;  %13124 = vmatprep.subr.bf16.mxu0 %v26146_v53 }
 0x4a7   : > { %13148 = vmatprep.subr.msk.bf16.mxu1 %vm26110_vm12, %v25446_v35 }
 0x4ad   : > { %13126 = vmatpush1.bf16.xpose.msra.mxu0 %v26147_v8 }
 0x4ae   : > { %13150 = vmatpush1.bf16.xpose.msk.msra.mxu1 %vm26113_vm13, %v25446_v35  ;;  %13128 = vmatprep.subr.bf16.mxu0 %v26148_v11 }
 0x4af   : > { %13152 = vmatprep.subr.msk.bf16.mxu1 %vm26116_vm15, %v25446_v35 }
 0x4b5   : > { %13130 = vmatpush1.bf16.xpose.msra.mxu0 %v26149_v52 }
 0x4b6   : > { %13154 = vmatpush1.bf16.xpose.msk.msra.mxu1 %vm26120_vm9, %v25446_v35  ;;  %13132 = vmatprep.subr.bf16.mxu0 %v26150_v17 }
 0x4b7   : > { %13156 = vmatprep.subr.msk.bf16.mxu1 %vm26123_vm0, %v25446_v35 }
 0x4bd   : > { %13134 = vmatpush1.bf16.xpose.msra.mxu0 %v26151_v47 }
 0x4be   : > { %13158 = vmatpush1.bf16.xpose.msk.msra.mxu1 %vm26126_vm7, %v25446_v35  ;;  %13136 = vmatprep.subr.bf16.mxu0 %v26152_v27 }
 0x4bf   : > { %11662 = vmatprep.subr.msk.mxu1 %vm26129_vm5, %v25623_v44 }
 0x4c0   : > { %v4946_v10 = vpop.f32.mrb[16].mxu1 }
 0x4c1   : > { %v4948_v31 = vpop.f32.mrb[17].mxu1 }
 0x4c5   : > { %13138 = vmatpush1.bf16.xpose.msra.mxu0 %v26153_v49 }
 0x4c6   : > { %11663 = vmatpush1.xpose.msk.msra.mxu1 %vm26131_vm6, %v25623_v44  ;;  %5784 = vmatprep.subr.mxu0 %v26154_v55 }
 0x4c7   : > { %v4786_v3 = vpop.f32.mrb[16].mxu0 }
 0x4c8   : > { %v4787_v48 = vadd.f32 %v4786_v3, %v4707_v59  ;;  %v4788_v6 = vpop.f32.mrb[17].mxu0 }
 0x4c9   : > { %5905 = vmatmul.mubr.f32.vlgmr.msra.gmra.mrb[26].mxu1 %v20173_v13 }
 0x4ca   : > { %v4947_v35 = vadd.f32 %v4946_v10, %v4787_v48 }
 0x4cd   : > { %5787 = vmatpush1.xpose.msra.mxu0 %v26155_v63 }
 0x4d0   : > { %5833 = vmatmul.mubr.f32.vlgmr.msra.gmra.mrb[26].mxu0 %v20173_v13 }
 0x4ec   : > { %v5118_v42 = vpop.f32.mrb[18].mxu1 }
 0x4ed   : > { %v5120_v58 = vpop.f32.mrb[19].mxu1 }
 0x4f3   : > { %v5042_v56 = vpop.f32.mrb[18].mxu0 }
 0x4f4   : > { %v5043_v61 = vadd.f32 %v5042_v56, %v4947_v35  ;;  %v5044_v9 = vpop.f32.mrb[19].mxu0 }
 0x4f6   : > { %v5119_v18 = vadd.f32 %v5118_v42, %v5043_v61 }
 0x518   : > { %v5306_v46 = vpop.f32.mrb[20].mxu1 }
 0x519   : > { %v5308_v44 = vpop.f32.mrb[21].mxu1 }
 0x51f   : > { %v5234_v32 = vpop.f32.mrb[20].mxu0 }
 0x520   : > { %v5235_v24 = vadd.f32 %v5234_v32, %v5119_v18  ;;  %v5236_v19 = vpop.f32.mrb[21].mxu0 }
 0x522   : > { %v5307_v7 = vadd.f32 %v5306_v46, %v5235_v24 }
 0x544   : > { %v5546_v41 = vpop.f32.mrb[22].mxu1 }
 0x545   : > { %v5548_v37 = vpop.f32.mrb[23].mxu1 }
 0x54b   : > { %v5386_v38 = vpop.f32.mrb[22].mxu0 }
 0x54c   : > { %v5387_v26 = vadd.f32 %v5386_v38, %v5307_v7  ;;  %v5388_v20 = vpop.f32.mrb[23].mxu0 }
 0x54e   : > { %v5547_v39 = vadd.f32 %v5546_v41, %v5387_v26 }
 0x570   : > { %v5718_v14 = vpop.f32.mrb[24].mxu1 }
 0x571   : > { %v5720_v13 = vpop.f32.mrb[25].mxu1 }
 0x577   : > { %v5642_v57 = vpop.f32.mrb[24].mxu0 }
 0x578   : > { %v5643_v51 = vadd.f32 %v5642_v57, %v5547_v39  ;;  %v5644_v43 = vpop.f32.mrb[25].mxu0 }
 0x57a   : > { %v5719_v45 = vadd.f32 %v5718_v14, %v5643_v51 }
 0x59c   : > { %v5906_v54 = vpop.f32.mrb[26].mxu1 }
 0x59d   : > { %v5908_v0 = vpop.f32.mrb[27].mxu1 }
 0x5a3   : > { %v5834_v29 = vpop.f32.mrb[26].mxu0 }
 0x5a4   : > { %v5835_v50 = vadd.f32 %v5834_v29, %v5719_v45  ;;  %v5836_v60 = vpop.f32.mrb[27].mxu0 }
 0x5a6   : > { %v5907_v34 = vadd.f32 %v5906_v54, %v5835_v50 }
 0x5a8   : > { %v5910_v4 = vadd.f32 %v5907_v34, %v3509_v21 }
 0x5aa   : > { %5911 = vst.msk [vmem:[#allocation2] sm:$0xff] %vm26156_vm8, %v5910_v4 }
 0x5ab PF: > { %p11664_p6 = scmp.ne.s32.totalorder %s14492_s21, 1 }
 0x5ad   : > { %5915 = sbr.rel (%p11664_p6) target bundleno = 2967 (0xb97), region = 72 }
 0x5b4   : > { %v26157_v36 = vld [vmem:[#allocation28_spill] sm:$0xff]  ;;  %v26161_v23 = vmov 0  ;;  %v23898_v33 = vmov 1.0|1.0   ;;  %v26168_v1 = vmov 0  ;;  %v23910_v22 = vmov 0.0  }
 0x5b5   : > { %vm26158_vm14 = vnez %v26157_v36  ;;  %v26159_v2 = vld [vmem:[#allocation44_spill] sm:$0xff]  ;;  %6013 = vmatprep.mubr.f32.mxu0 %v23910_v22  ;;  %v26171_v40 = vld [vmem:[#allocation27_spill] sm:$0xff]  ;;  %v26173_v28 = vld [vmem:[#allocation42_spill] sm:$0xff]  ;;  %v26175_v5 = vmov 0  ;;  %6606 = vmatprep.mubr.f32.mxu1 %v23910_v22  ;;  %v26184_v8 = vmov 0  ;;  %v26193_v31 = vmov 0 }
 0x5b6   : > { %vm26160_vm10 = vnez %v26159_v2  ;;  %v26164_v12 = vld [vmem:[#allocation32_spill] sm:$0xff]  ;;  %vm26172_vm4 = vnez %v26171_v40  ;;  %vm26174_vm12 = vnez %v26173_v28  ;;  %v26178_v15 = vld [vmem:[#allocation31_spill] sm:$0xff]  ;;  %v26180_v25 = vld [vmem:[#allocation30_spill] sm:$0xff]  ;;  %v26201_v6 = vmov 0 }
 0x5b7   : > { %vm20295_vm1 = vmpackc.low %vm26160_vm10, %vm26158_vm14  ;;  %vm26165_vm3 = vnez %v26164_v12  ;;  %v26166_v16 = vld [vmem:[#allocation48_spill] sm:$0xff]  ;;  %v20324_v59 = vsub.f32 %v26178_v15, %v26178_v15  ;;  %v26179_v30 = vld [vmem:[#allocation47_spill] sm:$0xff]  ;;  %vm26181_vm15 = vnez %v26180_v25  ;;  %v26209_v56 = vmov 0 }
 0x5b8   : > { %v26162_v23 = vsel %vm20295_vm1, 4294967295, %v26161_v23  ;;  %13160 = vmatprep.subr.msk.bf16.mxu0 %vm20295_vm1, %v23898_v33  ;;  %vm26167_vm2 = vnez %v26166_v16  ;;  %vm20318_vm13 = vmpackc.low %vm26174_vm12, %vm26172_vm4  ;;  %v20328_v62 = vsub.f32 %v26179_v30, %v26179_v30  ;;  %v26182_v53 = vld [vmem:[#allocation46_spill] sm:$0xff]  ;;  %v26187_v11 = vld [vmem:[#allocation35_spill] sm:$0xff]  ;;  %v26218_v7 = vmov 0 }
 0x5b9   : > { %26163 = vst [vmem:[#allocation376_spill] sm:$0xff] %v26162_v23  ;;  %vm20306_vm11 = vmpackc.low %vm26167_vm2, %vm26165_vm3  ;;  %v26176_v5 = vsel %vm20318_vm13, 4294967295, %v26175_v5  ;;  %13162 = vmatpush1.bf16.msk.msra.mxu0 %vm20318_vm13, %v23898_v33  ;;  %vm26183_vm9 = vnez %v26182_v53  ;;  %v20344_v52 = vsub.f32 %v26187_v11, %v26187_v11  ;;  %v26188_v17 = vld [vmem:[#allocation51_spill] sm:$0xff]  ;;  %v26189_v27 = vld [vmem:[#allocation60_spill] sm:$0xff]  ;;  %v23908_v61 = vand.u32 4294901760, %v20324_v59 }
 0x5ba   : > { %v26169_v1 = vsel %vm20306_vm11, 4294967295, %v26168_v1  ;;  %13280 = vmatprep.subr.msk.bf16.mxu1 %vm20306_vm11, %v23898_v33  ;;  %26177 = vst [vmem:[#allocation378_spill] sm:$0xff] %v26176_v5  ;;  %vm20338_vm0 = vmpackc.low %vm26183_vm9, %vm26181_vm15  ;;  %v20348_v47 = vsub.f32 %v26188_v17, %v26188_v17  ;;  %vm26190_vm7 = vnez %v26189_v27  ;;  %v26191_v10 = vld [vmem:[#allocation76_spill] sm:$0xff]  ;;  %v26196_v49 = vld [vmem:[#allocation29_spill] sm:$0xff]  ;;  %v23904_v9 = vand.u32 4294901760, %v20328_v62 }
 0x5bb   : > { %26170 = vst [vmem:[#allocation377_spill] sm:$0xff] %v26169_v1  ;;  %v26185_v8 = vsel %vm20338_vm0, 4294967295, %v26184_v8  ;;  %13282 = vmatpush1.bf16.msk.msra.mxu1 %vm20338_vm0, %v23898_v33  ;;  %vm26192_vm5 = vnez %v26191_v10  ;;  %v20363_v55 = vsub.f32 %v26196_v49, %v26196_v49  ;;  %v26197_v3 = vld [vmem:[#allocation64_spill] sm:$0xff]  ;;  %v26204_v35 = vld [vmem:[#allocation45_spill] sm:$0xff]  ;;  %v26205_v42 = vld [vmem:[#allocation58_spill] sm:$0xff]  ;;  %v23903_v41 = vand.u32 4294901760, %v20344_v52 }
 0x5bc   : > { %26186 = vst [vmem:[#allocation379_spill] sm:$0xff] %v26185_v8  ;;  %vm20357_vm6 = vmpackc.low %vm26192_vm5, %vm26190_vm7  ;;  %vm26198_vm8 = vnez %v26197_v3  ;;  %v26199_v48 = vld [vmem:[#allocation80_spill] sm:$0xff]  ;;  %v20378_v63 = vsub.f32 %v26204_v35, %v26204_v35  ;;  %vm26206_vm3 = vnez %v26205_v42  ;;  %v26207_v58 = vld [vmem:[#allocation74_spill] sm:$0xff]  ;;  %v23902_v37 = vand.u32 4294901760, %v20348_v47 }
 0x5bd   : > { %v26194_v31 = vsel %vm20357_vm6, 4294967295, %v26193_v31  ;;  %13164 = vmatprep.subr.msk.bf16.mxu0 %vm20357_vm6, %v23898_v33  ;;  %vm26200_vm14 = vnez %v26199_v48  ;;  %vm26208_vm2 = vnez %v26207_v58  ;;  %v26212_v18 = vld [vmem:[#allocation33_spill] sm:$0xff]  ;;  %v26214_v24 = vld [vmem:[#allocation62_spill] sm:$0xff]  ;;  %v23895_v38 = vand.u32 4294901760, %v20363_v55  ;;  %v26221_v20 = vld [vmem:[#allocation92_spill] sm:$0xff] }
 0x5be   : > { %26195 = vst [vmem:[#allocation380_spill] sm:$0xff] %v26194_v31  ;;  %vm20372_vm10 = vmpackc.low %vm26200_vm14, %vm26198_vm8  ;;  %v20395_v46 = vsub.f32 %v26212_v18, %v26212_v18  ;;  %v26213_v44 = vld [vmem:[#allocation49_spill] sm:$0xff]  ;;  %vm26215_vm12 = vnez %v26214_v24  ;;  %v26216_v19 = vld [vmem:[#allocation78_spill] sm:$0xff]  ;;  %v23894_v26 = vand.u32 4294901760, %v20378_v63  ;;  %vm26222_vm7 = vnez %v26221_v20 }
 0x5bf   : > { %v26202_v6 = vsel %vm20372_vm10, 4294967295, %v26201_v6  ;;  %13284 = vmatprep.subr.msk.bf16.mxu1 %vm20372_vm10, %v23898_v33  ;;  %vm20387_vm4 = vmpackc.low %vm26208_vm2, %vm26206_vm3  ;;  %v20399_v32 = vsub.f32 %v26213_v44, %v26213_v44  ;;  %vm26217_vm15 = vnez %v26216_v19  ;;  %v26223_v39 = vld [vmem:[#allocation108_spill] sm:$0xff]  ;;  %v26225_v14 = vmov 0  ;;  %v26228_v51 = vld [vmem:[#allocation63_spill] sm:$0xff] }
 0x5c0   : > { %26203 = vst [vmem:[#allocation381_spill] sm:$0xff] %v26202_v6  ;;  %v26210_v56 = vsel %vm20387_vm4, 4294967295, %v26209_v56  ;;  %13166 = vmatpush1.bf16.msk.msra.mxu0 %vm20387_vm4, %v23898_v33  ;;  %vm20408_vm9 = vmpackc.low %vm26217_vm15, %vm26215_vm12  ;;  %vm26224_vm5 = vnez %v26223_v39  ;;  %v23893_v13 = vand.u32 4294901760, %v20395_v46  ;;  %v20431_v43 = vsub.f32 %v26228_v51, %v26228_v51  ;;  %v26229_v45 = vld [vmem:[#allocation96_spill] sm:$0xff]  ;;  %v26236_v29 = vld [vmem:[#allocation79_spill] sm:$0xff] }
 0x5c1   : > { %26211 = vst [vmem:[#allocation382_spill] sm:$0xff] %v26210_v56  ;;  %v26219_v7 = vsel %vm20408_vm9, 4294967295, %v26218_v7  ;;  %13286 = vmatpush1.bf16.msk.msra.mxu1 %vm20408_vm9, %v23898_v33  ;;  %vm20423_vm8 = vmpackc.low %vm26224_vm5, %vm26222_vm7  ;;  %v23892_v57 = vand.u32 4294901760, %v20399_v32  ;;  %vm26230_vm14 = vnez %v26229_v45  ;;  %v26231_v54 = vld [vmem:[#allocation112_spill] sm:$0xff]  ;;  %v26233_v0 = vmov 0  ;;  %v26237_v60 = vld [vmem:[#allocation90_spill] sm:$0xff] }
 0x5c2   : > { %26220 = vst [vmem:[#allocation383_spill] sm:$0xff] %v26219_v7  ;;  %v26226_v14 = vsel %vm20423_vm8, 4294967295, %v26225_v14  ;;  %13168 = vmatprep.subr.msk.bf16.mxu0 %vm20423_vm8, %v23898_v33  ;;  %vm26232_vm3 = vnez %v26231_v54  ;;  %v20446_v50 = vsub.f32 %v26236_v29, %v26236_v29  ;;  %vm26238_vm12 = vnez %v26237_v60  ;;  %v26239_v21 = vld [vmem:[#allocation106_spill] sm:$0xff]  ;;  %v26251_v53 = vld [vmem:[#allocation124_spill] sm:$0xff]  ;;  %v26267_v44 = vld [vmem:[#allocation67_spill] sm:$0xff] }
 0x5c3   : > { %26227 = vst [vmem:[#allocation384_spill] sm:$0xff] %v26226_v14  ;;  %vm20440_vm2 = vmpackc.low %vm26232_vm3, %vm26230_vm14  ;;  %vm26240_vm15 = vnez %v26239_v21  ;;  %v26241_v34 = vmov 0  ;;  %v6027_v4 = vsub.f32 %v20324_v59, %v23908_v61  ;;  %v6037_v36 = vsub.f32 %v20328_v62, %v23904_v9  ;;  %v26244_v2 = vld [vmem:[#allocation94_spill] sm:$0xff]  ;;  %v26253_v11 = vld [vmem:[#allocation140_spill] sm:$0xff] }
 0x5c4   : > { %v26234_v0 = vsel %vm20440_vm2, 4294967295, %v26233_v0  ;;  %13288 = vmatprep.subr.msk.bf16.mxu1 %vm20440_vm2, %v23898_v33  ;;  %vm20455_vm7 = vmpackc.low %vm26240_vm15, %vm26238_vm12  ;;  %vm26245_vm5 = vnez %v26244_v2  ;;  %v26246_v12 = vld [vmem:[#allocation110_spill] sm:$0xff]  ;;  %v26248_v16 = vmov 0  ;;  %v6620_v40 = vsub.f32 %v20344_v52, %v23903_v41  ;;  %v26258_v48 = vld [vmem:[#allocation128_spill] sm:$0xff] }
 0x5c5   : > { %26235 = vst [vmem:[#allocation385_spill] sm:$0xff] %v26234_v0  ;;  %v26242_v34 = vsel %vm20455_vm7, 4294967295, %v26241_v34  ;;  %13170 = vmatpush1.bf16.msk.msra.mxu0 %vm20455_vm7, %v23898_v33  ;;  %vm26247_vm14 = vnez %v26246_v12  ;;  %v6630_v28 = vsub.f32 %v20348_v47, %v23902_v37  ;;  %v20482_v15 = vld [vmem:[#allocation2] sm:$0xff]  ;;  %v6032_v30 = vsub.f32 %v20363_v55, %v23895_v38  ;;  %v26260_v35 = vld [vmem:[#allocation144_spill] sm:$0xff]  ;;  %v26269_v39 = vld [vmem:[#allocation61_spill] sm:$0xff] }
 0x5c6   : > { %26243 = vst [vmem:[#allocation386_spill] sm:$0xff] %v26242_v34  ;;  %vm20472_vm3 = vmpackc.low %vm26247_vm14, %vm26245_vm5  ;;  %v6042_v25 = vsub.f32 %v20378_v63, %v23894_v26  ;;  %vm26252_vm12 = vnez %v26251_v53  ;;  %vm26254_vm15 = vnez %v26253_v11  ;;  %v26255_v17 = vmov 0  ;;  %v26268_v19 = vld [vmem:[#allocation83_spill] sm:$0xff]  ;;  %v26270_v45 = vld [vmem:[#allocation122_spill] sm:$0xff] }
 0x5c7   : > { %v26249_v16 = vsel %vm20472_vm3, 4294967295, %v26248_v16  ;;  %13290 = vmatpush1.bf16.msk.msra.mxu1 %vm20472_vm3, %v23898_v33  ;;  %vm20497_vm5 = vmpackc.low %vm26254_vm15, %vm26252_vm12  ;;  %v6625_v27 = vsub.f32 %v20395_v46, %v23893_v13  ;;  %v6635_v10 = vsub.f32 %v20399_v32, %v23892_v57  ;;  %v23891_v49 = vand.u32 4294901760, %v20431_v43  ;;  %v26272_v54 = vld [vmem:[#allocation138_spill] sm:$0xff]  ;;  %v26277_v2 = vld [vmem:[#allocation77_spill] sm:$0xff] }
 0x5c8   : > { %26250 = vst [vmem:[#allocation387_spill] sm:$0xff] %v26249_v16  ;;  %v26256_v17 = vsel %vm20497_vm5, 4294967295, %v26255_v17  ;;  %v23890_v3 = vand.u32 4294901760, %v20446_v50  ;;  %13172 = vmatprep.subr.msk.bf16.mxu0 %vm20497_vm5, %v23898_v33  ;;  %vm26259_vm14 = vnez %v26258_v48  ;;  %vm26261_vm12 = vnez %v26260_v35  ;;  %v26278_v53 = vld [vmem:[#allocation126_spill] sm:$0xff]  ;;  %v26317_v13 = vld [vmem:[#allocation81_spill] sm:$0xff]  ;;  %v26318_v26 = vld [vmem:[#allocation95_spill] sm:$0xff] }
 0x5c9   : > { %26257 = vst [vmem:[#allocation388_spill] sm:$0xff] %v26256_v17  ;;  %vm20516_vm15 = vmpackc.low %vm26261_vm12, %vm26259_vm14  ;;  %v26262_v42 = vmov 0  ;;  %v26265_v58 = vlaneseq  ;;  %v20525_v24 = vsub.f32 %v26267_v44, %v26267_v44  ;;  %v20529_v20 = vsub.f32 %v26268_v19, %v26268_v19  ;;  %v26280_v11 = vld [vmem:[#allocation142_spill] sm:$0xff]  ;;  %v26285_v44 = vld [vmem:[#allocation156_spill] sm:$0xff] }
 0x5ca   : > { %v26263_v42 = vsel %vm20516_vm15, 4294967295, %v26262_v42  ;;  %v20533_v51 = vsub.f32 %v26269_v39, %v26269_v39  ;;  %13292 = vmatprep.subr.msk.bf16.mxu1 %vm20516_vm15, %v23898_v33  ;;  %vm26271_vm14 = vnez %v26270_v45  ;;  %vm26273_vm12 = vnez %v26272_v54  ;;  %v26287_v19 = vld [vmem:[#allocation172_spill] sm:$0xff]  ;;  %v26338_v22 = vld [vmem:[#allocation115_spill] sm:$0xff] }
 0x5cb   : > { %26264 = vst [vmem:[#allocation389_spill] sm:$0xff] %v26263_v42  ;;  %v20521_v18 = vand.u32 127, %v26265_v58  ;;  %vm20542_vm5 = vmpackc.low %vm26273_vm12, %vm26271_vm14  ;;  %v26274_v29 = vmov 0  ;;  %v6028_v60 = vand.u32 4294901760, %v6027_v4  ;;  %v6038_v21 = vand.u32 4294901760, %v6037_v36  ;;  %v26364_v6 = vld [vmem:[#allocation147_spill] sm:$0xff] }
 0x5cc   : > { %v26275_v29 = vsel %vm20542_vm5, 4294967295, %v26274_v29  ;;  %v20549_v12 = vsub.f32 %v26277_v2, %v26277_v2  ;;  %13174 = vmatpush1.bf16.msk.msra.mxu0 %vm20542_vm5, %v23898_v33  ;;  %vm26279_vm15 = vnez %v26278_v53  ;;  %vm26281_vm7 = vnez %v26280_v11  ;;  %v26299_v11 = vld [vmem:[#allocation154_spill] sm:$0xff] }
 0x5cd   : > { %26266 = vst [vmem:[#allocation390_spill] sm:$0xff] %v20521_v18  ;;  %26276 = vst [vmem:[#allocation391_spill] sm:$0xff] %v26275_v29  ;;  %v26282_v48 = vmov 0  ;;  %v6621_v4 = vand.u32 4294901760, %v6620_v40  ;;  %v6631_v36 = vand.u32 4294901760, %v6630_v28  ;;  %v6033_v35 = vand.u32 4294901760, %v6032_v30 }
 0x5ce   : > { %vm20558_vm14 = vmpackc.low %vm26281_vm7, %vm26279_vm15  ;;  %v6043_v58 = vand.u32 4294901760, %v6042_v25  ;;  %vm26286_vm12 = vnez %v26285_v44  ;;  %vm26288_vm3 = vnez %v26287_v19  ;;  %v26289_v39 = vmov 0  ;;  %v26292_v30 = vld [vmem:[#allocation160_spill] sm:$0xff]  ;;  %v26301_v44 = vld [vmem:[#allocation170_spill] sm:$0xff] }
 0x5cf   : > { %v26283_v48 = vsel %vm20558_vm14, 4294967295, %v26282_v48  ;;  %13294 = vmatpush1.bf16.msk.msra.mxu1 %vm20558_vm14, %v23898_v33  ;;  %vm20569_vm5 = vmpackc.low %vm26288_vm3, %vm26286_vm12  ;;  %v6626_v45 = vand.u32 4294901760, %v6625_v27  ;;  %v6636_v54 = vand.u32 4294901760, %v6635_v10  ;;  %v20576_v40 = vsub.f32 %v20431_v43, %v23891_v49  ;;  %v26294_v25 = vld [vmem:[#allocation176_spill] sm:$0xff] }
 0x5d0   : > { %26284 = vst [vmem:[#allocation392_spill] sm:$0xff] %v26283_v48  ;;  %v26290_v39 = vsel %vm20569_vm5, 4294967295, %v26289_v39  ;;  %v20581_v28 = vsub.f32 %v20446_v50, %v23890_v3  ;;  %13176 = vmatprep.subr.msk.bf16.mxu0 %vm20569_vm5, %v23898_v33  ;;  %vm26293_vm7 = vnez %v26292_v30  ;;  %vm26295_vm3 = vnez %v26294_v25  ;;  %v26307_v3 = vld [vmem:[#allocation65_spill] sm:$0xff] }
 0x5d1   : > { %26291 = vst [vmem:[#allocation393_spill] sm:$0xff] %v26290_v39  ;;  %vm20590_vm15 = vmpackc.low %vm26295_vm3, %vm26293_vm7  ;;  %v26296_v27 = vmov 0  ;;  %v23905_v10 = vand.u32 4294901760, %v20525_v24  ;;  %v23906_v2 = vand.u32 4294901760, %v20529_v20  ;;  %v23907_v53 = vand.u32 4294901760, %v20533_v51 }
 0x5d2   : > { %v26297_v27 = vsel %vm20590_vm15, 4294967295, %v26296_v27  ;;  %13296 = vmatprep.subr.msk.bf16.mxu1 %vm20590_vm15, %v23898_v33  ;;  %vm26300_vm5 = vnez %v26299_v11  ;;  %vm26302_vm14 = vnez %v26301_v44  ;;  %v26303_v19 = vmov 0  ;;  %v26308_v11 = vld [vmem:[#allocation158_spill] sm:$0xff] }
 0x5d3   : > { %26298 = vst [vmem:[#allocation394_spill] sm:$0xff] %v26297_v27  ;;  %vm20605_vm7 = vmpackc.low %vm26302_vm14, %vm26300_vm5  ;;  %v20609_v30 = vpack.c.bf16 %v6038_v21, %v6028_v60  ;;  %v23909_v25 = vand.u32 4294901760, %v20549_v12  ;;  %v20615_v49 = vsub.f32 %v26307_v3, %v26307_v3  ;;  %vm26309_vm12 = vnez %v26308_v11  ;;  %v26310_v44 = vld [vmem:[#allocation174_spill] sm:$0xff] }
 0x5d4   : > { %v26304_v19 = vsel %vm20605_vm7, 4294967295, %v26303_v19  ;;  %13178 = vmatpush1.bf16.msk.msra.mxu0 %vm20605_vm7, %v23898_v33  ;;  %vm26311_vm5 = vnez %v26310_v44  ;;  %v26312_v57 = vmov 0  ;;  %v20628_v60 = vpack.c.bf16 %v6631_v36, %v6621_v4  ;;  %v26319_v44 = vld [vmem:[#allocation188_spill] sm:$0xff] }
 0x5d5   : > { %26305 = vst [vmem:[#allocation395_spill] sm:$0xff] %v26304_v19  ;;  %26306 = vst [vmem:[#allocation396_spill] sm:$0xff] %v20609_v30  ;;  %v20630_v21 = vpack.c.bf16 %v6043_v58, %v6033_v35  ;;  %v20634_v3 = vsub.f32 %v26317_v13, %v26317_v13  ;;  %v20638_v38 = vsub.f32 %v26318_v26, %v26318_v26  ;;  %v23913_v11 = vmov 1.0   ;;  %v26326_v35 = vld [vmem:[#allocation111_spill] sm:$0xff] }
 0x5d6   : > { %vm20624_vm14 = vmpackc.low %vm26311_vm5, %vm26309_vm12  ;;  %26315 = vst [vmem:[#allocation398_spill] sm:$0xff] %v20628_v60  ;;  %vm26320_vm12 = vnez %v26319_v44  ;;  %vm26321_vm5 = vcmp.gt.f32.partialorder %v20482_v15, 0.0  ;;  %vm26322_vm3 = vcmp.lt.s32.totalorder %v20521_v18, 80  ;;  %v20654_v4 = vpack.c.bf16 %v6636_v54, %v6626_v45  ;;  %v5934_v13 = vld [vmem:[%s23259_s5] sm:$0xff] }
 0x5d7   : > { %v26313_v57 = vsel %vm20624_vm14, 4294967295, %v26312_v57  ;;  %26316 = vst [vmem:[#allocation399_spill] sm:$0xff] %v20630_v21  ;;  %13298 = vmatpush1.bf16.msk.msra.mxu1 %vm20624_vm14, %v23898_v33  ;;  %11685 = vmatprep.subr.msk.mxu0 %vm26320_vm12, %v23913_v11  ;;  %vm20650_vm7 = vmand %vm26322_vm3, %vm26321_vm5  ;;  %v6048_v26 = vand.u32 4294901760, %v20576_v40  ;;  %v6058_v36 = vand.u32 4294901760, %v20581_v28  ;;  %v20660_v58 = vsub.f32 %v26326_v35, %v26326_v35  ;;  %v26327_v33 = vld [vmem:[#allocation192_spill] sm:$0xff] }
 0x5d8   : > { %26314 = vst [vmem:[#allocation397_spill] sm:$0xff] %v26313_v57  ;;  %26325 = vst [vmem:[#allocation400_spill] sm:$0xff] %v20654_v4  ;;  %vm26328_vm12 = vnez %v26327_v33  ;;  %vm26330_vm3 = vcmp.ge.s32.totalorder %v20521_v18, 80  ;;  %v5924_v45 = vsel %vm20650_vm7, %v20482_v15, 1.0  ;;  %v6640_v54 = vsub.f32 %v20525_v24, %v23905_v10  ;;  %v26333_v10 = vld [vmem:[#allocation186_spill] sm:$0xff]  ;;  %v26345_v57 = vld [vmem:[#allocation127_spill] sm:$0xff] }
 0x5d9   : > { %11751 = vmatprep.subr.msk.mxu1 %vm26328_vm12, %v23913_v11  ;;  %vm26329_vm14 = vmmov %vm26321_vm5  ;;  %v6650_v40 = vsub.f32 %v20529_v20, %v23906_v2  ;;  %v6052_v28 = vsub.f32 %v20533_v51, %v23907_v53  ;;  %14298 = vrcp.f32 %v5924_v45  ;;  %v6062_v41 = vsub.f32 %v20549_v12, %v23909_v25  ;;  %v26335_v45 = vld [vmem:[#allocation99_spill] sm:$0xff]  ;;  %v26340_v53 = vld [vmem:[#allocation109_spill] sm:$0xff] }
 0x5da   : > { %vm20669_vm5 = vmand %vm26330_vm3, %vm26329_vm14  ;;  %vm26334_vm14 = vnez %v26333_v10  ;;  %v20699_v61 = vsub.f32 %v26335_v45, %v26335_v45  ;;  %v20708_v9 = vsub.f32 %v26338_v22, %v26338_v22  ;;  %v20716_v45 = vsub.f32 %v26340_v53, %v26340_v53  ;;  %v26342_v25 = vld [vmem:[#allocation113_spill] sm:$0xff]  ;;  %v26343_v10 = vld [vmem:[#allocation18_spill] sm:$0xff] }
 0x5db   : > { %v5928_v35 = vsel %vm20669_vm5, %v20482_v15, 1.0  ;;  %11686 = vmatpush1.msk.msra.mxu0 %vm26334_vm14, %v23913_v11  ;;  %v26336_v15 = vld [vmem:[#allocation190_spill] sm:$0xff]  ;;  %v6641_v18 = vand.u32 4294901760, %v6640_v54  ;;  %v20725_v22 = vsub.f32 %v26342_v25, %v26342_v25  ;;  %v6063_v33 = vand.u32 4294901760, %v6062_v41 }
 0x5dc   : > { %14300 = vrcp.f32 %v5928_v35  ;;  %vm26337_vm3 = vnez %v26336_v15  ;;  %13180 = vmatprep.subr.bf16.mxu0 %v20609_v30  ;;  %v26339_v35 = vld [vmem:[#allocation93_spill] sm:$0xff]  ;;  %v26344_v44 = vand.u32 4294901760, %v20615_v49  ;;  %v20733_v54 = vsub.f32 %v26345_v57, %v26345_v57 }
 0x5dd   : > { %11752 = vmatpush1.msk.msra.mxu1 %vm26337_vm3, %v23913_v11  ;;  %v20712_v2 = vsub.f32 %v26339_v35, %v26339_v35  ;;  %v6651_v11 = vand.u32 4294901760, %v6650_v40  ;;  %v26341_v15 = vld [vmem:[#allocation97_spill] sm:$0xff]  ;;  %v6053_v35 = vand.u32 4294901760, %v6052_v28  ;;  %vm24031_vm14 = vcmp.eq.s32.totalorder %v26343_v10, 0  ;;  %v26348_v28 = vld [vmem:[#allocation143_spill] sm:$0xff] }
 0x5de   : > { %13300 = vmatprep.subr.bf16.mxu1 %v20628_v60  ;;  %v20721_v30 = vsub.f32 %v26341_v15, %v26341_v15  ;;  %v6645_v53 = vsub.f32 %v20615_v49, %v26344_v44  ;;  %v26346_v40 = vand.u32 4294901760, %v20634_v3  ;;  %v26347_v25 = vand.u32 4294901760, %v20638_v38 }
 0x5df   : > { %v20745_v19 = vsub.f32 %v26348_v28, %v26348_v28  ;;  %vm24030_vm3 = vcmask 719872   ;;  %v26349_v57 = vand.u32 4294901760, %v20660_v58  ;;  %v20753_v48 = vpack.c.bf16 %v6058_v36, %v6048_v26 }
 0x5e0   : > { %v6655_v15 = vsub.f32 %v20634_v3, %v26346_v40  ;;  %v6067_v60 = vsub.f32 %v20638_v38, %v26347_v25  ;;  %v23945_v28 = vand.u32 4294901760, %v20733_v54  ;;  %v20758_v29 = vpack.c.bf16 %v6651_v11, %v6641_v18 }
 0x5e1   : > { %v6077_v44 = vsub.f32 %v20660_v58, %v26349_v57  ;;  %26350 = vst [vmem:[#allocation401_spill] sm:$0xff] %v20753_v48  ;;  %v6646_v42 = vand.u32 4294901760, %v6645_v53  ;;  %v26352_v57 = vld [vmem:[#allocation131_spill] sm:$0xff]  ;;  %v20765_v39 = vpack.c.bf16 %v6063_v33, %v6053_v35  ;;  %v26354_v36 = vand.u32 4294901760, %v20699_v61 }
 0x5e2   : > { %26351 = vst [vmem:[#allocation402_spill] sm:$0xff] %v20758_v29  ;;  %v20763_v27 = vsub.f32 %v26352_v57, %v26352_v57  ;;  %v6656_v40 = vand.u32 4294901760, %v6655_v15  ;;  %v6068_v26 = vand.u32 4294901760, %v6067_v60  ;;  %v26355_v18 = vand.u32 4294901760, %v20708_v9 }
 0x5e3   : > { %26353 = vst [vmem:[#allocation403_spill] sm:$0xff] %v20765_v39  ;;  %v6660_v25 = vsub.f32 %v20699_v61, %v26354_v36  ;;  %v14299_v41 = vpop.eup %14298  ;;  %v6078_v16 = vand.u32 4294901760, %v6077_v44  ;;  %v26356_v53 = vand.u32 4294901760, %v20712_v2  ;;  %v26357_v57 = vand.u32 4294901760, %v20716_v45 }
 0x5e4   : > { %v6670_v11 = vsub.f32 %v20708_v9, %v26355_v18  ;;  %v5927_v60 = vsel %vm20650_vm7, %v14299_v41, 0.0  ;;  %v26358_v15 = vand.u32 4294901760, %v20721_v30  ;;  %v26359_v36 = vand.u32 4294901760, %v20725_v22  ;;  %v26360_v41 = vld [vmem:[#allocation19_spill] sm:$0xff] }
 0x5e5   : > { %v6072_v17 = vsub.f32 %v20712_v2, %v26356_v53  ;;  %v6082_v33 = vsub.f32 %v20716_v45, %v26357_v57  ;;  %v6087_v53 = vsub.f32 %v20733_v54, %v23945_v28  ;;  %v5943_v57 = vrot.slane %v5927_v60, %v26360_v41 }
 0x5e6   : > { %v14301_v35 = vpop.eup %14300  ;;  %v6665_v44 = vsub.f32 %v20721_v30, %v26358_v15  ;;  %v6675_v18 = vsub.f32 %v20725_v22, %v26359_v36  ;;  %v26361_v0 = vand.u32 4294901760, %v20745_v19  ;;  %v26362_v36 = vld [vmem:[#allocation20_spill] sm:$0xff]  ;;  %v20801_v56 = vpack.c.bf16 %v6656_v40, %v6646_v42 }
 0x5e7   : > { %v5931_v34 = vsel %vm20669_vm5, %v14301_v35, 0.0  ;;  %v6661_v28 = vand.u32 4294901760, %v6660_v25  ;;  %v20805_v37 = vsub.f32 %v26364_v6, %v26364_v6  ;;  %v20807_v35 = vpack.c.bf16 %v6078_v16, %v6068_v26  ;;  %v26369_v16 = vld [vmem:[#allocation125_spill] sm:$0xff] }
 0x5e8   : > { %v6097_v15 = vsub.f32 %v20745_v19, %v26361_v0  ;;  %v5938_v7 = vrot.slane %v5931_v34, %v26362_v36  ;;  %26363 = vst [vmem:[#allocation404_spill] sm:$0xff] %v20801_v56  ;;  %v6671_v31 = vand.u32 4294901760, %v6670_v11  ;;  %v6073_v8 = vand.u32 4294901760, %v6072_v17  ;;  %v26371_v26 = vld [vmem:[#allocation141_spill] sm:$0xff] }
 0x5e9   : > { %26365 = vst [vmem:[#allocation405_spill] sm:$0xff] %v20805_v37  ;;  %26366 = vst [vmem:[#allocation406_spill] sm:$0xff] %v20807_v35  ;;  %v6083_v60 = vand.u32 4294901760, %v6082_v33  ;;  %vm26367_vm7 = vcmp.eq.s32.totalorder %v26343_v10, 1  ;;  %v6666_v0 = vand.u32 4294901760, %v6665_v44  ;;  %v6676_v5 = vand.u32 4294901760, %v6675_v18 }
 0x5ea   : > { %v5939_v41 = vsel %vm26367_vm7, %v5938_v7, %v5934_v13  ;;  %v6088_v14 = vand.u32 4294901760, %v6087_v53  ;;  %v6098_v42 = vand.u32 4294901760, %v6097_v15  ;;  %v26368_v40 = vand.u32 4294901760, %v20763_v27  ;;  %v26373_v33 = vld [vmem:[#allocation129_spill] sm:$0xff]  ;;  %v26388_v7 = vld [vmem:[#allocation179_spill] sm:$0xff] }
 0x5eb   : > { %v5944_v34 = vsel %vm24031_vm14, %v5943_v57, %v5939_v41  ;;  %v20820_v25 = vsub.f32 %v26369_v16, %v26369_v16  ;;  %v20826_v11 = vsub.f32 %v26371_v26, %v26371_v26  ;;  %v20830_v44 = vsub.f32 %v26373_v33, %v26373_v33  ;;  %v26376_v13 = vld [vmem:[#allocation145_spill] sm:$0xff]  ;;  %v26378_v57 = vld [vmem:[#allocation159_spill] sm:$0xff] }
 0x5ec   : > { %v20816_v6 = vsub.f32 %v20763_v27, %v26368_v40  ;;  %v5947_v17 = vsel %vm24030_vm3, %v5944_v34, 0  ;;  %v20834_v53 = vpack.c.bf16 %v6671_v31, %v6661_v28  ;;  %v20838_v41 = vsub.f32 %v26376_v13, %v26376_v13  ;;  %v26382_v16 = vld [vmem:[#allocation175_spill] sm:$0xff] }
 0x5ed   : > { %26370 = vst [vmem:[#allocation407_spill] sm:$0xff] %v20820_v25  ;;  %26372 = vst [vmem:[#allocation408_spill] sm:$0xff] %v20826_v11  ;;  %v20832_v18 = vand.u32 4294901760, %v5947_v17  ;;  %v20842_v15 = vsub.f32 %v26378_v57, %v26378_v57  ;;  %v20844_v34 = vpack.c.bf16 %v6083_v60, %v6073_v8  ;;  %v20846_v40 = vpack.c.bf16 %v6676_v5, %v6666_v0  ;;  %v26384_v33 = vld [vmem:[#allocation163_spill] sm:$0xff]  ;;  %v26392_v57 = vld [vmem:[#allocation157_spill] sm:$0xff] }
 0x5ee   : > { %26375 = vst [vmem:[#allocation410_spill] sm:$0xff] %v20834_v53  ;;  %26377 = vst [vmem:[#allocation411_spill] sm:$0xff] %v20838_v41  ;;  %v20850_v26 = vsub.f32 %v26382_v16, %v26382_v16  ;;  %v20854_v31 = vsub.f32 %v26384_v33, %v26384_v33  ;;  %v20859_v13 = vpack.c.bf16 %v6098_v42, %v6088_v14  ;;  %v6681_v5 = vand.u32 4294901760, %v20816_v6  ;;  %v26396_v33 = vld [vmem:[#allocation161_spill] sm:$0xff] }
 0x5ef   : > { %26374 = vst [vmem:[#allocation409_spill] sm:$0xff] %v20832_v18  ;;  %26379 = vst [vmem:[#allocation412_spill] sm:$0xff] %v20842_v15  ;;  %v20857_v28 = vsub.f32 %v5947_v17, %v20832_v18  ;;  %v20864_v8 = vsub.f32 %v26388_v7, %v26388_v7  ;;  %v26390_v60 = vand.u32 4294901760, %v20805_v37  ;;  %v20879_v7 = vsub.f32 %v26392_v57, %v26392_v57  ;;  %v26399_v18 = vld [vmem:[#allocation177_spill] sm:$0xff] }
 0x5f0   : > { %26380 = vst [vmem:[#allocation413_spill] sm:$0xff] %v20844_v34  ;;  %26381 = vst [vmem:[#allocation414_spill] sm:$0xff] %v20846_v40  ;;  %v20889_v10 = vsub.f32 %v26396_v33, %v26396_v33  ;;  %v26398_v42 = vand.u32 4294901760, %v20820_v25  ;;  %v20902_v33 = vsub.f32 %v26399_v18, %v26399_v18  ;;  %v26406_v18 = vand.u32 4294901760, %v20850_v26 }
 0x5f1   : > { %26383 = vst [vmem:[#allocation415_spill] sm:$0xff] %v20850_v26  ;;  %26385 = vst [vmem:[#allocation416_spill] sm:$0xff] %v20854_v31  ;;  %v6690_v0 = vsub.f32 %v20805_v37, %v26390_v60  ;;  %v20873_v17 = vand.u32 4294901760, %v20857_v28  ;;  %v26394_v60 = vld [vmem:[#allocation173_spill] sm:$0xff] }
 0x5f2   : > { %26386 = vst [vmem:[#allocation417_spill] sm:$0xff] %v20857_v28  ;;  %26387 = vst [vmem:[#allocation418_spill] sm:$0xff] %v20859_v13  ;;  %v20885_v16 = vsub.f32 %v26394_v60, %v26394_v60  ;;  %v6092_v57 = vsub.f32 %v20820_v25, %v26398_v42  ;;  %v26403_v42 = vand.u32 4294901760, %v20830_v44  ;;  %v26405_v60 = vand.u32 4294901760, %v20842_v15 }
 0x5f3   : > { %26389 = vst [vmem:[#allocation419_spill] sm:$0xff] %v20864_v8  ;;  %26391 = vst [vmem:[#allocation420_spill] sm:$0xff] %v20873_v17  ;;  %v6017_v14 = vsub.f32 %v20857_v28, %v20873_v17  ;;  %v6691_v36 = vand.u32 4294901760, %v6690_v0  ;;  %v26402_v17 = vand.u32 4294901760, %v20826_v11  ;;  %v26404_v0 = vand.u32 4294901760, %v20838_v41 }
 0x5f4   : > { %26393 = vst [vmem:[#allocation421_spill] sm:$0xff] %v20879_v7  ;;  %26395 = vst [vmem:[#allocation422_spill] sm:$0xff] %v20885_v16  ;;  %v6685_v1 = vsub.f32 %v20830_v44, %v26403_v42  ;;  %v6107_v6 = vsub.f32 %v20842_v15, %v26405_v60  ;;  %v26407_v25 = vand.u32 4294901760, %v20854_v31  ;;  %v26408_v42 = vand.u32 4294901760, %v20864_v8 }
 0x5f5   : > { %26397 = vst [vmem:[#allocation423_spill] sm:$0xff] %v20889_v10  ;;  %26400 = vst [vmem:[#allocation424_spill] sm:$0xff] %v20902_v33  ;;  %v20904_v37 = vand.u32 4294901760, %v6017_v14  ;;  %v6102_v28 = vsub.f32 %v20826_v11, %v26402_v17  ;;  %v6695_v23 = vsub.f32 %v20838_v41, %v26404_v0  ;;  %v6117_v14 = vsub.f32 %v20850_v26, %v26406_v18  ;;  %v26410_v41 = vld [vmem:[#allocation191_spill] sm:$0xff] }
 0x5f6   : > { %v6700_v17 = vsub.f32 %v20854_v31, %v26407_v25  ;;  %v6710_v0 = vsub.f32 %v20864_v8, %v26408_v42  ;;  %v26409_v60 = vand.u32 4294901760, %v20879_v7  ;;  %v20935_v18 = vsub.f32 %v26410_v41, %v26410_v41  ;;  %v26414_v8 = vld [vmem:[#allocation195_spill] sm:$0xff] }
 0x5f7   : > { %26401 = vst [vmem:[#allocation425_spill] sm:$0xff] %v20904_v37  ;;  %6019 = vmatmul.mubr.f32.vlgmr.msra.gmra.mrb[0].mxu0 %v20904_v37  ;;  %6612 = vmatmul.mubr.f32.vlgmr.msra.gmra.mrb[0].mxu1 %v20904_v37  ;;  %v26412_v25 = vand.u32 4294901760, %v20885_v16  ;;  %v26413_v37 = vand.u32 4294901760, %v20889_v10  ;;  %v20947_v31 = vsub.f32 %v26414_v8, %v26414_v8  ;;  %v6093_v41 = vand.u32 4294901760, %v6092_v57 }
 0x5f8   : > { %v6112_v15 = vsub.f32 %v20879_v7, %v26409_v60  ;;  %26411 = vst [vmem:[#allocation426_spill] sm:$0xff] %v20935_v18  ;;  %13182 = vmatpush1.bf16.msra.mxu0 %v20630_v21  ;;  %13302 = vmatpush1.bf16.msra.mxu1 %v20654_v4  ;;  %v26416_v60 = vand.u32 4294901760, %v20902_v33  ;;  %v26417_v21 = vld [vmem:[#allocation189_spill] sm:$0xff]  ;;  %v6103_v8 = vand.u32 4294901760, %v6102_v28  ;;  %v6686_v7 = vand.u32 4294901760, %v6685_v1 }
 0x5f9   : > { %v6122_v11 = vsub.f32 %v20885_v16, %v26412_v25  ;;  %v6705_v42 = vsub.f32 %v20889_v10, %v26413_v37  ;;  %26415 = vst [vmem:[#allocation427_spill] sm:$0xff] %v20947_v31  ;;  %13184 = vmatprep.subr.bf16.mxu0 %v20753_v48  ;;  %13304 = vmatprep.subr.bf16.mxu1 %v20758_v29  ;;  %v26419_v16 = vld [vmem:[#allocation193_spill] sm:$0xff]  ;;  %v6696_v48 = vand.u32 4294901760, %v6695_v23  ;;  %v26422_v26 = vmov 0.0  }
 0x5fa   : > { %v6715_v4 = vsub.f32 %v20902_v33, %v26416_v60  ;;  %v20956_v25 = vsub.f32 %v26417_v21, %v26417_v21  ;;  %v20960_v37 = vsub.f32 %v26419_v16, %v26419_v16  ;;  %v20962_v10 = vpack.c.bf16 %v6691_v36, %v6681_v5  ;;  %6177 = vmatprep.mubr.f32.mxu0 %v26422_v26 }
 0x5fb   : > { %6770 = vmatprep.mubr.f32.mxu1 %v26422_v26  ;;  %v6108_v57 = vand.u32 4294901760, %v6107_v6  ;;  %v6118_v29 = vand.u32 4294901760, %v6117_v14  ;;  %v6701_v60 = vand.u32 4294901760, %v6700_v17  ;;  %v6711_v33 = vand.u32 4294901760, %v6710_v0 }
 0x5fc   : > { %26418 = vst [vmem:[#allocation428_spill] sm:$0xff] %v20956_v25  ;;  %26420 = vst [vmem:[#allocation429_spill] sm:$0xff] %v20960_v37  ;;  %13186 = vmatpush1.bf16.msra.mxu0 %v20765_v39  ;;  %13306 = vmatpush1.bf16.msra.mxu1 %v20801_v56  ;;  %v6113_v21 = vand.u32 4294901760, %v6112_v15  ;;  %v6123_v16 = vand.u32 4294901760, %v6122_v11  ;;  %v20969_v36 = vand.u32 4294901760, %v20935_v18  ;;  %v20972_v1 = vand.u32 4294901760, %v20947_v31 }
 0x5fd   : > { %26421 = vst [vmem:[#allocation430_spill] sm:$0xff] %v20962_v10  ;;  %13188 = vmatprep.subr.bf16.mxu0 %v20807_v35  ;;  %13308 = vmatprep.subr.bf16.mxu1 %v20834_v53  ;;  %v6706_v23 = vand.u32 4294901760, %v6705_v42  ;;  %v6716_v28 = vand.u32 4294901760, %v6715_v4  ;;  %v20977_v5 = vand.u32 4294901760, %v20956_v25  ;;  %v20980_v6 = vand.u32 4294901760, %v20960_v37 }
 0x5fe   : > { %26423 = vst [vmem:[#allocation431_spill] sm:$0xff] %v20969_v36  ;;  %26424 = vst [vmem:[#allocation432_spill] sm:$0xff] %v20972_v1  ;;  %v20982_v15 = vpack.c.bf16 %v6103_v8, %v6093_v41  ;;  %v20984_v11 = vpack.c.bf16 %v6696_v48, %v6686_v7  ;;  %v20986_v14 = vpack.c.bf16 %v6118_v29, %v6108_v57  ;;  %v26434_v41 = vand.u32 4294901760, %v20328_v62 }
 0x5ff   : > { %26425 = vst [vmem:[#allocation433_spill] sm:$0xff] %v20977_v5  ;;  %26426 = vst [vmem:[#allocation434_spill] sm:$0xff] %v20980_v6  ;;  %v20988_v17 = vpack.c.bf16 %v6711_v33, %v6701_v60  ;;  %v20992_v0 = vpack.c.bf16 %v6123_v16, %v6113_v21  ;;  %v6127_v4 = vsub.f32 %v20935_v18, %v20969_v36  ;;  %v26433_v33 = vand.u32 4294901760, %v20324_v59 }
 0x600   : > { %26427 = vst [vmem:[#allocation435_spill] sm:$0xff] %v20982_v15  ;;  %26428 = vst [vmem:[#allocation436_spill] sm:$0xff] %v20984_v11  ;;  %13190 = vmatpush1.bf16.msra.mxu0 %v20844_v34  ;;  %13310 = vmatpush1.bf16.msra.mxu1 %v20846_v40  ;;  %v6720_v42 = vsub.f32 %v20947_v31, %v20972_v1  ;;  %v21000_v29 = vpack.c.bf16 %v6716_v28, %v6706_v23  ;;  %v26436_v57 = vand.u32 4294901760, %v20344_v52  ;;  %v26480_v1 = vld [vmem:[#allocation408_spill] sm:$0xff] }
 0x601   : > { %26429 = vst [vmem:[#allocation437_spill] sm:$0xff] %v20986_v14  ;;  %26430 = vst [vmem:[#allocation438_spill] sm:$0xff] %v20988_v17  ;;  %13192 = vmatprep.subr.bf16.mxu0 %v20859_v13  ;;  %13312 = vmatprep.subr.bf16.mxu1 %v20962_v10  ;;  %v6132_v48 = vsub.f32 %v20956_v25, %v20977_v5  ;;  %v6725_v7 = vsub.f32 %v20960_v37, %v20980_v6  ;;  %v26437_v60 = vand.u32 4294901760, %v20348_v47 }
 0x602   : > { %26431 = vst [vmem:[#allocation439_spill] sm:$0xff] %v20992_v0  ;;  %26432 = vst [vmem:[#allocation440_spill] sm:$0xff] %v21000_v29  ;;  %v21010_v8 = vpack.c.bf16 %v26434_v41, %v26433_v33  ;;  %v26439_v16 = vand.u32 4294901760, %v20363_v55  ;;  %v26440_v23 = vand.u32 4294901760, %v20378_v63  ;;  %v26442_v10 = vand.u32 4294901760, %v20395_v46 }
 0x603   : > { %v21016_v21 = vpack.c.bf16 %v26437_v60, %v26436_v57  ;;  %v26443_v40 = vand.u32 4294901760, %v20399_v32  ;;  %v26445_v33 = vand.u32 4294901760, %v20431_v43  ;;  %v26446_v41 = vand.u32 4294901760, %v20446_v50 }
 0x604   : > { %26435 = vst [vmem:[#allocation441_spill] sm:$0xff] %v21010_v8  ;;  %v21022_v28 = vpack.c.bf16 %v26440_v23, %v26439_v16  ;;  %v26448_v57 = vand.u32 4294901760, %v20525_v24  ;;  %v26449_v60 = vand.u32 4294901760, %v20529_v20  ;;  %v26451_v16 = vand.u32 4294901760, %v20533_v51  ;;  %13194 = vmatpush1.bf16.msra.mxu0 %v20982_v15  ;;  %13314 = vmatpush1.bf16.msra.mxu1 %v20984_v11 }
 0x605   : > { %26438 = vst [vmem:[#allocation442_spill] sm:$0xff] %v21016_v21  ;;  %v21028_v53 = vpack.c.bf16 %v26443_v40, %v26442_v10  ;;  %v21034_v56 = vpack.c.bf16 %v26446_v41, %v26445_v33  ;;  %v26452_v23 = vand.u32 4294901760, %v20549_v12  ;;  %v26454_v10 = vand.u32 4294901760, %v20615_v49  ;;  %13196 = vmatprep.subr.bf16.mxu0 %v20986_v14  ;;  %13316 = vmatprep.subr.bf16.mxu1 %v20988_v17 }
 0x606   : > { %26441 = vst [vmem:[#allocation443_spill] sm:$0xff] %v21022_v28  ;;  %v21040_v13 = vpack.c.bf16 %v26449_v60, %v26448_v57  ;;  %v26455_v40 = vand.u32 4294901760, %v20634_v3  ;;  %v21056_v33 = vand.u32 4294901760, %v6127_v4  ;;  %v26458_v41 = vand.u32 4294901760, %v20638_v38 }
 0x607   : > { %26444 = vst [vmem:[#allocation444_spill] sm:$0xff] %v21028_v53  ;;  %26447 = vst [vmem:[#allocation445_spill] sm:$0xff] %v21034_v56  ;;  %v21046_v34 = vpack.c.bf16 %v26452_v23, %v26451_v16  ;;  %v26459_v57 = vand.u32 4294901760, %v20660_v58  ;;  %v26461_v16 = vand.u32 4294901760, %v20699_v61  ;;  %v26462_v23 = vand.u32 4294901760, %v20708_v9 }
 0x608   : > { %26450 = vst [vmem:[#allocation446_spill] sm:$0xff] %v21040_v13  ;;  %v21052_v35 = vpack.c.bf16 %v26455_v40, %v26454_v10  ;;  %26457 = vst [vmem:[#allocation449_spill] sm:$0xff] %v21056_v33  ;;  %v26464_v10 = vand.u32 4294901760, %v20712_v2  ;;  %v26465_v40 = vand.u32 4294901760, %v20716_v45  ;;  %v21078_v4 = vand.u32 4294901760, %v6720_v42  ;;  %v26478_v42 = vld [vmem:[#allocation407_spill] sm:$0xff]  ;;  %13198 = vmatpush1.bf16.msra.mxu0 %v20992_v0  ;;  %13318 = vmatpush1.bf16.msra.mxu1 %v21000_v29 }
 0x609   : > { %26453 = vst [vmem:[#allocation447_spill] sm:$0xff] %v21046_v34  ;;  %v21062_v60 = vpack.c.bf16 %v26459_v57, %v26458_v41  ;;  %v21068_v39 = vpack.c.bf16 %v26462_v23, %v26461_v16  ;;  %v26468_v41 = vand.u32 4294901760, %v20721_v30  ;;  %v26469_v57 = vand.u32 4294901760, %v20725_v22  ;;  %6129 = vmatprep.subr.mxu0 %v21056_v33  ;;  %v26622_v0 = vld [vmem:[#allocation101_spill] sm:$0xff] }
 0x60a   : > { %26456 = vst [vmem:[#allocation448_spill] sm:$0xff] %v21052_v35  ;;  %v21074_v15 = vpack.c.bf16 %v26465_v40, %v26464_v10  ;;  %26467 = vst [vmem:[#allocation453_spill] sm:$0xff] %v21078_v4  ;;  %v26471_v16 = vand.u32 4294901760, %v20733_v54  ;;  %v26472_v23 = vand.u32 4294901760, %v20745_v19  ;;  %v26474_v10 = vand.u32 4294901760, %v20763_v27  ;;  %v26475_v40 = vld [vmem:[#allocation405_spill] sm:$0xff]  ;;  %6722 = vmatprep.subr.mxu1 %v21078_v4 }
 0x60b   : > { %26460 = vst [vmem:[#allocation450_spill] sm:$0xff] %v21062_v60  ;;  %26463 = vst [vmem:[#allocation451_spill] sm:$0xff] %v21068_v39  ;;  %v21084_v11 = vpack.c.bf16 %v26469_v57, %v26468_v41  ;;  %v26476_v14 = vand.u32 4294901760, %v26475_v40  ;;  %v26479_v17 = vand.u32 4294901760, %v26478_v42  ;;  %v26481_v36 = vand.u32 4294901760, %v26480_v1  ;;  %v26484_v57 = vld [vmem:[#allocation411_spill] sm:$0xff] }
 0x60c   : > { %26466 = vst [vmem:[#allocation452_spill] sm:$0xff] %v21074_v15  ;;  %v21090_v6 = vpack.c.bf16 %v26472_v23, %v26471_v16  ;;  %v26483_v41 = vand.u32 4294901760, %v20830_v44  ;;  %v26487_v16 = vld [vmem:[#allocation412_spill] sm:$0xff] }
 0x60d   : > { %26470 = vst [vmem:[#allocation454_spill] sm:$0xff] %v21084_v11  ;;  %v21096_v5 = vpack.c.bf16 %v26476_v14, %v26474_v10  ;;  %v21102_v15 = vpack.c.bf16 %v26481_v36, %v26479_v17  ;;  %v26485_v11 = vand.u32 4294901760, %v26484_v57  ;;  %v26488_v23 = vand.u32 4294901760, %v26487_v16  ;;  %v26492_v14 = vld [vmem:[#allocation416_spill] sm:$0xff]  ;;  %v26497_v36 = vld [vmem:[#allocation421_spill] sm:$0xff] }
 0x60e   : > { %26473 = vst [vmem:[#allocation455_spill] sm:$0xff] %v21090_v6  ;;  %v26489_v6 = vld [vmem:[#allocation415_spill] sm:$0xff]  ;;  %v26493_v10 = vand.u32 4294901760, %v26492_v14  ;;  %v26498_v17 = vand.u32 4294901760, %v26497_v36  ;;  %v26587_v29 = vld [vmem:[#allocation444_spill] sm:$0xff] }
 0x60f   : > { %26477 = vst [vmem:[#allocation405_spill] sm:$0xff] %v21096_v5  ;;  %26482 = vst [vmem:[#allocation407_spill] sm:$0xff] %v21102_v15  ;;  %v21108_v39 = vpack.c.bf16 %v26485_v11, %v26483_v41  ;;  %v26490_v60 = vand.u32 4294901760, %v26489_v6  ;;  %v26494_v5 = vld [vmem:[#allocation419_spill] sm:$0xff]  ;;  %v26499_v15 = vld [vmem:[#allocation422_spill] sm:$0xff] }
 0x610   : > { %v26495_v34 = vand.u32 4294901760, %v26494_v5  ;;  %v26500_v56 = vand.u32 4294901760, %v26499_v15  ;;  %v26502_v11 = vld [vmem:[#allocation423_spill] sm:$0xff] }
 0x611   : > { %26486 = vst [vmem:[#allocation408_spill] sm:$0xff] %v21108_v39  ;;  %v21114_v35 = vpack.c.bf16 %v26490_v60, %v26488_v23  ;;  %v26503_v41 = vand.u32 4294901760, %v26502_v11  ;;  %v26504_v39 = vld [vmem:[#allocation424_spill] sm:$0xff]  ;;  %v21136_v60 = vand.u32 4294901760, %v6132_v48  ;;  %v21152_v23 = vpack.c.bf16 %v20378_v63, %v20363_v55 }
 0x612   : > { %v21120_v13 = vpack.c.bf16 %v26495_v34, %v26493_v10  ;;  %v21126_v53 = vpack.c.bf16 %v26500_v56, %v26498_v17  ;;  %v26505_v28 = vand.u32 4294901760, %v26504_v39  ;;  %v21138_v34 = vand.u32 4294901760, %v6725_v7  ;;  %v26550_v7 = vld [vmem:[#allocation391_spill] sm:$0xff] }
 0x613   : > { %26491 = vst [vmem:[#allocation411_spill] sm:$0xff] %v21114_v35  ;;  %26507 = vst [vmem:[#allocation419_spill] sm:$0xff] %v21136_v60  ;;  %v21144_v56 = vpack.c.bf16 %v20328_v62, %v20324_v59  ;;  %v21156_v48 = vpack.c.bf16 %v20399_v32, %v20395_v46  ;;  %6134 = vmatpush1.msra.mxu0 %v21136_v60  ;;  %v21162_v59 = vpack.c.bf16 %v20446_v50, %v20431_v43  ;;  %v26561_v10 = vmov 1.0   ;;  %v26612_v60 = vld [vmem:[#allocation107_spill] sm:$0xff]  ;;  %v26738_v17 = vld [vmem:[#allocation54_spill] sm:$0xff] }
 0x614   : > { %26496 = vst [vmem:[#allocation412_spill] sm:$0xff] %v21120_v13  ;;  %26501 = vst [vmem:[#allocation415_spill] sm:$0xff] %v21126_v53  ;;  %v21132_v21 = vpack.c.bf16 %v26505_v28, %v26503_v41  ;;  %v21148_v28 = vpack.c.bf16 %v20348_v47, %v20344_v52  ;;  %6727 = vmatpush1.msra.mxu1 %v21138_v34  ;;  %v21166_v62 = vpack.c.bf16 %v20529_v20, %v20525_v24  ;;  %v26515_v52 = vld [vmem:[#allocation409_spill] sm:$0xff] }
 0x615   : > { %26508 = vst [vmem:[#allocation421_spill] sm:$0xff] %v21138_v34  ;;  %26509 = vst [vmem:[#allocation422_spill] sm:$0xff] %v21144_v56  ;;  %13200 = vmatprep.subr.bf16.mxu0 %v21144_v56  ;;  %6179 = vmatmul.mubr.f32.vlgmr.msra.gmra.mrb[0].mxu0 %v26515_v52  ;;  %v21176_v47 = vpack.c.bf16 %v20549_v12, %v20533_v51  ;;  %v21180_v55 = vpack.c.bf16 %v20634_v3, %v20615_v49  ;;  %v26530_v12 = vmov 1.0|1.0   ;;  %v26582_v34 = vld [vmem:[#allocation41_spill] sm:$0xff]  ;;  %v26611_v56 = vld [vmem:[#allocation451_spill] sm:$0xff] }
 0x616   : > { %26506 = vst [vmem:[#allocation416_spill] sm:$0xff] %v21132_v21  ;;  %26510 = vst [vmem:[#allocation423_spill] sm:$0xff] %v21148_v28  ;;  %13320 = vmatprep.subr.bf16.mxu1 %v21148_v28  ;;  %6772 = vmatmul.mubr.f32.vlgmr.msra.gmra.mrb[0].mxu1 %v26515_v52  ;;  %v21186_v63 = vpack.c.bf16 %v20660_v58, %v20638_v38  ;;  %v21190_v46 = vpack.c.bf16 %v20708_v9, %v20699_v61  ;;  %v26581_v28 = vld [vmem:[#allocation420_spill] sm:$0xff] }
 0x617   : > { %26511 = vst [vmem:[#allocation424_spill] sm:$0xff] %v21152_v23  ;;  %26512 = vst [vmem:[#allocation456_spill] sm:$0xff] %v21156_v48  ;;  %13202 = vmatpush1.bf16.msra.mxu0 %v21152_v23  ;;  %13322 = vmatpush1.bf16.msra.mxu1 %v21156_v48  ;;  %v21198_v32 = vpack.c.bf16 %v20716_v45, %v20712_v2  ;;  %v21202_v38 = vpack.c.bf16 %v20725_v22, %v20721_v30  ;;  %v26533_v2 = vld [vmem:[#allocation417_spill] sm:$0xff]  ;;  %v26608_v23 = vld [vmem:[#allocation119_spill] sm:$0xff] }
 0x618   : > { %26513 = vst [vmem:[#allocation457_spill] sm:$0xff] %v21162_v59  ;;  %26514 = vst [vmem:[#allocation458_spill] sm:$0xff] %v21166_v62  ;;  %13204 = vmatprep.subr.bf16.mxu0 %v21162_v59  ;;  %13324 = vmatprep.subr.bf16.mxu1 %v21166_v62  ;;  %v21208_v61 = vpack.c.bf16 %v20745_v19, %v20733_v54  ;;  %v21212_v9 = vpack.c.bf16 %v26475_v40, %v20763_v27  ;;  %v26540_v54 = vld [vmem:[#allocation384_spill] sm:$0xff]  ;;  %v26579_v62 = vld [vmem:[#allocation53_spill] sm:$0xff] }
 0x619   : > { %26516 = vst [vmem:[#allocation459_spill] sm:$0xff] %v21176_v47  ;;  %26517 = vst [vmem:[#allocation460_spill] sm:$0xff] %v21180_v55  ;;  %6271 = vmatprep.mubr.f32.mxu0 %v26422_v26  ;;  %6864 = vmatprep.mubr.f32.mxu1 %v26422_v26  ;;  %v21218_v43 = vpack.c.bf16 %v26480_v1, %v26478_v42  ;;  %v21222_v50 = vpack.c.bf16 %v26484_v57, %v20830_v44  ;;  %v26541_v44 = vld [vmem:[#allocation385_spill] sm:$0xff]  ;;  %v26542_v1 = vld [vmem:[#allocation386_spill] sm:$0xff]  ;;  %v26733_v57 = vmov 0 }
 0x61a   : > { %26518 = vst [vmem:[#allocation461_spill] sm:$0xff] %v21186_v63  ;;  %26519 = vst [vmem:[#allocation462_spill] sm:$0xff] %v21190_v46  ;;  %v21228_v49 = vpack.c.bf16 %v26489_v6, %v26487_v16  ;;  %v21232_v24 = vpack.c.bf16 %v26494_v5, %v26492_v14  ;;  %v21238_v20 = vpack.c.bf16 %v26499_v15, %v26497_v36  ;;  %vm26543_vm5 = vnez %v26542_v1  ;;  %v26544_v5 = vld [vmem:[#allocation387_spill] sm:$0xff]  ;;  %v26546_v6 = vld [vmem:[#allocation388_spill] sm:$0xff] }
 0x61b   : > { %13206 = vmatpush1.bf16.msra.mxu0 %v21176_v47  ;;  %13326 = vmatpush1.bf16.msra.mxu1 %v21180_v55  ;;  %26520 = vst [vmem:[#allocation463_spill] sm:$0xff] %v21198_v32  ;;  %26521 = vst [vmem:[#allocation464_spill] sm:$0xff] %v21202_v38  ;;  %v21242_v51 = vpack.c.bf16 %v26504_v39, %v26502_v11  ;;  %vm26545_vm7 = vnez %v26544_v5  ;;  %vm26547_vm3 = vnez %v26546_v6  ;;  %v26548_v15 = vld [vmem:[#allocation389_spill] sm:$0xff]  ;;  %v26552_v40 = vld [vmem:[#allocation392_spill] sm:$0xff] }
 0x61c   : > { %13208 = vmatprep.subr.bf16.mxu0 %v21186_v63  ;;  %13328 = vmatprep.subr.bf16.mxu1 %v21190_v46  ;;  %26522 = vst [vmem:[#allocation465_spill] sm:$0xff] %v21208_v61  ;;  %26523 = vst [vmem:[#allocation466_spill] sm:$0xff] %v21212_v9  ;;  %vm26549_vm14 = vnez %v26548_v15  ;;  %v26554_v42 = vld [vmem:[#allocation393_spill] sm:$0xff]  ;;  %v26557_v16 = vld [vmem:[#allocation395_spill] sm:$0xff]  ;;  %v21352_v48 = vsub.f32 %v26579_v62, %v26579_v62 }
 0x61d   : > { %26524 = vst [vmem:[#allocation467_spill] sm:$0xff] %v21218_v43  ;;  %26525 = vst [vmem:[#allocation468_spill] sm:$0xff] %v21222_v50  ;;  %v26559_v14 = vld [vmem:[#allocation397_spill] sm:$0xff]  ;;  %v26565_v11 = vld [vmem:[#allocation39_spill] sm:$0xff] }
 0x61e   : > { %26526 = vst [vmem:[#allocation469_spill] sm:$0xff] %v21228_v49  ;;  %26527 = vst [vmem:[#allocation470_spill] sm:$0xff] %v21232_v24  ;;  %v26562_v36 = vld [vmem:[#allocation188_spill] sm:$0xff]  ;;  %v21324_v41 = vsub.f32 %v26565_v11, %v26565_v11  ;;  %v26574_v11 = vld [vmem:[#allocation442_spill] sm:$0xff] }
 0x61f   : > { %13210 = vmatpush1.bf16.msra.mxu0 %v21198_v32  ;;  %13330 = vmatpush1.bf16.msra.mxu1 %v21202_v38  ;;  %26528 = vst [vmem:[#allocation471_spill] sm:$0xff] %v21238_v20  ;;  %26529 = vst [vmem:[#allocation472_spill] sm:$0xff] %v21242_v51  ;;  %v26575_v38 = vld [vmem:[#allocation59_spill] sm:$0xff]  ;;  %v26577_v46 = vld [vmem:[#allocation37_spill] sm:$0xff]  ;;  %v21421_v32 = vsub.f32 %v26608_v23, %v26608_v23 }
 0x620   : > { %13212 = vmatprep.subr.bf16.mxu0 %v21208_v61  ;;  %13332 = vmatprep.subr.bf16.mxu1 %v21212_v9  ;;  %v21348_v55 = vsub.f32 %v26577_v46, %v26577_v46  ;;  %26580 = vst [vmem:[#allocation477_spill] sm:$0xff] %v21352_v48  ;;  %v26586_v46 = vld [vmem:[#allocation443_spill] sm:$0xff]  ;;  %v26604_v47 = vld [vmem:[#allocation103_spill] sm:$0xff]  ;;  %v26773_v5 = vld [vmem:[#allocation116_spill] sm:$0xff] }
 0x621   : > { %v21412_v59 = vsub.f32 %v26604_v47, %v26604_v47  ;;  %26609 = vst [vmem:[#allocation487_spill] sm:$0xff] %v21421_v32 }
 0x622   : > { %26578 = vst [vmem:[#allocation476_spill] sm:$0xff] %v21348_v55 }
 0x623   : > { %13214 = vmatpush1.bf16.msra.mxu0 %v21218_v43  ;;  %13334 = vmatpush1.bf16.msra.mxu1 %v21222_v50  ;;  %v26572_v50 = vld [vmem:[#allocation43_spill] sm:$0xff]  ;;  %26605 = vst [vmem:[#allocation486_spill] sm:$0xff] %v21412_v59 }
 0x624   : > { %13216 = vmatprep.subr.bf16.mxu0 %v21228_v49  ;;  %13336 = vmatprep.subr.bf16.mxu1 %v21232_v24  ;;  %v26570_v24 = vld [vmem:[#allocation190_spill] sm:$0xff]  ;;  %v21338_v9 = vsub.f32 %v26572_v50, %v26572_v50  ;;  %v26594_v49 = vld [vmem:[#allocation446_spill] sm:$0xff] }
 0x626   : > { %26573 = vst [vmem:[#allocation474_spill] sm:$0xff] %v21338_v9 }
 0x627   : > { %13218 = vmatpush1.bf16.msra.mxu0 %v21238_v20  ;;  %13338 = vmatpush1.bf16.msra.mxu1 %v21242_v51  ;;  %v26568_v51 = vld [vmem:[#allocation186_spill] sm:$0xff]  ;;  %v26801_v45 = vld [vmem:[#allocation477_spill] sm:$0xff] }
 0x628   : > { %6226 = vmatprep.subr.mxu0 %v20935_v18  ;;  %6819 = vmatprep.subr.mxu1 %v20947_v31  ;;  %v26590_v18 = vld [vmem:[#allocation87_spill] sm:$0xff]  ;;  %v26802_v3 = vand.u32 4294901760, %v26801_v45 }
 0x629   : > { %v21374_v50 = vsub.f32 %v26590_v18, %v26590_v18  ;;  %v26598_v18 = vld [vmem:[#allocation85_spill] sm:$0xff] }
 0x62a   : > { %v21393_v61 = vsub.f32 %v26598_v18, %v26598_v18  ;;  %v26602_v18 = vld [vmem:[#allocation89_spill] sm:$0xff] }
 0x62b   : > { %6228 = vmatpush1.msra.mxu0 %v20956_v25  ;;  %6821 = vmatpush1.msra.mxu1 %v20960_v37  ;;  %v26566_v37 = vld [vmem:[#allocation55_spill] sm:$0xff]  ;;  %v21408_v63 = vsub.f32 %v26602_v18, %v26602_v18  ;;  %v26610_v18 = vld [vmem:[#allocation450_spill] sm:$0xff] }
 0x62c   : > { %13220 = vmatprep.subr.msk.bf16.mxu0 %vm20295_vm1, %v26530_v12  ;;  %13340 = vmatprep.subr.msk.bf16.mxu1 %vm20306_vm11, %v26530_v12  ;;  %v21328_v31 = vsub.f32 %v26566_v37, %v26566_v37  ;;  %v21344_v37 = vsub.f32 %v26575_v38, %v26575_v38  ;;  %v26584_v38 = vld [vmem:[#allocation57_spill] sm:$0xff]  ;;  %26599 = vst [vmem:[#allocation483_spill] sm:$0xff] %v21393_v61 }
 0x62d   : > { %6274 = vmatmul.mubr.f32.vlgmr.msra.gmra.mrb[0].mxu0 %v26533_v2  ;;  %6867 = vmatmul.mubr.f32.vlgmr.msra.gmra.mrb[0].mxu1 %v26533_v2  ;;  %v21363_v4 = vsub.f32 %v26584_v38, %v26584_v38  ;;  %v26593_v38 = vld [vmem:[#allocation445_spill] sm:$0xff]  ;;  %26603 = vst [vmem:[#allocation485_spill] sm:$0xff] %v21408_v63  ;;  %v26625_v2 = vand.u32 4294901760, %v21352_v48 }
 0x62e   : > { %13222 = vmatpush1.bf16.msk.msra.mxu0 %vm20318_vm13, %v26530_v12  ;;  %13342 = vmatpush1.bf16.msk.msra.mxu1 %vm20338_vm0, %v26530_v12  ;;  %26567 = vst [vmem:[#allocation473_spill] sm:$0xff] %v21328_v31  ;;  %26576 = vst [vmem:[#allocation475_spill] sm:$0xff] %v21344_v37 }
 0x62f   : > { %13224 = vmatprep.subr.msk.bf16.mxu0 %vm20357_vm6, %v26530_v12  ;;  %13344 = vmatprep.subr.msk.bf16.mxu1 %vm20372_vm10, %v26530_v12  ;;  %26585 = vst [vmem:[#allocation479_spill] sm:$0xff] %v21363_v4  ;;  %v26634_v48 = vand.u32 4294901760, %v21363_v4  ;;  %v26663_v4 = vld [vmem:[#allocation137_spill] sm:$0xff] }
 0x630   : > { %6344 = vmatprep.mubr.f32.mxu0 %v26422_v26  ;;  %6937 = vmatprep.mubr.f32.mxu1 %v26422_v26 }
 0x632   : > { %13226 = vmatpush1.bf16.msk.msra.mxu0 %vm20387_vm4, %v26530_v12  ;;  %13346 = vmatpush1.bf16.msk.msra.mxu1 %vm20408_vm9, %v26530_v12 }
 0x633   : > { %13228 = vmatprep.subr.msk.bf16.mxu0 %vm20423_vm8, %v26530_v12  ;;  %13348 = vmatprep.subr.msk.bf16.mxu1 %vm20440_vm2, %v26530_v12  ;;  %vm26551_vm8 = vnez %v26550_v7  ;;  %vm26553_vm2 = vnez %v26552_v40  ;;  %v26736_v40 = vld [vmem:[#allocation38_spill] sm:$0xff] }
 0x635   : > { %v26779_v22 = vld [vmem:[#allocation473_spill] sm:$0xff] }
 0x636   : > { %13230 = vmatpush1.bf16.msk.msra.mxu0 %vm26543_vm5, %v26530_v12  ;;  %13350 = vmatpush1.bf16.msk.msra.mxu1 %vm26545_vm7, %v26530_v12  ;;  %vm26555_vm5 = vnez %v26554_v42  ;;  %v26780_v58 = vand.u32 4294901760, %v26779_v22 }
 0x637   : > { %13232 = vmatprep.subr.msk.bf16.mxu0 %vm26547_vm3, %v26530_v12  ;;  %13352 = vmatprep.subr.msk.bf16.mxu1 %vm26549_vm14, %v26530_v12  ;;  %vm26558_vm3 = vnez %v26557_v16  ;;  %vm26560_vm14 = vnez %v26559_v14 }
 0x638   : > { %v7223_v30 = vsub.f32 %v26779_v22, %v26780_v58 }
 0x63a   : > { %13234 = vmatpush1.bf16.msk.msra.mxu0 %vm26551_vm8, %v26530_v12  ;;  %13354 = vmatpush1.bf16.msk.msra.mxu1 %vm26553_vm2, %v26530_v12  ;;  %vm26563_vm8 = vnez %v26562_v36 }
 0x63b   : > { %13236 = vmatprep.subr.msk.bf16.mxu0 %vm26555_vm5, %v26530_v12  ;;  %13356 = vmatprep.subr.msk.bf16.mxu1 %vm20590_vm15, %v26530_v12 }
 0x63e   : > { %13238 = vmatpush1.bf16.msk.msra.mxu0 %vm26558_vm3, %v26530_v12  ;;  %13358 = vmatpush1.bf16.msk.msra.mxu1 %vm26560_vm14, %v26530_v12  ;;  %vm26569_vm3 = vnez %v26568_v51  ;;  %vm26571_vm14 = vnez %v26570_v24  ;;  %v26766_v24 = vld [vmem:[#allocation86_spill] sm:$0xff]  ;;  %v26783_v51 = vld [vmem:[#allocation120_spill] sm:$0xff] }
 0x63f   : > { %11707 = vmatprep.subr.msk.mxu0 %vm26563_vm8, %v26561_v10  ;;  %11773 = vmatprep.subr.msk.mxu1 %vm26328_vm12, %v26561_v10 }
 0x642   : > { %11708 = vmatpush1.msk.msra.mxu0 %vm26569_vm3, %v26561_v10  ;;  %11774 = vmatpush1.msk.msra.mxu1 %vm26571_vm14, %v26561_v10 }
 0x643   : > { %13240 = vmatprep.subr.bf16.mxu0 %v21010_v8  ;;  %13360 = vmatprep.subr.bf16.mxu1 %v26574_v11  ;;  %v21359_v11 = vsub.f32 %v26582_v34, %v26582_v34  ;;  %v26588_v8 = vld [vmem:[#allocation71_spill] sm:$0xff] }
 0x644   : > { %6348 = vmatmul.mubr.f32.vlgmr.msra.gmra.mrb[0].mxu0 %v26581_v28  ;;  %6941 = vmatmul.mubr.f32.vlgmr.msra.gmra.mrb[0].mxu1 %v26581_v28  ;;  %v21370_v25 = vsub.f32 %v26588_v8, %v26588_v8  ;;  %v26591_v34 = vld [vmem:[#allocation75_spill] sm:$0xff]  ;;  %v26596_v8 = vld [vmem:[#allocation69_spill] sm:$0xff]  ;;  %v26624_v28 = vand.u32 4294901760, %v21348_v55 }
 0x645   : > { %26583 = vst [vmem:[#allocation478_spill] sm:$0xff] %v21359_v11  ;;  %13242 = vmatpush1.bf16.msra.mxu0 %v26586_v46  ;;  %13362 = vmatpush1.bf16.msra.mxu1 %v26587_v29  ;;  %v21378_v20 = vsub.f32 %v26591_v34, %v26591_v34  ;;  %v26595_v46 = vld [vmem:[#allocation91_spill] sm:$0xff]  ;;  %v21389_v43 = vsub.f32 %v26596_v8, %v26596_v8  ;;  %v26606_v34 = vld [vmem:[#allocation447_spill] sm:$0xff]  ;;  %v26631_v8 = vld [vmem:[#allocation105_spill] sm:$0xff] }
 0x646   : > { %26589 = vst [vmem:[#allocation480_spill] sm:$0xff] %v21370_v25  ;;  %13244 = vmatprep.subr.bf16.mxu0 %v26593_v38  ;;  %13364 = vmatprep.subr.bf16.mxu1 %v26594_v49  ;;  %v21385_v62 = vsub.f32 %v26595_v46, %v26595_v46  ;;  %v26600_v46 = vld [vmem:[#allocation73_spill] sm:$0xff]  ;;  %v26607_v29 = vld [vmem:[#allocation448_spill] sm:$0xff]  ;;  %v21430_v49 = vsub.f32 %v26612_v60, %v26612_v60 }
 0x647   : > { %26592 = vst [vmem:[#allocation481_spill] sm:$0xff] %v21378_v20  ;;  %26597 = vst [vmem:[#allocation482_spill] sm:$0xff] %v21389_v43  ;;  %6462 = vmatprep.mubr.f32.mxu0 %v26422_v26  ;;  %7055 = vmatprep.mubr.f32.mxu1 %v26422_v26  ;;  %v21402_v38 = vsub.f32 %v26600_v46, %v26600_v46  ;;  %v26614_v46 = vld [vmem:[#allocation123_spill] sm:$0xff] }
 0x648   : > { %26613 = vst [vmem:[#allocation488_spill] sm:$0xff] %v21430_v49  ;;  %v21435_v23 = vsub.f32 %v26614_v46, %v26614_v46  ;;  %v21453_v46 = vsub.f32 %v26622_v0, %v26622_v0  ;;  %v21470_v0 = vsub.f32 %v26631_v8, %v26631_v8  ;;  %v26642_v55 = vld [vmem:[#allocation151_spill] sm:$0xff] }
 0x649   : > { %26601 = vst [vmem:[#allocation484_spill] sm:$0xff] %v21402_v38  ;;  %13246 = vmatpush1.bf16.msra.mxu0 %v26606_v34  ;;  %13366 = vmatpush1.bf16.msra.mxu1 %v26607_v29  ;;  %v26619_v34 = vand.u32 4294901760, %v21338_v9  ;;  %v26620_v29 = vand.u32 4294901760, %v21344_v37 }
 0x64a   : > { %13248 = vmatprep.subr.bf16.mxu0 %v26610_v18  ;;  %13368 = vmatprep.subr.bf16.mxu1 %v26611_v56  ;;  %26615 = vst [vmem:[#allocation489_spill] sm:$0xff] %v21435_v23  ;;  %v26616_v18 = vand.u32 4294901760, %v21324_v41  ;;  %v26617_v56 = vand.u32 4294901760, %v21328_v31  ;;  %26623 = vst [vmem:[#allocation492_spill] sm:$0xff] %v21453_v46 }
 0x64b   : > { %v21447_v47 = vpack.c.bf16 %v26620_v29, %v26619_v34  ;;  %v26629_v34 = vld [vmem:[#allocation117_spill] sm:$0xff]  ;;  %26632 = vst [vmem:[#allocation495_spill] sm:$0xff] %v21470_v0 }
 0x64c   : > { %v21441_v33 = vpack.c.bf16 %v26617_v56, %v26616_v18  ;;  %v21459_v56 = vpack.c.bf16 %v26625_v2, %v26624_v28  ;;  %v26627_v18 = vld [vmem:[#allocation452_spill] sm:$0xff]  ;;  %v21466_v60 = vsub.f32 %v26629_v34, %v26629_v34  ;;  %v26636_v2 = vld [vmem:[#allocation455_spill] sm:$0xff]  ;;  %v26803_v19 = vld [vmem:[#allocation478_spill] sm:$0xff] }
 0x64d   : > { %26621 = vst [vmem:[#allocation491_spill] sm:$0xff] %v21447_v47  ;;  %13250 = vmatpush1.bf16.msra.mxu0 %v26627_v18  ;;  %v26633_v47 = vand.u32 4294901760, %v21359_v11  ;;  %v26637_v18 = vld [vmem:[#allocation405_spill] sm:$0xff]  ;;  %v21491_v11 = vsub.f32 %v26642_v55, %v26642_v55  ;;  %v26650_v55 = vld [vmem:[#allocation133_spill] sm:$0xff]  ;;  %v26804_v27 = vand.u32 4294901760, %v26803_v19 }
 0x64e   : > { %26618 = vst [vmem:[#allocation490_spill] sm:$0xff] %v21441_v33  ;;  %26626 = vst [vmem:[#allocation493_spill] sm:$0xff] %v21459_v56  ;;  %v26628_v33 = vld [vmem:[#allocation454_spill] sm:$0xff]  ;;  %13252 = vmatprep.subr.bf16.mxu0 %v26636_v2  ;;  %v26640_v56 = vld [vmem:[#allocation135_spill] sm:$0xff]  ;;  %v21511_v37 = vsub.f32 %v26650_v55, %v26650_v55 }
 0x64f   : > { %13370 = vmatpush1.bf16.msra.mxu1 %v26628_v33  ;;  %26630 = vst [vmem:[#allocation494_spill] sm:$0xff] %v21466_v60  ;;  %v21476_v28 = vpack.c.bf16 %v26634_v48, %v26633_v47  ;;  %v26638_v33 = vld [vmem:[#allocation121_spill] sm:$0xff]  ;;  %v21487_v8 = vsub.f32 %v26640_v56, %v26640_v56  ;;  %26643 = vst [vmem:[#allocation499_spill] sm:$0xff] %v21491_v11  ;;  %v26644_v47 = vld [vmem:[#allocation139_spill] sm:$0xff]  ;;  %v26651_v48 = vand.u32 4294901760, %v21378_v20 }
 0x650   : > { %13372 = vmatprep.subr.bf16.mxu1 %v26637_v18  ;;  %v21483_v34 = vsub.f32 %v26638_v33, %v26638_v33  ;;  %v21496_v2 = vsub.f32 %v26644_v47, %v26644_v47  ;;  %v26646_v18 = vld [vmem:[#allocation155_spill] sm:$0xff]  ;;  %v26647_v33 = vand.u32 4294901760, %v21370_v25  ;;  %v26652_v47 = vand.u32 4294901760, %v21385_v62 }
 0x651   : > { %26635 = vst [vmem:[#allocation496_spill] sm:$0xff] %v21476_v28  ;;  %26641 = vst [vmem:[#allocation498_spill] sm:$0xff] %v21487_v8  ;;  %v21500_v29 = vsub.f32 %v26646_v18, %v26646_v18  ;;  %v26648_v28 = vand.u32 4294901760, %v21374_v50  ;;  %v26654_v18 = vand.u32 4294901760, %v21389_v43  ;;  %v26655_v25 = vand.u32 4294901760, %v21393_v61  ;;  %v26676_v55 = vld [vmem:[#allocation171_spill] sm:$0xff] }
 0x652   : > { %26639 = vst [vmem:[#allocation497_spill] sm:$0xff] %v21483_v34  ;;  %26645 = vst [vmem:[#allocation500_spill] sm:$0xff] %v21496_v2  ;;  %v21517_v9 = vpack.c.bf16 %v26652_v47, %v26651_v48  ;;  %v26660_v48 = vand.u32 4294901760, %v21402_v38  ;;  %v26661_v47 = vand.u32 4294901760, %v21408_v63 }
 0x653   : > { %v21506_v56 = vpack.c.bf16 %v26648_v28, %v26647_v33  ;;  %v21523_v31 = vpack.c.bf16 %v26655_v25, %v26654_v18  ;;  %v26657_v28 = vld [vmem:[#allocation407_spill] sm:$0xff]  ;;  %v26658_v33 = vld [vmem:[#allocation408_spill] sm:$0xff]  ;;  %v26666_v25 = vand.u32 4294901760, %v21421_v32 }
 0x654   : > { %26653 = vst [vmem:[#allocation502_spill] sm:$0xff] %v21517_v9  ;;  %13254 = vmatpush1.bf16.msra.mxu0 %v26657_v28  ;;  %13374 = vmatpush1.bf16.msra.mxu1 %v26658_v33  ;;  %v21537_v9 = vpack.c.bf16 %v26661_v47, %v26660_v48  ;;  %v26664_v48 = vld [vmem:[#allocation153_spill] sm:$0xff]  ;;  %v26668_v18 = vld [vmem:[#allocation167_spill] sm:$0xff]  ;;  %v26669_v33 = vand.u32 4294901760, %v21430_v49  ;;  %v26670_v28 = vand.u32 4294901760, %v21435_v23 }
 0x655   : > { %26649 = vst [vmem:[#allocation501_spill] sm:$0xff] %v21506_v56  ;;  %26656 = vst [vmem:[#allocation503_spill] sm:$0xff] %v21523_v31  ;;  %v26659_v56 = vld [vmem:[#allocation149_spill] sm:$0xff]  ;;  %13256 = vmatprep.subr.bf16.mxu0 %v21114_v35  ;;  %13376 = vmatprep.subr.bf16.mxu1 %v21120_v13  ;;  %v21552_v47 = vsub.f32 %v26664_v48, %v26664_v48  ;;  %v26665_v13 = vand.u32 4294901760, %v21412_v59  ;;  %v26672_v48 = vand.u32 4294901760, %v21453_v46  ;;  %v26673_v31 = vand.u32 4294901760, %v21466_v60 }
 0x656   : > { %v21531_v20 = vsub.f32 %v26659_v56, %v26659_v56  ;;  %26662 = vst [vmem:[#allocation504_spill] sm:$0xff] %v21537_v9  ;;  %v21546_v56 = vsub.f32 %v26663_v4, %v26663_v4  ;;  %v21563_v4 = vsub.f32 %v26668_v18, %v26668_v18  ;;  %v21569_v9 = vpack.c.bf16 %v26670_v28, %v26669_v33  ;;  %v26697_v23 = vld [vmem:[#allocation434_spill] sm:$0xff] }
 0x657   : > { %v21558_v35 = vpack.c.bf16 %v26666_v25, %v26665_v13  ;;  %v21575_v59 = vpack.c.bf16 %v26673_v31, %v26672_v48  ;;  %v26675_v25 = vld [vmem:[#allocation183_spill] sm:$0xff]  ;;  %v21586_v28 = vsub.f32 %v26676_v55, %v26676_v55  ;;  %v26677_v33 = vand.u32 4294901760, %v21470_v0  ;;  %v26680_v48 = vld [vmem:[#allocation431_spill] sm:$0xff] }
 0x658   : > { %26671 = vst [vmem:[#allocation506_spill] sm:$0xff] %v21569_v9  ;;  %13258 = vmatpush1.bf16.msra.mxu0 %v21126_v53  ;;  %13378 = vmatpush1.bf16.msra.mxu1 %v21132_v21  ;;  %v21582_v18 = vsub.f32 %v26675_v25, %v26675_v25  ;;  %v26678_v9 = vand.u32 4294901760, %v21483_v34  ;;  %v26681_v53 = vld [vmem:[#allocation432_spill] sm:$0xff]  ;;  %v26690_v34 = vand.u32 4294901760, %v21496_v2 }
 0x659   : > { %26667 = vst [vmem:[#allocation505_spill] sm:$0xff] %v21558_v35  ;;  %26674 = vst [vmem:[#allocation507_spill] sm:$0xff] %v21575_v59  ;;  %6416 = vmatprep.subr.mxu0 %v26680_v48  ;;  %7009 = vmatprep.subr.mxu1 %v26681_v53  ;;  %v26682_v21 = vld [vmem:[#allocation187_spill] sm:$0xff]  ;;  %v26683_v59 = vld [vmem:[#allocation165_spill] sm:$0xff] }
 0x65a   : > { %v21592_v31 = vpack.c.bf16 %v26678_v9, %v26677_v33  ;;  %v21599_v25 = vsub.f32 %v26682_v21, %v26682_v21  ;;  %v21603_v55 = vsub.f32 %v26683_v59, %v26683_v59  ;;  %v26684_v35 = vld [vmem:[#allocation181_spill] sm:$0xff]  ;;  %v26687_v21 = vand.u32 4294901760, %v21487_v8 }
 0x65b   : > { %v21607_v0 = vsub.f32 %v26684_v35, %v26684_v35  ;;  %v26685_v33 = vld [vmem:[#allocation169_spill] sm:$0xff]  ;;  %v26691_v35 = vand.u32 4294901760, %v21500_v29  ;;  %v26693_v9 = vand.u32 4294901760, %v21511_v37 }
 0x65c   : > { %26679 = vst [vmem:[#allocation508_spill] sm:$0xff] %v21592_v31  ;;  %v21612_v48 = vsub.f32 %v26685_v33, %v26685_v33  ;;  %v26686_v53 = vld [vmem:[#allocation185_spill] sm:$0xff]  ;;  %v26688_v31 = vand.u32 4294901760, %v21491_v11  ;;  %v26694_v33 = vand.u32 4294901760, %v21531_v20  ;;  %7012 = vmatpush1.msra.mxu1 %v26697_v23  ;;  %v24119_v11 = vand.u32 4294901760, %v21563_v4 }
 0x65d   : > { %v21616_v13 = vsub.f32 %v26686_v53, %v26686_v53  ;;  %v21628_v60 = vpack.c.bf16 %v26691_v35, %v26690_v34  ;;  %v26696_v53 = vld [vmem:[#allocation433_spill] sm:$0xff]  ;;  %13380 = vmatprep.subr.msk.bf16.mxu1 %vm20306_vm11, %v26530_v12  ;;  %v24120_v35 = vand.u32 4294901760, %v21599_v25  ;;  %7057 = vmatmul.mubr.f32.vlgmr.msra.gmra.mrb[0].mxu1 %v26515_v52  ;;  %v26701_v23 = vand.u32 4294901760, %v21582_v18 }
 0x65e   : > { %v21622_v59 = vpack.c.bf16 %v26688_v31, %v26687_v21  ;;  %v21634_v46 = vpack.c.bf16 %v26694_v33, %v26693_v9  ;;  %6419 = vmatpush1.msra.mxu0 %v26696_v53  ;;  %v26698_v21 = vand.u32 4294901760, %v21546_v56  ;;  %v24138_v9 = vand.u32 4294901760, %v21586_v28  ;;  %13382 = vmatpush1.bf16.msk.msra.mxu1 %vm20338_vm0, %v26530_v12  ;;  %v26781_v53 = vld [vmem:[#allocation104_spill] sm:$0xff] }
 0x65f   : > { %26692 = vst [vmem:[#allocation510_spill] sm:$0xff] %v21628_v60  ;;  %13260 = vmatprep.subr.msk.bf16.mxu0 %vm20295_vm1, %v26530_v12  ;;  %v24135_v33 = vand.u32 4294901760, %v21603_v55  ;;  %v24134_v31 = vand.u32 4294901760, %v21607_v0  ;;  %6464 = vmatmul.mubr.f32.vlgmr.msra.gmra.mrb[0].mxu0 %v26515_v52  ;;  %v21664_v39 = vpack.c.bf16 %v26701_v23, %v24119_v11  ;;  %v26705_v11 = vand.u32 4294901760, %v21612_v48 }
 0x660   : > { %26689 = vst [vmem:[#allocation509_spill] sm:$0xff] %v21622_v59  ;;  %26695 = vst [vmem:[#allocation511_spill] sm:$0xff] %v21634_v46  ;;  %v26699_v59 = vand.u32 4294901760, %v21552_v47  ;;  %13262 = vmatpush1.bf16.msk.msra.mxu0 %vm20318_vm13, %v26530_v12  ;;  %13384 = vmatprep.subr.msk.bf16.mxu1 %vm20372_vm10, %v26530_v12  ;;  %vm26707_vm10 = vnez %v26540_v54  ;;  %vm26708_vm0 = vnez %v26541_v44  ;;  %vm26709_vm11 = vnez %v26542_v1  ;;  %v26796_v1 = vld [vmem:[#allocation114_spill] sm:$0xff] }
 0x661   : > { %26702 = vst [vmem:[#allocation513_spill] sm:$0xff] %v21664_v39  ;;  %v21682_v23 = vpack.c.bf16 %v24134_v31, %v24135_v33  ;;  %13264 = vmatprep.subr.msk.bf16.mxu0 %vm20357_vm6, %v26530_v12  ;;  %6534 = vmatprep.mubr.f32.mxu0 %v26422_v26  ;;  %v26719_v31 = vmov 0  ;;  %v26722_v33 = vld [vmem:[#allocation40_spill] sm:$0xff]  ;;  %v26798_v54 = vmov 0  ;;  %v26823_v46 = vand.u32 4294901760, %v21374_v50 }
 0x662   : > { %v21644_v34 = vpack.c.bf16 %v26699_v59, %v26698_v21  ;;  %v24132_v21 = vand.u32 4294901760, %v21616_v13  ;;  %v21676_v59 = vpack.c.bf16 %v24120_v35, %v24138_v9  ;;  %7127 = vmatprep.mubr.f32.mxu1 %v26422_v26  ;;  %13386 = vmatpush1.bf16.msk.msra.mxu1 %vm20408_vm9, %v26530_v12  ;;  %vm26711_vm9 = vnez %v26548_v15  ;;  %v26724_v9 = vld [vmem:[#allocation56_spill] sm:$0xff] }
 0x663   : > { %26704 = vst [vmem:[#allocation515_spill] sm:$0xff] %v21682_v23  ;;  %13388 = vmatprep.subr.msk.bf16.mxu1 %vm26708_vm0, %v26530_v12  ;;  %v26754_v15 = vmov 0  ;;  %v7243_v60 = vsub.f32 %v21374_v50, %v26823_v46 }
 0x664   : > { %26700 = vst [vmem:[#allocation512_spill] sm:$0xff] %v21644_v34  ;;  %26703 = vst [vmem:[#allocation514_spill] sm:$0xff] %v21676_v59  ;;  %v21694_v35 = vpack.c.bf16 %v24132_v21, %v26705_v11  ;;  %13266 = vmatpush1.bf16.msk.msra.mxu0 %vm20387_vm4, %v26530_v12  ;;  %vm26710_vm4 = vnez %v26546_v6  ;;  %v26715_v11 = vld [vmem:[#allocation36_spill] sm:$0xff]  ;;  %v26794_v6 = vld [vmem:[#allocation98_spill] sm:$0xff] }
 0x665   : > { %13268 = vmatprep.subr.msk.bf16.mxu0 %vm26707_vm10, %v26530_v12  ;;  %vm26712_vm10 = vnez %v26550_v7  ;;  %vm26716_vm0 = vnez %v26715_v11  ;;  %v26717_v21 = vld [vmem:[#allocation52_spill] sm:$0xff]  ;;  %v26726_v11 = vmov 0  ;;  %v26792_v7 = vld [vmem:[#allocation476_spill] sm:$0xff] }
 0x666   : > { %26706 = vst [vmem:[#allocation516_spill] sm:$0xff] %v21694_v35  ;;  %13390 = vmatpush1.bf16.msk.msra.mxu1 %vm26545_vm7, %v26530_v12  ;;  %vm26713_vm7 = vnez %v26557_v16  ;;  %v26790_v16 = vld [vmem:[#allocation475_spill] sm:$0xff]  ;;  %v26821_v59 = vld [vmem:[#allocation480_spill] sm:$0xff] }
 0x667   : > { %13392 = vmatprep.subr.msk.bf16.mxu1 %vm26711_vm9, %v26530_v12  ;;  %vm26714_vm9 = vnez %v26559_v14  ;;  %v26731_v14 = vld [vmem:[#allocation50_spill] sm:$0xff]  ;;  %v26791_v42 = vand.u32 4294901760, %v26790_v16  ;;  %v26822_v39 = vand.u32 4294901760, %v26821_v59 }
 0x668   : > { %13270 = vmatpush1.bf16.msk.msra.mxu0 %vm26709_vm11, %v26530_v12  ;;  %v26805_v35 = vld [vmem:[#allocation479_spill] sm:$0xff] }
 0x669   : > { %13272 = vmatprep.subr.msk.bf16.mxu0 %vm26710_vm4, %v26530_v12  ;;  %v7816_v58 = vsub.f32 %v26790_v16, %v26791_v42  ;;  %v7811_v42 = vsub.f32 %v26803_v19, %v26804_v27  ;;  %v26806_v23 = vand.u32 4294901760, %v26805_v35  ;;  %v26814_v27 = vld [vmem:[#allocation132_spill] sm:$0xff]  ;;  %v7233_v34 = vsub.f32 %v26821_v59, %v26822_v39 }
 0x66a   : > { %13394 = vmatpush1.bf16.msk.msra.mxu1 %vm26553_vm2, %v26530_v12  ;;  %vm26718_vm2 = vnez %v26717_v21  ;;  %v26729_v21 = vld [vmem:[#allocation34_spill] sm:$0xff]  ;;  %vm26815_vm13 = vnez %v26814_v27  ;;  %v26828_v27 = vmov 0  ;;  %v26835_v39 = vmov 0 }
 0x66b   : > { %13396 = vmatprep.subr.msk.bf16.mxu1 %vm20590_vm15, %v26530_v12  ;;  %vm26723_vm15 = vnez %v26722_v33  ;;  %v26740_v33 = vmov 0 }
 0x66c   : > { %13274 = vmatpush1.bf16.msk.msra.mxu0 %vm26712_vm10, %v26530_v12  ;;  %vm21744_vm10 = vmpackc.low %vm26718_vm2, %vm26716_vm0  ;;  %vm26730_vm0 = vnez %v26729_v21  ;;  %vm26732_vm2 = vnez %v26731_v14  ;;  %v26743_v14 = vld [vmem:[#allocation68_spill] sm:$0xff] }
 0x66d   : > { %13276 = vmatprep.subr.msk.bf16.mxu0 %vm26555_vm5, %v26530_v12  ;;  %v26720_v31 = vsel %vm21744_vm10, 4294967295, %v26719_v31  ;;  %vm21766_vm5 = vmpackc.low %vm26732_vm2, %vm26730_vm0  ;;  %v26752_v21 = vld [vmem:[#allocation88_spill] sm:$0xff] }
 0x66e   : > { %13398 = vmatpush1.bf16.msk.msra.mxu1 %vm26714_vm9, %v26530_v12  ;;  %26721 = vst [vmem:[#allocation517_spill] sm:$0xff] %v26720_v31  ;;  %vm26725_vm9 = vnez %v26724_v9  ;;  %v26734_v57 = vsel %vm21766_vm5, 4294967295, %v26733_v57  ;;  %v26745_v9 = vld [vmem:[#allocation84_spill] sm:$0xff]  ;;  %v26866_v31 = vand.u32 4294901760, %v21402_v38 }
 0x66f   : > { %11795 = vmatprep.subr.msk.mxu1 %vm26328_vm12, %v26561_v10  ;;  %26735 = vst [vmem:[#allocation519_spill] sm:$0xff] %v26734_v57  ;;  %vm26739_vm12 = vnez %v26738_v17  ;;  %v26750_v17 = vld [vmem:[#allocation72_spill] sm:$0xff] }
 0x670   : > { %13278 = vmatpush1.bf16.msk.msra.mxu0 %vm26713_vm7, %v26530_v12  ;;  %vm21758_vm7 = vmpackc.low %vm26725_vm9, %vm26723_vm15  ;;  %vm26744_vm9 = vnez %v26743_v14  ;;  %vm26746_vm15 = vnez %v26745_v9  ;;  %v26757_v14 = vld [vmem:[#allocation66_spill] sm:$0xff] }
 0x671   : > { %11729 = vmatprep.subr.msk.mxu0 %vm26563_vm8, %v26561_v10  ;;  %v26727_v11 = vsel %vm21758_vm7, 4294967295, %v26726_v11  ;;  %vm26737_vm8 = vnez %v26736_v40  ;;  %vm21788_vm0 = vmpackc.low %vm26746_vm15, %vm26744_vm9  ;;  %v26747_v40 = vmov 0  ;;  %vm26758_vm9 = vnez %v26757_v14  ;;  %v26759_v9 = vld [vmem:[#allocation82_spill] sm:$0xff] }
 0x672   : > { %26728 = vst [vmem:[#allocation518_spill] sm:$0xff] %v26727_v11  ;;  %vm21774_vm4 = vmpackc.low %vm26739_vm12, %vm26737_vm8  ;;  %11796 = vmatpush1.msk.msra.mxu1 %vm26571_vm14, %v26561_v10  ;;  %v26748_v40 = vsel %vm21788_vm0, 4294967295, %v26747_v40  ;;  %vm26751_vm8 = vnez %v26750_v17  ;;  %vm26753_vm12 = vnez %v26752_v21  ;;  %vm26760_vm15 = vnez %v26759_v9  ;;  %v26764_v21 = vld [vmem:[#allocation70_spill] sm:$0xff]  ;;  %v26771_v9 = vld [vmem:[#allocation100_spill] sm:$0xff] }
 0x673   : > { %v26741_v33 = vsel %vm21774_vm4, 4294967295, %v26740_v33  ;;  %26749 = vst [vmem:[#allocation521_spill] sm:$0xff] %v26748_v40  ;;  %7129 = vmatmul.mubr.f32.vlgmr.msra.gmra.mrb[0].mxu1 %v26515_v52  ;;  %vm21798_vm2 = vmpackc.low %vm26753_vm12, %vm26751_vm8  ;;  %13520 = vmatprep.subr.msk.bf16.mxu1 %vm21758_vm7, %v26530_v12  ;;  %v26761_v17 = vmov 0  ;;  %vm26765_vm8 = vnez %v26764_v21  ;;  %vm26767_vm12 = vnez %v26766_v24  ;;  %v26833_v40 = vld [vmem:[#allocation146_spill] sm:$0xff] }
 0x674   : > { %26742 = vst [vmem:[#allocation520_spill] sm:$0xff] %v26741_v33  ;;  %11730 = vmatpush1.msk.msra.mxu0 %vm26569_vm3, %v26561_v10  ;;  %v26755_v15 = vsel %vm21798_vm2, 4294967295, %v26754_v15  ;;  %vm21812_vm14 = vmpackc.low %vm26760_vm15, %vm26758_vm9  ;;  %13522 = vmatpush1.bf16.msk.msra.mxu1 %vm21774_vm4, %v26530_v12  ;;  %v26768_v14 = vmov 0  ;;  %vm26772_vm9 = vnez %v26771_v9  ;;  %vm26774_vm15 = vnez %v26773_v5  ;;  %v26788_v5 = vld [vmem:[#allocation474_spill] sm:$0xff] }
 0x675   : > { %6536 = vmatmul.mubr.f32.vlgmr.msra.gmra.mrb[0].mxu0 %v26515_v52  ;;  %26756 = vst [vmem:[#allocation522_spill] sm:$0xff] %v26755_v15  ;;  %13400 = vmatprep.subr.msk.bf16.mxu0 %vm21744_vm10, %v26530_v12  ;;  %v26762_v17 = vsel %vm21812_vm14, 4294967295, %v26761_v17  ;;  %vm21826_vm3 = vmpackc.low %vm26767_vm12, %vm26765_vm8  ;;  %v26775_v21 = vmov 0  ;;  %v26778_v24 = vand.u32 4294901760, %v21324_v41  ;;  %vm26782_vm8 = vnez %v26781_v53  ;;  %v26831_v15 = vld [vmem:[#allocation130_spill] sm:$0xff] }
 0x676   : > { %26763 = vst [vmem:[#allocation523_spill] sm:$0xff] %v26762_v17  ;;  %13402 = vmatpush1.bf16.msk.msra.mxu0 %vm21766_vm5, %v26530_v12  ;;  %v26769_v14 = vsel %vm21826_vm3, 4294967295, %v26768_v14  ;;  %13524 = vmatprep.subr.msk.bf16.mxu1 %vm21798_vm2, %v26530_v12  ;;  %vm21840_vm11 = vmpackc.low %vm26774_vm15, %vm26772_vm9  ;;  %vm26784_vm12 = vnez %v26783_v51  ;;  %v26785_v9 = vmov 0  ;;  %v26789_v36 = vand.u32 4294901760, %v26788_v5 }
 0x677   : > { %26770 = vst [vmem:[#allocation524_spill] sm:$0xff] %v26769_v14  ;;  %13404 = vmatprep.subr.msk.bf16.mxu0 %vm21788_vm0, %v26530_v12  ;;  %v26776_v21 = vsel %vm21840_vm11, 4294967295, %v26775_v21  ;;  %v7213_v44 = vsub.f32 %v21324_v41, %v26778_v24  ;;  %vm21854_vm6 = vmpackc.low %vm26784_vm12, %vm26782_vm8  ;;  %7199 = vmatprep.mubr.f32.mxu0 %v26422_v26  ;;  %v26793_v53 = vand.u32 4294901760, %v26792_v7  ;;  %vm26795_vm9 = vnez %v26794_v6  ;;  %v26809_v6 = vld [vmem:[#allocation118_spill] sm:$0xff] }
 0x678   : > { %26777 = vst [vmem:[#allocation525_spill] sm:$0xff] %v26776_v21  ;;  %v26786_v9 = vsel %vm21854_vm6, 4294967295, %v26785_v9  ;;  %7792 = vmatprep.mubr.f32.mxu1 %v26422_v26  ;;  %v7806_v24 = vsub.f32 %v26788_v5, %v26789_v36  ;;  %vm26797_vm15 = vnez %v26796_v1  ;;  %v7228_v36 = vsub.f32 %v26801_v45, %v26802_v3  ;;  %13526 = vmatpush1.bf16.msk.msra.mxu1 %vm21826_vm3, %v26530_v12  ;;  %v26807_v1 = vld [vmem:[#allocation102_spill] sm:$0xff]  ;;  %v26824_v21 = vld [vmem:[#allocation136_spill] sm:$0xff] }
 0x679   : > { %26787 = vst [vmem:[#allocation473_spill] sm:$0xff] %v26786_v9  ;;  %v7218_v51 = vsub.f32 %v26792_v7, %v26793_v53  ;;  %vm21873_vm8 = vmpackc.low %vm26797_vm15, %vm26795_vm9  ;;  %v7821_v53 = vsub.f32 %v26805_v35, %v26806_v23  ;;  %vm26808_vm12 = vnez %v26807_v1  ;;  %vm26810_vm9 = vnez %v26809_v6  ;;  %13528 = vmatprep.subr.msk.bf16.mxu1 %vm21854_vm6, %v26530_v12  ;;  %v26816_v23 = vld [vmem:[#allocation148_spill] sm:$0xff] }
 0x67a   : > { %v26799_v54 = vsel %vm21873_vm8, 4294967295, %v26798_v54  ;;  %13406 = vmatpush1.bf16.msk.msra.mxu0 %vm21812_vm14, %v26530_v12  ;;  %vm21896_vm15 = vmpackc.low %vm26810_vm9, %vm26808_vm12  ;;  %v26811_v3 = vmov 0  ;;  %vm26817_vm1 = vnez %v26816_v23  ;;  %v26818_v1 = vmov 0  ;;  %v26826_v9 = vld [vmem:[#allocation152_spill] sm:$0xff] }
 0x67b   : > { %26800 = vst [vmem:[#allocation474_spill] sm:$0xff] %v26799_v54  ;;  %v26812_v3 = vsel %vm21896_vm15, 4294967295, %v26811_v3  ;;  %13408 = vmatprep.subr.msk.bf16.mxu0 %vm21840_vm11, %v26530_v12  ;;  %vm21910_vm3 = vmpackc.low %vm26817_vm1, %vm26815_vm13  ;;  %v7214_v6 = vand.u32 4294901760, %v7213_v44  ;;  %vm26825_vm12 = vnez %v26824_v21  ;;  %vm26827_vm9 = vnez %v26826_v9  ;;  %v26838_v9 = vld [vmem:[#allocation481_spill] sm:$0xff] }
 0x67c   : > { %26813 = vst [vmem:[#allocation475_spill] sm:$0xff] %v26812_v3  ;;  %v26819_v1 = vsel %vm21910_vm3, 4294967295, %v26818_v1  ;;  %vm21924_vm6 = vmpackc.low %vm26827_vm9, %vm26825_vm12  ;;  %v7224_v23 = vand.u32 4294901760, %v7223_v30  ;;  %v7807_v14 = vand.u32 4294901760, %v7806_v24  ;;  %v7817_v17 = vand.u32 4294901760, %v7816_v58  ;;  %13530 = vmatpush1.bf16.msk.msra.mxu1 %vm21896_vm15, %v26530_v12  ;;  %v26840_v30 = vld [vmem:[#allocation134_spill] sm:$0xff] }
 0x67d   : > { %26820 = vst [vmem:[#allocation476_spill] sm:$0xff] %v26819_v1  ;;  %v26829_v27 = vsel %vm21924_vm6, 4294967295, %v26828_v27  ;;  %v7219_v44 = vand.u32 4294901760, %v7218_v51  ;;  %vm26832_vm1 = vnez %v26831_v15  ;;  %vm26834_vm13 = vnez %v26833_v40  ;;  %v26842_v15 = vld [vmem:[#allocation150_spill] sm:$0xff]  ;;  %13532 = vmatprep.subr.msk.bf16.mxu1 %vm21924_vm6, %v26530_v12  ;;  %v26848_v58 = vld [vmem:[#allocation164_spill] sm:$0xff] }
 0x67e   : > { %26830 = vst [vmem:[#allocation477_spill] sm:$0xff] %v26829_v27  ;;  %vm21932_vm11 = vmpackc.low %vm26834_vm13, %vm26832_vm1  ;;  %v7229_v46 = vand.u32 4294901760, %v7228_v36  ;;  %v7812_v21 = vand.u32 4294901760, %v7811_v42  ;;  %v7822_v33 = vand.u32 4294901760, %v7821_v53  ;;  %v26839_v57 = vand.u32 4294901760, %v26838_v9  ;;  %13410 = vmatpush1.bf16.msk.msra.mxu0 %vm21873_vm8, %v26530_v12  ;;  %v26850_v51 = vld [vmem:[#allocation180_spill] sm:$0xff] }
 0x67f   : > { %v26836_v39 = vsel %vm21932_vm11, 4294967295, %v26835_v39  ;;  %vm26841_vm12 = vnez %v26840_v30  ;;  %vm26843_vm9 = vnez %v26842_v15  ;;  %v26844_v40 = vmov 0  ;;  %13412 = vmatprep.subr.msk.bf16.mxu0 %vm21910_vm3, %v26530_v12  ;;  %v26857_v27 = vld [vmem:[#allocation168_spill] sm:$0xff] }
 0x680   : > { %26837 = vst [vmem:[#allocation478_spill] sm:$0xff] %v26836_v39  ;;  %v7826_v11 = vsub.f32 %v26838_v9, %v26839_v57  ;;  %vm21949_vm1 = vmpackc.low %vm26843_vm9, %vm26841_vm12  ;;  %v26847_v24 = vand.u32 4294901760, %v21385_v62  ;;  %vm26849_vm13 = vnez %v26848_v58  ;;  %vm26851_vm15 = vnez %v26850_v51  ;;  %v26859_v3 = vld [vmem:[#allocation184_spill] sm:$0xff] }
 0x681   : > { %v26845_v40 = vsel %vm21949_vm1, 4294967295, %v26844_v40  ;;  %vm21966_vm12 = vmpackc.low %vm26851_vm15, %vm26849_vm13  ;;  %v26852_v36 = vmov 0  ;;  %v7234_v42 = vand.u32 4294901760, %v7233_v34  ;;  %v7244_v53 = vand.u32 4294901760, %v7243_v60  ;;  %13534 = vmatpush1.bf16.msk.msra.mxu1 %vm21949_vm1, %v26530_v12 }
 0x682   : > { %26846 = vst [vmem:[#allocation479_spill] sm:$0xff] %v26845_v40  ;;  %v7836_v57 = vsub.f32 %v21385_v62, %v26847_v24  ;;  %v26853_v36 = vsel %vm21966_vm12, 4294967295, %v26852_v36  ;;  %v26855_v30 = vand.u32 4294901760, %v21389_v43  ;;  %v26856_v24 = vand.u32 4294901760, %v21393_v61  ;;  %13414 = vmatpush1.bf16.msk.msra.mxu0 %vm21932_vm11, %v26530_v12  ;;  %v26886_v40 = vld [vmem:[#allocation489_spill] sm:$0xff] }
 0x683   : > { %26854 = vst [vmem:[#allocation480_spill] sm:$0xff] %v26853_v36  ;;  %vm26858_vm9 = vnez %v26857_v27  ;;  %vm26860_vm6 = vnez %v26859_v3  ;;  %v26861_v58 = vmov 0  ;;  %v21984_v51 = vpack.c.bf16 %v7224_v23, %v7214_v6  ;;  %v26867_v3 = vld [vmem:[#allocation162_spill] sm:$0xff]  ;;  %v26875_v6 = vld [vmem:[#allocation486_spill] sm:$0xff]  ;;  %13416 = vmatprep.subr.msk.bf16.mxu0 %vm21966_vm12, %v26530_v12 }
 0x684   : > { %v7238_v15 = vsub.f32 %v21389_v43, %v26855_v30  ;;  %v7248_v1 = vsub.f32 %v21393_v61, %v26856_v24  ;;  %vm21980_vm3 = vmpackc.low %vm26860_vm6, %vm26858_vm9  ;;  %v21986_v34 = vpack.c.bf16 %v7817_v17, %v7807_v14  ;;  %v21988_v60 = vpack.c.bf16 %v7229_v46, %v7219_v44  ;;  %v26869_v17 = vld [vmem:[#allocation178_spill] sm:$0xff]  ;;  %v26894_v61 = vld [vmem:[#allocation497_spill] sm:$0xff] }
 0x685   : > { %v26862_v58 = vsel %vm21980_vm3, 4294967295, %v26861_v58  ;;  %v21990_v54 = vpack.c.bf16 %v7822_v33, %v7812_v21  ;;  %v7827_v30 = vand.u32 4294901760, %v7826_v11  ;;  %v7831_v24 = vsub.f32 %v21402_v38, %v26866_v31  ;;  %13536 = vmatprep.subr.msk.bf16.mxu1 %vm21980_vm3, %v26530_v12  ;;  %v26878_v21 = vld [vmem:[#allocation166_spill] sm:$0xff] }
 0x686   : > { %26863 = vst [vmem:[#allocation481_spill] sm:$0xff] %v26862_v58  ;;  %26864 = vst [vmem:[#allocation526_spill] sm:$0xff] %v21986_v34  ;;  %vm26868_vm6 = vnez %v26867_v3  ;;  %vm26870_vm15 = vnez %v26869_v17  ;;  %v26871_v33 = vmov 0  ;;  %v7837_v11 = vand.u32 4294901760, %v7836_v57  ;;  %v26880_v57 = vld [vmem:[#allocation182_spill] sm:$0xff] }
 0x687   : > { %26865 = vst [vmem:[#allocation527_spill] sm:$0xff] %v21990_v54  ;;  %vm22005_vm13 = vmpackc.low %vm26870_vm15, %vm26868_vm6  ;;  %v26874_v14 = vand.u32 4294901760, %v21408_v63  ;;  %v26876_v27 = vand.u32 4294901760, %v26875_v6  ;;  %v26877_v44 = vand.u32 4294901760, %v21421_v32  ;;  %vm26879_vm9 = vnez %v26878_v21 }
 0x688   : > { %v26872_v33 = vsel %vm22005_vm13, 4294967295, %v26871_v33  ;;  %vm26881_vm6 = vnez %v26880_v57  ;;  %v26882_v3 = vmov 0  ;;  %v22032_v17 = vpack.c.bf16 %v7244_v53, %v7234_v42  ;;  %v26892_v42 = vld [vmem:[#allocation495_spill] sm:$0xff]  ;;  %13418 = vmatpush1.bf16.msk.msra.mxu0 %vm22005_vm13, %v26530_v12 }
 0x689   : > { %26873 = vst [vmem:[#allocation528_spill] sm:$0xff] %v26872_v33  ;;  %v7841_v31 = vsub.f32 %v21408_v63, %v26874_v14  ;;  %v7253_v23 = vsub.f32 %v26875_v6, %v26876_v27  ;;  %v7263_v46 = vsub.f32 %v21421_v32, %v26877_v44  ;;  %vm22028_vm15 = vmpackc.low %vm26881_vm6, %vm26879_vm9  ;;  %v7239_v14 = vand.u32 4294901760, %v7238_v15  ;;  %v26888_v32 = vld [vmem:[#allocation492_spill] sm:$0xff]  ;;  %v26890_v6 = vld [vmem:[#allocation494_spill] sm:$0xff] }
 0x68a   : > { %v26883_v3 = vsel %vm22028_vm15, 4294967295, %v26882_v3  ;;  %v7249_v27 = vand.u32 4294901760, %v7248_v1  ;;  %v26885_v44 = vand.u32 4294901760, %v21430_v49  ;;  %v26887_v39 = vand.u32 4294901760, %v26886_v40  ;;  %13538 = vmatpush1.bf16.msk.msra.mxu1 %vm22028_vm15, %v26530_v12 }
 0x68b   : > { %26884 = vst [vmem:[#allocation529_spill] sm:$0xff] %v26883_v3  ;;  %v26889_v21 = vand.u32 4294901760, %v26888_v32  ;;  %v26891_v63 = vand.u32 4294901760, %v26890_v6  ;;  %v26893_v53 = vand.u32 4294901760, %v26892_v42  ;;  %v7832_v15 = vand.u32 4294901760, %v7831_v24 }
 0x68c   : > { %v7846_v36 = vsub.f32 %v21430_v49, %v26885_v44  ;;  %v7856_v58 = vsub.f32 %v26886_v40, %v26887_v39  ;;  %v26895_v43 = vand.u32 4294901760, %v26894_v61  ;;  %v26896_v49 = vand.u32 4294901760, %v21487_v8  ;;  %v26897_v40 = vld [vmem:[#allocation499_spill] sm:$0xff] }
 0x68d   : > { %v7258_v57 = vsub.f32 %v26888_v32, %v26889_v21  ;;  %v7268_v38 = vsub.f32 %v26890_v6, %v26891_v63  ;;  %v7851_v1 = vsub.f32 %v26892_v42, %v26893_v53  ;;  %v26898_v52 = vand.u32 4294901760, %v26897_v40 }
 0x68e   : > { %v7861_v44 = vsub.f32 %v26894_v61, %v26895_v43  ;;  %v7273_v39 = vsub.f32 %v21487_v8, %v26896_v49  ;;  %v7842_v63 = vand.u32 4294901760, %v7841_v31  ;;  %v7254_v24 = vand.u32 4294901760, %v7253_v23  ;;  %v26900_v49 = vld [vmem:[#allocation196_spill] sm:$0xff] }
 0x68f   : > { %v7283_v21 = vsub.f32 %v26897_v40, %v26898_v52  ;;  %v7264_v53 = vand.u32 4294901760, %v7263_v46  ;;  %v26899_v43 = vand.u32 4294901760, %v21496_v2  ;;  %vm26901_vm9 = vnez %v26900_v49  ;;  %v26902_v52 = vld [vmem:[#allocation200_spill] sm:$0xff] }
 0x690   : > { %11817 = vmatprep.subr.msk.mxu0 %vm26901_vm9, %v26561_v10  ;;  %vm26903_vm6 = vnez %v26902_v52  ;;  %v22073_v33 = vpack.c.bf16 %v7837_v11, %v7827_v30  ;;  %v22075_v40 = vpack.c.bf16 %v7249_v27, %v7239_v14  ;;  %v7847_v3 = vand.u32 4294901760, %v7846_v36  ;;  %v26908_v30 = vld [vmem:[#allocation194_spill] sm:$0xff] }
 0x691   : > { %v7866_v61 = vsub.f32 %v21496_v2, %v26899_v43  ;;  %11883 = vmatprep.subr.msk.mxu1 %vm26903_vm6, %v26561_v10  ;;  %v26906_v31 = vand.u32 4294901760, %v21500_v29  ;;  %v7857_v46 = vand.u32 4294901760, %v7856_v58  ;;  %v7259_v12 = vand.u32 4294901760, %v7258_v57  ;;  %v26910_v36 = vld [vmem:[#allocation198_spill] sm:$0xff] }
 0x692   : > { %26904 = vst [vmem:[#allocation492_spill] sm:$0xff] %v22073_v33  ;;  %26905 = vst [vmem:[#allocation530_spill] sm:$0xff] %v22075_v40  ;;  %v7269_v43 = vand.u32 4294901760, %v7268_v38  ;;  %v7852_v2 = vand.u32 4294901760, %v7851_v1  ;;  %v7862_v8 = vand.u32 4294901760, %v7861_v44  ;;  %v7274_v49 = vand.u32 4294901760, %v7273_v39 }
 0x693   : > { %v7876_v23 = vsub.f32 %v21500_v29, %v26906_v31  ;;  %v7284_v42 = vand.u32 4294901760, %v7283_v21  ;;  %v26907_v6 = vand.u32 4294901760, %v21511_v37  ;;  %vm26909_vm6 = vnez %v26908_v30  ;;  %v26918_v21 = vld [vmem:[#allocation425_spill] sm:$0xff] }
 0x694   : > { %11818 = vmatpush1.msk.msra.mxu0 %vm26909_vm6, %v26561_v10  ;;  %vm26911_vm9 = vnez %v26910_v36  ;;  %v22089_v11 = vpack.c.bf16 %v7842_v63, %v7832_v15  ;;  %v22091_v58 = vpack.c.bf16 %v7264_v53, %v7254_v24  ;;  %v7867_v38 = vand.u32 4294901760, %v7866_v61 }
 0x695   : > { %v7278_v52 = vsub.f32 %v21511_v37, %v26907_v6  ;;  %11884 = vmatpush1.msk.msra.mxu1 %vm26911_vm9, %v26561_v10  ;;  %v26914_v14 = vand.u32 4294901760, %v21531_v20  ;;  %13420 = vmatprep.subr.bf16.mxu0 %v21984_v51  ;;  %v7877_v6 = vand.u32 4294901760, %v7876_v23  ;;  %v26915_v57 = vand.u32 4294901760, %v21546_v56 }
 0x696   : > { %26912 = vst [vmem:[#allocation531_spill] sm:$0xff] %v22089_v11  ;;  %26913 = vst [vmem:[#allocation532_spill] sm:$0xff] %v22091_v58  ;;  %13540 = vmatprep.subr.bf16.mxu1 %v21986_v34  ;;  %v26916_v44 = vand.u32 4294901760, %v21552_v47  ;;  %v26917_v39 = vand.u32 4294901760, %v21563_v4  ;;  %7205 = vmatmul.mubr.f32.vlgmr.msra.gmra.mrb[2].mxu0 %v26918_v21  ;;  %v22109_v63 = vpack.c.bf16 %v7857_v46, %v7847_v3  ;;  %v26920_v53 = vand.u32 4294901760, %v21582_v18 }
 0x697   : > { %v7288_v27 = vsub.f32 %v21531_v20, %v26914_v14  ;;  %v7871_v1 = vsub.f32 %v21546_v56, %v26915_v57  ;;  %7798 = vmatmul.mubr.f32.vlgmr.msra.gmra.mrb[2].mxu1 %v26918_v21  ;;  %v22111_v24 = vpack.c.bf16 %v7269_v43, %v7259_v12  ;;  %13422 = vmatpush1.bf16.msra.mxu0 %v21988_v60  ;;  %v7279_v57 = vand.u32 4294901760, %v7278_v52 }
 0x698   : > { %v7881_v15 = vsub.f32 %v21552_v47, %v26916_v44  ;;  %v7293_v61 = vsub.f32 %v21563_v4, %v26917_v39  ;;  %26919 = vst [vmem:[#allocation425_spill] sm:$0xff] %v22109_v63  ;;  %v7303_v31 = vsub.f32 %v21582_v18, %v26920_v53  ;;  %13542 = vmatpush1.bf16.msra.mxu1 %v21990_v54  ;;  %v26922_v44 = vand.u32 4294901760, %v21586_v28  ;;  %v26924_v39 = vld [vmem:[#allocation199_spill] sm:$0xff] }
 0x699   : > { %v22118_v23 = vpack.c.bf16 %v7862_v8, %v7852_v2  ;;  %v22120_v14 = vpack.c.bf16 %v7284_v42, %v7274_v49  ;;  %13424 = vmatprep.subr.bf16.mxu0 %v22032_v17  ;;  %13544 = vmatprep.subr.bf16.mxu1 %v22073_v33  ;;  %v7289_v12 = vand.u32 4294901760, %v7288_v27  ;;  %v26923_v46 = vand.u32 4294901760, %v21599_v25  ;;  %v26926_v8 = vld [vmem:[#allocation202_spill] sm:$0xff] }
 0x69a   : > { %v7886_v3 = vsub.f32 %v21586_v28, %v26922_v44  ;;  %v22132_v2 = vsub.f32 %v26924_v39, %v26924_v39  ;;  %v22136_v42 = vsub.f32 %v26926_v8, %v26926_v8  ;;  %v22138_v49 = vpack.c.bf16 %v7877_v6, %v7867_v38  ;;  %7363 = vmatprep.mubr.f32.mxu0 %v26422_v26 }
 0x69b   : > { %26921 = vst [vmem:[#allocation533_spill] sm:$0xff] %v22118_v23  ;;  %v7896_v43 = vsub.f32 %v21599_v25, %v26923_v46  ;;  %v7872_v52 = vand.u32 4294901760, %v7871_v1  ;;  %v7882_v21 = vand.u32 4294901760, %v7881_v15  ;;  %v7294_v53 = vand.u32 4294901760, %v7293_v61  ;;  %7956 = vmatprep.mubr.f32.mxu1 %v26422_v26  ;;  %13426 = vmatpush1.bf16.msra.mxu0 %v22075_v40  ;;  %v26933_v15 = vld [vmem:[#allocation197_spill] sm:$0xff] }
 0x69c   : > { %26925 = vst [vmem:[#allocation534_spill] sm:$0xff] %v22132_v2  ;;  %26927 = vst [vmem:[#allocation535_spill] sm:$0xff] %v22136_v42  ;;  %v7304_v27 = vand.u32 4294901760, %v7303_v31  ;;  %v26929_v44 = vand.u32 4294901760, %v21603_v55  ;;  %v26930_v39 = vand.u32 4294901760, %v21607_v0  ;;  %v26931_v8 = vand.u32 4294901760, %v21612_v48  ;;  %13546 = vmatpush1.bf16.msra.mxu1 %v22089_v11  ;;  %13428 = vmatprep.subr.bf16.mxu0 %v22091_v58 }
 0x69d   : > { %26928 = vst [vmem:[#allocation536_spill] sm:$0xff] %v22138_v49  ;;  %v26932_v6 = vand.u32 4294901760, %v21616_v13  ;;  %v22158_v61 = vsub.f32 %v26933_v15, %v26933_v15  ;;  %v26935_v31 = vld [vmem:[#allocation201_spill] sm:$0xff]  ;;  %13548 = vmatprep.subr.bf16.mxu1 %v22109_v63  ;;  %v22167_v11 = vand.u32 4294901760, %v22132_v2  ;;  %v22170_v54 = vand.u32 4294901760, %v22136_v42 }
 0x69e   : > { %v7298_v46 = vsub.f32 %v21603_v55, %v26929_v44  ;;  %v7308_v33 = vsub.f32 %v21607_v0, %v26930_v39  ;;  %v7891_v38 = vsub.f32 %v21612_v48, %v26931_v8  ;;  %v22162_v44 = vsub.f32 %v26935_v31, %v26935_v31 }
 0x69f   : > { %v7901_v1 = vsub.f32 %v21616_v13, %v26932_v6  ;;  %26934 = vst [vmem:[#allocation537_spill] sm:$0xff] %v22158_v61  ;;  %v7887_v39 = vand.u32 4294901760, %v7886_v3  ;;  %v7897_v8 = vand.u32 4294901760, %v7896_v43  ;;  %26937 = vst [vmem:[#allocation539_spill] sm:$0xff] %v22167_v11  ;;  %v22172_v6 = vpack.c.bf16 %v7289_v12, %v7279_v57  ;;  %13430 = vmatpush1.bf16.msra.mxu0 %v22111_v24 }
 0x6a0   : > { %26936 = vst [vmem:[#allocation538_spill] sm:$0xff] %v22162_v44  ;;  %26938 = vst [vmem:[#allocation540_spill] sm:$0xff] %v22170_v54  ;;  %v22174_v15 = vpack.c.bf16 %v7882_v21, %v7872_v52  ;;  %v22176_v34 = vpack.c.bf16 %v7304_v27, %v7294_v53  ;;  %v7299_v31 = vand.u32 4294901760, %v7298_v46  ;;  %v7309_v40 = vand.u32 4294901760, %v7308_v33  ;;  %13550 = vmatpush1.bf16.msra.mxu1 %v22118_v23  ;;  %v27026_v23 = vld [vmem:[#allocation506_spill] sm:$0xff] }
 0x6a1   : > { %v7892_v3 = vand.u32 4294901760, %v7891_v38  ;;  %v7902_v43 = vand.u32 4294901760, %v7901_v1  ;;  %v22181_v63 = vand.u32 4294901760, %v22158_v61  ;;  %v22184_v58 = vand.u32 4294901760, %v22162_v44  ;;  %13432 = vmatprep.subr.bf16.mxu0 %v22120_v14  ;;  %13552 = vmatprep.subr.bf16.mxu1 %v22138_v49  ;;  %v27024_v49 = vld [vmem:[#allocation504_spill] sm:$0xff] }
 0x6a2   : > { %26939 = vst [vmem:[#allocation541_spill] sm:$0xff] %v22174_v15  ;;  %v22188_v57 = vpack.c.bf16 %v7897_v8, %v7887_v39  ;;  %v7313_v33 = vsub.f32 %v22132_v2, %v22167_v11  ;;  %v7906_v12 = vsub.f32 %v22136_v42, %v22170_v54  ;;  %v22194_v52 = vpack.c.bf16 %v7309_v40, %v7299_v31 }
 0x6a3   : > { %26940 = vst [vmem:[#allocation542_spill] sm:$0xff] %v22181_v63  ;;  %26941 = vst [vmem:[#allocation543_spill] sm:$0xff] %v22184_v58  ;;  %13434 = vmatpush1.bf16.msra.mxu0 %v22172_v6  ;;  %v22198_v21 = vpack.c.bf16 %v7902_v43, %v7892_v3  ;;  %v7318_v53 = vsub.f32 %v22158_v61, %v22181_v63  ;;  %v7911_v27 = vsub.f32 %v22162_v44, %v22184_v58  ;;  %v26965_v43 = vld [vmem:[#allocation488_spill] sm:$0xff] }
 0x6a4   : > { %26942 = vst [vmem:[#allocation544_spill] sm:$0xff] %v22188_v57  ;;  %26943 = vst [vmem:[#allocation545_spill] sm:$0xff] %v22194_v52  ;;  %13554 = vmatpush1.bf16.msra.mxu1 %v22174_v15  ;;  %13436 = vmatprep.subr.bf16.mxu0 %v22176_v34  ;;  %v22206_v46 = vand.u32 4294901760, %v7313_v33  ;;  %v22208_v40 = vand.u32 4294901760, %v7906_v12  ;;  %v22220_v39 = vpack.c.bf16 %v26779_v22, %v21324_v41  ;;  %v26966_v33 = vld [vmem:[#allocation489_spill] sm:$0xff]  ;;  %v27023_v15 = vld [vmem:[#allocation503_spill] sm:$0xff] }
 0x6a5   : > { %26944 = vst [vmem:[#allocation546_spill] sm:$0xff] %v22198_v21  ;;  %13556 = vmatprep.subr.bf16.mxu1 %v22188_v57  ;;  %v22212_v38 = vand.u32 4294901760, %v7318_v53  ;;  %v22214_v1 = vand.u32 4294901760, %v7911_v27  ;;  %v22224_v8 = vpack.c.bf16 %v26790_v16, %v26788_v5  ;;  %v22228_v31 = vpack.c.bf16 %v26801_v45, %v26792_v7  ;;  %v26955_v45 = vld [vmem:[#allocation409_spill] sm:$0xff]  ;;  %v26957_v7 = vld [vmem:[#allocation483_spill] sm:$0xff]  ;;  %v26968_v53 = vld [vmem:[#allocation494_spill] sm:$0xff] }
 0x6a6   : > { %26945 = vst [vmem:[#allocation547_spill] sm:$0xff] %v22206_v46  ;;  %26946 = vst [vmem:[#allocation548_spill] sm:$0xff] %v22208_v40  ;;  %v22232_v3 = vpack.c.bf16 %v26805_v35, %v26803_v19  ;;  %v22238_v22 = vpack.c.bf16 %v21374_v50, %v26821_v59  ;;  %v22242_v16 = vpack.c.bf16 %v21385_v62, %v26838_v9  ;;  %v26956_v19 = vld [vmem:[#allocation482_spill] sm:$0xff]  ;;  %v26959_v50 = vld [vmem:[#allocation484_spill] sm:$0xff] }
 0x6a7   : > { %13438 = vmatpush1.bf16.msra.mxu0 %v22194_v52  ;;  %26947 = vst [vmem:[#allocation549_spill] sm:$0xff] %v22212_v38  ;;  %26948 = vst [vmem:[#allocation550_spill] sm:$0xff] %v22214_v1  ;;  %v22252_v41 = vpack.c.bf16 %v26957_v7, %v26956_v19  ;;  %v26960_v35 = vld [vmem:[#allocation485_spill] sm:$0xff]  ;;  %v26962_v59 = vld [vmem:[#allocation486_spill] sm:$0xff]  ;;  %v22266_v12 = vpack.c.bf16 %v26966_v33, %v26965_v43  ;;  %v22274_v27 = vpack.c.bf16 %v26968_v53, %v26888_v32 }
 0x6a8   : > { %13558 = vmatpush1.bf16.msra.mxu1 %v22198_v21  ;;  %7315 = vmatprep.subr.mxu0 %v22206_v46  ;;  %26949 = vst [vmem:[#allocation551_spill] sm:$0xff] %v22220_v39  ;;  %26950 = vst [vmem:[#allocation552_spill] sm:$0xff] %v22224_v8  ;;  %v22256_v62 = vpack.c.bf16 %v26960_v35, %v26959_v50  ;;  %v26963_v5 = vld [vmem:[#allocation487_spill] sm:$0xff]  ;;  %v26971_v7 = vld [vmem:[#allocation497_spill] sm:$0xff]  ;;  %v22294_v32 = vpack.c.bf16 %v21531_v20, %v21511_v37 }
 0x6a9   : > { %7908 = vmatprep.subr.mxu1 %v22208_v40  ;;  %26951 = vst [vmem:[#allocation553_spill] sm:$0xff] %v22228_v31  ;;  %26952 = vst [vmem:[#allocation554_spill] sm:$0xff] %v22232_v3  ;;  %v22262_v9 = vpack.c.bf16 %v26963_v5, %v26962_v59  ;;  %v26970_v19 = vld [vmem:[#allocation495_spill] sm:$0xff]  ;;  %v26973_v35 = vld [vmem:[#allocation498_spill] sm:$0xff]  ;;  %v22298_v53 = vpack.c.bf16 %v21552_v47, %v21546_v56  ;;  %v22314_v20 = vpack.c.bf16 %v21607_v0, %v21603_v55  ;;  %v26984_v0 = vmov 1.0|1.0  }
 0x6aa   : > { %26953 = vst [vmem:[#allocation555_spill] sm:$0xff] %v22238_v22  ;;  %26954 = vst [vmem:[#allocation556_spill] sm:$0xff] %v22242_v16  ;;  %v22278_v50 = vpack.c.bf16 %v26971_v7, %v26970_v19  ;;  %v26974_v59 = vld [vmem:[#allocation499_spill] sm:$0xff]  ;;  %v26976_v43 = vld [vmem:[#allocation500_spill] sm:$0xff]  ;;  %v22308_v19 = vpack.c.bf16 %v21599_v25, %v21586_v28  ;;  %v22318_v37 = vpack.c.bf16 %v21616_v13, %v21612_v48 }
 0x6ab   : > { %7320 = vmatpush1.msra.mxu0 %v22212_v38  ;;  %26958 = vst [vmem:[#allocation409_spill] sm:$0xff] %v22252_v41  ;;  %26961 = vst [vmem:[#allocation482_spill] sm:$0xff] %v22256_v62  ;;  %v22284_v5 = vpack.c.bf16 %v26974_v59, %v26973_v35  ;;  %v22288_v33 = vpack.c.bf16 %v21500_v29, %v26976_v43  ;;  %v22304_v29 = vpack.c.bf16 %v21582_v18, %v21563_v4  ;;  %v26985_v56 = vld [vmem:[#allocation517_spill] sm:$0xff]  ;;  %v26988_v13 = vld [vmem:[#allocation519_spill] sm:$0xff] }
 0x6ac   : > { %7913 = vmatpush1.msra.mxu1 %v22214_v1  ;;  %13440 = vmatprep.subr.bf16.mxu0 %v22220_v39  ;;  %26964 = vst [vmem:[#allocation483_spill] sm:$0xff] %v22262_v9  ;;  %26967 = vst [vmem:[#allocation484_spill] sm:$0xff] %v22266_v12  ;;  %v26987_v4 = vld [vmem:[#allocation417_spill] sm:$0xff]  ;;  %v26989_v18 = vld [vmem:[#allocation520_spill] sm:$0xff] }
 0x6ad   : > { %13560 = vmatprep.subr.bf16.mxu1 %v22224_v8  ;;  %7365 = vmatmul.mubr.f32.vlgmr.msra.gmra.mrb[2].mxu0 %v26955_v45  ;;  %26969 = vst [vmem:[#allocation485_spill] sm:$0xff] %v22274_v27  ;;  %26972 = vst [vmem:[#allocation486_spill] sm:$0xff] %v22278_v50  ;;  %v26990_v28 = vld [vmem:[#allocation521_spill] sm:$0xff]  ;;  %v26991_v48 = vld [vmem:[#allocation522_spill] sm:$0xff] }
 0x6ae   : > { %7958 = vmatmul.mubr.f32.vlgmr.msra.gmra.mrb[2].mxu1 %v26955_v45  ;;  %13442 = vmatpush1.bf16.msra.mxu0 %v22228_v31  ;;  %26975 = vst [vmem:[#allocation487_spill] sm:$0xff] %v22284_v5  ;;  %26977 = vst [vmem:[#allocation488_spill] sm:$0xff] %v22288_v33  ;;  %v26992_v25 = vld [vmem:[#allocation523_spill] sm:$0xff]  ;;  %v26993_v55 = vld [vmem:[#allocation524_spill] sm:$0xff] }
 0x6af   : > { %13562 = vmatpush1.bf16.msra.mxu1 %v22232_v3  ;;  %13444 = vmatprep.subr.bf16.mxu0 %v22238_v22  ;;  %26978 = vst [vmem:[#allocation489_spill] sm:$0xff] %v22294_v32  ;;  %26979 = vst [vmem:[#allocation494_spill] sm:$0xff] %v22298_v53  ;;  %v26995_v7 = vld [vmem:[#allocation525_spill] sm:$0xff]  ;;  %v26999_v59 = vld [vmem:[#allocation474_spill] sm:$0xff] }
 0x6b0   : > { %13564 = vmatprep.subr.bf16.mxu1 %v22242_v16  ;;  %7457 = vmatprep.mubr.f32.mxu0 %v26422_v26  ;;  %26980 = vst [vmem:[#allocation495_spill] sm:$0xff] %v22304_v29  ;;  %26981 = vst [vmem:[#allocation497_spill] sm:$0xff] %v22308_v19  ;;  %v26997_v35 = vld [vmem:[#allocation473_spill] sm:$0xff]  ;;  %v27000_v43 = vld [vmem:[#allocation475_spill] sm:$0xff] }
 0x6b1   : > { %8050 = vmatprep.mubr.f32.mxu1 %v26422_v26  ;;  %26982 = vst [vmem:[#allocation498_spill] sm:$0xff] %v22314_v20  ;;  %26983 = vst [vmem:[#allocation499_spill] sm:$0xff] %v22318_v37  ;;  %v27016_v16 = vld [vmem:[#allocation490_spill] sm:$0xff]  ;;  %v27017_v3 = vld [vmem:[#allocation491_spill] sm:$0xff] }
 0x6b2   : > { %13446 = vmatpush1.bf16.msra.mxu0 %v22252_v41  ;;  %v27018_v8 = vld [vmem:[#allocation420_spill] sm:$0xff]  ;;  %v27019_v1 = vld [vmem:[#allocation493_spill] sm:$0xff]  ;;  %v27022_v57 = vld [vmem:[#allocation502_spill] sm:$0xff] }
 0x6b3   : > { %13566 = vmatpush1.bf16.msra.mxu1 %v22256_v62  ;;  %13448 = vmatprep.subr.bf16.mxu0 %v22262_v9  ;;  %v27014_v62 = vld [vmem:[#allocation200_spill] sm:$0xff]  ;;  %v27020_v40 = vld [vmem:[#allocation496_spill] sm:$0xff] }
 0x6b4   : > { %13568 = vmatprep.subr.bf16.mxu1 %v22266_v12  ;;  %v27012_v12 = vld [vmem:[#allocation196_spill] sm:$0xff] }
 0x6b5   : > { %v27021_v21 = vld [vmem:[#allocation501_spill] sm:$0xff] }
 0x6b6   : > { %13450 = vmatpush1.bf16.msra.mxu0 %v22274_v27 }
 0x6b7   : > { %13570 = vmatpush1.bf16.msra.mxu1 %v22278_v50  ;;  %13452 = vmatprep.subr.bf16.mxu0 %v22284_v5  ;;  %v27075_v50 = vld [vmem:[#allocation439_spill] sm:$0xff] }
 0x6b8   : > { %13572 = vmatprep.subr.bf16.mxu1 %v22288_v33 }
 0x6ba   : > { %13454 = vmatpush1.bf16.msra.mxu0 %v22294_v32 }
 0x6bb   : > { %13574 = vmatpush1.bf16.msra.mxu1 %v22298_v53  ;;  %13456 = vmatprep.subr.bf16.mxu0 %v22304_v29  ;;  %v27078_v53 = vld [vmem:[#allocation449_spill] sm:$0xff] }
 0x6bc   : > { %13576 = vmatprep.subr.bf16.mxu1 %v22308_v19 }
 0x6be   : > { %13458 = vmatpush1.bf16.msra.mxu0 %v22314_v20 }
 0x6bf   : > { %13578 = vmatpush1.bf16.msra.mxu1 %v22318_v37  ;;  %7412 = vmatprep.subr.mxu0 %v22132_v2  ;;  %v27007_v37 = vld [vmem:[#allocation479_spill] sm:$0xff] }
 0x6c0   : > { %8005 = vmatprep.subr.mxu1 %v22136_v42  ;;  %v27006_v42 = vld [vmem:[#allocation478_spill] sm:$0xff] }
 0x6c2   : > { %7414 = vmatpush1.msra.mxu0 %v22158_v61  ;;  %v27033_v61 = vld [vmem:[#allocation513_spill] sm:$0xff] }
 0x6c3   : > { %8007 = vmatpush1.msra.mxu1 %v22162_v44  ;;  %13460 = vmatprep.subr.msk.bf16.mxu0 %vm21744_vm10, %v26984_v0  ;;  %v27004_v44 = vld [vmem:[#allocation477_spill] sm:$0xff] }
 0x6c4   : > { %13580 = vmatprep.subr.msk.bf16.mxu1 %vm21758_vm7, %v26984_v0  ;;  %7460 = vmatmul.mubr.f32.vlgmr.msra.gmra.mrb[2].mxu0 %v26987_v4 }
 0x6c5   : > { %8053 = vmatmul.mubr.f32.vlgmr.msra.gmra.mrb[2].mxu1 %v26987_v4  ;;  %13462 = vmatpush1.bf16.msk.msra.mxu0 %vm21766_vm5, %v26984_v0  ;;  %vm26994_vm5 = vnez %v26993_v55  ;;  %v27002_v4 = vld [vmem:[#allocation476_spill] sm:$0xff] }
 0x6c6   : > { %13582 = vmatpush1.bf16.msk.msra.mxu1 %vm21774_vm4, %v26984_v0  ;;  %13464 = vmatprep.subr.msk.bf16.mxu0 %vm21788_vm0, %v26984_v0  ;;  %vm26996_vm4 = vnez %v26995_v7  ;;  %vm26998_vm0 = vnez %v26997_v35 }
 0x6c7   : > { %13584 = vmatprep.subr.msk.bf16.mxu1 %vm21798_vm2, %v26984_v0  ;;  %7530 = vmatprep.mubr.f32.mxu0 %v26422_v26  ;;  %vm27001_vm2 = vnez %v27000_v43 }
 0x6c8   : > { %8123 = vmatprep.mubr.f32.mxu1 %v26422_v26 }
 0x6c9   : > { %13466 = vmatpush1.bf16.msk.msra.mxu0 %vm21812_vm14, %v26984_v0  ;;  %vm27003_vm14 = vnez %v27002_v4 }
 0x6ca   : > { %13586 = vmatpush1.bf16.msk.msra.mxu1 %vm26994_vm5, %v26984_v0  ;;  %13468 = vmatprep.subr.msk.bf16.mxu0 %vm26996_vm4, %v26984_v0  ;;  %vm27005_vm5 = vnez %v27004_v44  ;;  %v14514_v44 = vmov 1966171168  }
 0x6cb   : > { %13588 = vmatprep.subr.msk.bf16.mxu1 %vm26998_vm0, %v26984_v0  ;;  %v8423_v43 = vunpack.c.l.s4 %v14514_v44 }
 0x6cd   : > { %13470 = vmatpush1.bf16.msk.msra.mxu0 %vm21873_vm8, %v26984_v0  ;;  %v8424_v35 = vunpack.c.0.s8 %v8423_v43 }
 0x6ce   : > { %13590 = vmatpush1.bf16.msk.msra.mxu1 %vm27001_vm2, %v26984_v0  ;;  %13472 = vmatprep.subr.msk.bf16.mxu0 %vm27003_vm14, %v26984_v0 }
 0x6cf   : > { %13592 = vmatprep.subr.msk.bf16.mxu1 %vm27005_vm5, %v26984_v0 }
 0x6d1   : > { %13474 = vmatpush1.bf16.msk.msra.mxu0 %vm21932_vm11, %v26984_v0  ;;  %vm27013_vm11 = vnez %v27012_v12 }
 0x6d2   : > { %13594 = vmatpush1.bf16.msk.msra.mxu1 %vm21949_vm1, %v26984_v0  ;;  %13476 = vmatprep.subr.msk.bf16.mxu0 %vm21966_vm12, %v26984_v0  ;;  %vm27015_vm1 = vnez %v27014_v62 }
 0x6d3   : > { %13596 = vmatprep.subr.msk.bf16.mxu1 %vm21980_vm3, %v26984_v0 }
 0x6d5   : > { %13478 = vmatpush1.bf16.msk.msra.mxu0 %vm22005_vm13, %v26984_v0 }
 0x6d6   : > { %13598 = vmatpush1.bf16.msk.msra.mxu1 %vm22028_vm15, %v26984_v0  ;;  %11839 = vmatprep.subr.msk.mxu0 %vm27013_vm11, %v26561_v10 }
 0x6d7   : > { %11905 = vmatprep.subr.msk.mxu1 %vm27015_vm1, %v26561_v10  ;;  %vm27039_vm1 = vnez %v26990_v28  ;;  %v27218_v28 = vld [vmem:[#allocation503_spill] sm:$0xff] }
 0x6d9   : > { %11840 = vmatpush1.msk.msra.mxu0 %vm26909_vm6, %v26561_v10  ;;  %vm27038_vm6 = vnez %v26989_v18 }
 0x6da   : > { %11906 = vmatpush1.msk.msra.mxu1 %vm26911_vm9, %v26561_v10  ;;  %13480 = vmatprep.subr.bf16.mxu0 %v27016_v16  ;;  %v27032_v16 = vld [vmem:[#allocation512_spill] sm:$0xff]  ;;  %vm27037_vm9 = vnez %v26988_v13 }
 0x6db   : > { %13600 = vmatprep.subr.bf16.mxu1 %v27017_v3  ;;  %7534 = vmatmul.mubr.f32.vlgmr.msra.gmra.mrb[2].mxu0 %v27018_v8  ;;  %v27025_v3 = vld [vmem:[#allocation505_spill] sm:$0xff] }
 0x6dc   : > { %8127 = vmatmul.mubr.f32.vlgmr.msra.gmra.mrb[2].mxu1 %v27018_v8  ;;  %13482 = vmatpush1.bf16.msra.mxu0 %v27019_v1  ;;  %v27027_v8 = vld [vmem:[#allocation507_spill] sm:$0xff]  ;;  %v27028_v1 = vld [vmem:[#allocation508_spill] sm:$0xff] }
 0x6dd   : > { %13602 = vmatpush1.bf16.msra.mxu1 %v27020_v40  ;;  %13484 = vmatprep.subr.bf16.mxu0 %v27021_v21  ;;  %v27029_v40 = vld [vmem:[#allocation509_spill] sm:$0xff]  ;;  %v27030_v21 = vld [vmem:[#allocation510_spill] sm:$0xff] }
 0x6de   : > { %13604 = vmatprep.subr.bf16.mxu1 %v27022_v57  ;;  %7648 = vmatprep.mubr.f32.mxu0 %v26422_v26  ;;  %v27031_v57 = vld [vmem:[#allocation511_spill] sm:$0xff] }
 0x6df   : > { %8241 = vmatprep.mubr.f32.mxu1 %v26422_v26 }
 0x6e0   : > { %13486 = vmatpush1.bf16.msra.mxu0 %v27023_v15  ;;  %v27034_v15 = vld [vmem:[#allocation514_spill] sm:$0xff] }
 0x6e1   : > { %13606 = vmatpush1.bf16.msra.mxu1 %v27024_v49  ;;  %13488 = vmatprep.subr.bf16.mxu0 %v27025_v3  ;;  %v27035_v49 = vld [vmem:[#allocation515_spill] sm:$0xff]  ;;  %v27036_v3 = vld [vmem:[#allocation516_spill] sm:$0xff] }
 0x6e2   : > { %13608 = vmatprep.subr.bf16.mxu1 %v27026_v23  ;;  %v27066_v23 = vld [vmem:[#allocation418_spill] sm:$0xff] }
 0x6e4   : > { %13490 = vmatpush1.bf16.msra.mxu0 %v27027_v8 }
 0x6e5   : > { %13610 = vmatpush1.bf16.msra.mxu1 %v27028_v1  ;;  %13492 = vmatprep.subr.bf16.mxu0 %v27029_v40  ;;  %v27063_v1 = vld [vmem:[#allocation413_spill] sm:$0xff] }
 0x6e6   : > { %13612 = vmatprep.subr.bf16.mxu1 %v27030_v21  ;;  %v27057_v21 = vld [vmem:[#allocation403_spill] sm:$0xff] }
 0x6e8   : > { %13494 = vmatpush1.bf16.msra.mxu0 %v27031_v57 }
 0x6e9   : > { %13614 = vmatpush1.bf16.msra.mxu1 %v27032_v16  ;;  %13496 = vmatprep.subr.bf16.mxu0 %v27033_v61  ;;  %v27055_v16 = vld [vmem:[#allocation380_spill] sm:$0xff] }
 0x6ea   : > { %13616 = vmatprep.subr.bf16.mxu1 %v27034_v15  ;;  %v27054_v15 = vld [vmem:[#allocation401_spill] sm:$0xff] }
 0x6ec   : > { %13498 = vmatpush1.bf16.msra.mxu0 %v27035_v49 }
 0x6ed   : > { %13618 = vmatpush1.bf16.msra.mxu1 %v27036_v3  ;;  %7602 = vmatprep.subr.mxu0 %v22167_v11  ;;  %v27052_v3 = vld [vmem:[#allocation378_spill] sm:$0xff] }
 0x6ee   : > { %8195 = vmatprep.subr.mxu1 %v22170_v54  ;;  %v27051_v54 = vld [vmem:[#allocation399_spill] sm:$0xff] }
 0x6f0   : > { %7605 = vmatpush1.msra.mxu0 %v22181_v63 }
 0x6f1   : > { %8198 = vmatpush1.msra.mxu1 %v22184_v58  ;;  %13500 = vmatprep.subr.msk.bf16.mxu0 %vm21744_vm10, %v26984_v0  ;;  %vm27040_vm10 = vnez %v26991_v48  ;;  %v27049_v58 = vld [vmem:[#allocation376_spill] sm:$0xff] }
 0x6f2   : > { %13620 = vmatprep.subr.msk.bf16.mxu1 %vm21758_vm7, %v26984_v0  ;;  %7650 = vmatmul.mubr.f32.vlgmr.msra.gmra.mrb[2].mxu0 %v26955_v45  ;;  %vm27041_vm7 = vnez %v26992_v25  ;;  %v27220_v25 = vld [vmem:[#allocation507_spill] sm:$0xff] }
 0x6f3   : > { %8243 = vmatmul.mubr.f32.vlgmr.msra.gmra.mrb[2].mxu1 %v26955_v45  ;;  %13502 = vmatpush1.bf16.msk.msra.mxu0 %vm27037_vm9, %v26984_v0  ;;  %vm27042_vm9 = vnez %v26993_v55 }
 0x6f4   : > { %13622 = vmatpush1.bf16.msk.msra.mxu1 %vm27038_vm6, %v26984_v0  ;;  %13504 = vmatprep.subr.msk.bf16.mxu0 %vm27039_vm1, %v26984_v0 }
 0x6f5   : > { %13624 = vmatprep.subr.msk.bf16.mxu1 %vm27040_vm10, %v26984_v0  ;;  %7720 = vmatprep.mubr.f32.mxu0 %v26422_v26 }
 0x6f6   : > { %8313 = vmatprep.mubr.f32.mxu1 %v26422_v26  ;;  %v27048_v26 = vld [vmem:[#allocation396_spill] sm:$0xff] }
 0x6f7   : > { %13506 = vmatpush1.bf16.msk.msra.mxu0 %vm27041_vm7, %v26984_v0 }
 0x6f8   : > { %13626 = vmatpush1.bf16.msk.msra.mxu1 %vm27042_vm9, %v26984_v0  ;;  %13508 = vmatprep.subr.msk.bf16.mxu0 %vm26996_vm4, %v26984_v0  ;;  %vm27043_vm9 = vnez %v27006_v42 }
 0x6f9   : > { %13628 = vmatprep.subr.msk.bf16.mxu1 %vm26998_vm0, %v26984_v0  ;;  %vm27044_vm0 = vnez %v27007_v37  ;;  %v27081_v37 = vld [vmem:[#allocation419_spill] sm:$0xff] }
 0x6fb   : > { %13510 = vmatpush1.bf16.msk.msra.mxu0 %vm21873_vm8, %v26984_v0 }
 0x6fc   : > { %13630 = vmatpush1.bf16.msk.msra.mxu1 %vm27001_vm2, %v26984_v0  ;;  %13512 = vmatprep.subr.msk.bf16.mxu0 %vm27003_vm14, %v26984_v0 }
 0x6fd   : > { %13632 = vmatprep.subr.msk.bf16.mxu1 %vm27005_vm5, %v26984_v0  ;;  %vm27046_vm5 = vnez %v26908_v30 }
 0x6ff   : > { %13514 = vmatpush1.bf16.msk.msra.mxu0 %vm27043_vm9, %v26984_v0 }
 0x700   : > { %13634 = vmatpush1.bf16.msk.msra.mxu1 %vm27044_vm0, %v26984_v0  ;;  %13516 = vmatprep.subr.msk.bf16.mxu0 %vm21966_vm12, %v26984_v0  ;;  %vm27045_vm0 = vnez %v27014_v62  ;;  %v27072_v62 = vld [vmem:[#allocation437_spill] sm:$0xff] }
 0x701   : > { %13636 = vmatprep.subr.msk.bf16.mxu1 %vm21980_vm3, %v26984_v0  ;;  %vm27047_vm3 = vnez %v26910_v36  ;;  %v27069_v36 = vld [vmem:[#allocation435_spill] sm:$0xff] }
 0x703   : > { %13518 = vmatpush1.bf16.msk.msra.mxu0 %vm22005_vm13, %v26984_v0 }
 0x704   : > { %13638 = vmatpush1.bf16.msk.msra.mxu1 %vm22028_vm15, %v26984_v0  ;;  %11861 = vmatprep.subr.msk.mxu0 %vm27013_vm11, %v26561_v10  ;;  %vm27050_vm15 = vnez %v27049_v58  ;;  %v27106_v58 = vld [vmem:[#allocation445_spill] sm:$0xff] }
 0x705   : > { %11927 = vmatprep.subr.msk.mxu1 %vm27045_vm0, %v26561_v10  ;;  %vm27053_vm0 = vnez %v27052_v3  ;;  %v27107_v3 = vld [vmem:[#allocation447_spill] sm:$0xff] }
 0x707   : > { %11862 = vmatpush1.msk.msra.mxu0 %vm27046_vm5, %v26561_v10 }
 0x708   : > { %11928 = vmatpush1.msk.msra.mxu1 %vm27047_vm3, %v26561_v10  ;;  %7722 = vmatmul.mubr.f32.vlgmr.msra.gmra.mrb[2].mxu0 %v26955_v45  ;;  %vm27056_vm3 = vnez %v27055_v16  ;;  %v27108_v16 = vld [vmem:[#allocation450_spill] sm:$0xff] }
 0x709   : > { %8315 = vmatmul.mubr.f32.vlgmr.msra.gmra.mrb[2].mxu1 %v26955_v45  ;;  %13660 = vmatprep.subr.bf16.mxu1 %v27048_v26  ;;  %v27058_v26 = vld [vmem:[#allocation382_spill] sm:$0xff] }
 0x70a   : > { %13640 = vmatprep.subr.msk.bf16.mxu0 %vm27050_vm15, %v26984_v0  ;;  %vm27059_vm2 = vnez %v27058_v26  ;;  %v27060_v45 = vld [vmem:[#allocation406_spill] sm:$0xff]  ;;  %v27109_v26 = vld [vmem:[#allocation452_spill] sm:$0xff] }
 0x70e   : > { %13642 = vmatpush1.bf16.xpose.msk.msra.mxu0 %vm27053_vm0, %v26984_v0 }
 0x70f   : > { %13662 = vmatpush1.bf16.xpose.msra.mxu1 %v27051_v54  ;;  %13644 = vmatprep.subr.msk.bf16.mxu0 %vm27056_vm3, %v26984_v0  ;;  %v27061_v54 = vld [vmem:[#allocation384_spill] sm:$0xff] }
 0x710   : > { %13664 = vmatprep.subr.bf16.mxu1 %v27054_v15  ;;  %vm27062_vm10 = vnez %v27061_v54  ;;  %v27064_v15 = vld [vmem:[#allocation386_spill] sm:$0xff]  ;;  %v27110_v54 = vld [vmem:[#allocation455_spill] sm:$0xff] }
 0x711   : > { %vm27065_vm6 = vnez %v27064_v15  ;;  %v27111_v15 = vld [vmem:[#allocation22_spill] sm:$0xff] }
 0x716   : > { %13646 = vmatpush1.bf16.xpose.msk.msra.mxu0 %vm27059_vm2, %v26984_v0 }
 0x717   : > { %13666 = vmatpush1.bf16.xpose.msra.mxu1 %v27057_v21  ;;  %13648 = vmatprep.subr.msk.bf16.mxu0 %vm27062_vm10, %v26984_v0  ;;  %v27067_v21 = vld [vmem:[#allocation388_spill] sm:$0xff] }
 0x718   : > { %13668 = vmatprep.subr.bf16.mxu1 %v27060_v45  ;;  %vm27068_vm5 = vnez %v27067_v21  ;;  %v27070_v45 = vld [vmem:[#allocation391_spill] sm:$0xff] }
 0x719   : > { %vm27071_vm11 = vnez %v27070_v45  ;;  %v27113_v21 = vld [vmem:[#allocation407_spill] sm:$0xff] }
 0x71a   : > { %v27114_v45 = vld [vmem:[#allocation411_spill] sm:$0xff] }
 0x71e   : > { %13650 = vmatpush1.bf16.xpose.msk.msra.mxu0 %vm27065_vm6, %v26984_v0 }
 0x71f   : > { %13670 = vmatpush1.bf16.xpose.msra.mxu1 %v27063_v1  ;;  %13652 = vmatprep.subr.msk.bf16.mxu0 %vm27068_vm5, %v26984_v0  ;;  %v27073_v1 = vld [vmem:[#allocation393_spill] sm:$0xff] }
 0x720   : > { %13672 = vmatprep.subr.bf16.mxu1 %v27066_v23  ;;  %vm27074_vm13 = vnez %v27073_v1  ;;  %v27076_v23 = vld [vmem:[#allocation395_spill] sm:$0xff] }
 0x721   : > { %vm27077_vm12 = vnez %v27076_v23  ;;  %v27117_v23 = vld [vmem:[#allocation398_spill] sm:$0xff] }
 0x726   : > { %13654 = vmatpush1.bf16.xpose.msk.msra.mxu0 %vm27071_vm11, %v26984_v0 }
 0x727   : > { %13674 = vmatpush1.bf16.xpose.msra.mxu1 %v27069_v36  ;;  %13656 = vmatprep.subr.msk.bf16.mxu0 %vm27074_vm13, %v26984_v0  ;;  %v27079_v36 = vld [vmem:[#allocation188_spill] sm:$0xff] }
 0x728   : > { %13676 = vmatprep.subr.bf16.mxu1 %v27072_v62  ;;  %vm27080_vm9 = vnez %v27079_v36  ;;  %v27082_v62 = vld [vmem:[#allocation186_spill] sm:$0xff]  ;;  %v27119_v36 = vld [vmem:[#allocation402_spill] sm:$0xff] }
 0x729   : > { %vm27083_vm14 = vnez %v27082_v62 }
 0x72e   : > { %13658 = vmatpush1.bf16.xpose.msk.msra.mxu0 %vm27077_vm12, %v26984_v0 }
 0x72f   : > { %13678 = vmatpush1.bf16.xpose.msra.mxu1 %v27075_v50  ;;  %11949 = vmatprep.subr.msk.mxu0 %vm27080_vm9, %v26561_v10  ;;  %v27084_v50 = vld [vmem:[#allocation422_spill] sm:$0xff] }
 0x730   : > { %8778 = vmatprep.subr.mxu1 %v27078_v53  ;;  %v27085_v53 = vld [vmem:[#allocation18_spill] sm:$0xff] }
 0x731   : > { %vm8321_vm8 = vcmp.ge.s32.totalorder %v27085_v53, 2  ;;  %v22564_v18 = vsub.s32 %v8424_v35, %v27085_v53 }
 0x736   : > { %11950 = vmatpush1.xpose.msk.msra.mxu0 %vm27083_vm14, %v26561_v10 }
 0x737   : > { %8783 = vmatpush1.xpose.msra.mxu1 %v27081_v37  ;;  %13680 = vmatprep.subr.bf16.mxu0 %v27084_v50 }
 0x738   : > { %13700 = vmatprep.subr.msk.bf16.mxu1 %vm27050_vm15, %v26984_v0 }
 0x746   : > { %v7130_v48 = vpop.f32.mrb[0].mxu1 }
 0x747   : > { %v8324_v47 = vsel %vm8321_vm8, %v7130_v48, 0.0  ;;  %v7132_v11 = vpop.f32.mrb[1].mxu1 }
 0x748   : > { %v6537_v55 = vpop.f32.mrb[0].mxu0  ;;  %v8332_v50 = vmul.f32 %v8324_v47, %v8324_v47  ;;  %v8325_v57 = vsel %vm8321_vm8, %v7132_v11, 0.0  ;;  %v8419_v35 = vcombine.low %v7130_v48, %v7132_v11 }
 0x749   : > { %v8322_v37 = vsel %vm8321_vm8, %v6537_v55, 0.0  ;;  %v6539_v63 = vpop.f32.mrb[1].mxu0  ;;  %v8333_v20 = vmul.f32 %v8325_v57, %v8325_v57 }
 0x74a   : > { %v8330_v49 = vmul.f32 %v8322_v37, %v8322_v37  ;;  %v8323_v44 = vsel %vm8321_vm8, %v6539_v63, 0.0  ;;  %v8418_v43 = vcombine.low %v6537_v55, %v6539_v63  ;;  %v8350_v8 = vrot.slane %v8332_v50, 4 }
 0x74b   : > { %v8331_v61 = vmul.f32 %v8323_v44, %v8323_v44  ;;  %v22578_v32 = vrot.slane %v8419_v35, %v22564_v18  ;;  %v8356_v5 = vrot.slane %v8333_v20, 4 }
 0x74c   : > { %v8338_v40 = vrot.slane %v8330_v49, 4  ;;  %v22575_v2 = vrot.slane %v8418_v43, %v22564_v18  ;;  %v8351_v37 = vadd.f32 %v8350_v8, %v8332_v50 }
 0x74d   : > { %v8344_v29 = vrot.slane %v8331_v61, 4  ;;  %v8357_v22 = vadd.f32 %v8356_v5, %v8333_v20 }
 0x74e   : > { %v8339_v47 = vadd.f32 %v8338_v40, %v8330_v49  ;;  %v8352_v41 = vrot.slane %v8351_v37, 2 }
 0x74f   : > { %v8345_v27 = vadd.f32 %v8344_v29, %v8331_v61  ;;  %v8358_v43 = vrot.slane %v8357_v22, 2 }
 0x750   : > { %v8340_v9 = vrot.slane %v8339_v47, 2  ;;  %v8353_v30 = vadd.f32 %v8352_v41, %v8351_v37 }
 0x751   : > { %v8346_v31 = vrot.slane %v8345_v27, 2  ;;  %v8359_v33 = vadd.f32 %v8358_v43, %v8357_v22 }
 0x752   : > { %v8341_v39 = vadd.f32 %v8340_v9, %v8339_v47  ;;  %v8354_v38 = vrot.slane %v8353_v30, 1 }
 0x753   : > { %v8347_v12 = vadd.f32 %v8346_v31, %v8345_v27  ;;  %v8360_v40 = vrot.slane %v8359_v33, 1 }
 0x754   : > { %v8342_v57 = vrot.slane %v8341_v39, 1  ;;  %v8355_v49 = vadd.f32 %v8354_v38, %v8353_v30 }
 0x755   : > { %v8348_v35 = vrot.slane %v8347_v12, 1  ;;  %v8361_v50 = vadd.f32 %v8360_v40, %v8359_v33 }
 0x756   : > { %v8343_v46 = vadd.f32 %v8342_v57, %v8341_v39  ;;  %v8388_v29 = vadd.f32 1.0, %v8355_v49 }
 0x757   : > { %v8349_v8 = vadd.f32 %v8348_v35, %v8347_v12  ;;  %v8389_v19 = vadd.f32 1.0, %v8361_v50 }
 0x758   : > { %v8386_v61 = vadd.f32 1.0, %v8343_v46 }
 0x759   : > { %v8387_v44 = vadd.f32 1.0, %v8349_v8 }
 0x75a   : > { %14302 = vrcp.f32 %v8386_v61 }
 0x75b   : > { %14304 = vrcp.f32 %v8388_v29 }
 0x75c   : > { %14306 = vrcp.f32 %v8387_v44 }
 0x75d   : > { %14308 = vrcp.f32 %v8389_v19 }
 0x764   : > { %v14303_v41 = vpop.eup %14302 }
 0x765   : > { %v14305_v9 = vpop.eup %14304  ;;  %v8473_v31 = vmul.f32 %v14303_v41, %v6537_v55 }
 0x766   : > { %v14307_v27 = vpop.eup %14306  ;;  %v8475_v5 = vmul.f32 %v14305_v9, %v7130_v48 }
 0x767   : > { %v14309_v22 = vpop.eup %14308  ;;  %v8474_v20 = vmul.f32 %v14307_v27, %v6539_v63 }
 0x768   : > { %v8476_v39 = vmul.f32 %v14309_v22, %v7132_v11 }
 0x769   : > { %v8489_v30 = vcombine.low %v8473_v31, %v8474_v20 }
 0x76a   : > { %v8490_v38 = vcombine.low %v8475_v5, %v8476_v39 }
 0x76b   : > { %v22583_v46 = vrot.slane %v8489_v30, %v22564_v18 }
 0x76c   : > { %v22586_v12 = vrot.slane %v8490_v38, %v22564_v18 }
 0x7db   : > { %v7723_v19 = vpop.f32.mrb[2].mxu0 }
 0x7dc   : > { %v8316_v47 = vpop.f32.mrb[2].mxu1  ;;  %v8326_v55 = vsel %vm8321_vm8, %v7723_v19, 0.0  ;;  %v7725_v11 = vpop.f32.mrb[3].mxu0 }
 0x7dd   : > { %v8328_v63 = vsel %vm8321_vm8, %v8316_v47, 0.0  ;;  %v8318_v48 = vpop.f32.mrb[3].mxu1  ;;  %v8334_v37 = vmul.f32 %v8326_v55, %v8326_v55  ;;  %v8327_v43 = vsel %vm8321_vm8, %v7725_v11, 0.0  ;;  %v8420_v57 = vcombine.low %v7723_v19, %v7725_v11 }
 0x7de   : > { %v8336_v44 = vmul.f32 %v8328_v63, %v8328_v63  ;;  %v8335_v35 = vmul.f32 %v8327_v43, %v8327_v43  ;;  %v8329_v49 = vsel %vm8321_vm8, %v8318_v48, 0.0  ;;  %v8421_v40 = vcombine.low %v8316_v47, %v8318_v48 }
 0x7df   : > { %v8362_v8 = vrot.slane %v8334_v37, 4  ;;  %v8442_v29 = vrot.slane %v8420_v57, %v22564_v18  ;;  %v8337_v50 = vmul.f32 %v8329_v49, %v8329_v49  ;;  %v27086_v55 = vcombine.low %v22575_v2, %v22578_v32 }
 0x7e0   : > { %v8374_v61 = vrot.slane %v8336_v44, 4  ;;  %v8368_v41 = vrot.slane %v8335_v35, 4  ;;  %v8449_v9 = vrot.slane %v8421_v40, %v22564_v18  ;;  %vm27091_vm8 = vcmp.eq.s32.totalorder %v27085_v53, 0  ;;  %v27260_v53 = vld [vmem:[#allocation529_spill] sm:$0xff] }
 0x7e1   : > { %v8363_v31 = vadd.f32 %v8362_v8, %v8334_v37  ;;  %v8380_v5 = vrot.slane %v8337_v50, 4  ;;  %v8458_v63 = vrot.slane %v27086_v55, %v22564_v18  ;;  %vm27092_vm4 = vmmov %vm27091_vm8 }
 0x7e2   : > { %v8375_v27 = vadd.f32 %v8374_v61, %v8336_v44  ;;  %v8369_v22 = vadd.f32 %v8368_v41, %v8335_v35  ;;  %v8451_v20 = vcombine.low %v8442_v29, %v8449_v9 }
 0x7e3   : > { %v8364_v39 = vrot.slane %v8363_v31, 2  ;;  %v8381_v38 = vadd.f32 %v8380_v5, %v8337_v50 }
 0x7e4   : > { %v8376_v30 = vrot.slane %v8375_v27, 2  ;;  %v8370_v43 = vrot.slane %v8369_v22, 2  ;;  %v8465_v57 = vrot.slane %v8451_v20, %v22564_v18 }
 0x7e5   : > { %v8365_v49 = vadd.f32 %v8364_v39, %v8363_v31  ;;  %v8382_v52 = vrot.slane %v8381_v38, 2 }
 0x7e6   : > { %v8377_v33 = vadd.f32 %v8376_v30, %v8375_v27  ;;  %v8371_v40 = vadd.f32 %v8370_v43, %v8369_v22  ;;  %v8466_v37 = vcombine.low %v8458_v63, %v8465_v57  ;;  %v8469_v63 = vld [vmem:[#allocation10] sm:$0xff] }
 0x7e7   : > { %v8366_v44 = vrot.slane %v8365_v49, 1  ;;  %v8383_v35 = vadd.f32 %v8382_v52, %v8381_v38 }
 0x7e8   : > { %v8378_v8 = vrot.slane %v8377_v33, 1  ;;  %v8372_v61 = vrot.slane %v8371_v40, 1 }
 0x7e9   : > { %v8367_v29 = vadd.f32 %v8366_v44, %v8365_v49  ;;  %v8384_v50 = vrot.slane %v8383_v35, 1 }
 0x7ea   : > { %v8379_v41 = vadd.f32 %v8378_v8, %v8377_v33  ;;  %v8373_v9 = vadd.f32 %v8372_v61, %v8371_v40 }
 0x7eb   : > { %v8390_v5 = vadd.f32 1.0, %v8367_v29  ;;  %v8385_v2 = vadd.f32 %v8384_v50, %v8383_v35 }
 0x7ec   : > { %v8392_v42 = vadd.f32 1.0, %v8379_v41  ;;  %v8391_v32 = vadd.f32 1.0, %v8373_v9 }
 0x7ed   : > { %14310 = vrcp.f32 %v8390_v5  ;;  %v8393_v55 = vadd.f32 1.0, %v8385_v2  ;;  %v27089_v2 = vld [vmem:[#allocation20_spill] sm:$0xff] }
 0x7ee   : > { %14312 = vrcp.f32 %v8392_v42  ;;  %v27087_v42 = vcombine.high %v22583_v46, %v22586_v12  ;;  %v27090_v12 = vld [vmem:[#allocation19_spill] sm:$0xff] }
 0x7ef   : > { %14314 = vrcp.f32 %v8391_v32 }
 0x7f0   : > { %14316 = vrcp.f32 %v8393_v55  ;;  %v8529_v44 = vrot.slane %v27087_v42, %v22564_v18  ;;  %v27098_v42 = vld [vmem:[#allocation465_spill] sm:$0xff] }
 0x7f1   : > { %14318 = vrcp.f32 %v8469_v63  ;;  %v27093_v63 = vld [vmem:[#allocation424_spill] sm:$0xff] }
 0x7f7   : > { %v14311_v31 = vpop.eup %14310 }
 0x7f8   : > { %v14313_v27 = vpop.eup %14312  ;;  %v8477_v22 = vmul.f32 %v14311_v31, %v7723_v19 }
 0x7f9   : > { %v14315_v20 = vpop.eup %14314  ;;  %v8479_v39 = vmul.f32 %v14313_v27, %v8316_v47 }
 0x7fa   : > { %v14317_v52 = vpop.eup %14316  ;;  %v8478_v30 = vmul.f32 %v14315_v20, %v7725_v11 }
 0x7fb   : > { %v8480_v38 = vmul.f32 %v14317_v52, %v8318_v48  ;;  %v14319_v11 = vpop.eup %14318  ;;  %v27088_v48 = vld [vmem:[#allocation17_spill] sm:$0xff] }
 0x7fc   : > { %v8491_v33 = vcombine.low %v8477_v22, %v8478_v30  ;;  %v8468_v8 = vmul.f32 %v27088_v48, %v8466_v37  ;;  %v8471_v35 = vmul.f32 0.5, %v14319_v11  ;;  %v27102_v11 = vld [vmem:[#allocation426_spill] sm:$0xff]  ;;  %v27103_v48 = vld [vmem:[#allocation428_spill] sm:$0xff] }
 0x7fd   : > { %v8492_v43 = vcombine.low %v8479_v39, %v8480_v38 }
 0x7fe   : > { %v8513_v57 = vrot.slane %v8491_v33, %v22564_v18  ;;  %v8472_v61 = vmul.f32 %v8471_v35, %v8468_v8  ;;  %v27104_v8 = vld [vmem:[#allocation441_spill] sm:$0xff]  ;;  %v27105_v35 = vld [vmem:[#allocation443_spill] sm:$0xff] }
 0x7ff   : > { %v8520_v49 = vrot.slane %v8492_v43, %v22564_v18  ;;  %v27094_v43 = vld [vmem:[#allocation457_spill] sm:$0xff] }
 0x801   : > { %v8522_v40 = vcombine.high %v8513_v57, %v8520_v49  ;;  %v27095_v57 = vld [vmem:[#allocation459_spill] sm:$0xff]  ;;  %v27096_v49 = vld [vmem:[#allocation461_spill] sm:$0xff] }
 0x803   : > { %v8536_v19 = vrot.slane %v8522_v40, %v22564_v18  ;;  %v27097_v40 = vld [vmem:[#allocation463_spill] sm:$0xff] }
 0x805   : > { %v8537_v47 = vcombine.low %v8529_v44, %v8536_v19  ;;  %v27099_v44 = vld [vmem:[#allocation467_spill] sm:$0xff]  ;;  %v27100_v19 = vld [vmem:[#allocation469_spill] sm:$0xff] }
 0x807   : > { %14320 = vrcp.f32 %v8537_v47  ;;  %v27101_v47 = vld [vmem:[#allocation471_spill] sm:$0xff] }
 0x811   : > { %v14321_v29 = vpop.eup %14320 }
 0x812   : > { %v8540_v41 = vmul.f32 %v14321_v29, %v8472_v61 }
 0x814   : > { %14322 = vlog2.f32 %v8540_v41 }
 0x81e   : > { %v14323_v50 = vpop.eup %14322 }
 0x81f   : > { %v8542_v9 = vmul.f32 0.6931472, %v14323_v50  ;;  %v27115_v50 = vld [vmem:[#allocation415_spill] sm:$0xff] }
 0x821   : > { %v22613_v5 = vmul.f32 %v8542_v9, %v8472_v61  ;;  %v27116_v9 = vld [vmem:[#allocation431_spill] sm:$0xff] }
 0x823   : > { %v8552_v46 = vrot.slane %v22613_v5, %v27089_v2  ;;  %v8548_v18 = vrot.slane %v22613_v5, %v27090_v12  ;;  %v8560_v61 = vrot.slane %v22613_v5, %v27111_v15  ;;  %v27157_v15 = vld [vmem:[#allocation456_spill] sm:$0xff] }
 0x825   : > { %v8586_v32 = vsel %vm27091_vm8, %v8552_v46, 0.0  ;;  %v8585_v37 = vsel %vm27092_vm4, %v8548_v18, 0.0  ;;  %v27118_v46 = vld [vmem:[#allocation400_spill] sm:$0xff]  ;;  %v27120_v18 = vld [vmem:[#allocation433_spill] sm:$0xff] }
 0x826   : > { %v8658_v55 = vand.u32 4294901760, %v8586_v32  ;;  %v22623_v31 = vand.u32 4294901760, %v8585_v37 }
 0x828   : > { %8827 = vmatprep.mubr.f32.mxu1 %v8658_v55  ;;  %v8665_v27 = vsub.f32 %v8585_v37, %v22623_v31  ;;  %v8659_v22 = vsub.f32 %v8586_v32, %v8658_v55  ;;  %v27121_v32 = vld [vmem:[#allocation377_spill] sm:$0xff]  ;;  %v27123_v37 = vld [vmem:[#allocation379_spill] sm:$0xff] }
 0x829   : > { %8829 = vmatmul.mubr.f32.vlgmr.msra.gmra.mrb[4].mxu1 %v22623_v31 }
 0x82a   : > { %13702 = vmatpush1.bf16.xpose.msk.msra.mxu1 %vm27053_vm0, %v26984_v0  ;;  %v8660_v20 = vand.u32 4294901760, %v8659_v22  ;;  %v8666_v39 = vand.u32 4294901760, %v8665_v27 }
 0x82b   : > { %13704 = vmatprep.subr.msk.bf16.mxu1 %vm27056_vm3, %v26984_v0 }
 0x82c   : > { %8997 = vmatprep.mubr.f32.mxu1 %v8660_v20  ;;  %v8661_v52 = vsub.f32 %v8659_v22, %v8660_v20  ;;  %v8667_v30 = vsub.f32 %v8665_v27, %v8666_v39  ;;  %v27129_v20 = vld [vmem:[#allocation383_spill] sm:$0xff] }
 0x82e   : > { %v8662_v38 = vand.u32 4294901760, %v8661_v52  ;;  %v8668_v33 = vand.u32 4294901760, %v8667_v30  ;;  %v27134_v52 = vld [vmem:[#allocation430_spill] sm:$0xff]  ;;  %v27135_v30 = vld [vmem:[#allocation387_spill] sm:$0xff] }
 0x830   : > { %8663 = vmatprep.mubr.f32.mxu0 %v8662_v38  ;;  %v27137_v38 = vld [vmem:[#allocation436_spill] sm:$0xff] }
 0x831   : > { %8669 = vmatmul.mubr.f32.vlgmr.msra.gmra.mrb[4].mxu0 %v8668_v33  ;;  %v27138_v33 = vld [vmem:[#allocation389_spill] sm:$0xff] }
 0x832   : > { %13682 = vmatpush1.bf16.xpose.msra.mxu0 %v27093_v63  ;;  %13706 = vmatpush1.bf16.xpose.msk.msra.mxu1 %vm27059_vm2, %v26984_v0  ;;  %v27140_v63 = vld [vmem:[#allocation438_spill] sm:$0xff] }
 0x833   : > { %8922 = vmatprep.mubr.f32.mxu0 %v8659_v22  ;;  %13684 = vmatprep.subr.bf16.mxu0 %v27094_v43  ;;  %v27128_v22 = vld [vmem:[#allocation410_spill] sm:$0xff] }
 0x834   : > { %13708 = vmatprep.subr.msk.bf16.mxu1 %vm27062_vm10, %v26984_v0  ;;  %v27141_v43 = vld [vmem:[#allocation21_spill] sm:$0xff] }
 0x83a   : > { %13686 = vmatpush1.bf16.xpose.msra.mxu0 %v27095_v57  ;;  %13710 = vmatpush1.bf16.xpose.msk.msra.mxu1 %vm27065_vm6, %v26984_v0  ;;  %v8556_v57 = vrot.slane %v22613_v5, %v27141_v43 }
 0x83b   : > { %13688 = vmatprep.subr.bf16.mxu0 %v27096_v49  ;;  %13712 = vmatprep.subr.msk.bf16.mxu1 %vm27068_vm5, %v26984_v0 }
 0x842   : > { %13690 = vmatpush1.bf16.xpose.msra.mxu0 %v27097_v40  ;;  %13714 = vmatpush1.bf16.xpose.msk.msra.mxu1 %vm27071_vm11, %v26984_v0  ;;  %v27143_v40 = vld [vmem:[#allocation392_spill] sm:$0xff] }
 0x843   : > { %13692 = vmatprep.subr.bf16.mxu0 %v27098_v42  ;;  %13716 = vmatprep.subr.msk.bf16.mxu1 %vm27074_vm13, %v26984_v0  ;;  %v27145_v42 = vld [vmem:[#allocation440_spill] sm:$0xff] }
 0x84a   : > { %13694 = vmatpush1.bf16.xpose.msra.mxu0 %v27099_v44  ;;  %13718 = vmatpush1.bf16.xpose.msk.msra.mxu1 %vm27077_vm12, %v26984_v0  ;;  %v27146_v44 = vld [vmem:[#allocation394_spill] sm:$0xff] }
 0x84b   : > { %13696 = vmatprep.subr.bf16.mxu0 %v27100_v19  ;;  %11971 = vmatprep.subr.msk.mxu1 %vm27080_vm9, %v26561_v10 }
 0x852   : > { %13698 = vmatpush1.bf16.xpose.msra.mxu0 %v27101_v47  ;;  %11972 = vmatpush1.xpose.msk.msra.mxu1 %vm27083_vm14, %v26561_v10  ;;  %v27148_v47 = vld [vmem:[#allocation453_spill] sm:$0xff] }
 0x853   : > { %13740 = vmatprep.subr.msk.bf16.mxu1 %vm27050_vm15, %v26984_v0  ;;  %8875 = vmatprep.subr.mxu0 %v27102_v11  ;;  %vm27147_vm15 = vnez %v27146_v44  ;;  %v27180_v44 = vld [vmem:[#allocation434_spill] sm:$0xff] }
 0x855   : > { %9001 = vmatmul.mubr.f32.vlgmr.msra.gmra.mrb[6].mxu1 %v8666_v39  ;;  %v27131_v39 = vld [vmem:[#allocation414_spill] sm:$0xff] }
 0x856   : > { %13742 = vmatpush1.bf16.xpose.msk.msra.mxu1 %vm27053_vm0, %v26984_v0  ;;  %9187 = vmatprep.mubr.f32.mxu1 %v8658_v55  ;;  %vm27136_vm0 = vnez %v27135_v30 }
 0x857   : > { %13744 = vmatprep.subr.msk.bf16.mxu1 %vm27056_vm3, %v26984_v0  ;;  %vm27130_vm3 = vnez %v27129_v20  ;;  %v27176_v20 = vld [vmem:[#allocation408_spill] sm:$0xff] }
 0x85a   : > { %8877 = vmatpush1.xpose.msra.mxu0 %v27103_v48  ;;  %v27149_v48 = vld [vmem:[#allocation397_spill] sm:$0xff] }
 0x85b   : > { %13720 = vmatprep.subr.bf16.mxu0 %v27104_v8  ;;  %v27151_v8 = vld [vmem:[#allocation421_spill] sm:$0xff] }
 0x85d   : > { %8925 = vmatmul.mubr.f32.vlgmr.msra.gmra.mrb[6].mxu0 %v8665_v27  ;;  %v27126_v27 = vld [vmem:[#allocation381_spill] sm:$0xff] }
 0x85e   : > { %13722 = vmatpush1.bf16.xpose.msra.mxu0 %v27105_v35  ;;  %9115 = vmatprep.mubr.f32.mxu0 %v8658_v55  ;;  %v27125_v55 = vld [vmem:[#allocation404_spill] sm:$0xff]  ;;  %v27152_v35 = vld [vmem:[#allocation192_spill] sm:$0xff] }
 0x85f   : > { %13746 = vmatpush1.bf16.xpose.msk.msra.mxu1 %vm27059_vm2, %v26984_v0  ;;  %13724 = vmatprep.subr.bf16.mxu0 %v27106_v58  ;;  %vm27139_vm2 = vnez %v27138_v33  ;;  %v27178_v33 = vld [vmem:[#allocation416_spill] sm:$0xff] }
 0x860   : > { %13748 = vmatprep.subr.msk.bf16.mxu1 %vm27062_vm10, %v26984_v0  ;;  %vm27112_vm10 = vmmov %vm27092_vm4  ;;  %vm27124_vm4 = vnez %v27123_v37  ;;  %v27174_v37 = vld [vmem:[#allocation405_spill] sm:$0xff] }
 0x861   : > { %v8588_v29 = vsel %vm27112_vm10, %v8560_v61, 0.0  ;;  %v27158_v61 = vld [vmem:[#allocation458_spill] sm:$0xff] }
 0x862   : > { %v22717_v1 = vand.u32 4294901760, %v8588_v29 }
 0x864   : > { %v9259_v41 = vsub.f32 %v8588_v29, %v22717_v1  ;;  %v27159_v29 = vld [vmem:[#allocation460_spill] sm:$0xff] }
 0x866   : > { %13726 = vmatpush1.bf16.xpose.msra.mxu0 %v27107_v3  ;;  %v9260_v2 = vand.u32 4294901760, %v9259_v41 }
 0x867   : > { %13750 = vmatpush1.bf16.xpose.msk.msra.mxu1 %vm27065_vm6, %v26984_v0  ;;  %13728 = vmatprep.subr.bf16.mxu0 %v27108_v16  ;;  %vm27153_vm6 = vnez %v27152_v35  ;;  %v27154_v16 = vld [vmem:[#allocation190_spill] sm:$0xff] }
 0x868   : > { %13752 = vmatprep.subr.msk.bf16.mxu1 %vm27068_vm5, %v26984_v0  ;;  %v9261_v12 = vsub.f32 %v9259_v41, %v9260_v2 }
 0x86a   : > { %v9262_v62 = vand.u32 4294901760, %v9261_v12  ;;  %v27169_v12 = vld [vmem:[#allocation444_spill] sm:$0xff] }
 0x86e   : > { %13730 = vmatpush1.bf16.xpose.msra.mxu0 %v27109_v26 }
 0x86f   : > { %13754 = vmatpush1.bf16.xpose.msk.msra.mxu1 %vm27071_vm11, %v26984_v0  ;;  %13732 = vmatprep.subr.bf16.mxu0 %v27110_v54  ;;  %vm27122_vm11 = vnez %v27121_v32  ;;  %v27156_v54 = vld [vmem:[#allocation423_spill] sm:$0xff]  ;;  %v27171_v32 = vld [vmem:[#allocation448_spill] sm:$0xff] }
 0x870   : > { %13756 = vmatprep.subr.msk.bf16.mxu1 %vm27074_vm13, %v26984_v0  ;;  %vm27144_vm13 = vnez %v27143_v40 }
 0x876   : > { %13734 = vmatpush1.bf16.xpose.msra.mxu0 %v27113_v21  ;;  %v27160_v21 = vld [vmem:[#allocation462_spill] sm:$0xff] }
 0x877   : > { %13758 = vmatpush1.bf16.xpose.msk.msra.mxu1 %vm27077_vm12, %v26984_v0  ;;  %13736 = vmatprep.subr.bf16.mxu0 %v27114_v45  ;;  %vm27142_vm12 = vmmov %vm27091_vm8  ;;  %vm27155_vm8 = vnez %v27154_v16  ;;  %v27161_v45 = vld [vmem:[#allocation464_spill] sm:$0xff]  ;;  %v27198_v16 = vld [vmem:[#allocation549_spill] sm:$0xff] }
 0x878   : > { %11993 = vmatprep.subr.msk.mxu1 %vm27080_vm9, %v26561_v10  ;;  %v8587_v49 = vsel %vm27142_vm12, %v8556_v57, 0.0  ;;  %vm27150_vm9 = vnez %v27149_v48 }
 0x879   : > { %v22770_v19 = vand.u32 4294901760, %v8587_v49 }
 0x87b   : > { %v9265_v11 = vsub.f32 %v8587_v49, %v22770_v19 }
 0x87d   : > { %v9266_v58 = vand.u32 4294901760, %v9265_v11 }
 0x87e   : > { %13738 = vmatpush1.bf16.xpose.msra.mxu0 %v27115_v50  ;;  %v27163_v50 = vld [vmem:[#allocation468_spill] sm:$0xff] }
 0x87f   : > { %11994 = vmatpush1.xpose.msk.msra.mxu1 %vm27083_vm14, %v26561_v10  ;;  %9068 = vmatprep.subr.mxu0 %v27116_v9  ;;  %vm27127_vm14 = vnez %v27126_v27  ;;  %v9267_v3 = vsub.f32 %v9265_v11, %v9266_v58  ;;  %v27164_v9 = vld [vmem:[#allocation470_spill] sm:$0xff] }
 0x880   : > { %13780 = vmatprep.subr.bf16.mxu1 %v27117_v23  ;;  %v27165_v23 = vld [vmem:[#allocation472_spill] sm:$0xff] }
 0x881   : > { %v9268_v26 = vand.u32 4294901760, %v9267_v3  ;;  %v27196_v3 = vld [vmem:[#allocation528_spill] sm:$0xff] }
 0x882   : > { %9189 = vmatmul.mubr.f32.vlgmr.msra.gmra.mrb[8].mxu1 %v22623_v31 }
 0x883   : > { %13782 = vmatpush1.bf16.xpose.msra.mxu1 %v27118_v46  ;;  %9427 = vmatprep.mubr.f32.mxu1 %v22717_v1  ;;  %v27167_v46 = vld [vmem:[#allocation429_spill] sm:$0xff] }
 0x884   : > { %13784 = vmatprep.subr.bf16.mxu1 %v27119_v36  ;;  %v27168_v36 = vld [vmem:[#allocation442_spill] sm:$0xff] }
 0x886   : > { %9071 = vmatpush1.xpose.msra.mxu0 %v27120_v18  ;;  %v27170_v18 = vld [vmem:[#allocation446_spill] sm:$0xff] }
 0x887   : > { %13760 = vmatprep.subr.msk.bf16.mxu0 %vm27122_vm11, %v26984_v0 }
 0x889   : > { %9117 = vmatmul.mubr.f32.vlgmr.msra.gmra.mrb[8].mxu0 %v22623_v31  ;;  %v27132_v31 = vld [vmem:[#allocation385_spill] sm:$0xff] }
 0x88a   : > { %13762 = vmatpush1.bf16.xpose.msk.msra.mxu0 %vm27124_vm4, %v26984_v0  ;;  %9263 = vmatprep.mubr.f32.mxu0 %v9262_v62  ;;  %vm27133_vm5 = vnez %v27132_v31  ;;  %v27172_v62 = vld [vmem:[#allocation451_spill] sm:$0xff] }
 0x88b   : > { %13786 = vmatpush1.bf16.xpose.msra.mxu1 %v27125_v55  ;;  %13764 = vmatprep.subr.msk.bf16.mxu0 %vm27127_vm14, %v26984_v0  ;;  %v27175_v55 = vld [vmem:[#allocation24_spill] sm:$0xff] }
 0x88c   : > { %13788 = vmatprep.subr.bf16.mxu1 %v27128_v22  ;;  %v8568_v27 = vrot.slane %v22613_v5, %v27175_v55  ;;  %v27212_v55 = vld [vmem:[#allocation498_spill] sm:$0xff] }
 0x88e   : > { %v8590_v22 = vsel %vm27112_vm10, %v8568_v27, 0.0  ;;  %v27213_v27 = vld [vmem:[#allocation534_spill] sm:$0xff] }
 0x892   : > { %13766 = vmatpush1.bf16.xpose.msk.msra.mxu0 %vm27130_vm3, %v26984_v0 }
 0x893   : > { %13790 = vmatpush1.bf16.xpose.msra.mxu1 %v27131_v39  ;;  %13768 = vmatprep.subr.msk.bf16.mxu0 %vm27133_vm5, %v26984_v0  ;;  %v27177_v39 = vld [vmem:[#allocation412_spill] sm:$0xff] }
 0x894   : > { %13792 = vmatprep.subr.bf16.mxu1 %v27134_v52  ;;  %v22881_v52 = vand.u32 4294901760, %v8590_v22 }
 0x89a   : > { %13770 = vmatpush1.bf16.xpose.msk.msra.mxu0 %vm27136_vm0, %v26984_v0 }
 0x89b   : > { %13794 = vmatpush1.bf16.xpose.msra.mxu1 %v27137_v38  ;;  %13772 = vmatprep.subr.msk.bf16.mxu0 %vm27139_vm2, %v26984_v0  ;;  %v9859_v38 = vsub.f32 %v8590_v22, %v22881_v52 }
 0x89c   : > { %13796 = vmatprep.subr.bf16.mxu1 %v27140_v63  ;;  %v27179_v63 = vld [vmem:[#allocation432_spill] sm:$0xff] }
 0x89d   : > { %v9860_v57 = vand.u32 4294901760, %v9859_v38 }
 0x8a2   : > { %13774 = vmatpush1.bf16.xpose.msk.msra.mxu0 %vm27144_vm13, %v26984_v0 }
 0x8a3   : > { %13798 = vmatpush1.bf16.xpose.msra.mxu1 %v27145_v42  ;;  %13776 = vmatprep.subr.msk.bf16.mxu0 %vm27147_vm15, %v26984_v0  ;;  %v9861_v42 = vsub.f32 %v9859_v38, %v9860_v57 }
 0x8a4   : > { %9378 = vmatprep.subr.mxu1 %v27148_v47 }
 0x8a5   : > { %v9862_v47 = vand.u32 4294901760, %v9861_v42 }
 0x8aa   : > { %13778 = vmatpush1.bf16.xpose.msk.msra.mxu0 %vm27150_vm9, %v26984_v0 }
 0x8ab   : > { %9383 = vmatpush1.xpose.msra.mxu1 %v27151_v8  ;;  %12015 = vmatprep.subr.msk.mxu0 %vm27153_vm6, %v26561_v10 }
 0x8ac   : > { %13820 = vmatprep.subr.msk.bf16.mxu1 %vm27122_vm11, %v26984_v0 }
 0x8ae   : > { %9429 = vmatmul.mubr.f32.vlgmr.msra.gmra.mrb[10].mxu1 %v22770_v19 }
 0x8af   : > { %13822 = vmatpush1.bf16.xpose.msk.msra.mxu1 %vm27124_vm4, %v26984_v0  ;;  %9597 = vmatprep.mubr.f32.mxu1 %v9260_v2  ;;  %v27166_v2 = vld [vmem:[#allocation427_spill] sm:$0xff] }
 0x8b0   : > { %13824 = vmatprep.subr.msk.bf16.mxu1 %vm27127_vm14, %v26984_v0 }
 0x8b2   : > { %12016 = vmatpush1.xpose.msk.msra.mxu0 %vm27155_vm8, %v26561_v10 }
 0x8b3   : > { %13800 = vmatprep.subr.bf16.mxu0 %v27156_v54 }
 0x8b5   : > { %9269 = vmatmul.mubr.f32.vlgmr.msra.gmra.mrb[10].mxu0 %v9268_v26  ;;  %v27199_v26 = vld [vmem:[#allocation196_spill] sm:$0xff] }
 0x8b6   : > { %13802 = vmatpush1.bf16.xpose.msra.mxu0 %v27157_v15  ;;  %9522 = vmatprep.mubr.f32.mxu0 %v9259_v41  ;;  %v27162_v41 = vld [vmem:[#allocation466_spill] sm:$0xff] }
 0x8b7   : > { %13826 = vmatpush1.bf16.xpose.msk.msra.mxu1 %vm27130_vm3, %v26984_v0  ;;  %13804 = vmatprep.subr.bf16.mxu0 %v27158_v61 }
 0x8b8   : > { %13828 = vmatprep.subr.msk.bf16.mxu1 %vm27133_vm5, %v26984_v0 }
 0x8be   : > { %13806 = vmatpush1.bf16.xpose.msra.mxu0 %v27159_v29 }
 0x8bf   : > { %13830 = vmatpush1.bf16.xpose.msk.msra.mxu1 %vm27136_vm0, %v26984_v0  ;;  %13808 = vmatprep.subr.bf16.mxu0 %v27160_v21 }
 0x8c0   : > { %13832 = vmatprep.subr.msk.bf16.mxu1 %vm27139_vm2, %v26984_v0 }
 0x8c6   : > { %13810 = vmatpush1.bf16.xpose.msra.mxu0 %v27161_v45 }
 0x8c7   : > { %13834 = vmatpush1.bf16.xpose.msk.msra.mxu1 %vm27144_vm13, %v26984_v0  ;;  %13812 = vmatprep.subr.bf16.mxu0 %v27162_v41  ;;  %v27201_v41 = vld [vmem:[#allocation194_spill] sm:$0xff] }
 0x8c8   : > { %13836 = vmatprep.subr.msk.bf16.mxu1 %vm27147_vm15, %v26984_v0 }
 0x8ce   : > { %13814 = vmatpush1.bf16.xpose.msra.mxu0 %v27163_v50 }
 0x8cf   : > { %13838 = vmatpush1.bf16.xpose.msk.msra.mxu1 %vm27150_vm9, %v26984_v0  ;;  %13816 = vmatprep.subr.bf16.mxu0 %v27164_v9  ;;  %v27203_v9 = vld [vmem:[#allocation551_spill] sm:$0xff] }
 0x8d0   : > { %12037 = vmatprep.subr.msk.mxu1 %vm27153_vm6, %v26561_v10 }
 0x8d6   : > { %13818 = vmatpush1.bf16.xpose.msra.mxu0 %v27165_v23  ;;  %v27204_v23 = vld [vmem:[#allocation553_spill] sm:$0xff] }
 0x8d7   : > { %12038 = vmatpush1.xpose.msk.msra.mxu1 %vm27155_vm8, %v26561_v10  ;;  %9475 = vmatprep.subr.mxu0 %v27166_v2  ;;  %v27205_v2 = vld [vmem:[#allocation555_spill] sm:$0xff] }
 0x8d8   : > { %13860 = vmatprep.subr.msk.bf16.mxu1 %vm27122_vm11, %v26984_v0  ;;  %vm27181_vm11 = vnez %v26985_v56  ;;  %v27216_v56 = vld [vmem:[#allocation493_spill] sm:$0xff] }
 0x8da   : > { %9601 = vmatmul.mubr.f32.vlgmr.msra.gmra.mrb[12].mxu1 %v9266_v58 }
 0x8db   : > { %13862 = vmatpush1.bf16.xpose.msk.msra.mxu1 %vm27124_vm4, %v26984_v0  ;;  %9787 = vmatprep.mubr.f32.mxu1 %v22717_v1  ;;  %vm27182_vm4 = vnez %v26988_v13  ;;  %v27217_v13 = vld [vmem:[#allocation501_spill] sm:$0xff] }
 0x8dc   : > { %13864 = vmatprep.subr.msk.bf16.mxu1 %vm27127_vm14, %v26984_v0  ;;  %vm27185_vm14 = vnez %v26995_v7  ;;  %v27221_v7 = vld [vmem:[#allocation509_spill] sm:$0xff] }
 0x8de   : > { %9477 = vmatpush1.xpose.msra.mxu0 %v27167_v46  ;;  %v27206_v46 = vld [vmem:[#allocation409_spill] sm:$0xff] }
 0x8df   : > { %13840 = vmatprep.subr.bf16.mxu0 %v27168_v36  ;;  %v27207_v36 = vld [vmem:[#allocation483_spill] sm:$0xff] }
 0x8e1   : > { %9525 = vmatmul.mubr.f32.vlgmr.msra.gmra.mrb[12].mxu0 %v9265_v11  ;;  %v27192_v11 = vld [vmem:[#allocation545_spill] sm:$0xff] }
 0x8e2   : > { %13842 = vmatpush1.bf16.xpose.msra.mxu0 %v27169_v12  ;;  %9715 = vmatprep.mubr.f32.mxu0 %v22717_v1  ;;  %v27173_v1 = vld [vmem:[#allocation454_spill] sm:$0xff]  ;;  %v27208_v12 = vld [vmem:[#allocation485_spill] sm:$0xff] }
 0x8e3   : > { %13866 = vmatpush1.bf16.xpose.msk.msra.mxu1 %vm27130_vm3, %v26984_v0  ;;  %13844 = vmatprep.subr.bf16.mxu0 %v27170_v18  ;;  %vm27186_vm3 = vnez %v26999_v59  ;;  %v27209_v18 = vld [vmem:[#allocation487_spill] sm:$0xff] }
 0x8e4   : > { %13868 = vmatprep.subr.msk.bf16.mxu1 %vm27133_vm5, %v26984_v0  ;;  %vm27187_vm5 = vnez %v27002_v4  ;;  %v27222_v59 = vld [vmem:[#allocation26_spill] sm:$0xff] }
 0x8e5   : > { %v27224_v4 = vld [vmem:[#allocation511_spill] sm:$0xff] }
 0x8ea   : > { %13846 = vmatpush1.bf16.xpose.msra.mxu0 %v27171_v32  ;;  %v27210_v32 = vld [vmem:[#allocation489_spill] sm:$0xff] }
 0x8eb   : > { %13870 = vmatpush1.bf16.xpose.msk.msra.mxu1 %vm27136_vm0, %v26984_v0  ;;  %13848 = vmatprep.subr.bf16.mxu0 %v27172_v62  ;;  %vm27189_vm0 = vmmov %vm27112_vm10  ;;  %v27211_v62 = vld [vmem:[#allocation495_spill] sm:$0xff] }
 0x8ec   : > { %13872 = vmatprep.subr.msk.bf16.mxu1 %vm27139_vm2, %v26984_v0 }
 0x8f2   : > { %13850 = vmatpush1.bf16.xpose.msra.mxu0 %v27173_v1 }
 0x8f3   : > { %13874 = vmatpush1.bf16.xpose.msk.msra.mxu1 %vm27144_vm13, %v26984_v0  ;;  %13852 = vmatprep.subr.bf16.mxu0 %v27174_v37  ;;  %vm27197_vm13 = vnez %v27196_v3  ;;  %v27234_v3 = vld [vmem:[#allocation520_spill] sm:$0xff] }
 0x8f4   : > { %13876 = vmatprep.subr.msk.bf16.mxu1 %vm27147_vm15, %v26984_v0  ;;  %vm27200_vm15 = vnez %v27199_v26  ;;  %v27237_v26 = vld [vmem:[#allocation522_spill] sm:$0xff] }
 0x8fa   : > { %13854 = vmatpush1.bf16.xpose.msra.mxu0 %v27176_v20 }
 0x8fb   : > { %13878 = vmatpush1.bf16.xpose.msk.msra.mxu1 %vm27150_vm9, %v26984_v0  ;;  %13856 = vmatprep.subr.bf16.mxu0 %v27177_v39  ;;  %vm27202_vm9 = vnez %v27201_v41  ;;  %v27249_v41 = vld [vmem:[#allocation477_spill] sm:$0xff] }
 0x8fc   : > { %v8830_v31 = vpop.f32.mrb[4].mxu1  ;;  %12059 = vmatprep.subr.msk.mxu1 %vm27153_vm6, %v26561_v10  ;;  %vm27235_vm6 = vnez %v27234_v3 }
 0x8fd   : > { %v8832_v30 = vpop.f32.mrb[5].mxu1 }
 0x8fe   : > { %v27214_v30 = vld [vmem:[#allocation537_spill] sm:$0xff] }
 0x902   : > { %13858 = vmatpush1.bf16.xpose.msra.mxu0 %v27178_v33  ;;  %v27219_v33 = vld [vmem:[#allocation505_spill] sm:$0xff] }
 0x903   : > { %12060 = vmatpush1.xpose.msk.msra.mxu1 %vm27155_vm8, %v26561_v10  ;;  %9668 = vmatprep.subr.mxu0 %v27179_v63  ;;  %vm27238_vm8 = vnez %v27237_v26  ;;  %v27289_v26 = vld [vmem:[#allocation540_spill] sm:$0xff] }
 0x904   : > { %v8670_v43 = vpop.f32.mrb[4].mxu0  ;;  %13900 = vmatprep.subr.bf16.mxu1 %v21984_v51  ;;  %v27183_v51 = vld [vmem:[#allocation530_spill] sm:$0xff] }
 0x905   : > { %v8831_v49 = vadd.f32 %v8830_v31, %v8670_v43  ;;  %v8672_v40 = vpop.f32.mrb[5].mxu0  ;;  %v27225_v43 = vld [vmem:[#allocation513_spill] sm:$0xff] }
 0x906   : > { %9789 = vmatmul.mubr.f32.vlgmr.msra.gmra.mrb[14].mxu1 %v22770_v19 }
 0x907   : > { %13902 = vmatpush1.bf16.xpose.msra.mxu1 %v21988_v60  ;;  %10027 = vmatprep.mubr.f32.mxu1 %v22881_v52  ;;  %v27184_v60 = vld [vmem:[#allocation532_spill] sm:$0xff] }
 0x908   : > { %13904 = vmatprep.subr.bf16.mxu1 %v22032_v17  ;;  %v27188_v17 = vld [vmem:[#allocation23_spill] sm:$0xff] }
 0x90a   : > { %9671 = vmatpush1.xpose.msra.mxu0 %v27180_v44  ;;  %v27226_v44 = vld [vmem:[#allocation515_spill] sm:$0xff] }
 0x90b   : > { %13880 = vmatprep.subr.msk.bf16.mxu0 %vm27181_vm11, %v26984_v0 }
 0x90d   : > { %9717 = vmatmul.mubr.f32.vlgmr.msra.gmra.mrb[14].mxu0 %v22770_v19 }
 0x90e   : > { %13882 = vmatpush1.bf16.xpose.msk.msra.mxu0 %vm27182_vm4, %v26984_v0  ;;  %9863 = vmatprep.mubr.f32.mxu0 %v9862_v47  ;;  %v27227_v47 = vld [vmem:[#allocation539_spill] sm:$0xff] }
 0x90f   : > { %13906 = vmatpush1.bf16.xpose.msra.mxu1 %v27183_v51  ;;  %13884 = vmatprep.subr.msk.bf16.mxu0 %vm27039_vm1, %v26984_v0 }
 0x910   : > { %13908 = vmatprep.subr.bf16.mxu1 %v27184_v60  ;;  %v27228_v60 = vld [vmem:[#allocation526_spill] sm:$0xff] }
 0x916   : > { %13886 = vmatpush1.bf16.xpose.msk.msra.mxu0 %vm27041_vm7, %v26984_v0 }
 0x917   : > { %13910 = vmatpush1.bf16.xpose.msra.mxu1 %v22111_v24  ;;  %13888 = vmatprep.subr.msk.bf16.mxu0 %vm27185_vm14, %v26984_v0  ;;  %v8564_v24 = vrot.slane %v22613_v5, %v27188_v17 }
 0x918   : > { %13912 = vmatprep.subr.bf16.mxu1 %v22120_v14  ;;  %v27190_v14 = vld [vmem:[#allocation478_spill] sm:$0xff] }
 0x919   : > { %v8589_v19 = vsel %vm27189_vm0, %v8564_v24, 0.0  ;;  %vm27191_vm2 = vnez %v27190_v14  ;;  %v27229_v14 = vld [vmem:[#allocation527_spill] sm:$0xff] }
 0x91a   : > { %v22934_v48 = vand.u32 4294901760, %v8589_v19 }
 0x91c   : > { %v9865_v58 = vsub.f32 %v8589_v19, %v22934_v48 }
 0x91e   : > { %13890 = vmatpush1.bf16.xpose.msk.msra.mxu0 %vm27186_vm3, %v26984_v0  ;;  %v9866_v54 = vand.u32 4294901760, %v9865_v58 }
 0x91f   : > { %13914 = vmatpush1.bf16.xpose.msra.mxu1 %v22172_v6  ;;  %13892 = vmatprep.subr.msk.bf16.mxu0 %vm27187_vm5, %v26984_v0  ;;  %v27193_v6 = vld [vmem:[#allocation480_spill] sm:$0xff] }
 0x920   : > { %13916 = vmatprep.subr.bf16.mxu1 %v22176_v34  ;;  %vm27194_vm12 = vnez %v27193_v6  ;;  %v27195_v34 = vld [vmem:[#allocation547_spill] sm:$0xff]  ;;  %v9867_v21 = vsub.f32 %v9865_v58, %v9866_v54  ;;  %v27230_v6 = vld [vmem:[#allocation492_spill] sm:$0xff] }
 0x922   : > { %v9868_v50 = vand.u32 4294901760, %v9867_v21  ;;  %v27246_v21 = vld [vmem:[#allocation475_spill] sm:$0xff] }
 0x926   : > { %13894 = vmatpush1.bf16.xpose.msk.msra.mxu0 %vm27191_vm2, %v26984_v0 }
 0x927   : > { %13918 = vmatpush1.bf16.xpose.msra.mxu1 %v27192_v11  ;;  %13896 = vmatprep.subr.msk.bf16.mxu0 %vm27194_vm12, %v26984_v0 }
 0x928   : > { %v9002_v8 = vpop.f32.mrb[6].mxu1  ;;  %9978 = vmatprep.subr.mxu1 %v27195_v34  ;;  %v27231_v34 = vld [vmem:[#allocation542_spill] sm:$0xff] }
 0x929   : > { %v9004_v35 = vpop.f32.mrb[7].mxu1 }
 0x92a   : > { %v27232_v35 = vld [vmem:[#allocation518_spill] sm:$0xff] }
 0x92e   : > { %13898 = vmatpush1.bf16.xpose.msk.msra.mxu0 %vm27197_vm13, %v26984_v0 }
 0x92f   : > { %9983 = vmatpush1.xpose.msra.mxu1 %v27198_v16  ;;  %12081 = vmatprep.subr.msk.mxu0 %vm27200_vm15, %v26561_v10  ;;  %v27236_v16 = vld [vmem:[#allocation531_spill] sm:$0xff] }
 0x930   : > { %v8926_v15 = vpop.f32.mrb[6].mxu0  ;;  %13940 = vmatprep.subr.msk.bf16.mxu1 %vm27181_vm11, %v26984_v0 }
 0x931   : > { %v8927_v61 = vadd.f32 %v8926_v15, %v8831_v49  ;;  %v8928_v29 = vpop.f32.mrb[7].mxu0  ;;  %v27240_v15 = vld [vmem:[#allocation524_spill] sm:$0xff] }
 0x932   : > { %10029 = vmatmul.mubr.f32.vlgmr.msra.gmra.mrb[16].mxu1 %v22934_v48  ;;  %vm27241_vm10 = vnez %v27240_v15  ;;  %v27245_v29 = vld [vmem:[#allocation536_spill] sm:$0xff] }
 0x933   : > { %13942 = vmatpush1.bf16.xpose.msk.msra.mxu1 %vm27182_vm4, %v26984_v0  ;;  %10197 = vmatprep.mubr.f32.mxu1 %v9860_v57  ;;  %v9003_v45 = vadd.f32 %v9002_v8, %v8927_v61  ;;  %v27242_v61 = vld [vmem:[#allocation533_spill] sm:$0xff] }
 0x934   : > { %13944 = vmatprep.subr.msk.bf16.mxu1 %vm27039_vm1, %v26984_v0 }
 0x936   : > { %12082 = vmatpush1.xpose.msk.msra.mxu0 %vm27202_vm9, %v26561_v10 }
 0x937   : > { %13920 = vmatprep.subr.bf16.mxu0 %v27203_v9  ;;  %v27252_v9 = vld [vmem:[#allocation25_spill] sm:$0xff] }
 0x939   : > { %9869 = vmatmul.mubr.f32.vlgmr.msra.gmra.mrb[16].mxu0 %v9868_v50  ;;  %v27251_v50 = vld [vmem:[#allocation544_spill] sm:$0xff] }
 0x93a   : > { %13922 = vmatpush1.bf16.xpose.msra.mxu0 %v27204_v23  ;;  %10122 = vmatprep.mubr.f32.mxu0 %v9859_v38  ;;  %v27215_v38 = vld [vmem:[#allocation490_spill] sm:$0xff]  ;;  %v8572_v23 = vrot.slane %v22613_v5, %v27252_v9 }
 0x93b   : > { %13946 = vmatpush1.bf16.xpose.msk.msra.mxu1 %vm27041_vm7, %v26984_v0  ;;  %13924 = vmatprep.subr.bf16.mxu0 %v27205_v2 }
 0x93c   : > { %13948 = vmatprep.subr.msk.bf16.mxu1 %vm27185_vm14, %v26984_v0 }
 0x942   : > { %13926 = vmatpush1.bf16.xpose.msra.mxu0 %v27206_v46  ;;  %v27254_v46 = vld [vmem:[#allocation479_spill] sm:$0xff] }
 0x943   : > { %13950 = vmatpush1.bf16.xpose.msk.msra.mxu1 %vm27186_vm3, %v26984_v0  ;;  %13928 = vmatprep.subr.bf16.mxu0 %v27207_v36  ;;  %v27256_v36 = vld [vmem:[#allocation546_spill] sm:$0xff] }
 0x944   : > { %13952 = vmatprep.subr.msk.bf16.mxu1 %vm27187_vm5, %v26984_v0 }
 0x94a   : > { %13930 = vmatpush1.bf16.xpose.msra.mxu0 %v27208_v12  ;;  %v27257_v12 = vld [vmem:[#allocation481_spill] sm:$0xff] }
 0x94b   : > { %13954 = vmatpush1.bf16.xpose.msk.msra.mxu1 %vm27191_vm2, %v26984_v0  ;;  %13932 = vmatprep.subr.bf16.mxu0 %v27209_v18 }
 0x94c   : > { %13956 = vmatprep.subr.msk.bf16.mxu1 %vm27194_vm12, %v26984_v0 }
 0x952   : > { %13934 = vmatpush1.bf16.xpose.msra.mxu0 %v27210_v32  ;;  %v27259_v32 = vld [vmem:[#allocation548_spill] sm:$0xff] }
 0x953   : > { %13958 = vmatpush1.bf16.xpose.msk.msra.mxu1 %vm27197_vm13, %v26984_v0  ;;  %13936 = vmatprep.subr.bf16.mxu0 %v27211_v62 }
 0x954   : > { %12103 = vmatprep.subr.msk.mxu1 %vm27200_vm15, %v26561_v10 }
 0x955   : > { %v9190_v1 = vpop.f32.mrb[8].mxu1 }
 0x956   : > { %v9192_v37 = vpop.f32.mrb[9].mxu1 }
 0x957   : > { %v27262_v37 = vld [vmem:[#allocation550_spill] sm:$0xff] }
 0x95a   : > { %13938 = vmatpush1.bf16.xpose.msra.mxu0 %v27212_v55  ;;  %v27263_v55 = vld [vmem:[#allocation200_spill] sm:$0xff] }
 0x95b   : > { %12104 = vmatpush1.xpose.msk.msra.mxu1 %vm27202_vm9, %v26561_v10  ;;  %10075 = vmatprep.subr.mxu0 %v27213_v27 }
 0x95c   : > { %v9118_v22 = vpop.f32.mrb[8].mxu0  ;;  %13980 = vmatprep.subr.msk.bf16.mxu1 %vm27181_vm11, %v26984_v0 }
 0x95d   : > { %v9119_v20 = vadd.f32 %v9118_v22, %v9003_v45  ;;  %v9120_v39 = vpop.f32.mrb[9].mxu0  ;;  %v27248_v45 = vld [vmem:[#allocation541_spill] sm:$0xff] }
 0x95e   : > { %10201 = vmatmul.mubr.f32.vlgmr.msra.gmra.mrb[18].mxu1 %v9866_v54  ;;  %v27239_v54 = vld [vmem:[#allocation425_spill] sm:$0xff] }
 0x95f   : > { %13982 = vmatpush1.bf16.xpose.msk.msra.mxu1 %vm27182_vm4, %v26984_v0  ;;  %10387 = vmatprep.mubr.f32.mxu1 %v22881_v52  ;;  %v9191_v31 = vadd.f32 %v9190_v1, %v9119_v20  ;;  %vm27247_vm4 = vnez %v27246_v21 }
 0x960   : > { %13984 = vmatprep.subr.msk.bf16.mxu1 %vm27039_vm1, %v26984_v0  ;;  %vm27233_vm1 = vnez %v27232_v35  ;;  %v27287_v35 = vld [vmem:[#allocation514_spill] sm:$0xff] }
 0x962   : > { %10077 = vmatpush1.xpose.msra.mxu0 %v27214_v30 }
 0x963   : > { %13960 = vmatprep.subr.bf16.mxu0 %v27215_v38  ;;  %v27265_v38 = vld [vmem:[#allocation198_spill] sm:$0xff] }
 0x965   : > { %10125 = vmatmul.mubr.f32.vlgmr.msra.gmra.mrb[18].mxu0 %v9865_v58 }
 0x966   : > { %13962 = vmatpush1.bf16.xpose.msra.mxu0 %v27216_v56  ;;  %10315 = vmatprep.mubr.f32.mxu0 %v22881_v52  ;;  %v8576_v52 = vrot.slane %v22613_v5, %v27222_v59  ;;  %v27272_v59 = vld [vmem:[#allocation486_spill] sm:$0xff] }
 0x967   : > { %13986 = vmatpush1.bf16.xpose.msk.msra.mxu1 %vm27041_vm7, %v26984_v0  ;;  %13964 = vmatprep.subr.bf16.mxu0 %v27217_v13  ;;  %vm27223_vm7 = vmmov %vm27189_vm0  ;;  %v27267_v13 = vld [vmem:[#allocation552_spill] sm:$0xff] }
 0x968   : > { %13988 = vmatprep.subr.msk.bf16.mxu1 %vm27185_vm14, %v26984_v0  ;;  %v8592_v63 = vsel %vm27223_vm7, %v8576_v52, 0.0  ;;  %vm27250_vm14 = vnez %v27249_v41  ;;  %v27273_v52 = vld [vmem:[#allocation488_spill] sm:$0xff]  ;;  %vm27292_vm7 = vcmask 719872  }
 0x969   : > { %v23045_v57 = vand.u32 4294901760, %v8592_v63 }
 0x96b   : > { %v10459_v42 = vsub.f32 %v8592_v63, %v23045_v57  ;;  %v27274_v63 = vld [vmem:[#allocation494_spill] sm:$0xff] }
 0x96d   : > { %v10460_v17 = vand.u32 4294901760, %v10459_v42 }
 0x96e   : > { %13966 = vmatpush1.bf16.xpose.msra.mxu0 %v27218_v28  ;;  %v27268_v28 = vld [vmem:[#allocation554_spill] sm:$0xff] }
 0x96f   : > { %13990 = vmatpush1.bf16.xpose.msk.msra.mxu1 %vm27186_vm3, %v26984_v0  ;;  %13968 = vmatprep.subr.bf16.mxu0 %v27219_v33  ;;  %v10461_v8 = vsub.f32 %v10459_v42, %v10460_v17  ;;  %vm27253_vm3 = vmmov %vm27189_vm0  ;;  %vm27258_vm0 = vnez %v27257_v12  ;;  %v27269_v33 = vld [vmem:[#allocation556_spill] sm:$0xff] }
 0x970   : > { %13992 = vmatprep.subr.msk.bf16.mxu1 %vm27187_vm5, %v26984_v0  ;;  %v8591_v2 = vsel %vm27253_vm3, %v8572_v23, 0.0  ;;  %vm27255_vm5 = vnez %v27254_v46 }
 0x971   : > { %v10462_v58 = vand.u32 4294901760, %v10461_v8  ;;  %v23098_v18 = vand.u32 4294901760, %v8591_v2  ;;  %v27285_v8 = vld [vmem:[#allocation510_spill] sm:$0xff] }
 0x973   : > { %v10465_v5 = vsub.f32 %v8591_v2, %v23098_v18 }
 0x975   : > { %v10466_v27 = vand.u32 4294901760, %v10465_v5 }
 0x976   : > { %13970 = vmatpush1.bf16.xpose.msra.mxu0 %v27220_v25  ;;  %v27270_v25 = vld [vmem:[#allocation482_spill] sm:$0xff] }
 0x977   : > { %13994 = vmatpush1.bf16.xpose.msk.msra.mxu1 %vm27191_vm2, %v26984_v0  ;;  %13972 = vmatprep.subr.bf16.mxu0 %v27221_v7  ;;  %vm27261_vm2 = vnez %v27260_v53  ;;  %v27271_v7 = vld [vmem:[#allocation484_spill] sm:$0xff] }
 0x978   : > { %13996 = vmatprep.subr.msk.bf16.mxu1 %vm27194_vm12, %v26984_v0  ;;  %vm27264_vm12 = vnez %v27263_v55 }
 0x97e   : > { %13974 = vmatpush1.bf16.xpose.msra.mxu0 %v27224_v4  ;;  %v27275_v4 = vld [vmem:[#allocation497_spill] sm:$0xff] }
 0x97f   : > { %13998 = vmatpush1.bf16.xpose.msk.msra.mxu1 %vm27197_vm13, %v26984_v0  ;;  %13976 = vmatprep.subr.bf16.mxu0 %v27225_v43  ;;  %vm27266_vm13 = vnez %v27265_v38 }
 0x980   : > { %12125 = vmatprep.subr.msk.mxu1 %vm27200_vm15, %v26561_v10 }
 0x981   : > { %v9430_v49 = vpop.f32.mrb[10].mxu1 }
 0x982   : > { %v9432_v40 = vpop.f32.mrb[11].mxu1 }
 0x983   : > { %v27276_v40 = vld [vmem:[#allocation499_spill] sm:$0xff] }
 0x986   : > { %13978 = vmatpush1.bf16.xpose.msra.mxu0 %v27226_v44 }
 0x987   : > { %12126 = vmatpush1.xpose.msk.msra.mxu1 %vm27202_vm9, %v26561_v10  ;;  %10268 = vmatprep.subr.mxu0 %v27227_v47 }
 0x988   : > { %v9270_v51 = vpop.f32.mrb[10].mxu0  ;;  %14020 = vmatprep.subr.bf16.mxu1 %v27228_v60 }
 0x989   : > { %v9271_v24 = vadd.f32 %v9270_v51, %v9191_v31  ;;  %v9272_v19 = vpop.f32.mrb[11].mxu0  ;;  %v10467_v31 = vsub.f32 %v10465_v5, %v10466_v27 }
 0x98a   : > { %10389 = vmatmul.mubr.f32.vlgmr.msra.gmra.mrb[20].mxu1 %v22934_v48  ;;  %v27280_v19 = vld [vmem:[#allocation496_spill] sm:$0xff] }
 0x98b   : > { %14022 = vmatpush1.bf16.xpose.msra.mxu1 %v27229_v14  ;;  %10627 = vmatprep.mubr.f32.mxu1 %v23045_v57  ;;  %v9431_v11 = vadd.f32 %v9430_v49, %v9271_v24  ;;  %v10468_v56 = vand.u32 4294901760, %v10467_v31  ;;  %v27279_v24 = vld [vmem:[#allocation491_spill] sm:$0xff]  ;;  %v27281_v14 = vld [vmem:[#allocation502_spill] sm:$0xff] }
 0x98c   : > { %14024 = vmatprep.subr.bf16.mxu1 %v27230_v6  ;;  %v27283_v6 = vld [vmem:[#allocation506_spill] sm:$0xff] }
 0x98e   : > { %10271 = vmatpush1.xpose.msra.mxu0 %v27231_v34  ;;  %v27286_v34 = vld [vmem:[#allocation512_spill] sm:$0xff] }
 0x98f   : > { %14000 = vmatprep.subr.msk.bf16.mxu0 %vm27233_vm1, %v26984_v0 }
 0x991   : > { %10317 = vmatmul.mubr.f32.vlgmr.msra.gmra.mrb[20].mxu0 %v22934_v48  ;;  %v27243_v48 = vld [vmem:[#allocation473_spill] sm:$0xff] }
 0x992   : > { %14002 = vmatpush1.bf16.xpose.msk.msra.mxu0 %vm27235_vm6, %v26984_v0  ;;  %10463 = vmatprep.mubr.f32.mxu0 %v10462_v58  ;;  %vm27244_vm11 = vnez %v27243_v48  ;;  %v27290_v48 = vld [vmem:[#allocation543_spill] sm:$0xff] }
 0x993   : > { %14026 = vmatpush1.bf16.xpose.msra.mxu1 %v27236_v16  ;;  %14004 = vmatprep.subr.msk.bf16.mxu0 %vm27238_vm8, %v26984_v0  ;;  %v27288_v16 = vld [vmem:[#allocation516_spill] sm:$0xff] }
 0x994   : > { %14028 = vmatprep.subr.bf16.mxu1 %v27239_v54 }
 0x99a   : > { %14006 = vmatpush1.bf16.xpose.msk.msra.mxu0 %vm27241_vm10, %v26984_v0 }
 0x99b   : > { %14030 = vmatpush1.bf16.xpose.msra.mxu1 %v27242_v61  ;;  %14008 = vmatprep.subr.msk.bf16.mxu0 %vm27244_vm11, %v26984_v0 }
 0x99c   : > { %14032 = vmatprep.subr.bf16.mxu1 %v27245_v29 }
 0x9a2   : > { %14010 = vmatpush1.bf16.xpose.msk.msra.mxu0 %vm27247_vm4, %v26984_v0 }
 0x9a3   : > { %14034 = vmatpush1.bf16.xpose.msra.mxu1 %v27248_v45  ;;  %14012 = vmatprep.subr.msk.bf16.mxu0 %vm27250_vm14, %v26984_v0 }
 0x9a4   : > { %14036 = vmatprep.subr.bf16.mxu1 %v27251_v50 }
 0x9aa   : > { %14014 = vmatpush1.bf16.xpose.msk.msra.mxu0 %vm27255_vm5, %v26984_v0 }
 0x9ab   : > { %14038 = vmatpush1.bf16.xpose.msra.mxu1 %v27256_v36  ;;  %14016 = vmatprep.subr.msk.bf16.mxu0 %vm27258_vm0, %v26984_v0 }
 0x9ac   : > { %10578 = vmatprep.subr.mxu1 %v27259_v32 }
 0x9ad   : > { %v9602_v62 = vpop.f32.mrb[12].mxu1 }
 0x9ae   : > { %v9604_v1 = vpop.f32.mrb[13].mxu1 }
 0x9b2   : > { %14018 = vmatpush1.bf16.xpose.msk.msra.mxu0 %vm27261_vm2, %v26984_v0 }
 0x9b3   : > { %10583 = vmatpush1.xpose.msra.mxu1 %v27262_v37  ;;  %12147 = vmatprep.subr.msk.mxu0 %vm27264_vm12, %v26561_v10 }
 0x9b4   : > { %v9526_v22 = vpop.f32.mrb[12].mxu0  ;;  %14060 = vmatprep.subr.msk.bf16.mxu1 %vm27233_vm1, %v26984_v0 }
 0x9b5   : > { %v9527_v20 = vadd.f32 %v9526_v22, %v9431_v11  ;;  %v9528_v39 = vpop.f32.mrb[13].mxu0  ;;  %v27282_v11 = vld [vmem:[#allocation504_spill] sm:$0xff] }
 0x9b6   : > { %10629 = vmatmul.mubr.f32.vlgmr.msra.gmra.mrb[22].mxu1 %v23098_v18 }
 0x9b7   : > { %14062 = vmatpush1.bf16.xpose.msk.msra.mxu1 %vm27235_vm6, %v26984_v0  ;;  %10797 = vmatprep.mubr.f32.mxu1 %v10460_v17  ;;  %v9603_v30 = vadd.f32 %v9602_v62, %v9527_v20  ;;  %v27278_v17 = vld [vmem:[#allocation538_spill] sm:$0xff] }
 0x9b8   : > { %14064 = vmatprep.subr.msk.bf16.mxu1 %vm27238_vm8, %v26984_v0 }
 0x9ba   : > { %12148 = vmatpush1.xpose.msk.msra.mxu0 %vm27266_vm13, %v26561_v10 }
 0x9bb   : > { %14040 = vmatprep.subr.bf16.mxu0 %v27267_v13 }
 0x9bd   : > { %10469 = vmatmul.mubr.f32.vlgmr.msra.gmra.mrb[22].mxu0 %v10468_v56 }
 0x9be   : > { %14042 = vmatpush1.bf16.xpose.msra.mxu0 %v27268_v28  ;;  %10722 = vmatprep.mubr.f32.mxu0 %v10459_v42  ;;  %v27277_v42 = vld [vmem:[#allocation535_spill] sm:$0xff]  ;;  %v8593_v28 = vld [vmem:[#allocation3] sm:$0xff] }
 0x9bf   : > { %14066 = vmatpush1.bf16.xpose.msk.msra.mxu1 %vm27241_vm10, %v26984_v0  ;;  %14044 = vmatprep.subr.bf16.mxu0 %v27269_v33  ;;  %v27291_v33 = vld [vmem:[#allocation390_spill] sm:$0xff] }
 0x9c0   : > { %14068 = vmatprep.subr.msk.bf16.mxu1 %vm27244_vm11, %v26984_v0 }
 0x9c6   : > { %14046 = vmatpush1.bf16.xpose.msra.mxu0 %v27270_v25  ;;  %v12193_v25 = vadd.s32 4294967216, %v27291_v33 }
 0x9c7   : > { %14070 = vmatpush1.bf16.xpose.msk.msra.mxu1 %vm27247_vm4, %v26984_v0  ;;  %14048 = vmatprep.subr.bf16.mxu0 %v27271_v7 }
 0x9c8   : > { %14072 = vmatprep.subr.msk.bf16.mxu1 %vm27250_vm14, %v26984_v0  ;;  %vm11000_vm15 = vcmp.ge.s32.totalorder %v12193_v25, 0  ;;  %vm11001_vm9 = vcmp.lt.s32.totalorder %v12193_v25, 2 }
 0x9ce   : > { %14050 = vmatpush1.bf16.xpose.msra.mxu0 %v27272_v59 }
 0x9cf   : > { %14074 = vmatpush1.bf16.xpose.msk.msra.mxu1 %vm27255_vm5, %v26984_v0  ;;  %14052 = vmatprep.subr.bf16.mxu0 %v27273_v52  ;;  %v27293_v52 = vmov 0.0  }
 0x9d0   : > { %14076 = vmatprep.subr.msk.bf16.mxu1 %vm27258_vm0, %v26984_v0 }
 0x9d6   : > { %14054 = vmatpush1.bf16.xpose.msra.mxu0 %v27274_v63 }
 0x9d7   : > { %14078 = vmatpush1.bf16.xpose.msk.msra.mxu1 %vm27261_vm2, %v26984_v0  ;;  %14056 = vmatprep.subr.bf16.mxu0 %v27275_v4 }
 0x9d8   : > { %12169 = vmatprep.subr.msk.mxu1 %vm27264_vm12, %v26561_v10 }
 0x9d9   : > { %v9790_v43 = vpop.f32.mrb[14].mxu1 }
 0x9da   : > { %v9792_v49 = vpop.f32.mrb[15].mxu1 }
 0x9de   : > { %14058 = vmatpush1.bf16.xpose.msra.mxu0 %v27276_v40 }
 0x9df   : > { %12170 = vmatpush1.xpose.msk.msra.mxu1 %vm27266_vm13, %v26561_v10  ;;  %10675 = vmatprep.subr.mxu0 %v27277_v42 }
 0x9e0   : > { %v9718_v44 = vpop.f32.mrb[14].mxu0  ;;  %14100 = vmatprep.subr.msk.bf16.mxu1 %vm27233_vm1, %v26984_v0  ;;  %vm11002_vm1 = vmand %vm11000_vm15, %vm11001_vm9 }
 0x9e1   : > { %v9719_v47 = vadd.f32 %v9718_v44, %v9603_v30  ;;  %v9720_v51 = vpop.f32.mrb[15].mxu0  ;;  %v11003_v63 = vsel %vm11002_vm1, 1.0, %v27293_v52 }
 0x9e2   : > { %10801 = vmatmul.mubr.f32.vlgmr.msra.gmra.mrb[24].mxu1 %v10466_v27 }
 0x9e3   : > { %14102 = vmatpush1.bf16.xpose.msk.msra.mxu1 %vm27235_vm6, %v26984_v0  ;;  %10987 = vmatprep.mubr.f32.mxu1 %v23045_v57  ;;  %v9791_v60 = vadd.f32 %v9790_v43, %v9719_v47  ;;  %vm27294_vm6 = vmmov %vm27292_vm7 }
 0x9e4   : > { %14104 = vmatprep.subr.msk.bf16.mxu1 %vm27238_vm8, %v26984_v0  ;;  %vm11016_vm8 = vcmask 0  }
 0x9e6   : > { %10677 = vmatpush1.xpose.msra.mxu0 %v27278_v17 }
 0x9e7   : > { %14080 = vmatprep.subr.bf16.mxu0 %v27279_v24 }
 0x9e9   : > { %10725 = vmatmul.mubr.f32.vlgmr.msra.gmra.mrb[24].mxu0 %v10465_v5 }
 0x9ea   : > { %14082 = vmatpush1.bf16.xpose.msra.mxu0 %v27280_v19  ;;  %10915 = vmatprep.mubr.f32.mxu0 %v23045_v57  ;;  %v27284_v57 = vld [vmem:[#allocation508_spill] sm:$0xff] }
 0x9eb   : > { %14106 = vmatpush1.bf16.xpose.msk.msra.mxu1 %vm27241_vm10, %v26984_v0  ;;  %14084 = vmatprep.subr.bf16.mxu0 %v27281_v14 }
 0x9ec   : > { %14108 = vmatprep.subr.msk.bf16.mxu1 %vm27244_vm11, %v26984_v0 }
 0x9f2   : > { %14086 = vmatpush1.bf16.xpose.msra.mxu0 %v27282_v11 }
 0x9f3   : > { %14110 = vmatpush1.bf16.xpose.msk.msra.mxu1 %vm27247_vm4, %v26984_v0  ;;  %14088 = vmatprep.subr.bf16.mxu0 %v27283_v6 }
 0x9f4   : > { %14112 = vmatprep.subr.msk.bf16.mxu1 %vm27250_vm14, %v26984_v0 }
 0x9fa   : > { %14090 = vmatpush1.bf16.xpose.msra.mxu0 %v27284_v57 }
 0x9fb   : > { %14114 = vmatpush1.bf16.xpose.msk.msra.mxu1 %vm27255_vm5, %v26984_v0  ;;  %14092 = vmatprep.subr.bf16.mxu0 %v27285_v8 }
 0x9fc   : > { %14116 = vmatprep.subr.msk.bf16.mxu1 %vm27258_vm0, %v26984_v0 }
 0xa02   : > { %14094 = vmatpush1.bf16.xpose.msra.mxu0 %v27286_v34 }
 0xa03   : > { %14118 = vmatpush1.bf16.xpose.msk.msra.mxu1 %vm27261_vm2, %v26984_v0  ;;  %14096 = vmatprep.subr.bf16.mxu0 %v27287_v35 }
 0xa04   : > { %12191 = vmatprep.subr.msk.mxu1 %vm27264_vm12, %v26561_v10 }
 0xa05   : > { %v10030_v58 = vpop.f32.mrb[16].mxu1 }
 0xa06   : > { %v10032_v3 = vpop.f32.mrb[17].mxu1 }
 0xa0a   : > { %14098 = vmatpush1.bf16.xpose.msra.mxu0 %v27288_v16 }
 0xa0b   : > { %12192 = vmatpush1.xpose.msk.msra.mxu1 %vm27266_vm13, %v26561_v10  ;;  %10868 = vmatprep.subr.mxu0 %v27289_v26 }
 0xa0c   : > { %v9870_v54 = vpop.f32.mrb[16].mxu0 }
 0xa0d   : > { %v9871_v15 = vadd.f32 %v9870_v54, %v9791_v60  ;;  %v9872_v61 = vpop.f32.mrb[17].mxu0 }
 0xa0e   : > { %10989 = vmatmul.mubr.f32.vlgmr.msra.gmra.mrb[26].mxu1 %v23098_v18 }
 0xa0f   : > { %v10031_v0 = vadd.f32 %v10030_v58, %v9871_v15 }
 0xa12   : > { %10871 = vmatpush1.xpose.msra.mxu0 %v27290_v48 }
 0xa15   : > { %10917 = vmatmul.mubr.f32.vlgmr.msra.gmra.mrb[26].mxu0 %v23098_v18 }
 0xa31   : > { %v10202_v29 = vpop.f32.mrb[18].mxu1 }
 0xa32   : > { %v10204_v21 = vpop.f32.mrb[19].mxu1 }
 0xa38   : > { %v10126_v45 = vpop.f32.mrb[18].mxu0 }
 0xa39   : > { %v10127_v41 = vadd.f32 %v10126_v45, %v10031_v0  ;;  %v10128_v50 = vpop.f32.mrb[19].mxu0 }
 0xa3b   : > { %v10203_v9 = vadd.f32 %v10202_v29, %v10127_v41 }
 0xa5d   : > { %v10390_v23 = vpop.f32.mrb[20].mxu1 }
 0xa5e   : > { %v10392_v10 = vpop.f32.mrb[21].mxu1 }
 0xa64   : > { %v10318_v2 = vpop.f32.mrb[20].mxu0 }
 0xa65   : > { %v10319_v46 = vadd.f32 %v10318_v2, %v10203_v9  ;;  %v10320_v36 = vpop.f32.mrb[21].mxu0 }
 0xa67   : > { %v10391_v12 = vadd.f32 %v10390_v23, %v10319_v46 }
 0xa89   : > { %v10630_v32 = vpop.f32.mrb[22].mxu1 }
 0xa8a   : > { %v10632_v62 = vpop.f32.mrb[23].mxu1 }
 0xa90   : > { %v10470_v1 = vpop.f32.mrb[22].mxu0 }
 0xa91   : > { %v10471_v5 = vadd.f32 %v10470_v1, %v10391_v12  ;;  %v10472_v53 = vpop.f32.mrb[23].mxu0 }
 0xa93   : > { %v10631_v37 = vadd.f32 %v10630_v32, %v10471_v5 }
 0xab5   : > { %v10802_v55 = vpop.f32.mrb[24].mxu1 }
 0xab6   : > { %v10804_v18 = vpop.f32.mrb[25].mxu1 }
 0xabc   : > { %v10726_v27 = vpop.f32.mrb[24].mxu0 }
 0xabd   : > { %v10727_v22 = vadd.f32 %v10726_v27, %v10631_v37  ;;  %v10728_v20 = vpop.f32.mrb[25].mxu0 }
 0xabf   : > { %v10803_v39 = vadd.f32 %v10802_v55, %v10727_v22 }
 0xae1   : > { %v10990_v31 = vpop.f32.mrb[26].mxu1 }
 0xae2   : > { %v10992_v30 = vpop.f32.mrb[27].mxu1 }
 0xae8   : > { %v10918_v38 = vpop.f32.mrb[26].mxu0 }
 0xae9   : > { %v10919_v56 = vadd.f32 %v10918_v38, %v10803_v39  ;;  %v10920_v13 = vpop.f32.mrb[27].mxu0 }
 0xaeb   : > { %v10991_v7 = vadd.f32 %v10990_v31, %v10919_v56 }
 0xaed   : > { %v10994_v59 = vadd.f32 %v10991_v7, %v8593_v28 }
 0xaef   : > { %10995 = vst.msk [vmem:[#allocation3] sm:$0xff] %vm27292_vm7, %v10994_v59 }
 0xaf6   : > { %v11004_v4 = vld [vmem:[#allocation3] sm:$0xff] }
 0xaf7   : > { %v11005_v43 = vmul.f32 %v11004_v4, %v11003_v63 }
 0xaf9   : > { %v11006_v49 = vsel %vm27294_vm6, %v11005_v43, 0.0 }
 0xafa   : > { %11007 = vadd.xlane.f32.xlu0 %v11006_v49 }
 0xb87   : > { %v11008_v40 = vpop.xlane.xlu0 %11007 }
 0xb88   : > { %v11009_v42 = vrot.slane %v11008_v40, 4 }
 0xb8a   : > { %v11010_v44 = vadd.f32 %v11009_v42, %v11008_v40 }
 0xb8c   : > { %v11011_v47 = vrot.slane %v11010_v44, 2 }
 0xb8e   : > { %v11012_v51 = vadd.f32 %v11011_v47, %v11010_v44 }
 0xb90   : > { %v11013_v60 = vrot.slane %v11012_v51, 1 }
 0xb92   : > { %v11014_v17 = vadd.f32 %v11013_v60, %v11012_v51 }
 0xb94   : > { %v11015_v24 = vmul.f32 0.5, %v11014_v17 }
 0xb96   : > { %11017 = vst.msk [vmem:[#allocation12] sm:$0x1] %vm11016_vm8, %v11015_v24 }
 0xb97 PF: > { %p23219_p9 = scmp.eq.s32.totalorder %s11122_s26, 1  ;;  %s14515_s9 = smov [#allocation12]  }
 0xb98   : > { %s11025_s25 = sshll.u32 %s14515_s9, 4  ;;  %s11026_s25 = int_to_ptr.vmem [resolvable:$true] %s11025_s25 }
 0xb99   : > { %s14436_s7 = scalar_lea.vmem %s11026_s25, 16  ;;  %s14442_s16 = scalar_lea.vmem %s11026_s25, 32 }
 0xb9a   : > { %p14437_p10 = scmp.ne.s32.totalorder %s11026_s25, %s14436_s7  ;;  %p14443_p13 = scmp.lt.s32.totalorder %s11026_s25, %s11026_s25 }
 0xb9b   : > { %p14444_p0 = scmp.lt.s32.totalorder %s14442_s16, %s14436_s7 }
 0xb9c   : > { %p14438_p11 = pnand %p14437_p10, %p23219_p9 }
 0xb9d   : > { %p14445_p1 = por %p14444_p0, %p14443_p13 }
 0xb9e   : > { %p14439_p12 = pneg %p14438_p11 }
 0xba0   : > { %p14446_p4 = pnand %p14445_p1, %p14439_p12 }
 0xba2   : > { %14449 = shalt.err (!%p14446_p4)
}
 0xba3   : > { %s14450_s19 = scalar_lea.hbm %s23260_s6, 16 }
 0xba4   : > { %p14451_p7 = scmp.ne.s32.totalorder %s23260_s6, %s14450_s19  ;;  %p14456_p5 = scmp.lt.u32.totalorder %s14450_s19, %s23260_s6 }
 0xba6   : > { %p14452_p2 = pnand %p14451_p7, %p23219_p9 }
 0xba8   : > { %p14453_p3 = pneg %p14452_p2 }
 0xbaa   : > { %p14458_p8 = pnand %p14456_p5, %p14453_p3 }
 0xbac   : > { %14461 = shalt.err (!%p14458_p8)
}
 0xbad   : > { %14216 = dma.vmem_to_hbm [thread:$0]  (%p23219_p9), %s11026_s25, 16, %s23260_s6, [#allocation6]  }
 0xbae   : > { %14487 = dma.done.wait (%p23219_p9), [#allocation6], 16  }
 0xbaf   : > { %14489 = vsyncadd (%p23219_p9), [#allocation6], 4294967280 }
 0xbb0 PF: > { %s20_s23 = sadd.s32 1, %s14500_s23   ;;  %s27296_s21 = smov %s14496_s22 }
 0xbb1   : > { %p17_p6 = scmp.ge.s32.totalorder %s20_s23, 4   ;;  %s27297_s22 = smov %s27299_s29 }
 0xbb3   :  { %19 = sbr.rel (!%p17_p6) target bundleno = 5 (0x5), region = 108 }
 0xbba   :  { %11038 = vsyncpa [#allocation5], 1 }
 0xbbb   :  { %11040 = vsyncpa [#allocation5 + $0x1], 1 }
 0xbbc   :  { %11041 = vsyncpa [#allocation8], 1 }
 0xbbd   :  { %11042 = vsyncpa [#allocation11], 1 }
 0xbbe   :  { %11043 = vsyncpa [#allocation6], 1 }
 0xbbf   :  { %11045 = vsyncpa [#allocation6 + $0x1], 1 }

</bundles_post_ra>
